<compile_context>
chip_gen: v6e
topology: v6e:2x2x1
jax: 0.10.0
libtpu: 0.0.40
codegen_flags: <defaults>
</compile_context>

<pallas_src>
import functools
import math

import numpy as np

import jax
import jax.numpy as jnp
from jax.experimental import pallas as pl
from jax.experimental.pallas import tpu as pltpu

ACT = jnp.bfloat16  # activation dtype between kernels (MXU-friendly)


# ----------------------------------------------------------------------------
# small helpers
# ----------------------------------------------------------------------------
def _ln(z, g, b):
    """Row-wise LayerNorm (eps=1e-5, biased variance) in f32."""
    mu = jnp.mean(z, axis=-1, keepdims=True)
    var = jnp.mean(jnp.square(z - mu), axis=-1, keepdims=True)
    return (z - mu) * jax.lax.rsqrt(var + 1e-5) * g + b


def _tile(dim, cap, align):
    """Largest `align`-multiple divisor of dim that is <= cap, else full dim."""
    if dim <= cap:
        return dim
    t = (cap // align) * align
    while t >= align:
        if dim % t == 0:
            return t
        t -= align
    return dim


def _est_bytes(specs):
    return sum(int(np.prod(s)) * jnp.dtype(d).itemsize for s, d in specs)


def _mosaic_params(dim_sem, specs):
    """CompilerParams with an explicit VMEM limit sized from block footprints.

    2x for the double-buffered pipeline + 8 MiB headroom for compiler temporaries,
    clamped to [16 MiB, 64 MiB] (64 MiB = v7x physical ceiling; <= 128 MiB on v5e/v6e).
    """
    est = _est_bytes(specs)
    limit = int(min(max(2 * est + (8 << 20), 16 << 20), 64 << 20))
    return pltpu.CompilerParams(dimension_semantics=tuple(dim_sem),
                                vmem_limit_bytes=limit)


@functools.lru_cache(maxsize=None)
def _pos_encoding(T, D):
    pos = np.arange(T, dtype=np.float32)[:, None]
    i = np.arange(D)
    angle = pos / np.power(10000.0, (2 * (i // 2)).astype(np.float32) / D)[None, :]
    pe = np.where(i % 2 == 0, np.sin(angle), np.cos(angle)).astype(np.float32)
    return jnp.asarray(pe)[None]  # (1, T, D)


# ----------------------------------------------------------------------------
# tiled matmul + bias kernel (QKV projection, decoder input projection)
# ----------------------------------------------------------------------------
def _matmul_kernel(x_ref, w_ref, b_ref, o_ref, acc_ref, *, n_k):
    @pl.when(pl.program_id(2) == 0)
    def _():
        acc_ref[...] = jnp.zeros_like(acc_ref)

    acc_ref[...] += jnp.dot(x_ref[...], w_ref[...],
                            preferred_element_type=jnp.float32)

    @pl.when(pl.program_id(2) == n_k - 1)
    def _():
        o_ref[...] = (acc_ref[...] + b_ref[...]).astype(o_ref.dtype)


def pallas_matmul(x, w, b, out_dtype=jnp.float32):
    """x: (M, K) bf16, w: (K, N) bf16, b: (1, N) f32 -> (M, N) out_dtype."""
    M, K = x.shape
    N = w.shape[1]
    tm = _tile(M, 512, 16)     # 16-row multiple matches bf16 (16,128) packing
    tn = _tile(N, 512, 128)    # lane-dense, unmasked stores
    tk = _tile(K, 512, 128)
    n_k = K // tk
    params = _mosaic_params(
        ("parallel", "parallel", "arbitrary"),
        [((tm, tk), x.dtype), ((tk, tn), w.dtype), ((1, tn), jnp.float32),
         ((tm, tn), out_dtype), ((tm, tn), jnp.float32)])
    return pl.pallas_call(
        functools.partial(_matmul_kernel, n_k=n_k),
        out_shape=jax.ShapeDtypeStruct((M, N), out_dtype),
        grid=(M // tm, N // tn, n_k),
        in_specs=[
            pl.BlockSpec((tm, tk), lambda i, j, kk: (i, kk)),
            pl.BlockSpec((tk, tn), lambda i, j, kk: (kk, j)),
            pl.BlockSpec((1, tn), lambda i, j, kk: (0, j)),
        ],
        out_specs=pl.BlockSpec((tm, tn), lambda i, j, kk: (i, j)),
        scratch_shapes=[pltpu.VMEM((tm, tn), jnp.float32)],
        compiler_params=params,
    )(x, w, b)


# ----------------------------------------------------------------------------
# flash-style self-attention (online softmax, head-major, kv-tiled)
# ----------------------------------------------------------------------------
def _flash_attn_kernel(q_ref, k_ref, v_ref, m_ref, o_ref,
                       m_sc, l_sc, acc_sc, *, scale):
    ki = pl.program_id(3)

    @pl.when(ki == 0)
    def _():
        m_sc[...] = jnp.full_like(m_sc, -1e30)
        l_sc[...] = jnp.zeros_like(l_sc)
        acc_sc[...] = jnp.zeros_like(acc_sc)

    q = q_ref[0, 0]                                            # (tq, dh) bf16
    k = k_ref[0, 0]                                            # (tkv, dh) bf16
    v = v_ref[0, 0]                                            # (tkv, dh) bf16
    km = m_ref[0, 0]                                           # (1, tkv) f32 key mask

    s = jax.lax.dot_general(q, k, (((1,), (1,)), ((), ())),
                            preferred_element_type=jnp.float32) * scale
    s = jnp.where(km > 0.5, s, -1e9)

    m_prev = m_sc[...]
    m_new = jnp.maximum(m_prev, jnp.max(s, axis=-1, keepdims=True))
    alpha = jnp.exp(m_prev - m_new)
    p = jnp.exp(s - m_new)
    l_sc[...] = alpha * l_sc[...] + jnp.sum(p, axis=-1, keepdims=True)
    acc_sc[...] = alpha * acc_sc[...] + jnp.dot(p.astype(ACT), v,
                                                preferred_element_type=jnp.float32)
    m_sc[...] = m_new

    @pl.when(ki == pl.num_programs(3) - 1)
    def _():
        o_ref[0, 0] = (acc_sc[...] *
                       pl.reciprocal(l_sc[...], approx=True)).astype(o_ref.dtype)


def flash_attention(q, k, v, km, scale):
    """q/k/v: (B, H, T, dh) bf16, km: (B, 1, 1, T) f32 -> context (B, H, T, dh) bf16."""
    B, H, T, dh = q.shape
    tq = _tile(T, 256, 8)
    tkv = _tile(T, 512, 128)
    params = _mosaic_params(
        ("parallel", "parallel", "parallel", "arbitrary"),
        [((tq, dh), ACT), ((tkv, dh), ACT), ((tkv, dh), ACT), ((1, tkv), jnp.float32),
         ((tq, dh), ACT), ((tq, tkv), jnp.float32), ((tq, dh), jnp.float32)])
    return pl.pallas_call(
        functools.partial(_flash_attn_kernel, scale=scale),
        out_shape=jax.ShapeDtypeStruct((B, H, T, dh), ACT),
        grid=(B, H, T // tq, T // tkv),
        in_specs=[
            pl.BlockSpec((1, 1, tq, dh), lambda b, hh, qi, ki: (b, hh, qi, 0)),
            pl.BlockSpec((1, 1, tkv, dh), lambda b, hh, qi, ki: (b, hh, ki, 0)),
            pl.BlockSpec((1, 1, tkv, dh), lambda b, hh, qi, ki: (b, hh, ki, 0)),
            pl.BlockSpec((1, 1, 1, tkv), lambda b, hh, qi, ki: (b, 0, 0, ki)),
        ],
        out_specs=pl.BlockSpec((1, 1, tq, dh), lambda b, hh, qi, ki: (b, hh, qi, 0)),
        scratch_shapes=[pltpu.VMEM((tq, 1), jnp.float32),
                        pltpu.VMEM((tq, 1), jnp.float32),
                        pltpu.VMEM((tq, dh), jnp.float32)],
        compiler_params=params,
    )(q, k, v, km)


def _attn_probs_kernel(q_ref, k_ref, m_ref, p_ref, *, scale):
    q = q_ref[0, 0]                                            # (tq, dh)
    k = k_ref[0, 0]                                            # (T, dh)
    km = m_ref[0, 0]                                           # (1, T)
    s = jax.lax.dot_general(q, k, (((1,), (1,)), ((), ())),
                            preferred_element_type=jnp.float32) * scale
    s = jnp.where(km > 0.5, s, -1e9)
    s = s - jnp.max(s, axis=-1, keepdims=True)
    e = jnp.exp(s)
    p_ref[0, 0] = (e / jnp.sum(e, axis=-1, keepdims=True)).astype(p_ref.dtype)


def attention_probs(q, k, km, scale):
    """Attention maps for the last layer only (bf16).  Recomputes scores once."""
    B, H, T, dh = q.shape
    tq = _tile(T, 256, 8)
    params = _mosaic_params(
        ("parallel", "parallel", "parallel"),
        [((tq, dh), ACT), ((T, dh), ACT), ((1, T), jnp.float32),
         ((tq, T), jnp.float32), ((tq, T), ACT)])
    return pl.pallas_call(
        functools.partial(_attn_probs_kernel, scale=scale),
        out_shape=jax.ShapeDtypeStruct((B, H, T, T), ACT),
        grid=(B, H, T // tq),
        in_specs=[
            pl.BlockSpec((1, 1, tq, dh), lambda b, hh, qi: (b, hh, qi, 0)),
            pl.BlockSpec((1, 1, T, dh), lambda b, hh, qi: (b, hh, 0, 0)),
            pl.BlockSpec((1, 1, 1, T), lambda b, hh, qi: (b, 0, 0, 0)),
        ],
        out_specs=pl.BlockSpec((1, 1, tq, T), lambda b, hh, qi: (b, hh, qi, 0)),
        compiler_params=params,
    )(q, k, km)


def _attn_out_kernel(ctx_ref, x_ref, wo_ref, bo_ref, g_ref, b_ref, o_ref, *, n_head):
    # Output projection (sum over heads) + residual + LayerNorm.
    # Per-head temporaries here are only (tq, D) -- no (T, T) live ranges.
    x = x_ref[0]                                               # (tq, D) bf16
    y = bo_ref[...] + x.astype(jnp.float32)
    for hh in range(n_head):
        y = y + jnp.dot(ctx_ref[0, hh], wo_ref[hh],
                        preferred_element_type=jnp.float32)
    o_ref[0] = _ln(y, g_ref[...], b_ref[...]).astype(o_ref.dtype)


def attn_output_block(ctx, x, wo, bo, g, b):
    """ctx: (B, H, T, dh) bf16, x (residual): (B, T, D) bf16 -> (B, T, D) bf16."""
    B, H, T, dh = ctx.shape
    D = H * dh
    tq = _tile(T, 512, 8)
    params = _mosaic_params(
        ("parallel", "parallel"),
        [((H, tq, dh), ACT), ((tq, D), ACT), ((H, dh, D), ACT),
         ((1, D), jnp.float32), ((tq, D), ACT)])
    return pl.pallas_call(
        functools.partial(_attn_out_kernel, n_head=H),
        out_shape=jax.ShapeDtypeStruct((B, T, D), ACT),
        grid=(B, T // tq),
        in_specs=[
            pl.BlockSpec((1, H, tq, dh), lambda bb, i: (bb, 0, i, 0)),
            pl.BlockSpec((1, tq, D), lambda bb, i: (bb, i, 0)),
            pl.BlockSpec((H, dh, D), lambda bb, i: (0, 0, 0)),
            pl.BlockSpec((1, D), lambda bb, i: (0, 0)),
            pl.BlockSpec((1, D), lambda bb, i: (0, 0)),
            pl.BlockSpec((1, D), lambda bb, i: (0, 0)),
        ],
        out_specs=pl.BlockSpec((1, tq, D), lambda bb, i: (bb, i, 0)),
        compiler_params=params,
    )(ctx, x, wo, bo, g, b)


def attention_block(layer, h, mask, n_head, want_attn):
    """Post-norm self-attention sub-block: x -> LN(x + MHA(x))."""
    B, T, D = h.shape
    dh = D // n_head
    scale = 1.0 / math.sqrt(dh)

    # QKV projection: fused (D, 3D) weight; bias folded in; single bf16 cast at output.
    qkv = pallas_matmul(h.reshape(B * T, D), layer["wqkv"], layer["bqkv"],
                        out_dtype=ACT)
    qkv = qkv.reshape(B, T, 3, n_head, dh).transpose(2, 0, 3, 1, 4)  # (3, B, H, T, dh)
    q, k, v = qkv[0], qkv[1], qkv[2]

    km = mask[:, None, None, :].astype(jnp.float32)            # (B, 1, 1, T) key mask
    ctx = flash_attention(q, k, v, km, scale)
    attn = attention_probs(q, k, km, scale) if want_attn else None

    wo = layer["wo"].reshape(n_head, dh, D)                    # head-major out proj
    out = attn_output_block(ctx, h, wo, layer["bo"], layer["ln1_g"], layer["ln1_b"])
    return out, attn


# ----------------------------------------------------------------------------
# fused FFN block: conv1d(k)+ReLU+conv1d(k) + residual + LayerNorm
# ----------------------------------------------------------------------------
def _ffn_block_kernel(xp_ref, w1_ref, b1_ref, w2_ref, b2_ref, g_ref, be_ref,
                      o_ref, *, T, p, k):
    xp = xp_ref[0]                                             # (T + 4p, D) bf16
    Tm = T + 2 * p
    dff = w1_ref.shape[-1]

    # conv1 at extended positions (zero-padded input already provided)
    acc1 = jnp.zeros((Tm, dff), jnp.float32)
    for j in range(k):
        acc1 = acc1 + jnp.dot(xp[j:j + Tm], w1_ref[j],
                              preferred_element_type=jnp.float32)
    mid = jnp.maximum(acc1 + b1_ref[...], 0.0)
    # zero rows outside the true [0, T) output range == conv2's zero padding
    row = jax.lax.broadcasted_iota(jnp.int32, (Tm, 1), 0)
    mid = jnp.where((row >= p) & (row < T + p), mid, 0.0).astype(ACT)

    D = w2_ref.shape[-1]
    acc2 = jnp.zeros((T, D), jnp.float32)
    for j in range(k):
        acc2 = acc2 + jnp.dot(mid[j:j + T], w2_ref[j],
                              preferred_element_type=jnp.float32)
    y = acc2 + b2_ref[...]

    z = y + xp[2 * p:2 * p + T].astype(jnp.float32)            # residual
    o_ref[0] = _ln(z, g_ref[...], be_ref[...]).astype(o_ref.dtype)


def ffn_block(layer, h):
    B, T, D = h.shape
    k = layer["ff_w1"].shape[0]
    p = (k - 1) // 2
    dff = layer["ff_w1"].shape[-1]
    # TODO(synk): drop this wrapper-level pad and add a T-tile grid axis with halo
    # blocks for production-length sequences (v7x 2-TC sharding + 64 MiB VMEM ceiling).
    xp = jnp.pad(h, ((0, 0), (2 * p, 2 * p), (0, 0)))
    Tp = T + 4 * p
    params = _mosaic_params(
        ("parallel",),
        [((Tp, D), ACT), ((k, D, dff), ACT), ((1, dff), jnp.float32),
         ((k, dff, D), ACT), ((1, D), jnp.float32), ((T, D), ACT),
         ((Tp, dff), jnp.float32)])
    return pl.pallas_call(
        functools.partial(_ffn_block_kernel, T=T, p=p, k=k),
        out_shape=jax.ShapeDtypeStruct((B, T, D), ACT),
        grid=(B,),
        in_specs=[
            pl.BlockSpec((1, Tp, D), lambda b: (b, 0, 0)),
            pl.BlockSpec((k, D, dff), lambda b: (0, 0, 0)),
            pl.BlockSpec((1, dff), lambda b: (0, 0)),
            pl.BlockSpec((k, dff, D), lambda b: (0, 0, 0)),
            pl.BlockSpec((1, D), lambda b: (0, 0)),
            pl.BlockSpec((1, D), lambda b: (0, 0)),
            pl.BlockSpec((1, D), lambda b: (0, 0)),
        ],
        out_specs=pl.BlockSpec((1, T, D), lambda b: (b, 0, 0)),
        compiler_params=params,
    )(xp, layer["ff_w1"], layer["ff_b1"], layer["ff_w2"], layer["ff_b2"],
      layer["ln2_g"], layer["ln2_b"])


# ----------------------------------------------------------------------------
# fused variance predictor: conv+ReLU+LN -> conv+ReLU+LN -> Linear(D,1)
# (final projection stored as a zero-padded (D,128) weight -> lane-dense output)
# ----------------------------------------------------------------------------
def _var_pred_kernel(xp_ref, w1_ref, b1_ref, g1_ref, be1_ref,
                     w2_ref, b2_ref, g2_ref, be2_ref, wo_ref, bo_ref,
                     o_ref, *, T, p, k):
    xp = xp_ref[0]                                             # (T + 4p, D) bf16
    Tm = T + 2 * p
    C = w1_ref.shape[-1]

    acc1 = jnp.zeros((Tm, C), jnp.float32)
    for j in range(k):
        acc1 = acc1 + jnp.dot(xp[j:j + Tm], w1_ref[j],
                              preferred_element_type=jnp.float32)
    h1 = jnp.maximum(acc1 + b1_ref[...], 0.0)
    h1 = _ln(h1, g1_ref[...], be1_ref[...])
    row = jax.lax.broadcasted_iota(jnp.int32, (Tm, 1), 0)
    h1 = jnp.where((row >= p) & (row < T + p), h1, 0.0).astype(ACT)

    C2 = w2_ref.shape[-1]
    acc2 = jnp.zeros((T, C2), jnp.float32)
    for j in range(k):
        acc2 = acc2 + jnp.dot(h1[j:j + T], w2_ref[j],
                              preferred_element_type=jnp.float32)
    h2 = jnp.maximum(acc2 + b2_ref[...], 0.0)
    h2 = _ln(h2, g2_ref[...], be2_ref[...]).astype(ACT)

    # (D -> 128) matmul: only column 0 carries the real weights; this keeps the MXU
    # pass full-width and the store lane-dense (unmasked 128-lane vst).
    o_ref[0] = jnp.dot(h2, wo_ref[...],
                       preferred_element_type=jnp.float32) + bo_ref[...]


def variance_predictor(vp, x, mask):
    B, T, D = x.shape
    k = vp["w1"].shape[0]
    p = (k - 1) // 2
    xp = jnp.pad(x, ((0, 0), (2 * p, 2 * p), (0, 0)))
    Tp = T + 4 * p
    params = _mosaic_params(
        ("parallel",),
        [((Tp, D), ACT), ((k, D, D), ACT), ((k, D, D), ACT), ((D, 128), ACT),
         ((T, 128), jnp.float32), ((Tp, D), jnp.float32)])
    out = pl.pallas_call(
        functools.partial(_var_pred_kernel, T=T, p=p, k=k),
        out_shape=jax.ShapeDtypeStruct((B, T, 128), jnp.float32),
        grid=(B,),
        in_specs=[
            pl.BlockSpec((1, Tp, D), lambda b: (b, 0, 0)),
            pl.BlockSpec((k, D, D), lambda b: (0, 0, 0)),
            pl.BlockSpec((1, D), lambda b: (0, 0)),
            pl.BlockSpec((1, D), lambda b: (0, 0)),
            pl.BlockSpec((1, D), lambda b: (0, 0)),
            pl.BlockSpec((k, D, D), lambda b: (0, 0, 0)),
            pl.BlockSpec((1, D), lambda b: (0, 0)),
            pl.BlockSpec((1, D), lambda b: (0, 0)),
            pl.BlockSpec((1, D), lambda b: (0, 0)),
            pl.BlockSpec((D, 128), lambda b: (0, 0)),
            pl.BlockSpec((1, 128), lambda b: (0, 0)),
        ],
        out_specs=pl.BlockSpec((1, T, 128), lambda b: (b, 0, 0)),
        compiler_params=params,
    )(xp, vp["w1"], vp["b1"], vp["ln1_g"], vp["ln1_b"],
      vp["w2"], vp["b2"], vp["ln2_g"], vp["ln2_b"], vp["wo"], vp["bo"])
    return out[..., 0] * mask


# ----------------------------------------------------------------------------
# fused postnet: mel prenet Linear + 5 x conv1d(5) [+tanh] chain + residual
# ----------------------------------------------------------------------------
def _postnet_kernel(xp_ref, melw_ref, melb_ref, *rest, T, p, n_conv):
    conv_refs = rest[:2 * n_conv]
    pre_ref = rest[2 * n_conv]
    post_ref = rest[2 * n_conv + 1]

    xp = xp_ref[0]                                             # (T + 2*E0, D) bf16
    E = n_conv * p
    L = T + 2 * E

    pre_ext = jnp.dot(xp, melw_ref[...],
                      preferred_element_type=jnp.float32) + melb_ref[...]
    row = jax.lax.broadcasted_iota(jnp.int32, (L, 1), 0)
    pre_ext = jnp.where((row >= E) & (row < T + E), pre_ext, 0.0)
    prenet = pre_ext[E:E + T]
    pre_ref[0] = prenet.astype(pre_ref.dtype)

    # TODO(synk): PostConvNet BatchNorm1d (eval-mode running stats) omitted;
    # conv + tanh stack and residual connection are kept.
    h = pre_ext.astype(ACT)
    y = prenet
    for i in range(n_conv):
        w_ref = conv_refs[2 * i]
        b_ref = conv_refs[2 * i + 1]
        kk = w_ref.shape[0]
        E = E - p
        L = T + 2 * E
        acc = jnp.zeros((L, w_ref.shape[-1]), jnp.float32)
        for j in range(kk):
            acc = acc + jnp.dot(h[j:j + L], w_ref[j],
                                preferred_element_type=jnp.float32)
        y = acc + b_ref[...]
        if i < n_conv - 1:
            y = jnp.tanh(y)
        if E > 0:
            row = jax.lax.broadcasted_iota(jnp.int32, (L, 1), 0)
            y = jnp.where((row >= E) & (row < T + E), y, 0.0)
        h = y.astype(ACT)

    post_ref[0] = (prenet + y).astype(post_ref.dtype)          # last y is f32, E == 0


def postnet_forward(pn, x):
    B, T, D = x.shape
    n_conv = len(pn["convs"])
    k = pn["convs"][0]["w"].shape[0]
    p = (k - 1) // 2
    E0 = n_conv * p
    mel = pn["mel_w"].shape[-1]
    xp = jnp.pad(x, ((0, 0), (E0, E0), (0, 0)))
    Tp = T + 2 * E0

    in_specs = [
        pl.BlockSpec((1, Tp, D), lambda b: (b, 0, 0)),
        pl.BlockSpec((D, mel), lambda b: (0, 0)),
        pl.BlockSpec((1, mel), lambda b: (0, 0)),
    ]
    args = [xp, pn["mel_w"], pn["mel_b"]]
    est = [((Tp, D), ACT), ((Tp, mel), jnp.float32), ((T, mel), jnp.float32),
           ((T, mel), jnp.float32)]
    for c in pn["convs"]:
        w_shape = tuple(c["w"].shape)
        in_specs.append(pl.BlockSpec(w_shape, lambda b: (0, 0, 0)))
        in_specs.append(pl.BlockSpec((1, w_shape[-1]), lambda b: (0, 0)))
        args.extend([c["w"], c["b"]])
        est.append((w_shape, ACT))
        est.append(((Tp, w_shape[-1]), jnp.float32))

    pre, post = pl.pallas_call(
        functools.partial(_postnet_kernel, T=T, p=p, n_conv=n_conv),
        out_shape=(jax.ShapeDtypeStruct((B, T, mel), jnp.float32),
                   jax.ShapeDtypeStruct((B, T, mel), jnp.float32)),
        grid=(B,),
        in_specs=in_specs,
        out_specs=(pl.BlockSpec((1, T, mel), lambda b: (b, 0, 0)),
                   pl.BlockSpec((1, T, mel), lambda b: (b, 0, 0))),
        compiler_params=_mosaic_params(("parallel",), est),
    )(*args)
    return pre, post


# ----------------------------------------------------------------------------
# model glue (plain JAX)
# ----------------------------------------------------------------------------
def encoder_forward(p, x, mask, n_head, use_embedding):
    """ESPnet-style FFT blocks (post-norm, concat_after=False). Dropout = identity."""
    if use_embedding:
        h = jnp.take(p["emb"], x, axis=0)                      # (B, T, D) f32
        B, T, D = h.shape
        h = (h + _pos_encoding(T, D)).astype(ACT)
    else:
        B, T, Din = x.shape
        D = p["in_w"].shape[-1]
        h = pallas_matmul(x.reshape(B * T, Din), p["in_w"], p["in_b"],
                          out_dtype=jnp.float32).reshape(B, T, D)
        h = (h + _pos_encoding(T, D)).astype(ACT)

    attn = None
    n_layers = len(p["layers"])
    for li, layer in enumerate(p["layers"]):
        h, a = attention_block(layer, h, mask, n_head, want_attn=(li == n_layers - 1))
        if a is not None:
            attn = a
        h = ffn_block(layer, h)
    h = h * mask[..., None].astype(ACT)
    return h, attn


def length_regulate(x, d_target, mel_mask):
    """Expand phoneme-level features by integer durations to frame level."""
    B, T, D = x.shape
    M = mel_mask.shape[1]
    cum = jnp.cumsum(d_target, axis=1)                         # (B, T)
    t = jnp.arange(M)
    idx = jnp.sum((cum[:, None, :] <= t[None, :, None]).astype(jnp.int32), axis=-1)
    idx = jnp.clip(idx, 0, T - 1)
    out = x[jnp.arange(B)[:, None], idx]                       # (B, M, D)
    return out * mel_mask[..., None].astype(x.dtype)


def variance_adaptor(pa, x, src_mask, mel_mask, d_target, p_target, e_target):
    log_d_pred = variance_predictor(pa["dur"], x, src_mask)
    x = length_regulate(x, d_target, mel_mask)                 # frame level, bf16
    p_pred = variance_predictor(pa["pitch"], x, mel_mask)
    p_bucket = jnp.digitize(p_target, pa["pitch_bins"])
    x = (x.astype(jnp.float32)
         + jnp.take(pa["pitch_emb"], p_bucket, axis=0) * mel_mask[..., None]).astype(ACT)
    e_pred = variance_predictor(pa["energy"], x, mel_mask)
    e_bucket = jnp.digitize(e_target, pa["energy_bins"])
    x = (x.astype(jnp.float32)
         + jnp.take(pa["energy_emb"], e_bucket, axis=0) * mel_mask[..., None]).astype(ACT)
    return x, log_d_pred, p_pred, e_pred


def fastspeech2_forward(params, cfg, src, src_mask, mel_mask, d_target, p_target, e_target):
    e_out, attn_enc = encoder_forward(params["encoder"], src, src_mask,
                                      cfg["n_head_encoder"], use_embedding=True)
    va_out, log_d, p_pred, e_pred = variance_adaptor(
        params["va"], e_out, src_mask, mel_mask, d_target, p_target, e_target)
    d_out, attn_dec = encoder_forward(params["decoder"], va_out, mel_mask,
                                      cfg["n_head_decoder"], use_embedding=False)
    out_prenet, out_postnet = postnet_forward(params["postnet"], d_out)
    return (out_prenet, out_postnet, log_d, p_pred, e_pred, attn_enc, attn_dec)


# ----------------------------------------------------------------------------
# Deterministic parameter init (synthetic weights; MXU weights pre-cast to bf16)
# ----------------------------------------------------------------------------
def init_params(key, cfg):
    keys = iter(jax.random.split(key, 512))

    def nrm(*shape):
        return (0.02 * jax.random.normal(next(keys), shape)).astype(jnp.float32)

    def bfw(*shape):
        return nrm(*shape).astype(jnp.bfloat16)

    def zeros(*shape):
        return jnp.zeros(shape, jnp.float32)

    def ones(*shape):
        return jnp.ones(shape, jnp.float32)

    D_e, D_d = cfg["d_model_encoder"], cfg["d_model_decoder"]
    dff_e, dff_d = 4 * D_e, 4 * D_d

    def enc_layer(D, dff, k):
        return dict(
            wqkv=bfw(D, 3 * D), bqkv=zeros(1, 3 * D),
            wo=bfw(D, D), bo=zeros(1, D),
            ln1_g=ones(1, D), ln1_b=zeros(1, D),
            ff_w1=bfw(k, D, dff), ff_b1=zeros(1, dff),
            ff_w2=bfw(k, dff, D), ff_b2=zeros(1, D),
            ln2_g=ones(1, D), ln2_b=zeros(1, D))

    encoder = dict(emb=nrm(cfg["src_vocab"], D_e),
                   layers=[enc_layer(D_e, dff_e, cfg["ff_k_enc"]) for _ in range(cfg["N_e"])])
    decoder = dict(in_w=bfw(D_e, D_d), in_b=zeros(1, D_d),
                   layers=[enc_layer(D_d, dff_d, cfg["ff_k_dec"]) for _ in range(cfg["N_d"])])

    def var_pred(D):
        # final (D -> 1) head stored zero-padded to 128 output lanes (lane-dense store)
        wo = jnp.pad(nrm(D, 1), ((0, 0), (0, 127))).astype(jnp.bfloat16)
        return dict(w1=bfw(3, D, D), b1=zeros(1, D), ln1_g=ones(1, D), ln1_b=zeros(1, D),
                    w2=bfw(3, D, D), b2=zeros(1, D), ln2_g=ones(1, D), ln2_b=zeros(1, D),
                    wo=wo, bo=zeros(1, 128))

    va = dict(dur=var_pred(D_e), pitch=var_pred(D_e), energy=var_pred(D_e),
              pitch_bins=jnp.linspace(cfg["f0_min"], cfg["f0_max"], cfg["n_bins"] - 1),
              pitch_emb=nrm(cfg["n_bins"], D_e),
              energy_bins=jnp.linspace(cfg["energy_min"], cfg["energy_max"], cfg["n_bins"] - 1),
              energy_emb=nrm(cfg["n_bins"], D_e))

    mel_out = cfg["trg_vocab"] * cfg["reduction_rate"]
    H = D_d
    convs = [dict(w=bfw(5, mel_out, H), b=zeros(1, H))]
    for _ in range(3):
        convs.append(dict(w=bfw(5, H, H), b=zeros(1, H)))
    convs.append(dict(w=bfw(5, H, mel_out), b=zeros(1, mel_out)))
    postnet = dict(mel_w=bfw(D_d, mel_out), mel_b=zeros(1, mel_out), convs=convs)

    return dict(encoder=encoder, va=va, decoder=decoder, postnet=postnet)


# ----------------------------------------------------------------------------
if __name__ == "__main__":
    cfg = dict(src_vocab=40, trg_vocab=16,
               d_model_encoder=32, N_e=2, n_head_encoder=2, ff_k_enc=3,
               d_model_decoder=32, N_d=2, n_head_decoder=2, ff_k_dec=3,
               reduction_rate=1, n_bins=16,
               f0_min=0.0, f0_max=400.0, energy_min=0.0, energy_max=100.0)

    key = jax.random.PRNGKey(0)
    kp, k1, k2, k3 = jax.random.split(key, 4)
    params = init_params(kp, cfg)

    B, T_src, T_mel = 2, 8, 16
    src = jax.random.randint(k1, (B, T_src), 1, cfg["src_vocab"]).astype(jnp.int32)
    src_lens = jnp.array([8, 6], jnp.int32)
    src_mask = (jnp.arange(T_src)[None, :] < src_lens[:, None]).astype(jnp.float32)
    src = src * src_mask.astype(jnp.int32)

    d_target = jnp.array([[2, 2, 2, 2, 2, 2, 2, 2],
                          [2, 2, 2, 2, 2, 2, 0, 0]], jnp.int32)
    mel_len = jnp.sum(d_target, axis=1)
    mel_mask = (jnp.arange(T_mel)[None, :] < mel_len[:, None]).astype(jnp.float32)

    p_target = jax.random.uniform(k2, (B, T_mel), minval=cfg["f0_min"],
                                  maxval=cfg["f0_max"]) * mel_mask
    e_target = jax.random.uniform(k3, (B, T_mel), minval=cfg["energy_min"],
                                  maxval=cfg["energy_max"]) * mel_mask

    fwd = jax.jit(lambda s, sm, mm, dt, pt, et:
                  fastspeech2_forward(params, cfg, s, sm, mm, dt, pt, et))
    outputs = fwd(src, src_mask, mel_mask, d_target, p_target, e_target)
    jax.block_until_ready(outputs)

    (out_prenet, out_postnet, log_d, p_pred, e_pred, attn_enc, attn_dec) = outputs
    assert out_prenet.shape == (B, T_mel, cfg["trg_vocab"] * cfg["reduction_rate"])
    assert out_postnet.shape == out_prenet.shape
    assert log_d.shape == (B, T_src)
    assert p_pred.shape == (B, T_mel) and e_pred.shape == (B, T_mel)
    assert attn_enc.shape == (B, cfg["n_head_encoder"], T_src, T_src)
    assert attn_dec.shape == (B, cfg["n_head_decoder"], T_mel, T_mel)
    assert all(bool(jnp.all(jnp.isfinite(o.astype(jnp.float32)))) for o in
               (out_prenet, out_postnet, log_d, p_pred, e_pred, attn_enc, attn_dec))
    print("KERNEL_OK")
</pallas_src>

<mosaic_0001>
module attributes {stable_mosaic.version = 11 : i64} {
  func.func @_matmul_kernel(%arg0: i32, %arg1: i32, %arg2: i32, %arg3: memref<16x32xbf16, #tpu.memory_space<vmem>>, %arg4: memref<32x96xbf16, #tpu.memory_space<vmem>>, %arg5: memref<1x96xf32, #tpu.memory_space<vmem>>, %arg6: memref<16x96xbf16, #tpu.memory_space<vmem>>, %arg7: memref<16x96xf32, #tpu.memory_space<vmem>>) attributes {dimension_semantics = [#tpu.dimension_semantics<parallel>, #tpu.dimension_semantics<parallel>, #tpu.dimension_semantics<arbitrary>], iteration_bounds = array<i64: 1, 1, 1>, scalar_prefetch = 0 : i64, scratch_operands = 1 : i64, tpu.core_type = #tpu.core_type<tc>, window_params = [{transform_indices = @transform_0, window_bounds = array<i64: 16, 32>}, {transform_indices = @transform_1, window_bounds = array<i64: 32, 96>}, {transform_indices = @transform_2, window_bounds = array<i64: 1, 96>}, {transform_indices = @transform_3, window_bounds = array<i64: 16, 96>}]} {
    %c0_i32 = arith.constant 0 : i32
    %0 = arith.cmpi eq, %arg2, %c0_i32 : i32
    %1 = arith.extui %0 : i1 to i32
    %c0_i32_0 = arith.constant 0 : i32
    %2 = arith.cmpi ne, %1, %c0_i32_0 : i32
    scf.if %2 {
      %cst_10 = arith.constant 0.000000e+00 : f32
      %12 = vector.broadcast %cst_10 : f32 to vector<16x96xf32>
      %c0_11 = arith.constant 0 : index
      %c0_12 = arith.constant 0 : index
      %13 = vector.load %arg7[%c0_11, %c0_12] : memref<16x96xf32, #tpu.memory_space<vmem>>, vector<16x96xf32>
      tpu.vector_store %arg7[%c0_11, %c0_12], %12 {strides = array<i32>} : memref<16x96xf32, #tpu.memory_space<vmem>>, vector<16x96xf32>,
    } else {
    }
    %c0 = arith.constant 0 : index
    %c0_1 = arith.constant 0 : index
    %3 = vector.load %arg7[%c0, %c0_1] : memref<16x96xf32, #tpu.memory_space<vmem>>, vector<16x96xf32>
    %c0_2 = arith.constant 0 : index
    %c0_3 = arith.constant 0 : index
    %4 = vector.load %arg3[%c0_2, %c0_3] : memref<16x32xbf16, #tpu.memory_space<vmem>>, vector<16x32xbf16>
    %c0_4 = arith.constant 0 : index
    %c0_5 = arith.constant 0 : index
    %5 = vector.load %arg4[%c0_4, %c0_5] : memref<32x96xbf16, #tpu.memory_space<vmem>>, vector<32x96xbf16>
    %cst = arith.constant dense<0.000000e+00> : vector<16x96xf32>
    %6 = tpu.matmul %4, %5, %cst {dimension_numbers = #tpu.dot_dimension_numbers<[1], [0], [0], [1], [0, 0, 1, 1], [], []>} : vector<16x32xbf16>, vector<32x96xbf16>, vector<16x96xf32> -> vector<16x96xf32>
    %7 = arith.addf %3, %6 : vector<16x96xf32>
    %c0_6 = arith.constant 0 : index
    %c0_7 = arith.constant 0 : index
    %8 = vector.load %arg7[%c0_6, %c0_7] : memref<16x96xf32, #tpu.memory_space<vmem>>, vector<16x96xf32>
    tpu.vector_store %arg7[%c0_6, %c0_7], %7 {strides = array<i32>} : memref<16x96xf32, #tpu.memory_space<vmem>>, vector<16x96xf32>,
    %c0_i32_8 = arith.constant 0 : i32
    %9 = arith.cmpi eq, %arg2, %c0_i32_8 : i32
    %10 = arith.extui %9 : i1 to i32
    %c0_i32_9 = arith.constant 0 : i32
    %11 = arith.cmpi ne, %10, %c0_i32_9 : i32
    scf.if %11 {
      %c0_10 = arith.constant 0 : index
      %c0_11 = arith.constant 0 : index
      %12 = vector.load %arg7[%c0_10, %c0_11] : memref<16x96xf32, #tpu.memory_space<vmem>>, vector<16x96xf32>
      %c0_12 = arith.constant 0 : index
      %c0_13 = arith.constant 0 : index
      %13 = vector.load %arg5[%c0_12, %c0_13] : memref<1x96xf32, #tpu.memory_space<vmem>>, vector<1x96xf32>
      %14 = vector.broadcast %13 : vector<1x96xf32> to vector<16x96xf32>
      %15 = arith.addf %12, %14 : vector<16x96xf32>
      %16 = arith.truncf %15 : vector<16x96xf32> to vector<16x96xbf16>
      %c0_14 = arith.constant 0 : index
      %c0_15 = arith.constant 0 : index
      %17 = vector.load %arg6[%c0_14, %c0_15] : memref<16x96xbf16, #tpu.memory_space<vmem>>, vector<16x96xbf16>
      tpu.vector_store %arg6[%c0_14, %c0_15], %16 {strides = array<i32>} : memref<16x96xbf16, #tpu.memory_space<vmem>>, vector<16x96xbf16>,
    } else {
    }
    return
  }
  func.func @transform_0(%arg0: i32, %arg1: i32, %arg2: i32) -> (i32, i32) {
    %c0_i32 = arith.constant 0 : i32
    return %arg0, %arg2 : i32, i32
  }
  func.func @transform_1(%arg0: i32, %arg1: i32, %arg2: i32) -> (i32, i32) {
    %c0_i32 = arith.constant 0 : i32
    return %arg2, %arg1 : i32, i32
  }
  func.func @transform_2(%arg0: i32, %arg1: i32, %arg2: i32) -> (i32, i32) {
    %c0_i32 = arith.constant 0 : i32
    %c0_i32_0 = arith.constant 0 : i32
    return %c0_i32, %arg1 : i32, i32
  }
  func.func @transform_3(%arg0: i32, %arg1: i32, %arg2: i32) -> (i32, i32) {
    %c0_i32 = arith.constant 0 : i32
    return %arg0, %arg1 : i32, i32
  }
}

module attributes {stable_mosaic.version = 11 : i64} {
  func.func @_flash_attn_kernel(%arg0: i32, %arg1: i32, %arg2: i32, %arg3: i32, %arg4: memref<1x1x8x16xbf16, #tpu.memory_space<vmem>>, %arg5: memref<1x1x8x16xbf16, #tpu.memory_space<vmem>>, %arg6: memref<1x1x8x16xbf16, #tpu.memory_space<vmem>>, %arg7: memref<1x1x1x8xf32, #tpu.memory_space<vmem>>, %arg8: memref<1x1x8x16xbf16, #tpu.memory_space<vmem>>, %arg9: memref<8x1xf32, #tpu.memory_space<vmem>>, %arg10: memref<8x1xf32, #tpu.memory_space<vmem>>, %arg11: memref<8x16xf32, #tpu.memory_space<vmem>>) attributes {dimension_semantics = [#tpu.dimension_semantics<parallel>, #tpu.dimension_semantics<parallel>, #tpu.dimension_semantics<parallel>, #tpu.dimension_semantics<arbitrary>], iteration_bounds = array<i64: 2, 2, 1, 1>, scalar_prefetch = 0 : i64, scratch_operands = 3 : i64, tpu.core_type = #tpu.core_type<tc>, window_params = [{transform_indices = @transform_0, window_bounds = array<i64: 1, 1, 8, 16>}, {transform_indices = @transform_1, window_bounds = array<i64: 1, 1, 8, 16>}, {transform_indices = @transform_2, window_bounds = array<i64: 1, 1, 8, 16>}, {transform_indices = @transform_3, window_bounds = array<i64: 1, 1, 1, 8>}, {transform_indices = @transform_4, window_bounds = array<i64: 1, 1, 8, 16>}]} {
    %c0_i32 = arith.constant 0 : i32
    %0 = arith.cmpi eq, %arg3, %c0_i32 : i32
    %1 = arith.extui %0 : i1 to i32
    %c0_i32_0 = arith.constant 0 : i32
    %2 = arith.cmpi ne, %1, %c0_i32_0 : i32
    scf.if %2 {
      %cst_36 = arith.constant -1.000000e+30 : f32
      %46 = vector.broadcast %cst_36 : f32 to vector<8x1xf32>
      %c0_37 = arith.constant 0 : index
      %c0_38 = arith.constant 0 : index
      %47 = vector.load %arg9[%c0_37, %c0_38] : memref<8x1xf32, #tpu.memory_space<vmem>>, vector<8x1xf32>
      tpu.vector_store %arg9[%c0_37, %c0_38], %46 {strides = array<i32>} : memref<8x1xf32, #tpu.memory_space<vmem>>, vector<8x1xf32>,
      %cst_39 = arith.constant 0.000000e+00 : f32
      %48 = vector.broadcast %cst_39 : f32 to vector<8x1xf32>
      %c0_40 = arith.constant 0 : index
      %c0_41 = arith.constant 0 : index
      %49 = vector.load %arg10[%c0_40, %c0_41] : memref<8x1xf32, #tpu.memory_space<vmem>>, vector<8x1xf32>
      tpu.vector_store %arg10[%c0_40, %c0_41], %48 {strides = array<i32>} : memref<8x1xf32, #tpu.memory_space<vmem>>, vector<8x1xf32>,
      %cst_42 = arith.constant 0.000000e+00 : f32
      %50 = vector.broadcast %cst_42 : f32 to vector<8x16xf32>
      %c0_43 = arith.constant 0 : index
      %c0_44 = arith.constant 0 : index
      %51 = vector.load %arg11[%c0_43, %c0_44] : memref<8x16xf32, #tpu.memory_space<vmem>>, vector<8x16xf32>
      tpu.vector_store %arg11[%c0_43, %c0_44], %50 {strides = array<i32>} : memref<8x16xf32, #tpu.memory_space<vmem>>, vector<8x16xf32>,
    } else {
    }
    %c0 = arith.constant 0 : index
    %c0_1 = arith.constant 0 : index
    %c0_2 = arith.constant 0 : index
    %c0_3 = arith.constant 0 : index
    %3 = vector.load %arg4[%c0, %c0_1, %c0_2, %c0_3] : memref<1x1x8x16xbf16, #tpu.memory_space<vmem>>, vector<1x1x8x16xbf16>
    %4 = vector.shape_cast %3 : vector<1x1x8x16xbf16> to vector<8x16xbf16>
    %c0_4 = arith.constant 0 : index
    %c0_5 = arith.constant 0 : index
    %c0_6 = arith.constant 0 : index
    %c0_7 = arith.constant 0 : index
    %5 = vector.load %arg5[%c0_4, %c0_5, %c0_6, %c0_7] : memref<1x1x8x16xbf16, #tpu.memory_space<vmem>>, vector<1x1x8x16xbf16>
    %6 = vector.shape_cast %5 : vector<1x1x8x16xbf16> to vector<8x16xbf16>
    %c0_8 = arith.constant 0 : index
    %c0_9 = arith.constant 0 : index
    %c0_10 = arith.constant 0 : index
    %c0_11 = arith.constant 0 : index
    %7 = vector.load %arg6[%c0_8, %c0_9, %c0_10, %c0_11] : memref<1x1x8x16xbf16, #tpu.memory_space<vmem>>, vector<1x1x8x16xbf16>
    %8 = vector.shape_cast %7 : vector<1x1x8x16xbf16> to vector<8x16xbf16>
    %c0_12 = arith.constant 0 : index
    %c0_13 = arith.constant 0 : index
    %c0_14 = arith.constant 0 : index
    %c0_15 = arith.constant 0 : index
    %9 = vector.load %arg7[%c0_12, %c0_13, %c0_14, %c0_15] : memref<1x1x1x8xf32, #tpu.memory_space<vmem>>, vector<1x1x1x8xf32>
    %10 = vector.shape_cast %9 : vector<1x1x1x8xf32> to vector<1x8xf32>
    %cst = arith.constant dense<0.000000e+00> : vector<8x8xf32>
    %11 = tpu.matmul %4, %6, %cst {dimension_numbers = #tpu.dot_dimension_numbers<[1], [1], [0], [0], [0, 0, 1, 0], [], []>} : vector<8x16xbf16>, vector<8x16xbf16>, vector<8x8xf32> -> vector<8x8xf32>
    %cst_16 = arith.constant 2.500000e-01 : f32
    %12 = vector.broadcast %cst_16 : f32 to vector<8x8xf32>
    %13 = arith.mulf %11, %12 : vector<8x8xf32>
    %cst_17 = arith.constant 5.000000e-01 : f32
    %14 = vector.broadcast %cst_17 : f32 to vector<1x8xf32>
    %15 = arith.cmpf ogt, %10, %14 : vector<1x8xf32>
    %cst_18 = arith.constant -1.000000e+09 : f32
    %16 = vector.shape_cast %15 : vector<1x8xi1> to vector<1x8xi1>
    %17 = vector.broadcast %16 : vector<1x8xi1> to vector<8x8xi1>
    %18 = vector.broadcast %cst_18 : f32 to vector<8x8xf32>
    %19 = arith.select %17, %13, %18 : vector<8x8xi1>, vector<8x8xf32>
    %c0_19 = arith.constant 0 : index
    %c0_20 = arith.constant 0 : index
    %20 = vector.load %arg9[%c0_19, %c0_20] : memref<8x1xf32, #tpu.memory_space<vmem>>, vector<8x1xf32>
    %cst_21 = arith.constant dense<0xFF800000> : vector<8xf32>
    %21 = vector.multi_reduction <maximumf>, %19, %cst_21 [1] : vector<8x8xf32> to vector<8xf32>
    %22 = vector.shape_cast %21 : vector<8xf32> to vector<8x1xf32>
    %23 = arith.maximumf %20, %22 : vector<8x1xf32>
    %24 = arith.subf %20, %23 : vector<8x1xf32>
    %25 = math.exp %24 : vector<8x1xf32>
    %26 = vector.broadcast %23 : vector<8x1xf32> to vector<8x8xf32>
    %27 = arith.subf %19, %26 : vector<8x8xf32>
    %28 = math.exp %27 : vector<8x8xf32>
    %c0_22 = arith.constant 0 : index
    %c0_23 = arith.constant 0 : index
    %29 = vector.load %arg10[%c0_22, %c0_23] : memref<8x1xf32, #tpu.memory_space<vmem>>, vector<8x1xf32>
    %30 = arith.mulf %25, %29 : vector<8x1xf32>
    %cst_24 = arith.constant dense<0.000000e+00> : vector<8xf32>
    %31 = vector.multi_reduction <add>, %28, %cst_24 [1] : vector<8x8xf32> to vector<8xf32>
    %32 = vector.shape_cast %31 : vector<8xf32> to vector<8x1xf32>
    %33 = arith.addf %30, %32 : vector<8x1xf32>
    %c0_25 = arith.constant 0 : index
    %c0_26 = arith.constant 0 : index
    %34 = vector.load %arg10[%c0_25, %c0_26] : memref<8x1xf32, #tpu.memory_space<vmem>>, vector<8x1xf32>
    tpu.vector_store %arg10[%c0_25, %c0_26], %33 {strides = array<i32>} : memref<8x1xf32, #tpu.memory_space<vmem>>, vector<8x1xf32>,
    %c0_27 = arith.constant 0 : index
    %c0_28 = arith.constant 0 : index
    %35 = vector.load %arg11[%c0_27, %c0_28] : memref<8x16xf32, #tpu.memory_space<vmem>>, vector<8x16xf32>
    %36 = vector.broadcast %25 : vector<8x1xf32> to vector<8x16xf32>
    %37 = arith.mulf %36, %35 : vector<8x16xf32>
    %38 = arith.truncf %28 : vector<8x8xf32> to vector<8x8xbf16>
    %cst_29 = arith.constant dense<0.000000e+00> : vector<8x16xf32>
    %39 = tpu.matmul %38, %8, %cst_29 {dimension_numbers = #tpu.dot_dimension_numbers<[1], [0], [0], [1], [0, 0, 1, 1], [], []>} : vector<8x8xbf16>, vector<8x16xbf16>, vector<8x16xf32> -> vector<8x16xf32>
    %40 = arith.addf %37, %39 : vector<8x16xf32>
    %c0_30 = arith.constant 0 : index
    %c0_31 = arith.constant 0 : index
    %41 = vector.load %arg11[%c0_30, %c0_31] : memref<8x16xf32, #tpu.memory_space<vmem>>, vector<8x16xf32>
    tpu.vector_store %arg11[%c0_30, %c0_31], %40 {strides = array<i32>} : memref<8x16xf32, #tpu.memory_space<vmem>>, vector<8x16xf32>,
    %c0_32 = arith.constant 0 : index
    %c0_33 = arith.constant 0 : index
    %42 = vector.load %arg9[%c0_32, %c0_33] : memref<8x1xf32, #tpu.memory_space<vmem>>, vector<8x1xf32>
    tpu.vector_store %arg9[%c0_32, %c0_33], %23 {strides = array<i32>} : memref<8x1xf32, #tpu.memory_space<vmem>>, vector<8x1xf32>,
    %c0_i32_34 = arith.constant 0 : i32
    %43 = arith.cmpi eq, %arg3, %c0_i32_34 : i32
    %44 = arith.extui %43 : i1 to i32
    %c0_i32_35 = arith.constant 0 : i32
    %45 = arith.cmpi ne, %44, %c0_i32_35 : i32
    scf.if %45 {
      %c0_36 = arith.constant 0 : index
      %c0_37 = arith.constant 0 : index
      %46 = vector.load %arg11[%c0_36, %c0_37] : memref<8x16xf32, #tpu.memory_space<vmem>>, vector<8x16xf32>
      %c0_38 = arith.constant 0 : index
      %c0_39 = arith.constant 0 : index
      %47 = vector.load %arg10[%c0_38, %c0_39] : memref<8x1xf32, #tpu.memory_space<vmem>>, vector<8x1xf32>
      %48 = tpu.reciprocal %47 {approx = true} : vector<8x1xf32> -> vector<8x1xf32>
      %49 = vector.broadcast %48 : vector<8x1xf32> to vector<8x16xf32>
      %50 = arith.mulf %46, %49 : vector<8x16xf32>
      %51 = arith.truncf %50 : vector<8x16xf32> to vector<8x16xbf16>
      %c0_40 = arith.constant 0 : index
      %c0_41 = arith.constant 0 : index
      %c0_42 = arith.constant 0 : index
      %c0_43 = arith.constant 0 : index
      %52 = vector.load %arg8[%c0_40, %c0_41, %c0_42, %c0_43] : memref<1x1x8x16xbf16, #tpu.memory_space<vmem>>, vector<1x1x8x16xbf16>
      %53 = vector.shape_cast %52 : vector<1x1x8x16xbf16> to vector<8x16xbf16>
      %54 = vector.shape_cast %51 : vector<8x16xbf16> to vector<1x1x8x16xbf16>
      tpu.vector_store %arg8[%c0_40, %c0_41, %c0_42, %c0_43], %54 {strides = array<i32>} : memref<1x1x8x16xbf16, #tpu.memory_space<vmem>>, vector<1x1x8x16xbf16>,
    } else {
    }
    return
  }
  func.func @transform_0(%arg0: i32, %arg1: i32, %arg2: i32, %arg3: i32) -> (i32, i32, i32, i32) {
    %c0_i32 = arith.constant 0 : i32
    %c0_i32_0 = arith.constant 0 : i32
    return %arg0, %arg1, %arg2, %c0_i32 : i32, i32, i32, i32
  }
  func.func @transform_1(%arg0: i32, %arg1: i32, %arg2: i32, %arg3: i32) -> (i32, i32, i32, i32) {
    %c0_i32 = arith.constant 0 : i32
    %c0_i32_0 = arith.constant 0 : i32
    return %arg0, %arg1, %arg3, %c0_i32 : i32, i32, i32, i32
  }
  func.func @transform_2(%arg0: i32, %arg1: i32, %arg2: i32, %arg3: i32) -> (i32, i32, i32, i32) {
    %c0_i32 = arith.constant 0 : i32
    %c0_i32_0 = arith.constant 0 : i32
    return %arg0, %arg1, %arg3, %c0_i32 : i32, i32, i32, i32
  }
  func.func @transform_3(%arg0: i32, %arg1: i32, %arg2: i32, %arg3: i32) -> (i32, i32, i32, i32) {
    %c0_i32 = arith.constant 0 : i32
    %c0_i32_0 = arith.constant 0 : i32
    %c0_i32_1 = arith.constant 0 : i32
    return %arg0, %c0_i32, %c0_i32_0, %arg3 : i32, i32, i32, i32
  }
  func.func @transform_4(%arg0: i32, %arg1: i32, %arg2: i32, %arg3: i32) -> (i32, i32, i32, i32) {
    %c0_i32 = arith.constant 0 : i32
    %c0_i32_0 = arith.constant 0 : i32
    return %arg0, %arg1, %arg2, %c0_i32 : i32, i32, i32, i32
  }
}

module attributes {stable_mosaic.version = 11 : i64} {
  func.func @_attn_out_kernel(%arg0: i32, %arg1: i32, %arg2: memref<1x2x8x16xbf16, #tpu.memory_space<vmem>>, %arg3: memref<1x8x32xbf16, #tpu.memory_space<vmem>>, %arg4: memref<2x16x32xbf16, #tpu.memory_space<vmem>>, %arg5: memref<1x32xf32, #tpu.memory_space<vmem>>, %arg6: memref<1x32xf32, #tpu.memory_space<vmem>>, %arg7: memref<1x32xf32, #tpu.memory_space<vmem>>, %arg8: memref<1x8x32xbf16, #tpu.memory_space<vmem>>) attributes {dimension_semantics = [#tpu.dimension_semantics<parallel>, #tpu.dimension_semantics<parallel>], iteration_bounds = array<i64: 2, 1>, scalar_prefetch = 0 : i64, scratch_operands = 0 : i64, tpu.core_type = #tpu.core_type<tc>, window_params = [{transform_indices = @transform_0, window_bounds = array<i64: 1, 2, 8, 16>}, {transform_indices = @transform_1, window_bounds = array<i64: 1, 8, 32>}, {pipeline_mode = #tpu.pipeline_mode<synchronous>, transform_indices = @transform_2, window_bounds = array<i64: 2, 16, 32>}, {pipeline_mode = #tpu.pipeline_mode<synchronous>, transform_indices = @transform_3, window_bounds = array<i64: 1, 32>}, {pipeline_mode = #tpu.pipeline_mode<synchronous>, transform_indices = @transform_4, window_bounds = array<i64: 1, 32>}, {pipeline_mode = #tpu.pipeline_mode<synchronous>, transform_indices = @transform_5, window_bounds = array<i64: 1, 32>}, {transform_indices = @transform_6, window_bounds = array<i64: 1, 8, 32>}]} {
    %c0 = arith.constant 0 : index
    %c0_0 = arith.constant 0 : index
    %c0_1 = arith.constant 0 : index
    %0 = vector.load %arg3[%c0, %c0_0, %c0_1] : memref<1x8x32xbf16, #tpu.memory_space<vmem>>, vector<1x8x32xbf16>
    %1 = vector.shape_cast %0 : vector<1x8x32xbf16> to vector<8x32xbf16>
    %c0_2 = arith.constant 0 : index
    %c0_3 = arith.constant 0 : index
    %2 = vector.load %arg5[%c0_2, %c0_3] : memref<1x32xf32, #tpu.memory_space<vmem>>, vector<1x32xf32>
    %3 = arith.extf %1 : vector<8x32xbf16> to vector<8x32xf32>
    %4 = vector.broadcast %2 : vector<1x32xf32> to vector<8x32xf32>
    %5 = arith.addf %4, %3 : vector<8x32xf32>
    %c0_4 = arith.constant 0 : index
    %c0_5 = arith.constant 0 : index
    %c0_6 = arith.constant 0 : index
    %c0_7 = arith.constant 0 : index
    %6 = vector.load %arg2[%c0_4, %c0_5, %c0_6, %c0_7] : memref<1x2x8x16xbf16, #tpu.memory_space<vmem>>, vector<1x1x8x16xbf16>
    %7 = vector.shape_cast %6 : vector<1x1x8x16xbf16> to vector<8x16xbf16>
    %c0_8 = arith.constant 0 : index
    %c0_9 = arith.constant 0 : index
    %c0_10 = arith.constant 0 : index
    %8 = vector.load %arg4[%c0_8, %c0_9, %c0_10] : memref<2x16x32xbf16, #tpu.memory_space<vmem>>, vector<1x16x32xbf16>
    %9 = vector.shape_cast %8 : vector<1x16x32xbf16> to vector<16x32xbf16>
    %cst = arith.constant dense<0.000000e+00> : vector<8x32xf32>
    %10 = tpu.matmul %7, %9, %cst {dimension_numbers = #tpu.dot_dimension_numbers<[1], [0], [0], [1], [0, 0, 1, 1], [], []>} : vector<8x16xbf16>, vector<16x32xbf16>, vector<8x32xf32> -> vector<8x32xf32>
    %11 = arith.addf %5, %10 : vector<8x32xf32>
    %c0_11 = arith.constant 0 : index
    %c1 = arith.constant 1 : index
    %c0_12 = arith.constant 0 : index
    %c0_13 = arith.constant 0 : index
    %12 = vector.load %arg2[%c0_11, %c1, %c0_12, %c0_13] : memref<1x2x8x16xbf16, #tpu.memory_space<vmem>>, vector<1x1x8x16xbf16>
    %13 = vector.shape_cast %12 : vector<1x1x8x16xbf16> to vector<8x16xbf16>
    %c1_14 = arith.constant 1 : index
    %c0_15 = arith.constant 0 : index
    %c0_16 = arith.constant 0 : index
    %14 = vector.load %arg4[%c1_14, %c0_15, %c0_16] : memref<2x16x32xbf16, #tpu.memory_space<vmem>>, vector<1x16x32xbf16>
    %15 = vector.shape_cast %14 : vector<1x16x32xbf16> to vector<16x32xbf16>
    %cst_17 = arith.constant dense<0.000000e+00> : vector<8x32xf32>
    %16 = tpu.matmul %13, %15, %cst_17 {dimension_numbers = #tpu.dot_dimension_numbers<[1], [0], [0], [1], [0, 0, 1, 1], [], []>} : vector<8x16xbf16>, vector<16x32xbf16>, vector<8x32xf32> -> vector<8x32xf32>
    %17 = arith.addf %11, %16 : vector<8x32xf32>
    %c0_18 = arith.constant 0 : index
    %c0_19 = arith.constant 0 : index
    %18 = vector.load %arg6[%c0_18, %c0_19] : memref<1x32xf32, #tpu.memory_space<vmem>>, vector<1x32xf32>
    %c0_20 = arith.constant 0 : index
    %c0_21 = arith.constant 0 : index
    %19 = vector.load %arg7[%c0_20, %c0_21] : memref<1x32xf32, #tpu.memory_space<vmem>>, vector<1x32xf32>
    %cst_22 = arith.constant dense<0.000000e+00> : vector<8xf32>
    %20 = vector.multi_reduction <add>, %17, %cst_22 [1] : vector<8x32xf32> to vector<8xf32>
    %21 = vector.shape_cast %20 : vector<8xf32> to vector<8x1xf32>
    %cst_23 = arith.constant 3.200000e+01 : f32
    %22 = vector.broadcast %cst_23 : f32 to vector<8x1xf32>
    %23 = arith.divf %21, %22 : vector<8x1xf32>
    %24 = vector.broadcast %23 : vector<8x1xf32> to vector<8x32xf32>
    %25 = arith.subf %17, %24 : vector<8x32xf32>
    %26 = arith.mulf %25, %25 : vector<8x32xf32>
    %cst_24 = arith.constant dense<0.000000e+00> : vector<8xf32>
    %27 = vector.multi_reduction <add>, %26, %cst_24 [1] : vector<8x32xf32> to vector<8xf32>
    %28 = vector.shape_cast %27 : vector<8xf32> to vector<8x1xf32>
    %cst_25 = arith.constant 3.200000e+01 : f32
    %29 = vector.broadcast %cst_25 : f32 to vector<8x1xf32>
    %30 = arith.divf %28, %29 : vector<8x1xf32>
    %31 = vector.broadcast %23 : vector<8x1xf32> to vector<8x32xf32>
    %32 = arith.subf %17, %31 : vector<8x32xf32>
    %cst_26 = arith.constant 9.99999974E-6 : f32
    %33 = vector.broadcast %cst_26 : f32 to vector<8x1xf32>
    %34 = arith.addf %30, %33 : vector<8x1xf32>
    %35 = math.rsqrt %34 : vector<8x1xf32>
    %36 = vector.broadcast %35 : vector<8x1xf32> to vector<8x32xf32>
    %37 = arith.mulf %32, %36 : vector<8x32xf32>
    %38 = vector.broadcast %18 : vector<1x32xf32> to vector<8x32xf32>
    %39 = arith.mulf %37, %38 : vector<8x32xf32>
    %40 = vector.broadcast %19 : vector<1x32xf32> to vector<8x32xf32>
    %41 = arith.addf %39, %40 : vector<8x32xf32>
    %42 = arith.truncf %41 : vector<8x32xf32> to vector<8x32xbf16>
    %c0_27 = arith.constant 0 : index
    %c0_28 = arith.constant 0 : index
    %c0_29 = arith.constant 0 : index
    %43 = vector.load %arg8[%c0_27, %c0_28, %c0_29] : memref<1x8x32xbf16, #tpu.memory_space<vmem>>, vector<1x8x32xbf16>
    %44 = vector.shape_cast %43 : vector<1x8x32xbf16> to vector<8x32xbf16>
    %45 = vector.shape_cast %42 : vector<8x32xbf16> to vector<1x8x32xbf16>
    tpu.vector_store %arg8[%c0_27, %c0_28, %c0_29], %45 {strides = array<i32>} : memref<1x8x32xbf16, #tpu.memory_space<vmem>>, vector<1x8x32xbf16>,
    return
  }
  func.func @transform_0(%arg0: i32, %arg1: i32) -> (i32, i32, i32, i32) {
    %c0_i32 = arith.constant 0 : i32
    %c0_i32_0 = arith.constant 0 : i32
    %c0_i32_1 = arith.constant 0 : i32
    return %arg0, %c0_i32, %arg1, %c0_i32_0 : i32, i32, i32, i32
  }
  func.func @transform_1(%arg0: i32, %arg1: i32) -> (i32, i32, i32) {
    %c0_i32 = arith.constant 0 : i32
    %c0_i32_0 = arith.constant 0 : i32
    return %arg0, %arg1, %c0_i32 : i32, i32, i32
  }
  func.func @transform_2(%arg0: i32, %arg1: i32) -> (i32, i32, i32) {
    %c0_i32 = arith.constant 0 : i32
    %c0_i32_0 = arith.constant 0 : i32
    %c0_i32_1 = arith.constant 0 : i32
    %c0_i32_2 = arith.constant 0 : i32
    return %c0_i32, %c0_i32_0, %c0_i32_1 : i32, i32, i32
  }
  func.func @transform_3(%arg0: i32, %arg1: i32) -> (i32, i32) {
    %c0_i32 = arith.constant 0 : i32
    %c0_i32_0 = arith.constant 0 : i32
    %c0_i32_1 = arith.constant 0 : i32
    return %c0_i32, %c0_i32_0 : i32, i32
  }
  func.func @transform_4(%arg0: i32, %arg1: i32) -> (i32, i32) {
    %c0_i32 = arith.constant 0 : i32
    %c0_i32_0 = arith.constant 0 : i32
    %c0_i32_1 = arith.constant 0 : i32
    return %c0_i32, %c0_i32_0 : i32, i32
  }
  func.func @transform_5(%arg0: i32, %arg1: i32) -> (i32, i32) {
    %c0_i32 = arith.constant 0 : i32
    %c0_i32_0 = arith.constant 0 : i32
    %c0_i32_1 = arith.constant 0 : i32
    return %c0_i32, %c0_i32_0 : i32, i32
  }
  func.func @transform_6(%arg0: i32, %arg1: i32) -> (i32, i32, i32) {
    %c0_i32 = arith.constant 0 : i32
    %c0_i32_0 = arith.constant 0 : i32
    return %arg0, %arg1, %c0_i32 : i32, i32, i32
  }
}

module attributes {stable_mosaic.version = 11 : i64} {
  func.func @_ffn_block_kernel(%arg0: i32, %arg1: memref<1x12x32xbf16, #tpu.memory_space<vmem>>, %arg2: memref<3x32x128xbf16, #tpu.memory_space<vmem>>, %arg3: memref<1x128xf32, #tpu.memory_space<vmem>>, %arg4: memref<3x128x32xbf16, #tpu.memory_space<vmem>>, %arg5: memref<1x32xf32, #tpu.memory_space<vmem>>, %arg6: memref<1x32xf32, #tpu.memory_space<vmem>>, %arg7: memref<1x32xf32, #tpu.memory_space<vmem>>, %arg8: memref<1x8x32xbf16, #tpu.memory_space<vmem>>) attributes {dimension_semantics = [#tpu.dimension_semantics<parallel>], iteration_bounds = array<i64: 2>, scalar_prefetch = 0 : i64, scratch_operands = 0 : i64, tpu.core_type = #tpu.core_type<tc>, window_params = [{transform_indices = @transform_0, window_bounds = array<i64: 1, 12, 32>}, {pipeline_mode = #tpu.pipeline_mode<synchronous>, transform_indices = @transform_1, window_bounds = array<i64: 3, 32, 128>}, {pipeline_mode = #tpu.pipeline_mode<synchronous>, transform_indices = @transform_2, window_bounds = array<i64: 1, 128>}, {pipeline_mode = #tpu.pipeline_mode<synchronous>, transform_indices = @transform_3, window_bounds = array<i64: 3, 128, 32>}, {pipeline_mode = #tpu.pipeline_mode<synchronous>, transform_indices = @transform_4, window_bounds = array<i64: 1, 32>}, {pipeline_mode = #tpu.pipeline_mode<synchronous>, transform_indices = @transform_5, window_bounds = array<i64: 1, 32>}, {pipeline_mode = #tpu.pipeline_mode<synchronous>, transform_indices = @transform_6, window_bounds = array<i64: 1, 32>}, {transform_indices = @transform_7, window_bounds = array<i64: 1, 8, 32>}]} {
    %c0 = arith.constant 0 : index
    %c0_0 = arith.constant 0 : index
    %c0_1 = arith.constant 0 : index
    %0 = vector.load %arg1[%c0, %c0_0, %c0_1] : memref<1x12x32xbf16, #tpu.memory_space<vmem>>, vector<1x12x32xbf16>
    %1 = vector.shape_cast %0 : vector<1x12x32xbf16> to vector<12x32xbf16>
    %cst = arith.constant 0.000000e+00 : f32
    %2 = vector.broadcast %cst : f32 to vector<10x128xf32>
    %3 = vector.extract_strided_slice %1 {offsets = [0, 0], sizes = [10, 32], strides = [1, 1]} : vector<12x32xbf16> to vector<10x32xbf16>
    %c0_2 = arith.constant 0 : index
    %c0_3 = arith.constant 0 : index
    %c0_4 = arith.constant 0 : index
    %4 = vector.load %arg2[%c0_2, %c0_3, %c0_4] : memref<3x32x128xbf16, #tpu.memory_space<vmem>>, vector<1x32x128xbf16>
    %5 = vector.shape_cast %4 : vector<1x32x128xbf16> to vector<32x128xbf16>
    %cst_5 = arith.constant dense<0.000000e+00> : vector<10x128xf32>
    %6 = tpu.matmul %3, %5, %cst_5 {dimension_numbers = #tpu.dot_dimension_numbers<[1], [0], [0], [1], [0, 0, 1, 1], [], []>} : vector<10x32xbf16>, vector<32x128xbf16>, vector<10x128xf32> -> vector<10x128xf32>
    %7 = arith.addf %2, %6 : vector<10x128xf32>
    %8 = vector.extract_strided_slice %1 {offsets = [1, 0], sizes = [10, 32], strides = [1, 1]} : vector<12x32xbf16> to vector<10x32xbf16>
    %c1 = arith.constant 1 : index
    %c0_6 = arith.constant 0 : index
    %c0_7 = arith.constant 0 : index
    %9 = vector.load %arg2[%c1, %c0_6, %c0_7] : memref<3x32x128xbf16, #tpu.memory_space<vmem>>, vector<1x32x128xbf16>
    %10 = vector.shape_cast %9 : vector<1x32x128xbf16> to vector<32x128xbf16>
    %cst_8 = arith.constant dense<0.000000e+00> : vector<10x128xf32>
    %11 = tpu.matmul %8, %10, %cst_8 {dimension_numbers = #tpu.dot_dimension_numbers<[1], [0], [0], [1], [0, 0, 1, 1], [], []>} : vector<10x32xbf16>, vector<32x128xbf16>, vector<10x128xf32> -> vector<10x128xf32>
    %12 = arith.addf %7, %11 : vector<10x128xf32>
    %13 = vector.extract_strided_slice %1 {offsets = [2, 0], sizes = [10, 32], strides = [1, 1]} : vector<12x32xbf16> to vector<10x32xbf16>
    %c2 = arith.constant 2 : index
    %c0_9 = arith.constant 0 : index
    %c0_10 = arith.constant 0 : index
    %14 = vector.load %arg2[%c2, %c0_9, %c0_10] : memref<3x32x128xbf16, #tpu.memory_space<vmem>>, vector<1x32x128xbf16>
    %15 = vector.shape_cast %14 : vector<1x32x128xbf16> to vector<32x128xbf16>
    %cst_11 = arith.constant dense<0.000000e+00> : vector<10x128xf32>
    %16 = tpu.matmul %13, %15, %cst_11 {dimension_numbers = #tpu.dot_dimension_numbers<[1], [0], [0], [1], [0, 0, 1, 1], [], []>} : vector<10x32xbf16>, vector<32x128xbf16>, vector<10x128xf32> -> vector<10x128xf32>
    %17 = arith.addf %12, %16 : vector<10x128xf32>
    %c0_12 = arith.constant 0 : index
    %c0_13 = arith.constant 0 : index
    %18 = vector.load %arg3[%c0_12, %c0_13] : memref<1x128xf32, #tpu.memory_space<vmem>>, vector<1x128xf32>
    %19 = vector.broadcast %18 : vector<1x128xf32> to vector<10x128xf32>
    %20 = arith.addf %17, %19 : vector<10x128xf32>
    %cst_14 = arith.constant 0.000000e+00 : f32
    %21 = vector.broadcast %cst_14 : f32 to vector<10x128xf32>
    %22 = arith.maximumf %20, %21 : vector<10x128xf32>
    %23 = tpu.iota {dimensions = array<i32: 0>} : vector<10x1xi32>
    %c1_i32 = arith.constant 1 : i32
    %24 = vector.broadcast %c1_i32 : i32 to vector<10x1xi32>
    %25 = arith.cmpi sge, %23, %24 : vector<10x1xi32>
    %c9_i32 = arith.constant 9 : i32
    %26 = vector.broadcast %c9_i32 : i32 to vector<10x1xi32>
    %27 = arith.cmpi slt, %23, %26 : vector<10x1xi32>
    %28 = arith.andi %25, %27 : vector<10x1xi1>
    %cst_15 = arith.constant 0.000000e+00 : f32
    %29 = vector.shape_cast %28 : vector<10x1xi1> to vector<10x1xi1>
    %30 = vector.broadcast %29 : vector<10x1xi1> to vector<10x128xi1>
    %31 = vector.broadcast %cst_15 : f32 to vector<10x128xf32>
    %32 = arith.select %30, %22, %31 : vector<10x128xi1>, vector<10x128xf32>
    %33 = arith.truncf %32 : vector<10x128xf32> to vector<10x128xbf16>
    %cst_16 = arith.constant 0.000000e+00 : f32
    %34 = vector.broadcast %cst_16 : f32 to vector<8x32xf32>
    %35 = vector.extract_strided_slice %33 {offsets = [0, 0], sizes = [8, 128], strides = [1, 1]} : vector<10x128xbf16> to vector<8x128xbf16>
    %c0_17 = arith.constant 0 : index
    %c0_18 = arith.constant 0 : index
    %c0_19 = arith.constant 0 : index
    %36 = vector.load %arg4[%c0_17, %c0_18, %c0_19] : memref<3x128x32xbf16, #tpu.memory_space<vmem>>, vector<1x128x32xbf16>
    %37 = vector.shape_cast %36 : vector<1x128x32xbf16> to vector<128x32xbf16>
    %cst_20 = arith.constant dense<0.000000e+00> : vector<8x32xf32>
    %38 = tpu.matmul %35, %37, %cst_20 {dimension_numbers = #tpu.dot_dimension_numbers<[1], [0], [0], [1], [0, 0, 1, 1], [], []>} : vector<8x128xbf16>, vector<128x32xbf16>, vector<8x32xf32> -> vector<8x32xf32>
    %39 = arith.addf %34, %38 : vector<8x32xf32>
    %40 = vector.extract_strided_slice %33 {offsets = [1, 0], sizes = [8, 128], strides = [1, 1]} : vector<10x128xbf16> to vector<8x128xbf16>
    %c1_21 = arith.constant 1 : index
    %c0_22 = arith.constant 0 : index
    %c0_23 = arith.constant 0 : index
    %41 = vector.load %arg4[%c1_21, %c0_22, %c0_23] : memref<3x128x32xbf16, #tpu.memory_space<vmem>>, vector<1x128x32xbf16>
    %42 = vector.shape_cast %41 : vector<1x128x32xbf16> to vector<128x32xbf16>
    %cst_24 = arith.constant dense<0.000000e+00> : vector<8x32xf32>
    %43 = tpu.matmul %40, %42, %cst_24 {dimension_numbers = #tpu.dot_dimension_numbers<[1], [0], [0], [1], [0, 0, 1, 1], [], []>} : vector<8x128xbf16>, vector<128x32xbf16>, vector<8x32xf32> -> vector<8x32xf32>
    %44 = arith.addf %39, %43 : vector<8x32xf32>
    %45 = vector.extract_strided_slice %33 {offsets = [2, 0], sizes = [8, 128], strides = [1, 1]} : vector<10x128xbf16> to vector<8x128xbf16>
    %c2_25 = arith.constant 2 : index
    %c0_26 = arith.constant 0 : index
    %c0_27 = arith.constant 0 : index
    %46 = vector.load %arg4[%c2_25, %c0_26, %c0_27] : memref<3x128x32xbf16, #tpu.memory_space<vmem>>, vector<1x128x32xbf16>
    %47 = vector.shape_cast %46 : vector<1x128x32xbf16> to vector<128x32xbf16>
    %cst_28 = arith.constant dense<0.000000e+00> : vector<8x32xf32>
    %48 = tpu.matmul %45, %47, %cst_28 {dimension_numbers = #tpu.dot_dimension_numbers<[1], [0], [0], [1], [0, 0, 1, 1], [], []>} : vector<8x128xbf16>, vector<128x32xbf16>, vector<8x32xf32> -> vector<8x32xf32>
    %49 = arith.addf %44, %48 : vector<8x32xf32>
    %c0_29 = arith.constant 0 : index
    %c0_30 = arith.constant 0 : index
    %50 = vector.load %arg5[%c0_29, %c0_30] : memref<1x32xf32, #tpu.memory_space<vmem>>, vector<1x32xf32>
    %51 = vector.broadcast %50 : vector<1x32xf32> to vector<8x32xf32>
    %52 = arith.addf %49, %51 : vector<8x32xf32>
    %53 = vector.extract_strided_slice %1 {offsets = [2, 0], sizes = [8, 32], strides = [1, 1]} : vector<12x32xbf16> to vector<8x32xbf16>
    %54 = arith.extf %53 : vector<8x32xbf16> to vector<8x32xf32>
    %55 = arith.addf %52, %54 : vector<8x32xf32>
    %c0_31 = arith.constant 0 : index
    %c0_32 = arith.constant 0 : index
    %56 = vector.load %arg6[%c0_31, %c0_32] : memref<1x32xf32, #tpu.memory_space<vmem>>, vector<1x32xf32>
    %c0_33 = arith.constant 0 : index
    %c0_34 = arith.constant 0 : index
    %57 = vector.load %arg7[%c0_33, %c0_34] : memref<1x32xf32, #tpu.memory_space<vmem>>, vector<1x32xf32>
    %cst_35 = arith.constant dense<0.000000e+00> : vector<8xf32>
    %58 = vector.multi_reduction <add>, %55, %cst_35 [1] : vector<8x32xf32> to vector<8xf32>
    %59 = vector.shape_cast %58 : vector<8xf32> to vector<8x1xf32>
    %cst_36 = arith.constant 3.200000e+01 : f32
    %60 = vector.broadcast %cst_36 : f32 to vector<8x1xf32>
    %61 = arith.divf %59, %60 : vector<8x1xf32>
    %62 = vector.broadcast %61 : vector<8x1xf32> to vector<8x32xf32>
    %63 = arith.subf %55, %62 : vector<8x32xf32>
    %64 = arith.mulf %63, %63 : vector<8x32xf32>
    %cst_37 = arith.constant dense<0.000000e+00> : vector<8xf32>
    %65 = vector.multi_reduction <add>, %64, %cst_37 [1] : vector<8x32xf32> to vector<8xf32>
    %66 = vector.shape_cast %65 : vector<8xf32> to vector<8x1xf32>
    %cst_38 = arith.constant 3.200000e+01 : f32
    %67 = vector.broadcast %cst_38 : f32 to vector<8x1xf32>
    %68 = arith.divf %66, %67 : vector<8x1xf32>
    %69 = vector.broadcast %61 : vector<8x1xf32> to vector<8x32xf32>
    %70 = arith.subf %55, %69 : vector<8x32xf32>
    %cst_39 = arith.constant 9.99999974E-6 : f32
    %71 = vector.broadcast %cst_39 : f32 to vector<8x1xf32>
    %72 = arith.addf %68, %71 : vector<8x1xf32>
    %73 = math.rsqrt %72 : vector<8x1xf32>
    %74 = vector.broadcast %73 : vector<8x1xf32> to vector<8x32xf32>
    %75 = arith.mulf %70, %74 : vector<8x32xf32>
    %76 = vector.broadcast %56 : vector<1x32xf32> to vector<8x32xf32>
    %77 = arith.mulf %75, %76 : vector<8x32xf32>
    %78 = vector.broadcast %57 : vector<1x32xf32> to vector<8x32xf32>
    %79 = arith.addf %77, %78 : vector<8x32xf32>
    %80 = arith.truncf %79 : vector<8x32xf32> to vector<8x32xbf16>
    %c0_40 = arith.constant 0 : index
    %c0_41 = arith.constant 0 : index
    %c0_42 = arith.constant 0 : index
    %81 = vector.load %arg8[%c0_40, %c0_41, %c0_42] : memref<1x8x32xbf16, #tpu.memory_space<vmem>>, vector<1x8x32xbf16>
    %82 = vector.shape_cast %81 : vector<1x8x32xbf16> to vector<8x32xbf16>
    %83 = vector.shape_cast %80 : vector<8x32xbf16> to vector<1x8x32xbf16>
    tpu.vector_store %arg8[%c0_40, %c0_41, %c0_42], %83 {strides = array<i32>} : memref<1x8x32xbf16, #tpu.memory_space<vmem>>, vector<1x8x32xbf16>,
    return
  }
  func.func @transform_0(%arg0: i32) -> (i32, i32, i32) {
    %c0_i32 = arith.constant 0 : i32
    %c0_i32_0 = arith.constant 0 : i32
    %c0_i32_1 = arith.constant 0 : i32
    return %arg0, %c0_i32, %c0_i32_0 : i32, i32, i32
  }
  func.func @transform_1(%arg0: i32) -> (i32, i32, i32) {
    %c0_i32 = arith.constant 0 : i32
    %c0_i32_0 = arith.constant 0 : i32
    %c0_i32_1 = arith.constant 0 : i32
    %c0_i32_2 = arith.constant 0 : i32
    return %c0_i32, %c0_i32_0, %c0_i32_1 : i32, i32, i32
  }
  func.func @transform_2(%arg0: i32) -> (i32, i32) {
    %c0_i32 = arith.constant 0 : i32
    %c0_i32_0 = arith.constant 0 : i32
    %c0_i32_1 = arith.constant 0 : i32
    return %c0_i32, %c0_i32_0 : i32, i32
  }
  func.func @transform_3(%arg0: i32) -> (i32, i32, i32) {
    %c0_i32 = arith.constant 0 : i32
    %c0_i32_0 = arith.constant 0 : i32
    %c0_i32_1 = arith.constant 0 : i32
    %c0_i32_2 = arith.constant 0 : i32
    return %c0_i32, %c0_i32_0, %c0_i32_1 : i32, i32, i32
  }
  func.func @transform_4(%arg0: i32) -> (i32, i32) {
    %c0_i32 = arith.constant 0 : i32
    %c0_i32_0 = arith.constant 0 : i32
    %c0_i32_1 = arith.constant 0 : i32
    return %c0_i32, %c0_i32_0 : i32, i32
  }
  func.func @transform_5(%arg0: i32) -> (i32, i32) {
    %c0_i32 = arith.constant 0 : i32
    %c0_i32_0 = arith.constant 0 : i32
    %c0_i32_1 = arith.constant 0 : i32
    return %c0_i32, %c0_i32_0 : i32, i32
  }
  func.func @transform_6(%arg0: i32) -> (i32, i32) {
    %c0_i32 = arith.constant 0 : i32
    %c0_i32_0 = arith.constant 0 : i32
    %c0_i32_1 = arith.constant 0 : i32
    return %c0_i32, %c0_i32_0 : i32, i32
  }
  func.func @transform_7(%arg0: i32) -> (i32, i32, i32) {
    %c0_i32 = arith.constant 0 : i32
    %c0_i32_0 = arith.constant 0 : i32
    %c0_i32_1 = arith.constant 0 : i32
    return %arg0, %c0_i32, %c0_i32_0 : i32, i32, i32
  }
}

module attributes {stable_mosaic.version = 11 : i64} {
  func.func @_attn_probs_kernel(%arg0: i32, %arg1: i32, %arg2: i32, %arg3: memref<1x1x8x16xbf16, #tpu.memory_space<vmem>>, %arg4: memref<1x1x8x16xbf16, #tpu.memory_space<vmem>>, %arg5: memref<1x1x1x8xf32, #tpu.memory_space<vmem>>, %arg6: memref<1x1x8x8xbf16, #tpu.memory_space<vmem>>) attributes {dimension_semantics = [#tpu.dimension_semantics<parallel>, #tpu.dimension_semantics<parallel>, #tpu.dimension_semantics<parallel>], iteration_bounds = array<i64: 2, 2, 1>, scalar_prefetch = 0 : i64, scratch_operands = 0 : i64, tpu.core_type = #tpu.core_type<tc>, window_params = [{transform_indices = @transform_0, window_bounds = array<i64: 1, 1, 8, 16>}, {transform_indices = @transform_1, window_bounds = array<i64: 1, 1, 8, 16>}, {transform_indices = @transform_2, window_bounds = array<i64: 1, 1, 1, 8>}, {transform_indices = @transform_3, window_bounds = array<i64: 1, 1, 8, 8>}]} {
    %c0 = arith.constant 0 : index
    %c0_0 = arith.constant 0 : index
    %c0_1 = arith.constant 0 : index
    %c0_2 = arith.constant 0 : index
    %0 = vector.load %arg3[%c0, %c0_0, %c0_1, %c0_2] : memref<1x1x8x16xbf16, #tpu.memory_space<vmem>>, vector<1x1x8x16xbf16>
    %1 = vector.shape_cast %0 : vector<1x1x8x16xbf16> to vector<8x16xbf16>
    %c0_3 = arith.constant 0 : index
    %c0_4 = arith.constant 0 : index
    %c0_5 = arith.constant 0 : index
    %c0_6 = arith.constant 0 : index
    %2 = vector.load %arg4[%c0_3, %c0_4, %c0_5, %c0_6] : memref<1x1x8x16xbf16, #tpu.memory_space<vmem>>, vector<1x1x8x16xbf16>
    %3 = vector.shape_cast %2 : vector<1x1x8x16xbf16> to vector<8x16xbf16>
    %c0_7 = arith.constant 0 : index
    %c0_8 = arith.constant 0 : index
    %c0_9 = arith.constant 0 : index
    %c0_10 = arith.constant 0 : index
    %4 = vector.load %arg5[%c0_7, %c0_8, %c0_9, %c0_10] : memref<1x1x1x8xf32, #tpu.memory_space<vmem>>, vector<1x1x1x8xf32>
    %5 = vector.shape_cast %4 : vector<1x1x1x8xf32> to vector<1x8xf32>
    %cst = arith.constant dense<0.000000e+00> : vector<8x8xf32>
    %6 = tpu.matmul %1, %3, %cst {dimension_numbers = #tpu.dot_dimension_numbers<[1], [1], [0], [0], [0, 0, 1, 0], [], []>} : vector<8x16xbf16>, vector<8x16xbf16>, vector<8x8xf32> -> vector<8x8xf32>
    %cst_11 = arith.constant 2.500000e-01 : f32
    %7 = vector.broadcast %cst_11 : f32 to vector<8x8xf32>
    %8 = arith.mulf %6, %7 : vector<8x8xf32>
    %cst_12 = arith.constant 5.000000e-01 : f32
    %9 = vector.broadcast %cst_12 : f32 to vector<1x8xf32>
    %10 = arith.cmpf ogt, %5, %9 : vector<1x8xf32>
    %cst_13 = arith.constant -1.000000e+09 : f32
    %11 = vector.shape_cast %10 : vector<1x8xi1> to vector<1x8xi1>
    %12 = vector.broadcast %11 : vector<1x8xi1> to vector<8x8xi1>
    %13 = vector.broadcast %cst_13 : f32 to vector<8x8xf32>
    %14 = arith.select %12, %8, %13 : vector<8x8xi1>, vector<8x8xf32>
    %cst_14 = arith.constant dense<0xFF800000> : vector<8xf32>
    %15 = vector.multi_reduction <maximumf>, %14, %cst_14 [1] : vector<8x8xf32> to vector<8xf32>
    %16 = vector.shape_cast %15 : vector<8xf32> to vector<8x1xf32>
    %17 = vector.broadcast %16 : vector<8x1xf32> to vector<8x8xf32>
    %18 = arith.subf %14, %17 : vector<8x8xf32>
    %19 = math.exp %18 : vector<8x8xf32>
    %cst_15 = arith.constant dense<0.000000e+00> : vector<8xf32>
    %20 = vector.multi_reduction <add>, %19, %cst_15 [1] : vector<8x8xf32> to vector<8xf32>
    %21 = vector.shape_cast %20 : vector<8xf32> to vector<8x1xf32>
    %22 = vector.broadcast %21 : vector<8x1xf32> to vector<8x8xf32>
    %23 = arith.divf %19, %22 : vector<8x8xf32>
    %24 = arith.truncf %23 : vector<8x8xf32> to vector<8x8xbf16>
    %c0_16 = arith.constant 0 : index
    %c0_17 = arith.constant 0 : index
    %c0_18 = arith.constant 0 : index
    %c0_19 = arith.constant 0 : index
    %25 = vector.load %arg6[%c0_16, %c0_17, %c0_18, %c0_19] : memref<1x1x8x8xbf16, #tpu.memory_space<vmem>>, vector<1x1x8x8xbf16>
    %26 = vector.shape_cast %25 : vector<1x1x8x8xbf16> to vector<8x8xbf16>
    %27 = vector.shape_cast %24 : vector<8x8xbf16> to vector<1x1x8x8xbf16>
    tpu.vector_store %arg6[%c0_16, %c0_17, %c0_18, %c0_19], %27 {strides = array<i32>} : memref<1x1x8x8xbf16, #tpu.memory_space<vmem>>, vector<1x1x8x8xbf16>,
    return
  }
  func.func @transform_0(%arg0: i32, %arg1: i32, %arg2: i32) -> (i32, i32, i32, i32) {
    %c0_i32 = arith.constant 0 : i32
    %c0_i32_0 = arith.constant 0 : i32
    return %arg0, %arg1, %arg2, %c0_i32 : i32, i32, i32, i32
  }
  func.func @transform_1(%arg0: i32, %arg1: i32, %arg2: i32) -> (i32, i32, i32, i32) {
    %c0_i32 = arith.constant 0 : i32
    %c0_i32_0 = arith.constant 0 : i32
    %c0_i32_1 = arith.constant 0 : i32
    return %arg0, %arg1, %c0_i32, %c0_i32_0 : i32, i32, i32, i32
  }
  func.func @transform_2(%arg0: i32, %arg1: i32, %arg2: i32) -> (i32, i32, i32, i32) {
    %c0_i32 = arith.constant 0 : i32
    %c0_i32_0 = arith.constant 0 : i32
    %c0_i32_1 = arith.constant 0 : i32
    %c0_i32_2 = arith.constant 0 : i32
    return %arg0, %c0_i32, %c0_i32_0, %c0_i32_1 : i32, i32, i32, i32
  }
  func.func @transform_3(%arg0: i32, %arg1: i32, %arg2: i32) -> (i32, i32, i32, i32) {
    %c0_i32 = arith.constant 0 : i32
    %c0_i32_0 = arith.constant 0 : i32
    return %arg0, %arg1, %arg2, %c0_i32 : i32, i32, i32, i32
  }
}

module attributes {stable_mosaic.version = 11 : i64} {
  func.func @_var_pred_kernel(%arg0: i32, %arg1: memref<1x12x32xbf16, #tpu.memory_space<vmem>>, %arg2: memref<3x32x32xbf16, #tpu.memory_space<vmem>>, %arg3: memref<1x32xf32, #tpu.memory_space<vmem>>, %arg4: memref<1x32xf32, #tpu.memory_space<vmem>>, %arg5: memref<1x32xf32, #tpu.memory_space<vmem>>, %arg6: memref<3x32x32xbf16, #tpu.memory_space<vmem>>, %arg7: memref<1x32xf32, #tpu.memory_space<vmem>>, %arg8: memref<1x32xf32, #tpu.memory_space<vmem>>, %arg9: memref<1x32xf32, #tpu.memory_space<vmem>>, %arg10: memref<32x128xbf16, #tpu.memory_space<vmem>>, %arg11: memref<1x128xf32, #tpu.memory_space<vmem>>, %arg12: memref<1x8x128xf32, #tpu.memory_space<vmem>>) attributes {dimension_semantics = [#tpu.dimension_semantics<parallel>], iteration_bounds = array<i64: 2>, scalar_prefetch = 0 : i64, scratch_operands = 0 : i64, tpu.core_type = #tpu.core_type<tc>, window_params = [{transform_indices = @transform_0, window_bounds = array<i64: 1, 12, 32>}, {pipeline_mode = #tpu.pipeline_mode<synchronous>, transform_indices = @transform_1, window_bounds = array<i64: 3, 32, 32>}, {pipeline_mode = #tpu.pipeline_mode<synchronous>, transform_indices = @transform_2, window_bounds = array<i64: 1, 32>}, {pipeline_mode = #tpu.pipeline_mode<synchronous>, transform_indices = @transform_3, window_bounds = array<i64: 1, 32>}, {pipeline_mode = #tpu.pipeline_mode<synchronous>, transform_indices = @transform_4, window_bounds = array<i64: 1, 32>}, {pipeline_mode = #tpu.pipeline_mode<synchronous>, transform_indices = @transform_5, window_bounds = array<i64: 3, 32, 32>}, {pipeline_mode = #tpu.pipeline_mode<synchronous>, transform_indices = @transform_6, window_bounds = array<i64: 1, 32>}, {pipeline_mode = #tpu.pipeline_mode<synchronous>, transform_indices = @transform_7, window_bounds = array<i64: 1, 32>}, {pipeline_mode = #tpu.pipeline_mode<synchronous>, transform_indices = @transform_8, window_bounds = array<i64: 1, 32>}, {pipeline_mode = #tpu.pipeline_mode<synchronous>, transform_indices = @transform_9, window_bounds = array<i64: 32, 128>}, {pipeline_mode = #tpu.pipeline_mode<synchronous>, transform_indices = @transform_10, window_bounds = array<i64: 1, 128>}, {transform_indices = @transform_11, window_bounds = array<i64: 1, 8, 128>}]} {
    %c0 = arith.constant 0 : index
    %c0_0 = arith.constant 0 : index
    %c0_1 = arith.constant 0 : index
    %0 = vector.load %arg1[%c0, %c0_0, %c0_1] : memref<1x12x32xbf16, #tpu.memory_space<vmem>>, vector<1x12x32xbf16>
    %1 = vector.shape_cast %0 : vector<1x12x32xbf16> to vector<12x32xbf16>
    %cst = arith.constant 0.000000e+00 : f32
    %2 = vector.broadcast %cst : f32 to vector<10x32xf32>
    %3 = vector.extract_strided_slice %1 {offsets = [0, 0], sizes = [10, 32], strides = [1, 1]} : vector<12x32xbf16> to vector<10x32xbf16>
    %c0_2 = arith.constant 0 : index
    %c0_3 = arith.constant 0 : index
    %c0_4 = arith.constant 0 : index
    %4 = vector.load %arg2[%c0_2, %c0_3, %c0_4] : memref<3x32x32xbf16, #tpu.memory_space<vmem>>, vector<1x32x32xbf16>
    %5 = vector.shape_cast %4 : vector<1x32x32xbf16> to vector<32x32xbf16>
    %cst_5 = arith.constant dense<0.000000e+00> : vector<10x32xf32>
    %6 = tpu.matmul %3, %5, %cst_5 {dimension_numbers = #tpu.dot_dimension_numbers<[1], [0], [0], [1], [0, 0, 1, 1], [], []>} : vector<10x32xbf16>, vector<32x32xbf16>, vector<10x32xf32> -> vector<10x32xf32>
    %7 = arith.addf %2, %6 : vector<10x32xf32>
    %8 = vector.extract_strided_slice %1 {offsets = [1, 0], sizes = [10, 32], strides = [1, 1]} : vector<12x32xbf16> to vector<10x32xbf16>
    %c1 = arith.constant 1 : index
    %c0_6 = arith.constant 0 : index
    %c0_7 = arith.constant 0 : index
    %9 = vector.load %arg2[%c1, %c0_6, %c0_7] : memref<3x32x32xbf16, #tpu.memory_space<vmem>>, vector<1x32x32xbf16>
    %10 = vector.shape_cast %9 : vector<1x32x32xbf16> to vector<32x32xbf16>
    %cst_8 = arith.constant dense<0.000000e+00> : vector<10x32xf32>
    %11 = tpu.matmul %8, %10, %cst_8 {dimension_numbers = #tpu.dot_dimension_numbers<[1], [0], [0], [1], [0, 0, 1, 1], [], []>} : vector<10x32xbf16>, vector<32x32xbf16>, vector<10x32xf32> -> vector<10x32xf32>
    %12 = arith.addf %7, %11 : vector<10x32xf32>
    %13 = vector.extract_strided_slice %1 {offsets = [2, 0], sizes = [10, 32], strides = [1, 1]} : vector<12x32xbf16> to vector<10x32xbf16>
    %c2 = arith.constant 2 : index
    %c0_9 = arith.constant 0 : index
    %c0_10 = arith.constant 0 : index
    %14 = vector.load %arg2[%c2, %c0_9, %c0_10] : memref<3x32x32xbf16, #tpu.memory_space<vmem>>, vector<1x32x32xbf16>
    %15 = vector.shape_cast %14 : vector<1x32x32xbf16> to vector<32x32xbf16>
    %cst_11 = arith.constant dense<0.000000e+00> : vector<10x32xf32>
    %16 = tpu.matmul %13, %15, %cst_11 {dimension_numbers = #tpu.dot_dimension_numbers<[1], [0], [0], [1], [0, 0, 1, 1], [], []>} : vector<10x32xbf16>, vector<32x32xbf16>, vector<10x32xf32> -> vector<10x32xf32>
    %17 = arith.addf %12, %16 : vector<10x32xf32>
    %c0_12 = arith.constant 0 : index
    %c0_13 = arith.constant 0 : index
    %18 = vector.load %arg3[%c0_12, %c0_13] : memref<1x32xf32, #tpu.memory_space<vmem>>, vector<1x32xf32>
    %19 = vector.broadcast %18 : vector<1x32xf32> to vector<10x32xf32>
    %20 = arith.addf %17, %19 : vector<10x32xf32>
    %cst_14 = arith.constant 0.000000e+00 : f32
    %21 = vector.broadcast %cst_14 : f32 to vector<10x32xf32>
    %22 = arith.maximumf %20, %21 : vector<10x32xf32>
    %c0_15 = arith.constant 0 : index
    %c0_16 = arith.constant 0 : index
    %23 = vector.load %arg4[%c0_15, %c0_16] : memref<1x32xf32, #tpu.memory_space<vmem>>, vector<1x32xf32>
    %c0_17 = arith.constant 0 : index
    %c0_18 = arith.constant 0 : index
    %24 = vector.load %arg5[%c0_17, %c0_18] : memref<1x32xf32, #tpu.memory_space<vmem>>, vector<1x32xf32>
    %cst_19 = arith.constant dense<0.000000e+00> : vector<10xf32>
    %25 = vector.multi_reduction <add>, %22, %cst_19 [1] : vector<10x32xf32> to vector<10xf32>
    %26 = vector.shape_cast %25 : vector<10xf32> to vector<10x1xf32>
    %cst_20 = arith.constant 3.200000e+01 : f32
    %27 = vector.broadcast %cst_20 : f32 to vector<10x1xf32>
    %28 = arith.divf %26, %27 : vector<10x1xf32>
    %29 = vector.broadcast %28 : vector<10x1xf32> to vector<10x32xf32>
    %30 = arith.subf %22, %29 : vector<10x32xf32>
    %31 = arith.mulf %30, %30 : vector<10x32xf32>
    %cst_21 = arith.constant dense<0.000000e+00> : vector<10xf32>
    %32 = vector.multi_reduction <add>, %31, %cst_21 [1] : vector<10x32xf32> to vector<10xf32>
    %33 = vector.shape_cast %32 : vector<10xf32> to vector<10x1xf32>
    %cst_22 = arith.constant 3.200000e+01 : f32
    %34 = vector.broadcast %cst_22 : f32 to vector<10x1xf32>
    %35 = arith.divf %33, %34 : vector<10x1xf32>
    %36 = vector.broadcast %28 : vector<10x1xf32> to vector<10x32xf32>
    %37 = arith.subf %22, %36 : vector<10x32xf32>
    %cst_23 = arith.constant 9.99999974E-6 : f32
    %38 = vector.broadcast %cst_23 : f32 to vector<10x1xf32>
    %39 = arith.addf %35, %38 : vector<10x1xf32>
    %40 = math.rsqrt %39 : vector<10x1xf32>
    %41 = vector.broadcast %40 : vector<10x1xf32> to vector<10x32xf32>
    %42 = arith.mulf %37, %41 : vector<10x32xf32>
    %43 = vector.broadcast %23 : vector<1x32xf32> to vector<10x32xf32>
    %44 = arith.mulf %42, %43 : vector<10x32xf32>
    %45 = vector.broadcast %24 : vector<1x32xf32> to vector<10x32xf32>
    %46 = arith.addf %44, %45 : vector<10x32xf32>
    %47 = tpu.iota {dimensions = array<i32: 0>} : vector<10x1xi32>
    %c1_i32 = arith.constant 1 : i32
    %48 = vector.broadcast %c1_i32 : i32 to vector<10x1xi32>
    %49 = arith.cmpi sge, %47, %48 : vector<10x1xi32>
    %c9_i32 = arith.constant 9 : i32
    %50 = vector.broadcast %c9_i32 : i32 to vector<10x1xi32>
    %51 = arith.cmpi slt, %47, %50 : vector<10x1xi32>
    %52 = arith.andi %49, %51 : vector<10x1xi1>
    %cst_24 = arith.constant 0.000000e+00 : f32
    %53 = vector.shape_cast %52 : vector<10x1xi1> to vector<10x1xi1>
    %54 = vector.broadcast %53 : vector<10x1xi1> to vector<10x32xi1>
    %55 = vector.broadcast %cst_24 : f32 to vector<10x32xf32>
    %56 = arith.select %54, %46, %55 : vector<10x32xi1>, vector<10x32xf32>
    %57 = arith.truncf %56 : vector<10x32xf32> to vector<10x32xbf16>
    %cst_25 = arith.constant 0.000000e+00 : f32
    %58 = vector.broadcast %cst_25 : f32 to vector<8x32xf32>
    %59 = vector.extract_strided_slice %57 {offsets = [0, 0], sizes = [8, 32], strides = [1, 1]} : vector<10x32xbf16> to vector<8x32xbf16>
    %c0_26 = arith.constant 0 : index
    %c0_27 = arith.constant 0 : index
    %c0_28 = arith.constant 0 : index
    %60 = vector.load %arg6[%c0_26, %c0_27, %c0_28] : memref<3x32x32xbf16, #tpu.memory_space<vmem>>, vector<1x32x32xbf16>
    %61 = vector.shape_cast %60 : vector<1x32x32xbf16> to vector<32x32xbf16>
    %cst_29 = arith.constant dense<0.000000e+00> : vector<8x32xf32>
    %62 = tpu.matmul %59, %61, %cst_29 {dimension_numbers = #tpu.dot_dimension_numbers<[1], [0], [0], [1], [0, 0, 1, 1], [], []>} : vector<8x32xbf16>, vector<32x32xbf16>, vector<8x32xf32> -> vector<8x32xf32>
    %63 = arith.addf %58, %62 : vector<8x32xf32>
    %64 = vector.extract_strided_slice %57 {offsets = [1, 0], sizes = [8, 32], strides = [1, 1]} : vector<10x32xbf16> to vector<8x32xbf16>
    %c1_30 = arith.constant 1 : index
    %c0_31 = arith.constant 0 : index
    %c0_32 = arith.constant 0 : index
    %65 = vector.load %arg6[%c1_30, %c0_31, %c0_32] : memref<3x32x32xbf16, #tpu.memory_space<vmem>>, vector<1x32x32xbf16>
    %66 = vector.shape_cast %65 : vector<1x32x32xbf16> to vector<32x32xbf16>
    %cst_33 = arith.constant dense<0.000000e+00> : vector<8x32xf32>
    %67 = tpu.matmul %64, %66, %cst_33 {dimension_numbers = #tpu.dot_dimension_numbers<[1], [0], [0], [1], [0, 0, 1, 1], [], []>} : vector<8x32xbf16>, vector<32x32xbf16>, vector<8x32xf32> -> vector<8x32xf32>
    %68 = arith.addf %63, %67 : vector<8x32xf32>
    %69 = vector.extract_strided_slice %57 {offsets = [2, 0], sizes = [8, 32], strides = [1, 1]} : vector<10x32xbf16> to vector<8x32xbf16>
    %c2_34 = arith.constant 2 : index
    %c0_35 = arith.constant 0 : index
    %c0_36 = arith.constant 0 : index
    %70 = vector.load %arg6[%c2_34, %c0_35, %c0_36] : memref<3x32x32xbf16, #tpu.memory_space<vmem>>, vector<1x32x32xbf16>
    %71 = vector.shape_cast %70 : vector<1x32x32xbf16> to vector<32x32xbf16>
    %cst_37 = arith.constant dense<0.000000e+00> : vector<8x32xf32>
    %72 = tpu.matmul %69, %71, %cst_37 {dimension_numbers = #tpu.dot_dimension_numbers<[1], [0], [0], [1], [0, 0, 1, 1], [], []>} : vector<8x32xbf16>, vector<32x32xbf16>, vector<8x32xf32> -> vector<8x32xf32>
    %73 = arith.addf %68, %72 : vector<8x32xf32>
    %c0_38 = arith.constant 0 : index
    %c0_39 = arith.constant 0 : index
    %74 = vector.load %arg7[%c0_38, %c0_39] : memref<1x32xf32, #tpu.memory_space<vmem>>, vector<1x32xf32>
    %75 = vector.broadcast %74 : vector<1x32xf32> to vector<8x32xf32>
    %76 = arith.addf %73, %75 : vector<8x32xf32>
    %cst_40 = arith.constant 0.000000e+00 : f32
    %77 = vector.broadcast %cst_40 : f32 to vector<8x32xf32>
    %78 = arith.maximumf %76, %77 : vector<8x32xf32>
    %c0_41 = arith.constant 0 : index
    %c0_42 = arith.constant 0 : index
    %79 = vector.load %arg8[%c0_41, %c0_42] : memref<1x32xf32, #tpu.memory_space<vmem>>, vector<1x32xf32>
    %c0_43 = arith.constant 0 : index
    %c0_44 = arith.constant 0 : index
    %80 = vector.load %arg9[%c0_43, %c0_44] : memref<1x32xf32, #tpu.memory_space<vmem>>, vector<1x32xf32>
    %cst_45 = arith.constant dense<0.000000e+00> : vector<8xf32>
    %81 = vector.multi_reduction <add>, %78, %cst_45 [1] : vector<8x32xf32> to vector<8xf32>
    %82 = vector.shape_cast %81 : vector<8xf32> to vector<8x1xf32>
    %cst_46 = arith.constant 3.200000e+01 : f32
    %83 = vector.broadcast %cst_46 : f32 to vector<8x1xf32>
    %84 = arith.divf %82, %83 : vector<8x1xf32>
    %85 = vector.broadcast %84 : vector<8x1xf32> to vector<8x32xf32>
    %86 = arith.subf %78, %85 : vector<8x32xf32>
    %87 = arith.mulf %86, %86 : vector<8x32xf32>
    %cst_47 = arith.constant dense<0.000000e+00> : vector<8xf32>
    %88 = vector.multi_reduction <add>, %87, %cst_47 [1] : vector<8x32xf32> to vector<8xf32>
    %89 = vector.shape_cast %88 : vector<8xf32> to vector<8x1xf32>
    %cst_48 = arith.constant 3.200000e+01 : f32
    %90 = vector.broadcast %cst_48 : f32 to vector<8x1xf32>
    %91 = arith.divf %89, %90 : vector<8x1xf32>
    %92 = vector.broadcast %84 : vector<8x1xf32> to vector<8x32xf32>
    %93 = arith.subf %78, %92 : vector<8x32xf32>
    %cst_49 = arith.constant 9.99999974E-6 : f32
    %94 = vector.broadcast %cst_49 : f32 to vector<8x1xf32>
    %95 = arith.addf %91, %94 : vector<8x1xf32>
    %96 = math.rsqrt %95 : vector<8x1xf32>
    %97 = vector.broadcast %96 : vector<8x1xf32> to vector<8x32xf32>
    %98 = arith.mulf %93, %97 : vector<8x32xf32>
    %99 = vector.broadcast %79 : vector<1x32xf32> to vector<8x32xf32>
    %100 = arith.mulf %98, %99 : vector<8x32xf32>
    %101 = vector.broadcast %80 : vector<1x32xf32> to vector<8x32xf32>
    %102 = arith.addf %100, %101 : vector<8x32xf32>
    %103 = arith.truncf %102 : vector<8x32xf32> to vector<8x32xbf16>
    %c0_50 = arith.constant 0 : index
    %c0_51 = arith.constant 0 : index
    %104 = vector.load %arg10[%c0_50, %c0_51] : memref<32x128xbf16, #tpu.memory_space<vmem>>, vector<32x128xbf16>
    %cst_52 = arith.constant dense<0.000000e+00> : vector<8x128xf32>
    %105 = tpu.matmul %103, %104, %cst_52 {dimension_numbers = #tpu.dot_dimension_numbers<[1], [0], [0], [1], [0, 0, 1, 1], [], []>} : vector<8x32xbf16>, vector<32x128xbf16>, vector<8x128xf32> -> vector<8x128xf32>
    %c0_53 = arith.constant 0 : index
    %c0_54 = arith.constant 0 : index
    %106 = vector.load %arg11[%c0_53, %c0_54] : memref<1x128xf32, #tpu.memory_space<vmem>>, vector<1x128xf32>
    %107 = vector.broadcast %106 : vector<1x128xf32> to vector<8x128xf32>
    %108 = arith.addf %105, %107 : vector<8x128xf32>
    %c0_55 = arith.constant 0 : index
    %c0_56 = arith.constant 0 : index
    %c0_57 = arith.constant 0 : index
    %109 = vector.load %arg12[%c0_55, %c0_56, %c0_57] : memref<1x8x128xf32, #tpu.memory_space<vmem>>, vector<1x8x128xf32>
    %110 = vector.shape_cast %109 : vector<1x8x128xf32> to vector<8x128xf32>
    %111 = vector.shape_cast %108 : vector<8x128xf32> to vector<1x8x128xf32>
    tpu.vector_store %arg12[%c0_55, %c0_56, %c0_57], %111 {strides = array<i32>} : memref<1x8x128xf32, #tpu.memory_space<vmem>>, vector<1x8x128xf32>,
    return
  }
  func.func @transform_0(%arg0: i32) -> (i32, i32, i32) {
    %c0_i32 = arith.constant 0 : i32
    %c0_i32_0 = arith.constant 0 : i32
    %c0_i32_1 = arith.constant 0 : i32
    return %arg0, %c0_i32, %c0_i32_0 : i32, i32, i32
  }
  func.func @transform_1(%arg0: i32) -> (i32, i32, i32) {
    %c0_i32 = arith.constant 0 : i32
    %c0_i32_0 = arith.constant 0 : i32
    %c0_i32_1 = arith.constant 0 : i32
    %c0_i32_2 = arith.constant 0 : i32
    return %c0_i32, %c0_i32_0, %c0_i32_1 : i32, i32, i32
  }
  func.func @transform_2(%arg0: i32) -> (i32, i32) {
    %c0_i32 = arith.constant 0 : i32
    %c0_i32_0 = arith.constant 0 : i32
    %c0_i32_1 = arith.constant 0 : i32
    return %c0_i32, %c0_i32_0 : i32, i32
  }
  func.func @transform_3(%arg0: i32) -> (i32, i32) {
    %c0_i32 = arith.constant 0 : i32
    %c0_i32_0 = arith.constant 0 : i32
    %c0_i32_1 = arith.constant 0 : i32
    return %c0_i32, %c0_i32_0 : i32, i32
  }
  func.func @transform_4(%arg0: i32) -> (i32, i32) {
    %c0_i32 = arith.constant 0 : i32
    %c0_i32_0 = arith.constant 0 : i32
    %c0_i32_1 = arith.constant 0 : i32
    return %c0_i32, %c0_i32_0 : i32, i32
  }
  func.func @transform_5(%arg0: i32) -> (i32, i32, i32) {
    %c0_i32 = arith.constant 0 : i32
    %c0_i32_0 = arith.constant 0 : i32
    %c0_i32_1 = arith.constant 0 : i32
    %c0_i32_2 = arith.constant 0 : i32
    return %c0_i32, %c0_i32_0, %c0_i32_1 : i32, i32, i32
  }
  func.func @transform_6(%arg0: i32) -> (i32, i32) {
    %c0_i32 = arith.constant 0 : i32
    %c0_i32_0 = arith.constant 0 : i32
    %c0_i32_1 = arith.constant 0 : i32
    return %c0_i32, %c0_i32_0 : i32, i32
  }
  func.func @transform_7(%arg0: i32) -> (i32, i32) {
    %c0_i32 = arith.constant 0 : i32
    %c0_i32_0 = arith.constant 0 : i32
    %c0_i32_1 = arith.constant 0 : i32
    return %c0_i32, %c0_i32_0 : i32, i32
  }
  func.func @transform_8(%arg0: i32) -> (i32, i32) {
    %c0_i32 = arith.constant 0 : i32
    %c0_i32_0 = arith.constant 0 : i32
    %c0_i32_1 = arith.constant 0 : i32
    return %c0_i32, %c0_i32_0 : i32, i32
  }
  func.func @transform_9(%arg0: i32) -> (i32, i32) {
    %c0_i32 = arith.constant 0 : i32
    %c0_i32_0 = arith.constant 0 : i32
    %c0_i32_1 = arith.constant 0 : i32
    return %c0_i32, %c0_i32_0 : i32, i32
  }
  func.func @transform_10(%arg0: i32) -> (i32, i32) {
    %c0_i32 = arith.constant 0 : i32
    %c0_i32_0 = arith.constant 0 : i32
    %c0_i32_1 = arith.constant 0 : i32
    return %c0_i32, %c0_i32_0 : i32, i32
  }
  func.func @transform_11(%arg0: i32) -> (i32, i32, i32) {
    %c0_i32 = arith.constant 0 : i32
    %c0_i32_0 = arith.constant 0 : i32
    %c0_i32_1 = arith.constant 0 : i32
    return %arg0, %c0_i32, %c0_i32_0 : i32, i32, i32
  }
}

module attributes {stable_mosaic.version = 11 : i64} {
  func.func @_matmul_kernel(%arg0: i32, %arg1: i32, %arg2: i32, %arg3: memref<32x32xbf16, #tpu.memory_space<vmem>>, %arg4: memref<32x96xbf16, #tpu.memory_space<vmem>>, %arg5: memref<1x96xf32, #tpu.memory_space<vmem>>, %arg6: memref<32x96xbf16, #tpu.memory_space<vmem>>, %arg7: memref<32x96xf32, #tpu.memory_space<vmem>>) attributes {dimension_semantics = [#tpu.dimension_semantics<parallel>, #tpu.dimension_semantics<parallel>, #tpu.dimension_semantics<arbitrary>], iteration_bounds = array<i64: 1, 1, 1>, scalar_prefetch = 0 : i64, scratch_operands = 1 : i64, tpu.core_type = #tpu.core_type<tc>, window_params = [{transform_indices = @transform_0, window_bounds = array<i64: 32, 32>}, {transform_indices = @transform_1, window_bounds = array<i64: 32, 96>}, {transform_indices = @transform_2, window_bounds = array<i64: 1, 96>}, {transform_indices = @transform_3, window_bounds = array<i64: 32, 96>}]} {
    %c0_i32 = arith.constant 0 : i32
    %0 = arith.cmpi eq, %arg2, %c0_i32 : i32
    %1 = arith.extui %0 : i1 to i32
    %c0_i32_0 = arith.constant 0 : i32
    %2 = arith.cmpi ne, %1, %c0_i32_0 : i32
    scf.if %2 {
      %cst_10 = arith.constant 0.000000e+00 : f32
      %12 = vector.broadcast %cst_10 : f32 to vector<32x96xf32>
      %c0_11 = arith.constant 0 : index
      %c0_12 = arith.constant 0 : index
      %13 = vector.load %arg7[%c0_11, %c0_12] : memref<32x96xf32, #tpu.memory_space<vmem>>, vector<32x96xf32>
      tpu.vector_store %arg7[%c0_11, %c0_12], %12 {strides = array<i32>} : memref<32x96xf32, #tpu.memory_space<vmem>>, vector<32x96xf32>,
    } else {
    }
    %c0 = arith.constant 0 : index
    %c0_1 = arith.constant 0 : index
    %3 = vector.load %arg7[%c0, %c0_1] : memref<32x96xf32, #tpu.memory_space<vmem>>, vector<32x96xf32>
    %c0_2 = arith.constant 0 : index
    %c0_3 = arith.constant 0 : index
    %4 = vector.load %arg3[%c0_2, %c0_3] : memref<32x32xbf16, #tpu.memory_space<vmem>>, vector<32x32xbf16>
    %c0_4 = arith.constant 0 : index
    %c0_5 = arith.constant 0 : index
    %5 = vector.load %arg4[%c0_4, %c0_5] : memref<32x96xbf16, #tpu.memory_space<vmem>>, vector<32x96xbf16>
    %cst = arith.constant dense<0.000000e+00> : vector<32x96xf32>
    %6 = tpu.matmul %4, %5, %cst {dimension_numbers = #tpu.dot_dimension_numbers<[1], [0], [0], [1], [0, 0, 1, 1], [], []>} : vector<32x32xbf16>, vector<32x96xbf16>, vector<32x96xf32> -> vector<32x96xf32>
    %7 = arith.addf %3, %6 : vector<32x96xf32>
    %c0_6 = arith.constant 0 : index
    %c0_7 = arith.constant 0 : index
    %8 = vector.load %arg7[%c0_6, %c0_7] : memref<32x96xf32, #tpu.memory_space<vmem>>, vector<32x96xf32>
    tpu.vector_store %arg7[%c0_6, %c0_7], %7 {strides = array<i32>} : memref<32x96xf32, #tpu.memory_space<vmem>>, vector<32x96xf32>,
    %c0_i32_8 = arith.constant 0 : i32
    %9 = arith.cmpi eq, %arg2, %c0_i32_8 : i32
    %10 = arith.extui %9 : i1 to i32
    %c0_i32_9 = arith.constant 0 : i32
    %11 = arith.cmpi ne, %10, %c0_i32_9 : i32
    scf.if %11 {
      %c0_10 = arith.constant 0 : index
      %c0_11 = arith.constant 0 : index
      %12 = vector.load %arg7[%c0_10, %c0_11] : memref<32x96xf32, #tpu.memory_space<vmem>>, vector<32x96xf32>
      %c0_12 = arith.constant 0 : index
      %c0_13 = arith.constant 0 : index
      %13 = vector.load %arg5[%c0_12, %c0_13] : memref<1x96xf32, #tpu.memory_space<vmem>>, vector<1x96xf32>
      %14 = vector.broadcast %13 : vector<1x96xf32> to vector<32x96xf32>
      %15 = arith.addf %12, %14 : vector<32x96xf32>
      %16 = arith.truncf %15 : vector<32x96xf32> to vector<32x96xbf16>
      %c0_14 = arith.constant 0 : index
      %c0_15 = arith.constant 0 : index
      %17 = vector.load %arg6[%c0_14, %c0_15] : memref<32x96xbf16, #tpu.memory_space<vmem>>, vector<32x96xbf16>
      tpu.vector_store %arg6[%c0_14, %c0_15], %16 {strides = array<i32>} : memref<32x96xbf16, #tpu.memory_space<vmem>>, vector<32x96xbf16>,
    } else {
    }
    return
  }
  func.func @transform_0(%arg0: i32, %arg1: i32, %arg2: i32) -> (i32, i32) {
    %c0_i32 = arith.constant 0 : i32
    return %arg0, %arg2 : i32, i32
  }
  func.func @transform_1(%arg0: i32, %arg1: i32, %arg2: i32) -> (i32, i32) {
    %c0_i32 = arith.constant 0 : i32
    return %arg2, %arg1 : i32, i32
  }
  func.func @transform_2(%arg0: i32, %arg1: i32, %arg2: i32) -> (i32, i32) {
    %c0_i32 = arith.constant 0 : i32
    %c0_i32_0 = arith.constant 0 : i32
    return %c0_i32, %arg1 : i32, i32
  }
  func.func @transform_3(%arg0: i32, %arg1: i32, %arg2: i32) -> (i32, i32) {
    %c0_i32 = arith.constant 0 : i32
    return %arg0, %arg1 : i32, i32
  }
}

module attributes {stable_mosaic.version = 11 : i64} {
  func.func @_matmul_kernel(%arg0: i32, %arg1: i32, %arg2: i32, %arg3: memref<32x32xbf16, #tpu.memory_space<vmem>>, %arg4: memref<32x32xbf16, #tpu.memory_space<vmem>>, %arg5: memref<1x32xf32, #tpu.memory_space<vmem>>, %arg6: memref<32x32xf32, #tpu.memory_space<vmem>>, %arg7: memref<32x32xf32, #tpu.memory_space<vmem>>) attributes {dimension_semantics = [#tpu.dimension_semantics<parallel>, #tpu.dimension_semantics<parallel>, #tpu.dimension_semantics<arbitrary>], iteration_bounds = array<i64: 1, 1, 1>, scalar_prefetch = 0 : i64, scratch_operands = 1 : i64, tpu.core_type = #tpu.core_type<tc>, window_params = [{transform_indices = @transform_0, window_bounds = array<i64: 32, 32>}, {transform_indices = @transform_1, window_bounds = array<i64: 32, 32>}, {transform_indices = @transform_2, window_bounds = array<i64: 1, 32>}, {transform_indices = @transform_3, window_bounds = array<i64: 32, 32>}]} {
    %c0_i32 = arith.constant 0 : i32
    %0 = arith.cmpi eq, %arg2, %c0_i32 : i32
    %1 = arith.extui %0 : i1 to i32
    %c0_i32_0 = arith.constant 0 : i32
    %2 = arith.cmpi ne, %1, %c0_i32_0 : i32
    scf.if %2 {
      %cst_10 = arith.constant 0.000000e+00 : f32
      %12 = vector.broadcast %cst_10 : f32 to vector<32x32xf32>
      %c0_11 = arith.constant 0 : index
      %c0_12 = arith.constant 0 : index
      %13 = vector.load %arg7[%c0_11, %c0_12] : memref<32x32xf32, #tpu.memory_space<vmem>>, vector<32x32xf32>
      tpu.vector_store %arg7[%c0_11, %c0_12], %12 {strides = array<i32>} : memref<32x32xf32, #tpu.memory_space<vmem>>, vector<32x32xf32>,
    } else {
    }
    %c0 = arith.constant 0 : index
    %c0_1 = arith.constant 0 : index
    %3 = vector.load %arg7[%c0, %c0_1] : memref<32x32xf32, #tpu.memory_space<vmem>>, vector<32x32xf32>
    %c0_2 = arith.constant 0 : index
    %c0_3 = arith.constant 0 : index
    %4 = vector.load %arg3[%c0_2, %c0_3] : memref<32x32xbf16, #tpu.memory_space<vmem>>, vector<32x32xbf16>
    %c0_4 = arith.constant 0 : index
    %c0_5 = arith.constant 0 : index
    %5 = vector.load %arg4[%c0_4, %c0_5] : memref<32x32xbf16, #tpu.memory_space<vmem>>, vector<32x32xbf16>
    %cst = arith.constant dense<0.000000e+00> : vector<32x32xf32>
    %6 = tpu.matmul %4, %5, %cst {dimension_numbers = #tpu.dot_dimension_numbers<[1], [0], [0], [1], [0, 0, 1, 1], [], []>} : vector<32x32xbf16>, vector<32x32xbf16>, vector<32x32xf32> -> vector<32x32xf32>
    %7 = arith.addf %3, %6 : vector<32x32xf32>
    %c0_6 = arith.constant 0 : index
    %c0_7 = arith.constant 0 : index
    %8 = vector.load %arg7[%c0_6, %c0_7] : memref<32x32xf32, #tpu.memory_space<vmem>>, vector<32x32xf32>
    tpu.vector_store %arg7[%c0_6, %c0_7], %7 {strides = array<i32>} : memref<32x32xf32, #tpu.memory_space<vmem>>, vector<32x32xf32>,
    %c0_i32_8 = arith.constant 0 : i32
    %9 = arith.cmpi eq, %arg2, %c0_i32_8 : i32
    %10 = arith.extui %9 : i1 to i32
    %c0_i32_9 = arith.constant 0 : i32
    %11 = arith.cmpi ne, %10, %c0_i32_9 : i32
    scf.if %11 {
      %c0_10 = arith.constant 0 : index
      %c0_11 = arith.constant 0 : index
      %12 = vector.load %arg7[%c0_10, %c0_11] : memref<32x32xf32, #tpu.memory_space<vmem>>, vector<32x32xf32>
      %c0_12 = arith.constant 0 : index
      %c0_13 = arith.constant 0 : index
      %13 = vector.load %arg5[%c0_12, %c0_13] : memref<1x32xf32, #tpu.memory_space<vmem>>, vector<1x32xf32>
      %14 = vector.broadcast %13 : vector<1x32xf32> to vector<32x32xf32>
      %15 = arith.addf %12, %14 : vector<32x32xf32>
      %c0_14 = arith.constant 0 : index
      %c0_15 = arith.constant 0 : index
      %16 = vector.load %arg6[%c0_14, %c0_15] : memref<32x32xf32, #tpu.memory_space<vmem>>, vector<32x32xf32>
      tpu.vector_store %arg6[%c0_14, %c0_15], %15 {strides = array<i32>} : memref<32x32xf32, #tpu.memory_space<vmem>>, vector<32x32xf32>,
    } else {
    }
    return
  }
  func.func @transform_0(%arg0: i32, %arg1: i32, %arg2: i32) -> (i32, i32) {
    %c0_i32 = arith.constant 0 : i32
    return %arg0, %arg2 : i32, i32
  }
  func.func @transform_1(%arg0: i32, %arg1: i32, %arg2: i32) -> (i32, i32) {
    %c0_i32 = arith.constant 0 : i32
    return %arg2, %arg1 : i32, i32
  }
  func.func @transform_2(%arg0: i32, %arg1: i32, %arg2: i32) -> (i32, i32) {
    %c0_i32 = arith.constant 0 : i32
    %c0_i32_0 = arith.constant 0 : i32
    return %c0_i32, %arg1 : i32, i32
  }
  func.func @transform_3(%arg0: i32, %arg1: i32, %arg2: i32) -> (i32, i32) {
    %c0_i32 = arith.constant 0 : i32
    return %arg0, %arg1 : i32, i32
  }
}

module attributes {stable_mosaic.version = 11 : i64} {
  func.func @_var_pred_kernel(%arg0: i32, %arg1: memref<1x20x32xbf16, #tpu.memory_space<vmem>>, %arg2: memref<3x32x32xbf16, #tpu.memory_space<vmem>>, %arg3: memref<1x32xf32, #tpu.memory_space<vmem>>, %arg4: memref<1x32xf32, #tpu.memory_space<vmem>>, %arg5: memref<1x32xf32, #tpu.memory_space<vmem>>, %arg6: memref<3x32x32xbf16, #tpu.memory_space<vmem>>, %arg7: memref<1x32xf32, #tpu.memory_space<vmem>>, %arg8: memref<1x32xf32, #tpu.memory_space<vmem>>, %arg9: memref<1x32xf32, #tpu.memory_space<vmem>>, %arg10: memref<32x128xbf16, #tpu.memory_space<vmem>>, %arg11: memref<1x128xf32, #tpu.memory_space<vmem>>, %arg12: memref<1x16x128xf32, #tpu.memory_space<vmem>>) attributes {dimension_semantics = [#tpu.dimension_semantics<parallel>], iteration_bounds = array<i64: 2>, scalar_prefetch = 0 : i64, scratch_operands = 0 : i64, tpu.core_type = #tpu.core_type<tc>, window_params = [{transform_indices = @transform_0, window_bounds = array<i64: 1, 20, 32>}, {pipeline_mode = #tpu.pipeline_mode<synchronous>, transform_indices = @transform_1, window_bounds = array<i64: 3, 32, 32>}, {pipeline_mode = #tpu.pipeline_mode<synchronous>, transform_indices = @transform_2, window_bounds = array<i64: 1, 32>}, {pipeline_mode = #tpu.pipeline_mode<synchronous>, transform_indices = @transform_3, window_bounds = array<i64: 1, 32>}, {pipeline_mode = #tpu.pipeline_mode<synchronous>, transform_indices = @transform_4, window_bounds = array<i64: 1, 32>}, {pipeline_mode = #tpu.pipeline_mode<synchronous>, transform_indices = @transform_5, window_bounds = array<i64: 3, 32, 32>}, {pipeline_mode = #tpu.pipeline_mode<synchronous>, transform_indices = @transform_6, window_bounds = array<i64: 1, 32>}, {pipeline_mode = #tpu.pipeline_mode<synchronous>, transform_indices = @transform_7, window_bounds = array<i64: 1, 32>}, {pipeline_mode = #tpu.pipeline_mode<synchronous>, transform_indices = @transform_8, window_bounds = array<i64: 1, 32>}, {pipeline_mode = #tpu.pipeline_mode<synchronous>, transform_indices = @transform_9, window_bounds = array<i64: 32, 128>}, {pipeline_mode = #tpu.pipeline_mode<synchronous>, transform_indices = @transform_10, window_bounds = array<i64: 1, 128>}, {transform_indices = @transform_11, window_bounds = array<i64: 1, 16, 128>}]} {
    %c0 = arith.constant 0 : index
    %c0_0 = arith.constant 0 : index
    %c0_1 = arith.constant 0 : index
    %0 = vector.load %arg1[%c0, %c0_0, %c0_1] : memref<1x20x32xbf16, #tpu.memory_space<vmem>>, vector<1x20x32xbf16>
    %1 = vector.shape_cast %0 : vector<1x20x32xbf16> to vector<20x32xbf16>
    %cst = arith.constant 0.000000e+00 : f32
    %2 = vector.broadcast %cst : f32 to vector<18x32xf32>
    %3 = vector.extract_strided_slice %1 {offsets = [0, 0], sizes = [18, 32], strides = [1, 1]} : vector<20x32xbf16> to vector<18x32xbf16>
    %c0_2 = arith.constant 0 : index
    %c0_3 = arith.constant 0 : index
    %c0_4 = arith.constant 0 : index
    %4 = vector.load %arg2[%c0_2, %c0_3, %c0_4] : memref<3x32x32xbf16, #tpu.memory_space<vmem>>, vector<1x32x32xbf16>
    %5 = vector.shape_cast %4 : vector<1x32x32xbf16> to vector<32x32xbf16>
    %cst_5 = arith.constant dense<0.000000e+00> : vector<18x32xf32>
    %6 = tpu.matmul %3, %5, %cst_5 {dimension_numbers = #tpu.dot_dimension_numbers<[1], [0], [0], [1], [0, 0, 1, 1], [], []>} : vector<18x32xbf16>, vector<32x32xbf16>, vector<18x32xf32> -> vector<18x32xf32>
    %7 = arith.addf %2, %6 : vector<18x32xf32>
    %8 = vector.extract_strided_slice %1 {offsets = [1, 0], sizes = [18, 32], strides = [1, 1]} : vector<20x32xbf16> to vector<18x32xbf16>
    %c1 = arith.constant 1 : index
    %c0_6 = arith.constant 0 : index
    %c0_7 = arith.constant 0 : index
    %9 = vector.load %arg2[%c1, %c0_6, %c0_7] : memref<3x32x32xbf16, #tpu.memory_space<vmem>>, vector<1x32x32xbf16>
    %10 = vector.shape_cast %9 : vector<1x32x32xbf16> to vector<32x32xbf16>
    %cst_8 = arith.constant dense<0.000000e+00> : vector<18x32xf32>
    %11 = tpu.matmul %8, %10, %cst_8 {dimension_numbers = #tpu.dot_dimension_numbers<[1], [0], [0], [1], [0, 0, 1, 1], [], []>} : vector<18x32xbf16>, vector<32x32xbf16>, vector<18x32xf32> -> vector<18x32xf32>
    %12 = arith.addf %7, %11 : vector<18x32xf32>
    %13 = vector.extract_strided_slice %1 {offsets = [2, 0], sizes = [18, 32], strides = [1, 1]} : vector<20x32xbf16> to vector<18x32xbf16>
    %c2 = arith.constant 2 : index
    %c0_9 = arith.constant 0 : index
    %c0_10 = arith.constant 0 : index
    %14 = vector.load %arg2[%c2, %c0_9, %c0_10] : memref<3x32x32xbf16, #tpu.memory_space<vmem>>, vector<1x32x32xbf16>
    %15 = vector.shape_cast %14 : vector<1x32x32xbf16> to vector<32x32xbf16>
    %cst_11 = arith.constant dense<0.000000e+00> : vector<18x32xf32>
    %16 = tpu.matmul %13, %15, %cst_11 {dimension_numbers = #tpu.dot_dimension_numbers<[1], [0], [0], [1], [0, 0, 1, 1], [], []>} : vector<18x32xbf16>, vector<32x32xbf16>, vector<18x32xf32> -> vector<18x32xf32>
    %17 = arith.addf %12, %16 : vector<18x32xf32>
    %c0_12 = arith.constant 0 : index
    %c0_13 = arith.constant 0 : index
    %18 = vector.load %arg3[%c0_12, %c0_13] : memref<1x32xf32, #tpu.memory_space<vmem>>, vector<1x32xf32>
    %19 = vector.broadcast %18 : vector<1x32xf32> to vector<18x32xf32>
    %20 = arith.addf %17, %19 : vector<18x32xf32>
    %cst_14 = arith.constant 0.000000e+00 : f32
    %21 = vector.broadcast %cst_14 : f32 to vector<18x32xf32>
    %22 = arith.maximumf %20, %21 : vector<18x32xf32>
    %c0_15 = arith.constant 0 : index
    %c0_16 = arith.constant 0 : index
    %23 = vector.load %arg4[%c0_15, %c0_16] : memref<1x32xf32, #tpu.memory_space<vmem>>, vector<1x32xf32>
    %c0_17 = arith.constant 0 : index
    %c0_18 = arith.constant 0 : index
    %24 = vector.load %arg5[%c0_17, %c0_18] : memref<1x32xf32, #tpu.memory_space<vmem>>, vector<1x32xf32>
    %cst_19 = arith.constant dense<0.000000e+00> : vector<18xf32>
    %25 = vector.multi_reduction <add>, %22, %cst_19 [1] : vector<18x32xf32> to vector<18xf32>
    %26 = vector.shape_cast %25 : vector<18xf32> to vector<18x1xf32>
    %cst_20 = arith.constant 3.200000e+01 : f32
    %27 = vector.broadcast %cst_20 : f32 to vector<18x1xf32>
    %28 = arith.divf %26, %27 : vector<18x1xf32>
    %29 = vector.broadcast %28 : vector<18x1xf32> to vector<18x32xf32>
    %30 = arith.subf %22, %29 : vector<18x32xf32>
    %31 = arith.mulf %30, %30 : vector<18x32xf32>
    %cst_21 = arith.constant dense<0.000000e+00> : vector<18xf32>
    %32 = vector.multi_reduction <add>, %31, %cst_21 [1] : vector<18x32xf32> to vector<18xf32>
    %33 = vector.shape_cast %32 : vector<18xf32> to vector<18x1xf32>
    %cst_22 = arith.constant 3.200000e+01 : f32
    %34 = vector.broadcast %cst_22 : f32 to vector<18x1xf32>
    %35 = arith.divf %33, %34 : vector<18x1xf32>
    %36 = vector.broadcast %28 : vector<18x1xf32> to vector<18x32xf32>
    %37 = arith.subf %22, %36 : vector<18x32xf32>
    %cst_23 = arith.constant 9.99999974E-6 : f32
    %38 = vector.broadcast %cst_23 : f32 to vector<18x1xf32>
    %39 = arith.addf %35, %38 : vector<18x1xf32>
    %40 = math.rsqrt %39 : vector<18x1xf32>
    %41 = vector.broadcast %40 : vector<18x1xf32> to vector<18x32xf32>
    %42 = arith.mulf %37, %41 : vector<18x32xf32>
    %43 = vector.broadcast %23 : vector<1x32xf32> to vector<18x32xf32>
    %44 = arith.mulf %42, %43 : vector<18x32xf32>
    %45 = vector.broadcast %24 : vector<1x32xf32> to vector<18x32xf32>
    %46 = arith.addf %44, %45 : vector<18x32xf32>
    %47 = tpu.iota {dimensions = array<i32: 0>} : vector<18x1xi32>
    %c1_i32 = arith.constant 1 : i32
    %48 = vector.broadcast %c1_i32 : i32 to vector<18x1xi32>
    %49 = arith.cmpi sge, %47, %48 : vector<18x1xi32>
    %c17_i32 = arith.constant 17 : i32
    %50 = vector.broadcast %c17_i32 : i32 to vector<18x1xi32>
    %51 = arith.cmpi slt, %47, %50 : vector<18x1xi32>
    %52 = arith.andi %49, %51 : vector<18x1xi1>
    %cst_24 = arith.constant 0.000000e+00 : f32
    %53 = vector.shape_cast %52 : vector<18x1xi1> to vector<18x1xi1>
    %54 = vector.broadcast %53 : vector<18x1xi1> to vector<18x32xi1>
    %55 = vector.broadcast %cst_24 : f32 to vector<18x32xf32>
    %56 = arith.select %54, %46, %55 : vector<18x32xi1>, vector<18x32xf32>
    %57 = arith.truncf %56 : vector<18x32xf32> to vector<18x32xbf16>
    %cst_25 = arith.constant 0.000000e+00 : f32
    %58 = vector.broadcast %cst_25 : f32 to vector<16x32xf32>
    %59 = vector.extract_strided_slice %57 {offsets = [0, 0], sizes = [16, 32], strides = [1, 1]} : vector<18x32xbf16> to vector<16x32xbf16>
    %c0_26 = arith.constant 0 : index
    %c0_27 = arith.constant 0 : index
    %c0_28 = arith.constant 0 : index
    %60 = vector.load %arg6[%c0_26, %c0_27, %c0_28] : memref<3x32x32xbf16, #tpu.memory_space<vmem>>, vector<1x32x32xbf16>
    %61 = vector.shape_cast %60 : vector<1x32x32xbf16> to vector<32x32xbf16>
    %cst_29 = arith.constant dense<0.000000e+00> : vector<16x32xf32>
    %62 = tpu.matmul %59, %61, %cst_29 {dimension_numbers = #tpu.dot_dimension_numbers<[1], [0], [0], [1], [0, 0, 1, 1], [], []>} : vector<16x32xbf16>, vector<32x32xbf16>, vector<16x32xf32> -> vector<16x32xf32>
    %63 = arith.addf %58, %62 : vector<16x32xf32>
    %64 = vector.extract_strided_slice %57 {offsets = [1, 0], sizes = [16, 32], strides = [1, 1]} : vector<18x32xbf16> to vector<16x32xbf16>
    %c1_30 = arith.constant 1 : index
    %c0_31 = arith.constant 0 : index
    %c0_32 = arith.constant 0 : index
    %65 = vector.load %arg6[%c1_30, %c0_31, %c0_32] : memref<3x32x32xbf16, #tpu.memory_space<vmem>>, vector<1x32x32xbf16>
    %66 = vector.shape_cast %65 : vector<1x32x32xbf16> to vector<32x32xbf16>
    %cst_33 = arith.constant dense<0.000000e+00> : vector<16x32xf32>
    %67 = tpu.matmul %64, %66, %cst_33 {dimension_numbers = #tpu.dot_dimension_numbers<[1], [0], [0], [1], [0, 0, 1, 1], [], []>} : vector<16x32xbf16>, vector<32x32xbf16>, vector<16x32xf32> -> vector<16x32xf32>
    %68 = arith.addf %63, %67 : vector<16x32xf32>
    %69 = vector.extract_strided_slice %57 {offsets = [2, 0], sizes = [16, 32], strides = [1, 1]} : vector<18x32xbf16> to vector<16x32xbf16>
    %c2_34 = arith.constant 2 : index
    %c0_35 = arith.constant 0 : index
    %c0_36 = arith.constant 0 : index
    %70 = vector.load %arg6[%c2_34, %c0_35, %c0_36] : memref<3x32x32xbf16, #tpu.memory_space<vmem>>, vector<1x32x32xbf16>
    %71 = vector.shape_cast %70 : vector<1x32x32xbf16> to vector<32x32xbf16>
    %cst_37 = arith.constant dense<0.000000e+00> : vector<16x32xf32>
    %72 = tpu.matmul %69, %71, %cst_37 {dimension_numbers = #tpu.dot_dimension_numbers<[1], [0], [0], [1], [0, 0, 1, 1], [], []>} : vector<16x32xbf16>, vector<32x32xbf16>, vector<16x32xf32> -> vector<16x32xf32>
    %73 = arith.addf %68, %72 : vector<16x32xf32>
    %c0_38 = arith.constant 0 : index
    %c0_39 = arith.constant 0 : index
    %74 = vector.load %arg7[%c0_38, %c0_39] : memref<1x32xf32, #tpu.memory_space<vmem>>, vector<1x32xf32>
    %75 = vector.broadcast %74 : vector<1x32xf32> to vector<16x32xf32>
    %76 = arith.addf %73, %75 : vector<16x32xf32>
    %cst_40 = arith.constant 0.000000e+00 : f32
    %77 = vector.broadcast %cst_40 : f32 to vector<16x32xf32>
    %78 = arith.maximumf %76, %77 : vector<16x32xf32>
    %c0_41 = arith.constant 0 : index
    %c0_42 = arith.constant 0 : index
    %79 = vector.load %arg8[%c0_41, %c0_42] : memref<1x32xf32, #tpu.memory_space<vmem>>, vector<1x32xf32>
    %c0_43 = arith.constant 0 : index
    %c0_44 = arith.constant 0 : index
    %80 = vector.load %arg9[%c0_43, %c0_44] : memref<1x32xf32, #tpu.memory_space<vmem>>, vector<1x32xf32>
    %cst_45 = arith.constant dense<0.000000e+00> : vector<16xf32>
    %81 = vector.multi_reduction <add>, %78, %cst_45 [1] : vector<16x32xf32> to vector<16xf32>
    %82 = vector.shape_cast %81 : vector<16xf32> to vector<16x1xf32>
    %cst_46 = arith.constant 3.200000e+01 : f32
    %83 = vector.broadcast %cst_46 : f32 to vector<16x1xf32>
    %84 = arith.divf %82, %83 : vector<16x1xf32>
    %85 = vector.broadcast %84 : vector<16x1xf32> to vector<16x32xf32>
    %86 = arith.subf %78, %85 : vector<16x32xf32>
    %87 = arith.mulf %86, %86 : vector<16x32xf32>
    %cst_47 = arith.constant dense<0.000000e+00> : vector<16xf32>
    %88 = vector.multi_reduction <add>, %87, %cst_47 [1] : vector<16x32xf32> to vector<16xf32>
    %89 = vector.shape_cast %88 : vector<16xf32> to vector<16x1xf32>
    %cst_48 = arith.constant 3.200000e+01 : f32
    %90 = vector.broadcast %cst_48 : f32 to vector<16x1xf32>
    %91 = arith.divf %89, %90 : vector<16x1xf32>
    %92 = vector.broadcast %84 : vector<16x1xf32> to vector<16x32xf32>
    %93 = arith.subf %78, %92 : vector<16x32xf32>
    %cst_49 = arith.constant 9.99999974E-6 : f32
    %94 = vector.broadcast %cst_49 : f32 to vector<16x1xf32>
    %95 = arith.addf %91, %94 : vector<16x1xf32>
    %96 = math.rsqrt %95 : vector<16x1xf32>
    %97 = vector.broadcast %96 : vector<16x1xf32> to vector<16x32xf32>
    %98 = arith.mulf %93, %97 : vector<16x32xf32>
    %99 = vector.broadcast %79 : vector<1x32xf32> to vector<16x32xf32>
    %100 = arith.mulf %98, %99 : vector<16x32xf32>
    %101 = vector.broadcast %80 : vector<1x32xf32> to vector<16x32xf32>
    %102 = arith.addf %100, %101 : vector<16x32xf32>
    %103 = arith.truncf %102 : vector<16x32xf32> to vector<16x32xbf16>
    %c0_50 = arith.constant 0 : index
    %c0_51 = arith.constant 0 : index
    %104 = vector.load %arg10[%c0_50, %c0_51] : memref<32x128xbf16, #tpu.memory_space<vmem>>, vector<32x128xbf16>
    %cst_52 = arith.constant dense<0.000000e+00> : vector<16x128xf32>
    %105 = tpu.matmul %103, %104, %cst_52 {dimension_numbers = #tpu.dot_dimension_numbers<[1], [0], [0], [1], [0, 0, 1, 1], [], []>} : vector<16x32xbf16>, vector<32x128xbf16>, vector<16x128xf32> -> vector<16x128xf32>
    %c0_53 = arith.constant 0 : index
    %c0_54 = arith.constant 0 : index
    %106 = vector.load %arg11[%c0_53, %c0_54] : memref<1x128xf32, #tpu.memory_space<vmem>>, vector<1x128xf32>
    %107 = vector.broadcast %106 : vector<1x128xf32> to vector<16x128xf32>
    %108 = arith.addf %105, %107 : vector<16x128xf32>
    %c0_55 = arith.constant 0 : index
    %c0_56 = arith.constant 0 : index
    %c0_57 = arith.constant 0 : index
    %109 = vector.load %arg12[%c0_55, %c0_56, %c0_57] : memref<1x16x128xf32, #tpu.memory_space<vmem>>, vector<1x16x128xf32>
    %110 = vector.shape_cast %109 : vector<1x16x128xf32> to vector<16x128xf32>
    %111 = vector.shape_cast %108 : vector<16x128xf32> to vector<1x16x128xf32>
    tpu.vector_store %arg12[%c0_55, %c0_56, %c0_57], %111 {strides = array<i32>} : memref<1x16x128xf32, #tpu.memory_space<vmem>>, vector<1x16x128xf32>,
    return
  }
  func.func @transform_0(%arg0: i32) -> (i32, i32, i32) {
    %c0_i32 = arith.constant 0 : i32
    %c0_i32_0 = arith.constant 0 : i32
    %c0_i32_1 = arith.constant 0 : i32
    return %arg0, %c0_i32, %c0_i32_0 : i32, i32, i32
  }
  func.func @transform_1(%arg0: i32) -> (i32, i32, i32) {
    %c0_i32 = arith.constant 0 : i32
    %c0_i32_0 = arith.constant 0 : i32
    %c0_i32_1 = arith.constant 0 : i32
    %c0_i32_2 = arith.constant 0 : i32
    return %c0_i32, %c0_i32_0, %c0_i32_1 : i32, i32, i32
  }
  func.func @transform_2(%arg0: i32) -> (i32, i32) {
    %c0_i32 = arith.constant 0 : i32
    %c0_i32_0 = arith.constant 0 : i32
    %c0_i32_1 = arith.constant 0 : i32
    return %c0_i32, %c0_i32_0 : i32, i32
  }
  func.func @transform_3(%arg0: i32) -> (i32, i32) {
    %c0_i32 = arith.constant 0 : i32
    %c0_i32_0 = arith.constant 0 : i32
    %c0_i32_1 = arith.constant 0 : i32
    return %c0_i32, %c0_i32_0 : i32, i32
  }
  func.func @transform_4(%arg0: i32) -> (i32, i32) {
    %c0_i32 = arith.constant 0 : i32
    %c0_i32_0 = arith.constant 0 : i32
    %c0_i32_1 = arith.constant 0 : i32
    return %c0_i32, %c0_i32_0 : i32, i32
  }
  func.func @transform_5(%arg0: i32) -> (i32, i32, i32) {
    %c0_i32 = arith.constant 0 : i32
    %c0_i32_0 = arith.constant 0 : i32
    %c0_i32_1 = arith.constant 0 : i32
    %c0_i32_2 = arith.constant 0 : i32
    return %c0_i32, %c0_i32_0, %c0_i32_1 : i32, i32, i32
  }
  func.func @transform_6(%arg0: i32) -> (i32, i32) {
    %c0_i32 = arith.constant 0 : i32
    %c0_i32_0 = arith.constant 0 : i32
    %c0_i32_1 = arith.constant 0 : i32
    return %c0_i32, %c0_i32_0 : i32, i32
  }
  func.func @transform_7(%arg0: i32) -> (i32, i32) {
    %c0_i32 = arith.constant 0 : i32
    %c0_i32_0 = arith.constant 0 : i32
    %c0_i32_1 = arith.constant 0 : i32
    return %c0_i32, %c0_i32_0 : i32, i32
  }
  func.func @transform_8(%arg0: i32) -> (i32, i32) {
    %c0_i32 = arith.constant 0 : i32
    %c0_i32_0 = arith.constant 0 : i32
    %c0_i32_1 = arith.constant 0 : i32
    return %c0_i32, %c0_i32_0 : i32, i32
  }
  func.func @transform_9(%arg0: i32) -> (i32, i32) {
    %c0_i32 = arith.constant 0 : i32
    %c0_i32_0 = arith.constant 0 : i32
    %c0_i32_1 = arith.constant 0 : i32
    return %c0_i32, %c0_i32_0 : i32, i32
  }
  func.func @transform_10(%arg0: i32) -> (i32, i32) {
    %c0_i32 = arith.constant 0 : i32
    %c0_i32_0 = arith.constant 0 : i32
    %c0_i32_1 = arith.constant 0 : i32
    return %c0_i32, %c0_i32_0 : i32, i32
  }
  func.func @transform_11(%arg0: i32) -> (i32, i32, i32) {
    %c0_i32 = arith.constant 0 : i32
    %c0_i32_0 = arith.constant 0 : i32
    %c0_i32_1 = arith.constant 0 : i32
    return %arg0, %c0_i32, %c0_i32_0 : i32, i32, i32
  }
}

module attributes {stable_mosaic.version = 11 : i64} {
  func.func @_flash_attn_kernel(%arg0: i32, %arg1: i32, %arg2: i32, %arg3: i32, %arg4: memref<1x1x16x16xbf16, #tpu.memory_space<vmem>>, %arg5: memref<1x1x16x16xbf16, #tpu.memory_space<vmem>>, %arg6: memref<1x1x16x16xbf16, #tpu.memory_space<vmem>>, %arg7: memref<1x1x1x16xf32, #tpu.memory_space<vmem>>, %arg8: memref<1x1x16x16xbf16, #tpu.memory_space<vmem>>, %arg9: memref<16x1xf32, #tpu.memory_space<vmem>>, %arg10: memref<16x1xf32, #tpu.memory_space<vmem>>, %arg11: memref<16x16xf32, #tpu.memory_space<vmem>>) attributes {dimension_semantics = [#tpu.dimension_semantics<parallel>, #tpu.dimension_semantics<parallel>, #tpu.dimension_semantics<parallel>, #tpu.dimension_semantics<arbitrary>], iteration_bounds = array<i64: 2, 2, 1, 1>, scalar_prefetch = 0 : i64, scratch_operands = 3 : i64, tpu.core_type = #tpu.core_type<tc>, window_params = [{transform_indices = @transform_0, window_bounds = array<i64: 1, 1, 16, 16>}, {transform_indices = @transform_1, window_bounds = array<i64: 1, 1, 16, 16>}, {transform_indices = @transform_2, window_bounds = array<i64: 1, 1, 16, 16>}, {transform_indices = @transform_3, window_bounds = array<i64: 1, 1, 1, 16>}, {transform_indices = @transform_4, window_bounds = array<i64: 1, 1, 16, 16>}]} {
    %c0_i32 = arith.constant 0 : i32
    %0 = arith.cmpi eq, %arg3, %c0_i32 : i32
    %1 = arith.extui %0 : i1 to i32
    %c0_i32_0 = arith.constant 0 : i32
    %2 = arith.cmpi ne, %1, %c0_i32_0 : i32
    scf.if %2 {
      %cst_36 = arith.constant -1.000000e+30 : f32
      %46 = vector.broadcast %cst_36 : f32 to vector<16x1xf32>
      %c0_37 = arith.constant 0 : index
      %c0_38 = arith.constant 0 : index
      %47 = vector.load %arg9[%c0_37, %c0_38] : memref<16x1xf32, #tpu.memory_space<vmem>>, vector<16x1xf32>
      tpu.vector_store %arg9[%c0_37, %c0_38], %46 {strides = array<i32>} : memref<16x1xf32, #tpu.memory_space<vmem>>, vector<16x1xf32>,
      %cst_39 = arith.constant 0.000000e+00 : f32
      %48 = vector.broadcast %cst_39 : f32 to vector<16x1xf32>
      %c0_40 = arith.constant 0 : index
      %c0_41 = arith.constant 0 : index
      %49 = vector.load %arg10[%c0_40, %c0_41] : memref<16x1xf32, #tpu.memory_space<vmem>>, vector<16x1xf32>
      tpu.vector_store %arg10[%c0_40, %c0_41], %48 {strides = array<i32>} : memref<16x1xf32, #tpu.memory_space<vmem>>, vector<16x1xf32>,
      %cst_42 = arith.constant 0.000000e+00 : f32
      %50 = vector.broadcast %cst_42 : f32 to vector<16x16xf32>
      %c0_43 = arith.constant 0 : index
      %c0_44 = arith.constant 0 : index
      %51 = vector.load %arg11[%c0_43, %c0_44] : memref<16x16xf32, #tpu.memory_space<vmem>>, vector<16x16xf32>
      tpu.vector_store %arg11[%c0_43, %c0_44], %50 {strides = array<i32>} : memref<16x16xf32, #tpu.memory_space<vmem>>, vector<16x16xf32>,
    } else {
    }
    %c0 = arith.constant 0 : index
    %c0_1 = arith.constant 0 : index
    %c0_2 = arith.constant 0 : index
    %c0_3 = arith.constant 0 : index
    %3 = vector.load %arg4[%c0, %c0_1, %c0_2, %c0_3] : memref<1x1x16x16xbf16, #tpu.memory_space<vmem>>, vector<1x1x16x16xbf16>
    %4 = vector.shape_cast %3 : vector<1x1x16x16xbf16> to vector<16x16xbf16>
    %c0_4 = arith.constant 0 : index
    %c0_5 = arith.constant 0 : index
    %c0_6 = arith.constant 0 : index
    %c0_7 = arith.constant 0 : index
    %5 = vector.load %arg5[%c0_4, %c0_5, %c0_6, %c0_7] : memref<1x1x16x16xbf16, #tpu.memory_space<vmem>>, vector<1x1x16x16xbf16>
    %6 = vector.shape_cast %5 : vector<1x1x16x16xbf16> to vector<16x16xbf16>
    %c0_8 = arith.constant 0 : index
    %c0_9 = arith.constant 0 : index
    %c0_10 = arith.constant 0 : index
    %c0_11 = arith.constant 0 : index
    %7 = vector.load %arg6[%c0_8, %c0_9, %c0_10, %c0_11] : memref<1x1x16x16xbf16, #tpu.memory_space<vmem>>, vector<1x1x16x16xbf16>
    %8 = vector.shape_cast %7 : vector<1x1x16x16xbf16> to vector<16x16xbf16>
    %c0_12 = arith.constant 0 : index
    %c0_13 = arith.constant 0 : index
    %c0_14 = arith.constant 0 : index
    %c0_15 = arith.constant 0 : index
    %9 = vector.load %arg7[%c0_12, %c0_13, %c0_14, %c0_15] : memref<1x1x1x16xf32, #tpu.memory_space<vmem>>, vector<1x1x1x16xf32>
    %10 = vector.shape_cast %9 : vector<1x1x1x16xf32> to vector<1x16xf32>
    %cst = arith.constant dense<0.000000e+00> : vector<16x16xf32>
    %11 = tpu.matmul %4, %6, %cst {dimension_numbers = #tpu.dot_dimension_numbers<[1], [1], [0], [0], [0, 0, 1, 0], [], []>} : vector<16x16xbf16>, vector<16x16xbf16>, vector<16x16xf32> -> vector<16x16xf32>
    %cst_16 = arith.constant 2.500000e-01 : f32
    %12 = vector.broadcast %cst_16 : f32 to vector<16x16xf32>
    %13 = arith.mulf %11, %12 : vector<16x16xf32>
    %cst_17 = arith.constant 5.000000e-01 : f32
    %14 = vector.broadcast %cst_17 : f32 to vector<1x16xf32>
    %15 = arith.cmpf ogt, %10, %14 : vector<1x16xf32>
    %cst_18 = arith.constant -1.000000e+09 : f32
    %16 = vector.shape_cast %15 : vector<1x16xi1> to vector<1x16xi1>
    %17 = vector.broadcast %16 : vector<1x16xi1> to vector<16x16xi1>
    %18 = vector.broadcast %cst_18 : f32 to vector<16x16xf32>
    %19 = arith.select %17, %13, %18 : vector<16x16xi1>, vector<16x16xf32>
    %c0_19 = arith.constant 0 : index
    %c0_20 = arith.constant 0 : index
    %20 = vector.load %arg9[%c0_19, %c0_20] : memref<16x1xf32, #tpu.memory_space<vmem>>, vector<16x1xf32>
    %cst_21 = arith.constant dense<0xFF800000> : vector<16xf32>
    %21 = vector.multi_reduction <maximumf>, %19, %cst_21 [1] : vector<16x16xf32> to vector<16xf32>
    %22 = vector.shape_cast %21 : vector<16xf32> to vector<16x1xf32>
    %23 = arith.maximumf %20, %22 : vector<16x1xf32>
    %24 = arith.subf %20, %23 : vector<16x1xf32>
    %25 = math.exp %24 : vector<16x1xf32>
    %26 = vector.broadcast %23 : vector<16x1xf32> to vector<16x16xf32>
    %27 = arith.subf %19, %26 : vector<16x16xf32>
    %28 = math.exp %27 : vector<16x16xf32>
    %c0_22 = arith.constant 0 : index
    %c0_23 = arith.constant 0 : index
    %29 = vector.load %arg10[%c0_22, %c0_23] : memref<16x1xf32, #tpu.memory_space<vmem>>, vector<16x1xf32>
    %30 = arith.mulf %25, %29 : vector<16x1xf32>
    %cst_24 = arith.constant dense<0.000000e+00> : vector<16xf32>
    %31 = vector.multi_reduction <add>, %28, %cst_24 [1] : vector<16x16xf32> to vector<16xf32>
    %32 = vector.shape_cast %31 : vector<16xf32> to vector<16x1xf32>
    %33 = arith.addf %30, %32 : vector<16x1xf32>
    %c0_25 = arith.constant 0 : index
    %c0_26 = arith.constant 0 : index
    %34 = vector.load %arg10[%c0_25, %c0_26] : memref<16x1xf32, #tpu.memory_space<vmem>>, vector<16x1xf32>
    tpu.vector_store %arg10[%c0_25, %c0_26], %33 {strides = array<i32>} : memref<16x1xf32, #tpu.memory_space<vmem>>, vector<16x1xf32>,
    %c0_27 = arith.constant 0 : index
    %c0_28 = arith.constant 0 : index
    %35 = vector.load %arg11[%c0_27, %c0_28] : memref<16x16xf32, #tpu.memory_space<vmem>>, vector<16x16xf32>
    %36 = vector.broadcast %25 : vector<16x1xf32> to vector<16x16xf32>
    %37 = arith.mulf %36, %35 : vector<16x16xf32>
    %38 = arith.truncf %28 : vector<16x16xf32> to vector<16x16xbf16>
    %cst_29 = arith.constant dense<0.000000e+00> : vector<16x16xf32>
    %39 = tpu.matmul %38, %8, %cst_29 {dimension_numbers = #tpu.dot_dimension_numbers<[1], [0], [0], [1], [0, 0, 1, 1], [], []>} : vector<16x16xbf16>, vector<16x16xbf16>, vector<16x16xf32> -> vector<16x16xf32>
    %40 = arith.addf %37, %39 : vector<16x16xf32>
    %c0_30 = arith.constant 0 : index
    %c0_31 = arith.constant 0 : index
    %41 = vector.load %arg11[%c0_30, %c0_31] : memref<16x16xf32, #tpu.memory_space<vmem>>, vector<16x16xf32>
    tpu.vector_store %arg11[%c0_30, %c0_31], %40 {strides = array<i32>} : memref<16x16xf32, #tpu.memory_space<vmem>>, vector<16x16xf32>,
    %c0_32 = arith.constant 0 : index
    %c0_33 = arith.constant 0 : index
    %42 = vector.load %arg9[%c0_32, %c0_33] : memref<16x1xf32, #tpu.memory_space<vmem>>, vector<16x1xf32>
    tpu.vector_store %arg9[%c0_32, %c0_33], %23 {strides = array<i32>} : memref<16x1xf32, #tpu.memory_space<vmem>>, vector<16x1xf32>,
    %c0_i32_34 = arith.constant 0 : i32
    %43 = arith.cmpi eq, %arg3, %c0_i32_34 : i32
    %44 = arith.extui %43 : i1 to i32
    %c0_i32_35 = arith.constant 0 : i32
    %45 = arith.cmpi ne, %44, %c0_i32_35 : i32
    scf.if %45 {
      %c0_36 = arith.constant 0 : index
      %c0_37 = arith.constant 0 : index
      %46 = vector.load %arg11[%c0_36, %c0_37] : memref<16x16xf32, #tpu.memory_space<vmem>>, vector<16x16xf32>
      %c0_38 = arith.constant 0 : index
      %c0_39 = arith.constant 0 : index
      %47 = vector.load %arg10[%c0_38, %c0_39] : memref<16x1xf32, #tpu.memory_space<vmem>>, vector<16x1xf32>
      %48 = tpu.reciprocal %47 {approx = true} : vector<16x1xf32> -> vector<16x1xf32>
      %49 = vector.broadcast %48 : vector<16x1xf32> to vector<16x16xf32>
      %50 = arith.mulf %46, %49 : vector<16x16xf32>
      %51 = arith.truncf %50 : vector<16x16xf32> to vector<16x16xbf16>
      %c0_40 = arith.constant 0 : index
      %c0_41 = arith.constant 0 : index
      %c0_42 = arith.constant 0 : index
      %c0_43 = arith.constant 0 : index
      %52 = vector.load %arg8[%c0_40, %c0_41, %c0_42, %c0_43] : memref<1x1x16x16xbf16, #tpu.memory_space<vmem>>, vector<1x1x16x16xbf16>
      %53 = vector.shape_cast %52 : vector<1x1x16x16xbf16> to vector<16x16xbf16>
      %54 = vector.shape_cast %51 : vector<16x16xbf16> to vector<1x1x16x16xbf16>
      tpu.vector_store %arg8[%c0_40, %c0_41, %c0_42, %c0_43], %54 {strides = array<i32>} : memref<1x1x16x16xbf16, #tpu.memory_space<vmem>>, vector<1x1x16x16xbf16>,
    } else {
    }
    return
  }
  func.func @transform_0(%arg0: i32, %arg1: i32, %arg2: i32, %arg3: i32) -> (i32, i32, i32, i32) {
    %c0_i32 = arith.constant 0 : i32
    %c0_i32_0 = arith.constant 0 : i32
    return %arg0, %arg1, %arg2, %c0_i32 : i32, i32, i32, i32
  }
  func.func @transform_1(%arg0: i32, %arg1: i32, %arg2: i32, %arg3: i32) -> (i32, i32, i32, i32) {
    %c0_i32 = arith.constant 0 : i32
    %c0_i32_0 = arith.constant 0 : i32
    return %arg0, %arg1, %arg3, %c0_i32 : i32, i32, i32, i32
  }
  func.func @transform_2(%arg0: i32, %arg1: i32, %arg2: i32, %arg3: i32) -> (i32, i32, i32, i32) {
    %c0_i32 = arith.constant 0 : i32
    %c0_i32_0 = arith.constant 0 : i32
    return %arg0, %arg1, %arg3, %c0_i32 : i32, i32, i32, i32
  }
  func.func @transform_3(%arg0: i32, %arg1: i32, %arg2: i32, %arg3: i32) -> (i32, i32, i32, i32) {
    %c0_i32 = arith.constant 0 : i32
    %c0_i32_0 = arith.constant 0 : i32
    %c0_i32_1 = arith.constant 0 : i32
    return %arg0, %c0_i32, %c0_i32_0, %arg3 : i32, i32, i32, i32
  }
  func.func @transform_4(%arg0: i32, %arg1: i32, %arg2: i32, %arg3: i32) -> (i32, i32, i32, i32) {
    %c0_i32 = arith.constant 0 : i32
    %c0_i32_0 = arith.constant 0 : i32
    return %arg0, %arg1, %arg2, %c0_i32 : i32, i32, i32, i32
  }
}

module attributes {stable_mosaic.version = 11 : i64} {
  func.func @_attn_out_kernel(%arg0: i32, %arg1: i32, %arg2: memref<1x2x16x16xbf16, #tpu.memory_space<vmem>>, %arg3: memref<1x16x32xbf16, #tpu.memory_space<vmem>>, %arg4: memref<2x16x32xbf16, #tpu.memory_space<vmem>>, %arg5: memref<1x32xf32, #tpu.memory_space<vmem>>, %arg6: memref<1x32xf32, #tpu.memory_space<vmem>>, %arg7: memref<1x32xf32, #tpu.memory_space<vmem>>, %arg8: memref<1x16x32xbf16, #tpu.memory_space<vmem>>) attributes {dimension_semantics = [#tpu.dimension_semantics<parallel>, #tpu.dimension_semantics<parallel>], iteration_bounds = array<i64: 2, 1>, scalar_prefetch = 0 : i64, scratch_operands = 0 : i64, tpu.core_type = #tpu.core_type<tc>, window_params = [{transform_indices = @transform_0, window_bounds = array<i64: 1, 2, 16, 16>}, {transform_indices = @transform_1, window_bounds = array<i64: 1, 16, 32>}, {pipeline_mode = #tpu.pipeline_mode<synchronous>, transform_indices = @transform_2, window_bounds = array<i64: 2, 16, 32>}, {pipeline_mode = #tpu.pipeline_mode<synchronous>, transform_indices = @transform_3, window_bounds = array<i64: 1, 32>}, {pipeline_mode = #tpu.pipeline_mode<synchronous>, transform_indices = @transform_4, window_bounds = array<i64: 1, 32>}, {pipeline_mode = #tpu.pipeline_mode<synchronous>, transform_indices = @transform_5, window_bounds = array<i64: 1, 32>}, {transform_indices = @transform_6, window_bounds = array<i64: 1, 16, 32>}]} {
    %c0 = arith.constant 0 : index
    %c0_0 = arith.constant 0 : index
    %c0_1 = arith.constant 0 : index
    %0 = vector.load %arg3[%c0, %c0_0, %c0_1] : memref<1x16x32xbf16, #tpu.memory_space<vmem>>, vector<1x16x32xbf16>
    %1 = vector.shape_cast %0 : vector<1x16x32xbf16> to vector<16x32xbf16>
    %c0_2 = arith.constant 0 : index
    %c0_3 = arith.constant 0 : index
    %2 = vector.load %arg5[%c0_2, %c0_3] : memref<1x32xf32, #tpu.memory_space<vmem>>, vector<1x32xf32>
    %3 = arith.extf %1 : vector<16x32xbf16> to vector<16x32xf32>
    %4 = vector.broadcast %2 : vector<1x32xf32> to vector<16x32xf32>
    %5 = arith.addf %4, %3 : vector<16x32xf32>
    %c0_4 = arith.constant 0 : index
    %c0_5 = arith.constant 0 : index
    %c0_6 = arith.constant 0 : index
    %c0_7 = arith.constant 0 : index
    %6 = vector.load %arg2[%c0_4, %c0_5, %c0_6, %c0_7] : memref<1x2x16x16xbf16, #tpu.memory_space<vmem>>, vector<1x1x16x16xbf16>
    %7 = vector.shape_cast %6 : vector<1x1x16x16xbf16> to vector<16x16xbf16>
    %c0_8 = arith.constant 0 : index
    %c0_9 = arith.constant 0 : index
    %c0_10 = arith.constant 0 : index
    %8 = vector.load %arg4[%c0_8, %c0_9, %c0_10] : memref<2x16x32xbf16, #tpu.memory_space<vmem>>, vector<1x16x32xbf16>
    %9 = vector.shape_cast %8 : vector<1x16x32xbf16> to vector<16x32xbf16>
    %cst = arith.constant dense<0.000000e+00> : vector<16x32xf32>
    %10 = tpu.matmul %7, %9, %cst {dimension_numbers = #tpu.dot_dimension_numbers<[1], [0], [0], [1], [0, 0, 1, 1], [], []>} : vector<16x16xbf16>, vector<16x32xbf16>, vector<16x32xf32> -> vector<16x32xf32>
    %11 = arith.addf %5, %10 : vector<16x32xf32>
    %c0_11 = arith.constant 0 : index
    %c1 = arith.constant 1 : index
    %c0_12 = arith.constant 0 : index
    %c0_13 = arith.constant 0 : index
    %12 = vector.load %arg2[%c0_11, %c1, %c0_12, %c0_13] : memref<1x2x16x16xbf16, #tpu.memory_space<vmem>>, vector<1x1x16x16xbf16>
    %13 = vector.shape_cast %12 : vector<1x1x16x16xbf16> to vector<16x16xbf16>
    %c1_14 = arith.constant 1 : index
    %c0_15 = arith.constant 0 : index
    %c0_16 = arith.constant 0 : index
    %14 = vector.load %arg4[%c1_14, %c0_15, %c0_16] : memref<2x16x32xbf16, #tpu.memory_space<vmem>>, vector<1x16x32xbf16>
    %15 = vector.shape_cast %14 : vector<1x16x32xbf16> to vector<16x32xbf16>
    %cst_17 = arith.constant dense<0.000000e+00> : vector<16x32xf32>
    %16 = tpu.matmul %13, %15, %cst_17 {dimension_numbers = #tpu.dot_dimension_numbers<[1], [0], [0], [1], [0, 0, 1, 1], [], []>} : vector<16x16xbf16>, vector<16x32xbf16>, vector<16x32xf32> -> vector<16x32xf32>
    %17 = arith.addf %11, %16 : vector<16x32xf32>
    %c0_18 = arith.constant 0 : index
    %c0_19 = arith.constant 0 : index
    %18 = vector.load %arg6[%c0_18, %c0_19] : memref<1x32xf32, #tpu.memory_space<vmem>>, vector<1x32xf32>
    %c0_20 = arith.constant 0 : index
    %c0_21 = arith.constant 0 : index
    %19 = vector.load %arg7[%c0_20, %c0_21] : memref<1x32xf32, #tpu.memory_space<vmem>>, vector<1x32xf32>
    %cst_22 = arith.constant dense<0.000000e+00> : vector<16xf32>
    %20 = vector.multi_reduction <add>, %17, %cst_22 [1] : vector<16x32xf32> to vector<16xf32>
    %21 = vector.shape_cast %20 : vector<16xf32> to vector<16x1xf32>
    %cst_23 = arith.constant 3.200000e+01 : f32
    %22 = vector.broadcast %cst_23 : f32 to vector<16x1xf32>
    %23 = arith.divf %21, %22 : vector<16x1xf32>
    %24 = vector.broadcast %23 : vector<16x1xf32> to vector<16x32xf32>
    %25 = arith.subf %17, %24 : vector<16x32xf32>
    %26 = arith.mulf %25, %25 : vector<16x32xf32>
    %cst_24 = arith.constant dense<0.000000e+00> : vector<16xf32>
    %27 = vector.multi_reduction <add>, %26, %cst_24 [1] : vector<16x32xf32> to vector<16xf32>
    %28 = vector.shape_cast %27 : vector<16xf32> to vector<16x1xf32>
    %cst_25 = arith.constant 3.200000e+01 : f32
    %29 = vector.broadcast %cst_25 : f32 to vector<16x1xf32>
    %30 = arith.divf %28, %29 : vector<16x1xf32>
    %31 = vector.broadcast %23 : vector<16x1xf32> to vector<16x32xf32>
    %32 = arith.subf %17, %31 : vector<16x32xf32>
    %cst_26 = arith.constant 9.99999974E-6 : f32
    %33 = vector.broadcast %cst_26 : f32 to vector<16x1xf32>
    %34 = arith.addf %30, %33 : vector<16x1xf32>
    %35 = math.rsqrt %34 : vector<16x1xf32>
    %36 = vector.broadcast %35 : vector<16x1xf32> to vector<16x32xf32>
    %37 = arith.mulf %32, %36 : vector<16x32xf32>
    %38 = vector.broadcast %18 : vector<1x32xf32> to vector<16x32xf32>
    %39 = arith.mulf %37, %38 : vector<16x32xf32>
    %40 = vector.broadcast %19 : vector<1x32xf32> to vector<16x32xf32>
    %41 = arith.addf %39, %40 : vector<16x32xf32>
    %42 = arith.truncf %41 : vector<16x32xf32> to vector<16x32xbf16>
    %c0_27 = arith.constant 0 : index
    %c0_28 = arith.constant 0 : index
    %c0_29 = arith.constant 0 : index
    %43 = vector.load %arg8[%c0_27, %c0_28, %c0_29] : memref<1x16x32xbf16, #tpu.memory_space<vmem>>, vector<1x16x32xbf16>
    %44 = vector.shape_cast %43 : vector<1x16x32xbf16> to vector<16x32xbf16>
    %45 = vector.shape_cast %42 : vector<16x32xbf16> to vector<1x16x32xbf16>
    tpu.vector_store %arg8[%c0_27, %c0_28, %c0_29], %45 {strides = array<i32>} : memref<1x16x32xbf16, #tpu.memory_space<vmem>>, vector<1x16x32xbf16>,
    return
  }
  func.func @transform_0(%arg0: i32, %arg1: i32) -> (i32, i32, i32, i32) {
    %c0_i32 = arith.constant 0 : i32
    %c0_i32_0 = arith.constant 0 : i32
    %c0_i32_1 = arith.constant 0 : i32
    return %arg0, %c0_i32, %arg1, %c0_i32_0 : i32, i32, i32, i32
  }
  func.func @transform_1(%arg0: i32, %arg1: i32) -> (i32, i32, i32) {
    %c0_i32 = arith.constant 0 : i32
    %c0_i32_0 = arith.constant 0 : i32
    return %arg0, %arg1, %c0_i32 : i32, i32, i32
  }
  func.func @transform_2(%arg0: i32, %arg1: i32) -> (i32, i32, i32) {
    %c0_i32 = arith.constant 0 : i32
    %c0_i32_0 = arith.constant 0 : i32
    %c0_i32_1 = arith.constant 0 : i32
    %c0_i32_2 = arith.constant 0 : i32
    return %c0_i32, %c0_i32_0, %c0_i32_1 : i32, i32, i32
  }
  func.func @transform_3(%arg0: i32, %arg1: i32) -> (i32, i32) {
    %c0_i32 = arith.constant 0 : i32
    %c0_i32_0 = arith.constant 0 : i32
    %c0_i32_1 = arith.constant 0 : i32
    return %c0_i32, %c0_i32_0 : i32, i32
  }
  func.func @transform_4(%arg0: i32, %arg1: i32) -> (i32, i32) {
    %c0_i32 = arith.constant 0 : i32
    %c0_i32_0 = arith.constant 0 : i32
    %c0_i32_1 = arith.constant 0 : i32
    return %c0_i32, %c0_i32_0 : i32, i32
  }
  func.func @transform_5(%arg0: i32, %arg1: i32) -> (i32, i32) {
    %c0_i32 = arith.constant 0 : i32
    %c0_i32_0 = arith.constant 0 : i32
    %c0_i32_1 = arith.constant 0 : i32
    return %c0_i32, %c0_i32_0 : i32, i32
  }
  func.func @transform_6(%arg0: i32, %arg1: i32) -> (i32, i32, i32) {
    %c0_i32 = arith.constant 0 : i32
    %c0_i32_0 = arith.constant 0 : i32
    return %arg0, %arg1, %c0_i32 : i32, i32, i32
  }
}

module attributes {stable_mosaic.version = 11 : i64} {
  func.func @_ffn_block_kernel(%arg0: i32, %arg1: memref<1x20x32xbf16, #tpu.memory_space<vmem>>, %arg2: memref<3x32x128xbf16, #tpu.memory_space<vmem>>, %arg3: memref<1x128xf32, #tpu.memory_space<vmem>>, %arg4: memref<3x128x32xbf16, #tpu.memory_space<vmem>>, %arg5: memref<1x32xf32, #tpu.memory_space<vmem>>, %arg6: memref<1x32xf32, #tpu.memory_space<vmem>>, %arg7: memref<1x32xf32, #tpu.memory_space<vmem>>, %arg8: memref<1x16x32xbf16, #tpu.memory_space<vmem>>) attributes {dimension_semantics = [#tpu.dimension_semantics<parallel>], iteration_bounds = array<i64: 2>, scalar_prefetch = 0 : i64, scratch_operands = 0 : i64, tpu.core_type = #tpu.core_type<tc>, window_params = [{transform_indices = @transform_0, window_bounds = array<i64: 1, 20, 32>}, {pipeline_mode = #tpu.pipeline_mode<synchronous>, transform_indices = @transform_1, window_bounds = array<i64: 3, 32, 128>}, {pipeline_mode = #tpu.pipeline_mode<synchronous>, transform_indices = @transform_2, window_bounds = array<i64: 1, 128>}, {pipeline_mode = #tpu.pipeline_mode<synchronous>, transform_indices = @transform_3, window_bounds = array<i64: 3, 128, 32>}, {pipeline_mode = #tpu.pipeline_mode<synchronous>, transform_indices = @transform_4, window_bounds = array<i64: 1, 32>}, {pipeline_mode = #tpu.pipeline_mode<synchronous>, transform_indices = @transform_5, window_bounds = array<i64: 1, 32>}, {pipeline_mode = #tpu.pipeline_mode<synchronous>, transform_indices = @transform_6, window_bounds = array<i64: 1, 32>}, {transform_indices = @transform_7, window_bounds = array<i64: 1, 16, 32>}]} {
    %c0 = arith.constant 0 : index
    %c0_0 = arith.constant 0 : index
    %c0_1 = arith.constant 0 : index
    %0 = vector.load %arg1[%c0, %c0_0, %c0_1] : memref<1x20x32xbf16, #tpu.memory_space<vmem>>, vector<1x20x32xbf16>
    %1 = vector.shape_cast %0 : vector<1x20x32xbf16> to vector<20x32xbf16>
    %cst = arith.constant 0.000000e+00 : f32
    %2 = vector.broadcast %cst : f32 to vector<18x128xf32>
    %3 = vector.extract_strided_slice %1 {offsets = [0, 0], sizes = [18, 32], strides = [1, 1]} : vector<20x32xbf16> to vector<18x32xbf16>
    %c0_2 = arith.constant 0 : index
    %c0_3 = arith.constant 0 : index
    %c0_4 = arith.constant 0 : index
    %4 = vector.load %arg2[%c0_2, %c0_3, %c0_4] : memref<3x32x128xbf16, #tpu.memory_space<vmem>>, vector<1x32x128xbf16>
    %5 = vector.shape_cast %4 : vector<1x32x128xbf16> to vector<32x128xbf16>
    %cst_5 = arith.constant dense<0.000000e+00> : vector<18x128xf32>
    %6 = tpu.matmul %3, %5, %cst_5 {dimension_numbers = #tpu.dot_dimension_numbers<[1], [0], [0], [1], [0, 0, 1, 1], [], []>} : vector<18x32xbf16>, vector<32x128xbf16>, vector<18x128xf32> -> vector<18x128xf32>
    %7 = arith.addf %2, %6 : vector<18x128xf32>
    %8 = vector.extract_strided_slice %1 {offsets = [1, 0], sizes = [18, 32], strides = [1, 1]} : vector<20x32xbf16> to vector<18x32xbf16>
    %c1 = arith.constant 1 : index
    %c0_6 = arith.constant 0 : index
    %c0_7 = arith.constant 0 : index
    %9 = vector.load %arg2[%c1, %c0_6, %c0_7] : memref<3x32x128xbf16, #tpu.memory_space<vmem>>, vector<1x32x128xbf16>
    %10 = vector.shape_cast %9 : vector<1x32x128xbf16> to vector<32x128xbf16>
    %cst_8 = arith.constant dense<0.000000e+00> : vector<18x128xf32>
    %11 = tpu.matmul %8, %10, %cst_8 {dimension_numbers = #tpu.dot_dimension_numbers<[1], [0], [0], [1], [0, 0, 1, 1], [], []>} : vector<18x32xbf16>, vector<32x128xbf16>, vector<18x128xf32> -> vector<18x128xf32>
    %12 = arith.addf %7, %11 : vector<18x128xf32>
    %13 = vector.extract_strided_slice %1 {offsets = [2, 0], sizes = [18, 32], strides = [1, 1]} : vector<20x32xbf16> to vector<18x32xbf16>
    %c2 = arith.constant 2 : index
    %c0_9 = arith.constant 0 : index
    %c0_10 = arith.constant 0 : index
    %14 = vector.load %arg2[%c2, %c0_9, %c0_10] : memref<3x32x128xbf16, #tpu.memory_space<vmem>>, vector<1x32x128xbf16>
    %15 = vector.shape_cast %14 : vector<1x32x128xbf16> to vector<32x128xbf16>
    %cst_11 = arith.constant dense<0.000000e+00> : vector<18x128xf32>
    %16 = tpu.matmul %13, %15, %cst_11 {dimension_numbers = #tpu.dot_dimension_numbers<[1], [0], [0], [1], [0, 0, 1, 1], [], []>} : vector<18x32xbf16>, vector<32x128xbf16>, vector<18x128xf32> -> vector<18x128xf32>
    %17 = arith.addf %12, %16 : vector<18x128xf32>
    %c0_12 = arith.constant 0 : index
    %c0_13 = arith.constant 0 : index
    %18 = vector.load %arg3[%c0_12, %c0_13] : memref<1x128xf32, #tpu.memory_space<vmem>>, vector<1x128xf32>
    %19 = vector.broadcast %18 : vector<1x128xf32> to vector<18x128xf32>
    %20 = arith.addf %17, %19 : vector<18x128xf32>
    %cst_14 = arith.constant 0.000000e+00 : f32
    %21 = vector.broadcast %cst_14 : f32 to vector<18x128xf32>
    %22 = arith.maximumf %20, %21 : vector<18x128xf32>
    %23 = tpu.iota {dimensions = array<i32: 0>} : vector<18x1xi32>
    %c1_i32 = arith.constant 1 : i32
    %24 = vector.broadcast %c1_i32 : i32 to vector<18x1xi32>
    %25 = arith.cmpi sge, %23, %24 : vector<18x1xi32>
    %c17_i32 = arith.constant 17 : i32
    %26 = vector.broadcast %c17_i32 : i32 to vector<18x1xi32>
    %27 = arith.cmpi slt, %23, %26 : vector<18x1xi32>
    %28 = arith.andi %25, %27 : vector<18x1xi1>
    %cst_15 = arith.constant 0.000000e+00 : f32
    %29 = vector.shape_cast %28 : vector<18x1xi1> to vector<18x1xi1>
    %30 = vector.broadcast %29 : vector<18x1xi1> to vector<18x128xi1>
    %31 = vector.broadcast %cst_15 : f32 to vector<18x128xf32>
    %32 = arith.select %30, %22, %31 : vector<18x128xi1>, vector<18x128xf32>
    %33 = arith.truncf %32 : vector<18x128xf32> to vector<18x128xbf16>
    %cst_16 = arith.constant 0.000000e+00 : f32
    %34 = vector.broadcast %cst_16 : f32 to vector<16x32xf32>
    %35 = vector.extract_strided_slice %33 {offsets = [0, 0], sizes = [16, 128], strides = [1, 1]} : vector<18x128xbf16> to vector<16x128xbf16>
    %c0_17 = arith.constant 0 : index
    %c0_18 = arith.constant 0 : index
    %c0_19 = arith.constant 0 : index
    %36 = vector.load %arg4[%c0_17, %c0_18, %c0_19] : memref<3x128x32xbf16, #tpu.memory_space<vmem>>, vector<1x128x32xbf16>
    %37 = vector.shape_cast %36 : vector<1x128x32xbf16> to vector<128x32xbf16>
    %cst_20 = arith.constant dense<0.000000e+00> : vector<16x32xf32>
    %38 = tpu.matmul %35, %37, %cst_20 {dimension_numbers = #tpu.dot_dimension_numbers<[1], [0], [0], [1], [0, 0, 1, 1], [], []>} : vector<16x128xbf16>, vector<128x32xbf16>, vector<16x32xf32> -> vector<16x32xf32>
    %39 = arith.addf %34, %38 : vector<16x32xf32>
    %40 = vector.extract_strided_slice %33 {offsets = [1, 0], sizes = [16, 128], strides = [1, 1]} : vector<18x128xbf16> to vector<16x128xbf16>
    %c1_21 = arith.constant 1 : index
    %c0_22 = arith.constant 0 : index
    %c0_23 = arith.constant 0 : index
    %41 = vector.load %arg4[%c1_21, %c0_22, %c0_23] : memref<3x128x32xbf16, #tpu.memory_space<vmem>>, vector<1x128x32xbf16>
    %42 = vector.shape_cast %41 : vector<1x128x32xbf16> to vector<128x32xbf16>
    %cst_24 = arith.constant dense<0.000000e+00> : vector<16x32xf32>
    %43 = tpu.matmul %40, %42, %cst_24 {dimension_numbers = #tpu.dot_dimension_numbers<[1], [0], [0], [1], [0, 0, 1, 1], [], []>} : vector<16x128xbf16>, vector<128x32xbf16>, vector<16x32xf32> -> vector<16x32xf32>
    %44 = arith.addf %39, %43 : vector<16x32xf32>
    %45 = vector.extract_strided_slice %33 {offsets = [2, 0], sizes = [16, 128], strides = [1, 1]} : vector<18x128xbf16> to vector<16x128xbf16>
    %c2_25 = arith.constant 2 : index
    %c0_26 = arith.constant 0 : index
    %c0_27 = arith.constant 0 : index
    %46 = vector.load %arg4[%c2_25, %c0_26, %c0_27] : memref<3x128x32xbf16, #tpu.memory_space<vmem>>, vector<1x128x32xbf16>
    %47 = vector.shape_cast %46 : vector<1x128x32xbf16> to vector<128x32xbf16>
    %cst_28 = arith.constant dense<0.000000e+00> : vector<16x32xf32>
    %48 = tpu.matmul %45, %47, %cst_28 {dimension_numbers = #tpu.dot_dimension_numbers<[1], [0], [0], [1], [0, 0, 1, 1], [], []>} : vector<16x128xbf16>, vector<128x32xbf16>, vector<16x32xf32> -> vector<16x32xf32>
    %49 = arith.addf %44, %48 : vector<16x32xf32>
    %c0_29 = arith.constant 0 : index
    %c0_30 = arith.constant 0 : index
    %50 = vector.load %arg5[%c0_29, %c0_30] : memref<1x32xf32, #tpu.memory_space<vmem>>, vector<1x32xf32>
    %51 = vector.broadcast %50 : vector<1x32xf32> to vector<16x32xf32>
    %52 = arith.addf %49, %51 : vector<16x32xf32>
    %53 = vector.extract_strided_slice %1 {offsets = [2, 0], sizes = [16, 32], strides = [1, 1]} : vector<20x32xbf16> to vector<16x32xbf16>
    %54 = arith.extf %53 : vector<16x32xbf16> to vector<16x32xf32>
    %55 = arith.addf %52, %54 : vector<16x32xf32>
    %c0_31 = arith.constant 0 : index
    %c0_32 = arith.constant 0 : index
    %56 = vector.load %arg6[%c0_31, %c0_32] : memref<1x32xf32, #tpu.memory_space<vmem>>, vector<1x32xf32>
    %c0_33 = arith.constant 0 : index
    %c0_34 = arith.constant 0 : index
    %57 = vector.load %arg7[%c0_33, %c0_34] : memref<1x32xf32, #tpu.memory_space<vmem>>, vector<1x32xf32>
    %cst_35 = arith.constant dense<0.000000e+00> : vector<16xf32>
    %58 = vector.multi_reduction <add>, %55, %cst_35 [1] : vector<16x32xf32> to vector<16xf32>
    %59 = vector.shape_cast %58 : vector<16xf32> to vector<16x1xf32>
    %cst_36 = arith.constant 3.200000e+01 : f32
    %60 = vector.broadcast %cst_36 : f32 to vector<16x1xf32>
    %61 = arith.divf %59, %60 : vector<16x1xf32>
    %62 = vector.broadcast %61 : vector<16x1xf32> to vector<16x32xf32>
    %63 = arith.subf %55, %62 : vector<16x32xf32>
    %64 = arith.mulf %63, %63 : vector<16x32xf32>
    %cst_37 = arith.constant dense<0.000000e+00> : vector<16xf32>
    %65 = vector.multi_reduction <add>, %64, %cst_37 [1] : vector<16x32xf32> to vector<16xf32>
    %66 = vector.shape_cast %65 : vector<16xf32> to vector<16x1xf32>
    %cst_38 = arith.constant 3.200000e+01 : f32
    %67 = vector.broadcast %cst_38 : f32 to vector<16x1xf32>
    %68 = arith.divf %66, %67 : vector<16x1xf32>
    %69 = vector.broadcast %61 : vector<16x1xf32> to vector<16x32xf32>
    %70 = arith.subf %55, %69 : vector<16x32xf32>
    %cst_39 = arith.constant 9.99999974E-6 : f32
    %71 = vector.broadcast %cst_39 : f32 to vector<16x1xf32>
    %72 = arith.addf %68, %71 : vector<16x1xf32>
    %73 = math.rsqrt %72 : vector<16x1xf32>
    %74 = vector.broadcast %73 : vector<16x1xf32> to vector<16x32xf32>
    %75 = arith.mulf %70, %74 : vector<16x32xf32>
    %76 = vector.broadcast %56 : vector<1x32xf32> to vector<16x32xf32>
    %77 = arith.mulf %75, %76 : vector<16x32xf32>
    %78 = vector.broadcast %57 : vector<1x32xf32> to vector<16x32xf32>
    %79 = arith.addf %77, %78 : vector<16x32xf32>
    %80 = arith.truncf %79 : vector<16x32xf32> to vector<16x32xbf16>
    %c0_40 = arith.constant 0 : index
    %c0_41 = arith.constant 0 : index
    %c0_42 = arith.constant 0 : index
    %81 = vector.load %arg8[%c0_40, %c0_41, %c0_42] : memref<1x16x32xbf16, #tpu.memory_space<vmem>>, vector<1x16x32xbf16>
    %82 = vector.shape_cast %81 : vector<1x16x32xbf16> to vector<16x32xbf16>
    %83 = vector.shape_cast %80 : vector<16x32xbf16> to vector<1x16x32xbf16>
    tpu.vector_store %arg8[%c0_40, %c0_41, %c0_42], %83 {strides = array<i32>} : memref<1x16x32xbf16, #tpu.memory_space<vmem>>, vector<1x16x32xbf16>,
    return
  }
  func.func @transform_0(%arg0: i32) -> (i32, i32, i32) {
    %c0_i32 = arith.constant 0 : i32
    %c0_i32_0 = arith.constant 0 : i32
    %c0_i32_1 = arith.constant 0 : i32
    return %arg0, %c0_i32, %c0_i32_0 : i32, i32, i32
  }
  func.func @transform_1(%arg0: i32) -> (i32, i32, i32) {
    %c0_i32 = arith.constant 0 : i32
    %c0_i32_0 = arith.constant 0 : i32
    %c0_i32_1 = arith.constant 0 : i32
    %c0_i32_2 = arith.constant 0 : i32
    return %c0_i32, %c0_i32_0, %c0_i32_1 : i32, i32, i32
  }
  func.func @transform_2(%arg0: i32) -> (i32, i32) {
    %c0_i32 = arith.constant 0 : i32
    %c0_i32_0 = arith.constant 0 : i32
    %c0_i32_1 = arith.constant 0 : i32
    return %c0_i32, %c0_i32_0 : i32, i32
  }
  func.func @transform_3(%arg0: i32) -> (i32, i32, i32) {
    %c0_i32 = arith.constant 0 : i32
    %c0_i32_0 = arith.constant 0 : i32
    %c0_i32_1 = arith.constant 0 : i32
    %c0_i32_2 = arith.constant 0 : i32
    return %c0_i32, %c0_i32_0, %c0_i32_1 : i32, i32, i32
  }
  func.func @transform_4(%arg0: i32) -> (i32, i32) {
    %c0_i32 = arith.constant 0 : i32
    %c0_i32_0 = arith.constant 0 : i32
    %c0_i32_1 = arith.constant 0 : i32
    return %c0_i32, %c0_i32_0 : i32, i32
  }
  func.func @transform_5(%arg0: i32) -> (i32, i32) {
    %c0_i32 = arith.constant 0 : i32
    %c0_i32_0 = arith.constant 0 : i32
    %c0_i32_1 = arith.constant 0 : i32
    return %c0_i32, %c0_i32_0 : i32, i32
  }
  func.func @transform_6(%arg0: i32) -> (i32, i32) {
    %c0_i32 = arith.constant 0 : i32
    %c0_i32_0 = arith.constant 0 : i32
    %c0_i32_1 = arith.constant 0 : i32
    return %c0_i32, %c0_i32_0 : i32, i32
  }
  func.func @transform_7(%arg0: i32) -> (i32, i32, i32) {
    %c0_i32 = arith.constant 0 : i32
    %c0_i32_0 = arith.constant 0 : i32
    %c0_i32_1 = arith.constant 0 : i32
    return %arg0, %c0_i32, %c0_i32_0 : i32, i32, i32
  }
}

module attributes {stable_mosaic.version = 11 : i64} {
  func.func @_attn_probs_kernel(%arg0: i32, %arg1: i32, %arg2: i32, %arg3: memref<1x1x16x16xbf16, #tpu.memory_space<vmem>>, %arg4: memref<1x1x16x16xbf16, #tpu.memory_space<vmem>>, %arg5: memref<1x1x1x16xf32, #tpu.memory_space<vmem>>, %arg6: memref<1x1x16x16xbf16, #tpu.memory_space<vmem>>) attributes {dimension_semantics = [#tpu.dimension_semantics<parallel>, #tpu.dimension_semantics<parallel>, #tpu.dimension_semantics<parallel>], iteration_bounds = array<i64: 2, 2, 1>, scalar_prefetch = 0 : i64, scratch_operands = 0 : i64, tpu.core_type = #tpu.core_type<tc>, window_params = [{transform_indices = @transform_0, window_bounds = array<i64: 1, 1, 16, 16>}, {transform_indices = @transform_1, window_bounds = array<i64: 1, 1, 16, 16>}, {transform_indices = @transform_2, window_bounds = array<i64: 1, 1, 1, 16>}, {transform_indices = @transform_3, window_bounds = array<i64: 1, 1, 16, 16>}]} {
    %c0 = arith.constant 0 : index
    %c0_0 = arith.constant 0 : index
    %c0_1 = arith.constant 0 : index
    %c0_2 = arith.constant 0 : index
    %0 = vector.load %arg3[%c0, %c0_0, %c0_1, %c0_2] : memref<1x1x16x16xbf16, #tpu.memory_space<vmem>>, vector<1x1x16x16xbf16>
    %1 = vector.shape_cast %0 : vector<1x1x16x16xbf16> to vector<16x16xbf16>
    %c0_3 = arith.constant 0 : index
    %c0_4 = arith.constant 0 : index
    %c0_5 = arith.constant 0 : index
    %c0_6 = arith.constant 0 : index
    %2 = vector.load %arg4[%c0_3, %c0_4, %c0_5, %c0_6] : memref<1x1x16x16xbf16, #tpu.memory_space<vmem>>, vector<1x1x16x16xbf16>
    %3 = vector.shape_cast %2 : vector<1x1x16x16xbf16> to vector<16x16xbf16>
    %c0_7 = arith.constant 0 : index
    %c0_8 = arith.constant 0 : index
    %c0_9 = arith.constant 0 : index
    %c0_10 = arith.constant 0 : index
    %4 = vector.load %arg5[%c0_7, %c0_8, %c0_9, %c0_10] : memref<1x1x1x16xf32, #tpu.memory_space<vmem>>, vector<1x1x1x16xf32>
    %5 = vector.shape_cast %4 : vector<1x1x1x16xf32> to vector<1x16xf32>
    %cst = arith.constant dense<0.000000e+00> : vector<16x16xf32>
    %6 = tpu.matmul %1, %3, %cst {dimension_numbers = #tpu.dot_dimension_numbers<[1], [1], [0], [0], [0, 0, 1, 0], [], []>} : vector<16x16xbf16>, vector<16x16xbf16>, vector<16x16xf32> -> vector<16x16xf32>
    %cst_11 = arith.constant 2.500000e-01 : f32
    %7 = vector.broadcast %cst_11 : f32 to vector<16x16xf32>
    %8 = arith.mulf %6, %7 : vector<16x16xf32>
    %cst_12 = arith.constant 5.000000e-01 : f32
    %9 = vector.broadcast %cst_12 : f32 to vector<1x16xf32>
    %10 = arith.cmpf ogt, %5, %9 : vector<1x16xf32>
    %cst_13 = arith.constant -1.000000e+09 : f32
    %11 = vector.shape_cast %10 : vector<1x16xi1> to vector<1x16xi1>
    %12 = vector.broadcast %11 : vector<1x16xi1> to vector<16x16xi1>
    %13 = vector.broadcast %cst_13 : f32 to vector<16x16xf32>
    %14 = arith.select %12, %8, %13 : vector<16x16xi1>, vector<16x16xf32>
    %cst_14 = arith.constant dense<0xFF800000> : vector<16xf32>
    %15 = vector.multi_reduction <maximumf>, %14, %cst_14 [1] : vector<16x16xf32> to vector<16xf32>
    %16 = vector.shape_cast %15 : vector<16xf32> to vector<16x1xf32>
    %17 = vector.broadcast %16 : vector<16x1xf32> to vector<16x16xf32>
    %18 = arith.subf %14, %17 : vector<16x16xf32>
    %19 = math.exp %18 : vector<16x16xf32>
    %cst_15 = arith.constant dense<0.000000e+00> : vector<16xf32>
    %20 = vector.multi_reduction <add>, %19, %cst_15 [1] : vector<16x16xf32> to vector<16xf32>
    %21 = vector.shape_cast %20 : vector<16xf32> to vector<16x1xf32>
    %22 = vector.broadcast %21 : vector<16x1xf32> to vector<16x16xf32>
    %23 = arith.divf %19, %22 : vector<16x16xf32>
    %24 = arith.truncf %23 : vector<16x16xf32> to vector<16x16xbf16>
    %c0_16 = arith.constant 0 : index
    %c0_17 = arith.constant 0 : index
    %c0_18 = arith.constant 0 : index
    %c0_19 = arith.constant 0 : index
    %25 = vector.load %arg6[%c0_16, %c0_17, %c0_18, %c0_19] : memref<1x1x16x16xbf16, #tpu.memory_space<vmem>>, vector<1x1x16x16xbf16>
    %26 = vector.shape_cast %25 : vector<1x1x16x16xbf16> to vector<16x16xbf16>
    %27 = vector.shape_cast %24 : vector<16x16xbf16> to vector<1x1x16x16xbf16>
    tpu.vector_store %arg6[%c0_16, %c0_17, %c0_18, %c0_19], %27 {strides = array<i32>} : memref<1x1x16x16xbf16, #tpu.memory_space<vmem>>, vector<1x1x16x16xbf16>,
    return
  }
  func.func @transform_0(%arg0: i32, %arg1: i32, %arg2: i32) -> (i32, i32, i32, i32) {
    %c0_i32 = arith.constant 0 : i32
    %c0_i32_0 = arith.constant 0 : i32
    return %arg0, %arg1, %arg2, %c0_i32 : i32, i32, i32, i32
  }
  func.func @transform_1(%arg0: i32, %arg1: i32, %arg2: i32) -> (i32, i32, i32, i32) {
    %c0_i32 = arith.constant 0 : i32
    %c0_i32_0 = arith.constant 0 : i32
    %c0_i32_1 = arith.constant 0 : i32
    return %arg0, %arg1, %c0_i32, %c0_i32_0 : i32, i32, i32, i32
  }
  func.func @transform_2(%arg0: i32, %arg1: i32, %arg2: i32) -> (i32, i32, i32, i32) {
    %c0_i32 = arith.constant 0 : i32
    %c0_i32_0 = arith.constant 0 : i32
    %c0_i32_1 = arith.constant 0 : i32
    %c0_i32_2 = arith.constant 0 : i32
    return %arg0, %c0_i32, %c0_i32_0, %c0_i32_1 : i32, i32, i32, i32
  }
  func.func @transform_3(%arg0: i32, %arg1: i32, %arg2: i32) -> (i32, i32, i32, i32) {
    %c0_i32 = arith.constant 0 : i32
    %c0_i32_0 = arith.constant 0 : i32
    return %arg0, %arg1, %arg2, %c0_i32 : i32, i32, i32, i32
  }
}

module attributes {stable_mosaic.version = 11 : i64} {
  func.func @_postnet_kernel(%arg0: i32, %arg1: memref<1x36x32xbf16, #tpu.memory_space<vmem>>, %arg2: memref<32x16xbf16, #tpu.memory_space<vmem>>, %arg3: memref<1x16xf32, #tpu.memory_space<vmem>>, %arg4: memref<5x16x32xbf16, #tpu.memory_space<vmem>>, %arg5: memref<1x32xf32, #tpu.memory_space<vmem>>, %arg6: memref<5x32x32xbf16, #tpu.memory_space<vmem>>, %arg7: memref<1x32xf32, #tpu.memory_space<vmem>>, %arg8: memref<5x32x32xbf16, #tpu.memory_space<vmem>>, %arg9: memref<1x32xf32, #tpu.memory_space<vmem>>, %arg10: memref<5x32x32xbf16, #tpu.memory_space<vmem>>, %arg11: memref<1x32xf32, #tpu.memory_space<vmem>>, %arg12: memref<5x32x16xbf16, #tpu.memory_space<vmem>>, %arg13: memref<1x16xf32, #tpu.memory_space<vmem>>, %arg14: memref<1x16x16xf32, #tpu.memory_space<vmem>>, %arg15: memref<1x16x16xf32, #tpu.memory_space<vmem>>) attributes {dimension_semantics = [#tpu.dimension_semantics<parallel>], iteration_bounds = array<i64: 2>, scalar_prefetch = 0 : i64, scratch_operands = 0 : i64, tpu.core_type = #tpu.core_type<tc>, window_params = [{transform_indices = @transform_0, window_bounds = array<i64: 1, 36, 32>}, {pipeline_mode = #tpu.pipeline_mode<synchronous>, transform_indices = @transform_1, window_bounds = array<i64: 32, 16>}, {pipeline_mode = #tpu.pipeline_mode<synchronous>, transform_indices = @transform_2, window_bounds = array<i64: 1, 16>}, {pipeline_mode = #tpu.pipeline_mode<synchronous>, transform_indices = @transform_3, window_bounds = array<i64: 5, 16, 32>}, {pipeline_mode = #tpu.pipeline_mode<synchronous>, transform_indices = @transform_4, window_bounds = array<i64: 1, 32>}, {pipeline_mode = #tpu.pipeline_mode<synchronous>, transform_indices = @transform_5, window_bounds = array<i64: 5, 32, 32>}, {pipeline_mode = #tpu.pipeline_mode<synchronous>, transform_indices = @transform_6, window_bounds = array<i64: 1, 32>}, {pipeline_mode = #tpu.pipeline_mode<synchronous>, transform_indices = @transform_7, window_bounds = array<i64: 5, 32, 32>}, {pipeline_mode = #tpu.pipeline_mode<synchronous>, transform_indices = @transform_8, window_bounds = array<i64: 1, 32>}, {pipeline_mode = #tpu.pipeline_mode<synchronous>, transform_indices = @transform_9, window_bounds = array<i64: 5, 32, 32>}, {pipeline_mode = #tpu.pipeline_mode<synchronous>, transform_indices = @transform_10, window_bounds = array<i64: 1, 32>}, {pipeline_mode = #tpu.pipeline_mode<synchronous>, transform_indices = @transform_11, window_bounds = array<i64: 5, 32, 16>}, {pipeline_mode = #tpu.pipeline_mode<synchronous>, transform_indices = @transform_12, window_bounds = array<i64: 1, 16>}, {transform_indices = @transform_13, window_bounds = array<i64: 1, 16, 16>}, {transform_indices = @transform_14, window_bounds = array<i64: 1, 16, 16>}]} {
    %c0 = arith.constant 0 : index
    %c0_0 = arith.constant 0 : index
    %c0_1 = arith.constant 0 : index
    %0 = vector.load %arg1[%c0, %c0_0, %c0_1] : memref<1x36x32xbf16, #tpu.memory_space<vmem>>, vector<1x36x32xbf16>
    %1 = vector.shape_cast %0 : vector<1x36x32xbf16> to vector<36x32xbf16>
    %c0_2 = arith.constant 0 : index
    %c0_3 = arith.constant 0 : index
    %2 = vector.load %arg2[%c0_2, %c0_3] : memref<32x16xbf16, #tpu.memory_space<vmem>>, vector<32x16xbf16>
    %cst = arith.constant dense<0.000000e+00> : vector<36x16xf32>
    %3 = tpu.matmul %1, %2, %cst {dimension_numbers = #tpu.dot_dimension_numbers<[1], [0], [0], [1], [0, 0, 1, 1], [], []>} : vector<36x32xbf16>, vector<32x16xbf16>, vector<36x16xf32> -> vector<36x16xf32>
    %c0_4 = arith.constant 0 : index
    %c0_5 = arith.constant 0 : index
    %4 = vector.load %arg3[%c0_4, %c0_5] : memref<1x16xf32, #tpu.memory_space<vmem>>, vector<1x16xf32>
    %5 = vector.broadcast %4 : vector<1x16xf32> to vector<36x16xf32>
    %6 = arith.addf %3, %5 : vector<36x16xf32>
    %7 = tpu.iota {dimensions = array<i32: 0>} : vector<36x1xi32>
    %c10_i32 = arith.constant 10 : i32
    %8 = vector.broadcast %c10_i32 : i32 to vector<36x1xi32>
    %9 = arith.cmpi sge, %7, %8 : vector<36x1xi32>
    %c26_i32 = arith.constant 26 : i32
    %10 = vector.broadcast %c26_i32 : i32 to vector<36x1xi32>
    %11 = arith.cmpi slt, %7, %10 : vector<36x1xi32>
    %12 = arith.andi %9, %11 : vector<36x1xi1>
    %cst_6 = arith.constant 0.000000e+00 : f32
    %13 = vector.shape_cast %12 : vector<36x1xi1> to vector<36x1xi1>
    %14 = vector.broadcast %13 : vector<36x1xi1> to vector<36x16xi1>
    %15 = vector.broadcast %cst_6 : f32 to vector<36x16xf32>
    %16 = arith.select %14, %6, %15 : vector<36x16xi1>, vector<36x16xf32>
    %17 = vector.extract_strided_slice %16 {offsets = [10, 0], sizes = [16, 16], strides = [1, 1]} : vector<36x16xf32> to vector<16x16xf32>
    %c0_7 = arith.constant 0 : index
    %c0_8 = arith.constant 0 : index
    %c0_9 = arith.constant 0 : index
    %18 = vector.load %arg14[%c0_7, %c0_8, %c0_9] : memref<1x16x16xf32, #tpu.memory_space<vmem>>, vector<1x16x16xf32>
    %19 = vector.shape_cast %18 : vector<1x16x16xf32> to vector<16x16xf32>
    %20 = vector.shape_cast %17 : vector<16x16xf32> to vector<1x16x16xf32>
    tpu.vector_store %arg14[%c0_7, %c0_8, %c0_9], %20 {strides = array<i32>} : memref<1x16x16xf32, #tpu.memory_space<vmem>>, vector<1x16x16xf32>,
    %21 = arith.truncf %16 : vector<36x16xf32> to vector<36x16xbf16>
    %cst_10 = arith.constant 0.000000e+00 : f32
    %22 = vector.broadcast %cst_10 : f32 to vector<32x32xf32>
    %23 = vector.extract_strided_slice %21 {offsets = [0, 0], sizes = [32, 16], strides = [1, 1]} : vector<36x16xbf16> to vector<32x16xbf16>
    %c0_11 = arith.constant 0 : index
    %c0_12 = arith.constant 0 : index
    %c0_13 = arith.constant 0 : index
    %24 = vector.load %arg4[%c0_11, %c0_12, %c0_13] : memref<5x16x32xbf16, #tpu.memory_space<vmem>>, vector<1x16x32xbf16>
    %25 = vector.shape_cast %24 : vector<1x16x32xbf16> to vector<16x32xbf16>
    %cst_14 = arith.constant dense<0.000000e+00> : vector<32x32xf32>
    %26 = tpu.matmul %23, %25, %cst_14 {dimension_numbers = #tpu.dot_dimension_numbers<[1], [0], [0], [1], [0, 0, 1, 1], [], []>} : vector<32x16xbf16>, vector<16x32xbf16>, vector<32x32xf32> -> vector<32x32xf32>
    %27 = arith.addf %22, %26 : vector<32x32xf32>
    %28 = vector.extract_strided_slice %21 {offsets = [1, 0], sizes = [32, 16], strides = [1, 1]} : vector<36x16xbf16> to vector<32x16xbf16>
    %c1 = arith.constant 1 : index
    %c0_15 = arith.constant 0 : index
    %c0_16 = arith.constant 0 : index
    %29 = vector.load %arg4[%c1, %c0_15, %c0_16] : memref<5x16x32xbf16, #tpu.memory_space<vmem>>, vector<1x16x32xbf16>
    %30 = vector.shape_cast %29 : vector<1x16x32xbf16> to vector<16x32xbf16>
    %cst_17 = arith.constant dense<0.000000e+00> : vector<32x32xf32>
    %31 = tpu.matmul %28, %30, %cst_17 {dimension_numbers = #tpu.dot_dimension_numbers<[1], [0], [0], [1], [0, 0, 1, 1], [], []>} : vector<32x16xbf16>, vector<16x32xbf16>, vector<32x32xf32> -> vector<32x32xf32>
    %32 = arith.addf %27, %31 : vector<32x32xf32>
    %33 = vector.extract_strided_slice %21 {offsets = [2, 0], sizes = [32, 16], strides = [1, 1]} : vector<36x16xbf16> to vector<32x16xbf16>
    %c2 = arith.constant 2 : index
    %c0_18 = arith.constant 0 : index
    %c0_19 = arith.constant 0 : index
    %34 = vector.load %arg4[%c2, %c0_18, %c0_19] : memref<5x16x32xbf16, #tpu.memory_space<vmem>>, vector<1x16x32xbf16>
    %35 = vector.shape_cast %34 : vector<1x16x32xbf16> to vector<16x32xbf16>
    %cst_20 = arith.constant dense<0.000000e+00> : vector<32x32xf32>
    %36 = tpu.matmul %33, %35, %cst_20 {dimension_numbers = #tpu.dot_dimension_numbers<[1], [0], [0], [1], [0, 0, 1, 1], [], []>} : vector<32x16xbf16>, vector<16x32xbf16>, vector<32x32xf32> -> vector<32x32xf32>
    %37 = arith.addf %32, %36 : vector<32x32xf32>
    %38 = vector.extract_strided_slice %21 {offsets = [3, 0], sizes = [32, 16], strides = [1, 1]} : vector<36x16xbf16> to vector<32x16xbf16>
    %c3 = arith.constant 3 : index
    %c0_21 = arith.constant 0 : index
    %c0_22 = arith.constant 0 : index
    %39 = vector.load %arg4[%c3, %c0_21, %c0_22] : memref<5x16x32xbf16, #tpu.memory_space<vmem>>, vector<1x16x32xbf16>
    %40 = vector.shape_cast %39 : vector<1x16x32xbf16> to vector<16x32xbf16>
    %cst_23 = arith.constant dense<0.000000e+00> : vector<32x32xf32>
    %41 = tpu.matmul %38, %40, %cst_23 {dimension_numbers = #tpu.dot_dimension_numbers<[1], [0], [0], [1], [0, 0, 1, 1], [], []>} : vector<32x16xbf16>, vector<16x32xbf16>, vector<32x32xf32> -> vector<32x32xf32>
    %42 = arith.addf %37, %41 : vector<32x32xf32>
    %43 = vector.extract_strided_slice %21 {offsets = [4, 0], sizes = [32, 16], strides = [1, 1]} : vector<36x16xbf16> to vector<32x16xbf16>
    %c4 = arith.constant 4 : index
    %c0_24 = arith.constant 0 : index
    %c0_25 = arith.constant 0 : index
    %44 = vector.load %arg4[%c4, %c0_24, %c0_25] : memref<5x16x32xbf16, #tpu.memory_space<vmem>>, vector<1x16x32xbf16>
    %45 = vector.shape_cast %44 : vector<1x16x32xbf16> to vector<16x32xbf16>
    %cst_26 = arith.constant dense<0.000000e+00> : vector<32x32xf32>
    %46 = tpu.matmul %43, %45, %cst_26 {dimension_numbers = #tpu.dot_dimension_numbers<[1], [0], [0], [1], [0, 0, 1, 1], [], []>} : vector<32x16xbf16>, vector<16x32xbf16>, vector<32x32xf32> -> vector<32x32xf32>
    %47 = arith.addf %42, %46 : vector<32x32xf32>
    %c0_27 = arith.constant 0 : index
    %c0_28 = arith.constant 0 : index
    %48 = vector.load %arg5[%c0_27, %c0_28] : memref<1x32xf32, #tpu.memory_space<vmem>>, vector<1x32xf32>
    %49 = vector.broadcast %48 : vector<1x32xf32> to vector<32x32xf32>
    %50 = arith.addf %47, %49 : vector<32x32xf32>
    %51 = math.tanh %50 : vector<32x32xf32>
    %52 = tpu.iota {dimensions = array<i32: 0>} : vector<32x1xi32>
    %c8_i32 = arith.constant 8 : i32
    %53 = vector.broadcast %c8_i32 : i32 to vector<32x1xi32>
    %54 = arith.cmpi sge, %52, %53 : vector<32x1xi32>
    %c24_i32 = arith.constant 24 : i32
    %55 = vector.broadcast %c24_i32 : i32 to vector<32x1xi32>
    %56 = arith.cmpi slt, %52, %55 : vector<32x1xi32>
    %57 = arith.andi %54, %56 : vector<32x1xi1>
    %cst_29 = arith.constant 0.000000e+00 : f32
    %58 = vector.shape_cast %57 : vector<32x1xi1> to vector<32x1xi1>
    %59 = vector.broadcast %58 : vector<32x1xi1> to vector<32x32xi1>
    %60 = vector.broadcast %cst_29 : f32 to vector<32x32xf32>
    %61 = arith.select %59, %51, %60 : vector<32x32xi1>, vector<32x32xf32>
    %62 = arith.truncf %61 : vector<32x32xf32> to vector<32x32xbf16>
    %cst_30 = arith.constant 0.000000e+00 : f32
    %63 = vector.broadcast %cst_30 : f32 to vector<28x32xf32>
    %64 = vector.extract_strided_slice %62 {offsets = [0, 0], sizes = [28, 32], strides = [1, 1]} : vector<32x32xbf16> to vector<28x32xbf16>
    %c0_31 = arith.constant 0 : index
    %c0_32 = arith.constant 0 : index
    %c0_33 = arith.constant 0 : index
    %65 = vector.load %arg6[%c0_31, %c0_32, %c0_33] : memref<5x32x32xbf16, #tpu.memory_space<vmem>>, vector<1x32x32xbf16>
    %66 = vector.shape_cast %65 : vector<1x32x32xbf16> to vector<32x32xbf16>
    %cst_34 = arith.constant dense<0.000000e+00> : vector<28x32xf32>
    %67 = tpu.matmul %64, %66, %cst_34 {dimension_numbers = #tpu.dot_dimension_numbers<[1], [0], [0], [1], [0, 0, 1, 1], [], []>} : vector<28x32xbf16>, vector<32x32xbf16>, vector<28x32xf32> -> vector<28x32xf32>
    %68 = arith.addf %63, %67 : vector<28x32xf32>
    %69 = vector.extract_strided_slice %62 {offsets = [1, 0], sizes = [28, 32], strides = [1, 1]} : vector<32x32xbf16> to vector<28x32xbf16>
    %c1_35 = arith.constant 1 : index
    %c0_36 = arith.constant 0 : index
    %c0_37 = arith.constant 0 : index
    %70 = vector.load %arg6[%c1_35, %c0_36, %c0_37] : memref<5x32x32xbf16, #tpu.memory_space<vmem>>, vector<1x32x32xbf16>
    %71 = vector.shape_cast %70 : vector<1x32x32xbf16> to vector<32x32xbf16>
    %cst_38 = arith.constant dense<0.000000e+00> : vector<28x32xf32>
    %72 = tpu.matmul %69, %71, %cst_38 {dimension_numbers = #tpu.dot_dimension_numbers<[1], [0], [0], [1], [0, 0, 1, 1], [], []>} : vector<28x32xbf16>, vector<32x32xbf16>, vector<28x32xf32> -> vector<28x32xf32>
    %73 = arith.addf %68, %72 : vector<28x32xf32>
    %74 = vector.extract_strided_slice %62 {offsets = [2, 0], sizes = [28, 32], strides = [1, 1]} : vector<32x32xbf16> to vector<28x32xbf16>
    %c2_39 = arith.constant 2 : index
    %c0_40 = arith.constant 0 : index
    %c0_41 = arith.constant 0 : index
    %75 = vector.load %arg6[%c2_39, %c0_40, %c0_41] : memref<5x32x32xbf16, #tpu.memory_space<vmem>>, vector<1x32x32xbf16>
    %76 = vector.shape_cast %75 : vector<1x32x32xbf16> to vector<32x32xbf16>
    %cst_42 = arith.constant dense<0.000000e+00> : vector<28x32xf32>
    %77 = tpu.matmul %74, %76, %cst_42 {dimension_numbers = #tpu.dot_dimension_numbers<[1], [0], [0], [1], [0, 0, 1, 1], [], []>} : vector<28x32xbf16>, vector<32x32xbf16>, vector<28x32xf32> -> vector<28x32xf32>
    %78 = arith.addf %73, %77 : vector<28x32xf32>
    %79 = vector.extract_strided_slice %62 {offsets = [3, 0], sizes = [28, 32], strides = [1, 1]} : vector<32x32xbf16> to vector<28x32xbf16>
    %c3_43 = arith.constant 3 : index
    %c0_44 = arith.constant 0 : index
    %c0_45 = arith.constant 0 : index
    %80 = vector.load %arg6[%c3_43, %c0_44, %c0_45] : memref<5x32x32xbf16, #tpu.memory_space<vmem>>, vector<1x32x32xbf16>
    %81 = vector.shape_cast %80 : vector<1x32x32xbf16> to vector<32x32xbf16>
    %cst_46 = arith.constant dense<0.000000e+00> : vector<28x32xf32>
    %82 = tpu.matmul %79, %81, %cst_46 {dimension_numbers = #tpu.dot_dimension_numbers<[1], [0], [0], [1], [0, 0, 1, 1], [], []>} : vector<28x32xbf16>, vector<32x32xbf16>, vector<28x32xf32> -> vector<28x32xf32>
    %83 = arith.addf %78, %82 : vector<28x32xf32>
    %84 = vector.extract_strided_slice %62 {offsets = [4, 0], sizes = [28, 32], strides = [1, 1]} : vector<32x32xbf16> to vector<28x32xbf16>
    %c4_47 = arith.constant 4 : index
    %c0_48 = arith.constant 0 : index
    %c0_49 = arith.constant 0 : index
    %85 = vector.load %arg6[%c4_47, %c0_48, %c0_49] : memref<5x32x32xbf16, #tpu.memory_space<vmem>>, vector<1x32x32xbf16>
    %86 = vector.shape_cast %85 : vector<1x32x32xbf16> to vector<32x32xbf16>
    %cst_50 = arith.constant dense<0.000000e+00> : vector<28x32xf32>
    %87 = tpu.matmul %84, %86, %cst_50 {dimension_numbers = #tpu.dot_dimension_numbers<[1], [0], [0], [1], [0, 0, 1, 1], [], []>} : vector<28x32xbf16>, vector<32x32xbf16>, vector<28x32xf32> -> vector<28x32xf32>
    %88 = arith.addf %83, %87 : vector<28x32xf32>
    %c0_51 = arith.constant 0 : index
    %c0_52 = arith.constant 0 : index
    %89 = vector.load %arg7[%c0_51, %c0_52] : memref<1x32xf32, #tpu.memory_space<vmem>>, vector<1x32xf32>
    %90 = vector.broadcast %89 : vector<1x32xf32> to vector<28x32xf32>
    %91 = arith.addf %88, %90 : vector<28x32xf32>
    %92 = math.tanh %91 : vector<28x32xf32>
    %93 = tpu.iota {dimensions = array<i32: 0>} : vector<28x1xi32>
    %c6_i32 = arith.constant 6 : i32
    %94 = vector.broadcast %c6_i32 : i32 to vector<28x1xi32>
    %95 = arith.cmpi sge, %93, %94 : vector<28x1xi32>
    %c22_i32 = arith.constant 22 : i32
    %96 = vector.broadcast %c22_i32 : i32 to vector<28x1xi32>
    %97 = arith.cmpi slt, %93, %96 : vector<28x1xi32>
    %98 = arith.andi %95, %97 : vector<28x1xi1>
    %cst_53 = arith.constant 0.000000e+00 : f32
    %99 = vector.shape_cast %98 : vector<28x1xi1> to vector<28x1xi1>
    %100 = vector.broadcast %99 : vector<28x1xi1> to vector<28x32xi1>
    %101 = vector.broadcast %cst_53 : f32 to vector<28x32xf32>
    %102 = arith.select %100, %92, %101 : vector<28x32xi1>, vector<28x32xf32>
    %103 = arith.truncf %102 : vector<28x32xf32> to vector<28x32xbf16>
    %cst_54 = arith.constant 0.000000e+00 : f32
    %104 = vector.broadcast %cst_54 : f32 to vector<24x32xf32>
    %105 = vector.extract_strided_slice %103 {offsets = [0, 0], sizes = [24, 32], strides = [1, 1]} : vector<28x32xbf16> to vector<24x32xbf16>
    %c0_55 = arith.constant 0 : index
    %c0_56 = arith.constant 0 : index
    %c0_57 = arith.constant 0 : index
    %106 = vector.load %arg8[%c0_55, %c0_56, %c0_57] : memref<5x32x32xbf16, #tpu.memory_space<vmem>>, vector<1x32x32xbf16>
    %107 = vector.shape_cast %106 : vector<1x32x32xbf16> to vector<32x32xbf16>
    %cst_58 = arith.constant dense<0.000000e+00> : vector<24x32xf32>
    %108 = tpu.matmul %105, %107, %cst_58 {dimension_numbers = #tpu.dot_dimension_numbers<[1], [0], [0], [1], [0, 0, 1, 1], [], []>} : vector<24x32xbf16>, vector<32x32xbf16>, vector<24x32xf32> -> vector<24x32xf32>
    %109 = arith.addf %104, %108 : vector<24x32xf32>
    %110 = vector.extract_strided_slice %103 {offsets = [1, 0], sizes = [24, 32], strides = [1, 1]} : vector<28x32xbf16> to vector<24x32xbf16>
    %c1_59 = arith.constant 1 : index
    %c0_60 = arith.constant 0 : index
    %c0_61 = arith.constant 0 : index
    %111 = vector.load %arg8[%c1_59, %c0_60, %c0_61] : memref<5x32x32xbf16, #tpu.memory_space<vmem>>, vector<1x32x32xbf16>
    %112 = vector.shape_cast %111 : vector<1x32x32xbf16> to vector<32x32xbf16>
    %cst_62 = arith.constant dense<0.000000e+00> : vector<24x32xf32>
    %113 = tpu.matmul %110, %112, %cst_62 {dimension_numbers = #tpu.dot_dimension_numbers<[1], [0], [0], [1], [0, 0, 1, 1], [], []>} : vector<24x32xbf16>, vector<32x32xbf16>, vector<24x32xf32> -> vector<24x32xf32>
    %114 = arith.addf %109, %113 : vector<24x32xf32>
    %115 = vector.extract_strided_slice %103 {offsets = [2, 0], sizes = [24, 32], strides = [1, 1]} : vector<28x32xbf16> to vector<24x32xbf16>
    %c2_63 = arith.constant 2 : index
    %c0_64 = arith.constant 0 : index
    %c0_65 = arith.constant 0 : index
    %116 = vector.load %arg8[%c2_63, %c0_64, %c0_65] : memref<5x32x32xbf16, #tpu.memory_space<vmem>>, vector<1x32x32xbf16>
    %117 = vector.shape_cast %116 : vector<1x32x32xbf16> to vector<32x32xbf16>
    %cst_66 = arith.constant dense<0.000000e+00> : vector<24x32xf32>
    %118 = tpu.matmul %115, %117, %cst_66 {dimension_numbers = #tpu.dot_dimension_numbers<[1], [0], [0], [1], [0, 0, 1, 1], [], []>} : vector<24x32xbf16>, vector<32x32xbf16>, vector<24x32xf32> -> vector<24x32xf32>
    %119 = arith.addf %114, %118 : vector<24x32xf32>
    %120 = vector.extract_strided_slice %103 {offsets = [3, 0], sizes = [24, 32], strides = [1, 1]} : vector<28x32xbf16> to vector<24x32xbf16>
    %c3_67 = arith.constant 3 : index
    %c0_68 = arith.constant 0 : index
    %c0_69 = arith.constant 0 : index
    %121 = vector.load %arg8[%c3_67, %c0_68, %c0_69] : memref<5x32x32xbf16, #tpu.memory_space<vmem>>, vector<1x32x32xbf16>
    %122 = vector.shape_cast %121 : vector<1x32x32xbf16> to vector<32x32xbf16>
    %cst_70 = arith.constant dense<0.000000e+00> : vector<24x32xf32>
    %123 = tpu.matmul %120, %122, %cst_70 {dimension_numbers = #tpu.dot_dimension_numbers<[1], [0], [0], [1], [0, 0, 1, 1], [], []>} : vector<24x32xbf16>, vector<32x32xbf16>, vector<24x32xf32> -> vector<24x32xf32>
    %124 = arith.addf %119, %123 : vector<24x32xf32>
    %125 = vector.extract_strided_slice %103 {offsets = [4, 0], sizes = [24, 32], strides = [1, 1]} : vector<28x32xbf16> to vector<24x32xbf16>
    %c4_71 = arith.constant 4 : index
    %c0_72 = arith.constant 0 : index
    %c0_73 = arith.constant 0 : index
    %126 = vector.load %arg8[%c4_71, %c0_72, %c0_73] : memref<5x32x32xbf16, #tpu.memory_space<vmem>>, vector<1x32x32xbf16>
    %127 = vector.shape_cast %126 : vector<1x32x32xbf16> to vector<32x32xbf16>
    %cst_74 = arith.constant dense<0.000000e+00> : vector<24x32xf32>
    %128 = tpu.matmul %125, %127, %cst_74 {dimension_numbers = #tpu.dot_dimension_numbers<[1], [0], [0], [1], [0, 0, 1, 1], [], []>} : vector<24x32xbf16>, vector<32x32xbf16>, vector<24x32xf32> -> vector<24x32xf32>
    %129 = arith.addf %124, %128 : vector<24x32xf32>
    %c0_75 = arith.constant 0 : index
    %c0_76 = arith.constant 0 : index
    %130 = vector.load %arg9[%c0_75, %c0_76] : memref<1x32xf32, #tpu.memory_space<vmem>>, vector<1x32xf32>
    %131 = vector.broadcast %130 : vector<1x32xf32> to vector<24x32xf32>
    %132 = arith.addf %129, %131 : vector<24x32xf32>
    %133 = math.tanh %132 : vector<24x32xf32>
    %134 = tpu.iota {dimensions = array<i32: 0>} : vector<24x1xi32>
    %c4_i32 = arith.constant 4 : i32
    %135 = vector.broadcast %c4_i32 : i32 to vector<24x1xi32>
    %136 = arith.cmpi sge, %134, %135 : vector<24x1xi32>
    %c20_i32 = arith.constant 20 : i32
    %137 = vector.broadcast %c20_i32 : i32 to vector<24x1xi32>
    %138 = arith.cmpi slt, %134, %137 : vector<24x1xi32>
    %139 = arith.andi %136, %138 : vector<24x1xi1>
    %cst_77 = arith.constant 0.000000e+00 : f32
    %140 = vector.shape_cast %139 : vector<24x1xi1> to vector<24x1xi1>
    %141 = vector.broadcast %140 : vector<24x1xi1> to vector<24x32xi1>
    %142 = vector.broadcast %cst_77 : f32 to vector<24x32xf32>
    %143 = arith.select %141, %133, %142 : vector<24x32xi1>, vector<24x32xf32>
    %144 = arith.truncf %143 : vector<24x32xf32> to vector<24x32xbf16>
    %cst_78 = arith.constant 0.000000e+00 : f32
    %145 = vector.broadcast %cst_78 : f32 to vector<20x32xf32>
    %146 = vector.extract_strided_slice %144 {offsets = [0, 0], sizes = [20, 32], strides = [1, 1]} : vector<24x32xbf16> to vector<20x32xbf16>
    %c0_79 = arith.constant 0 : index
    %c0_80 = arith.constant 0 : index
    %c0_81 = arith.constant 0 : index
    %147 = vector.load %arg10[%c0_79, %c0_80, %c0_81] : memref<5x32x32xbf16, #tpu.memory_space<vmem>>, vector<1x32x32xbf16>
    %148 = vector.shape_cast %147 : vector<1x32x32xbf16> to vector<32x32xbf16>
    %cst_82 = arith.constant dense<0.000000e+00> : vector<20x32xf32>
    %149 = tpu.matmul %146, %148, %cst_82 {dimension_numbers = #tpu.dot_dimension_numbers<[1], [0], [0], [1], [0, 0, 1, 1], [], []>} : vector<20x32xbf16>, vector<32x32xbf16>, vector<20x32xf32> -> vector<20x32xf32>
    %150 = arith.addf %145, %149 : vector<20x32xf32>
    %151 = vector.extract_strided_slice %144 {offsets = [1, 0], sizes = [20, 32], strides = [1, 1]} : vector<24x32xbf16> to vector<20x32xbf16>
    %c1_83 = arith.constant 1 : index
    %c0_84 = arith.constant 0 : index
    %c0_85 = arith.constant 0 : index
    %152 = vector.load %arg10[%c1_83, %c0_84, %c0_85] : memref<5x32x32xbf16, #tpu.memory_space<vmem>>, vector<1x32x32xbf16>
    %153 = vector.shape_cast %152 : vector<1x32x32xbf16> to vector<32x32xbf16>
    %cst_86 = arith.constant dense<0.000000e+00> : vector<20x32xf32>
    %154 = tpu.matmul %151, %153, %cst_86 {dimension_numbers = #tpu.dot_dimension_numbers<[1], [0], [0], [1], [0, 0, 1, 1], [], []>} : vector<20x32xbf16>, vector<32x32xbf16>, vector<20x32xf32> -> vector<20x32xf32>
    %155 = arith.addf %150, %154 : vector<20x32xf32>
    %156 = vector.extract_strided_slice %144 {offsets = [2, 0], sizes = [20, 32], strides = [1, 1]} : vector<24x32xbf16> to vector<20x32xbf16>
    %c2_87 = arith.constant 2 : index
    %c0_88 = arith.constant 0 : index
    %c0_89 = arith.constant 0 : index
    %157 = vector.load %arg10[%c2_87, %c0_88, %c0_89] : memref<5x32x32xbf16, #tpu.memory_space<vmem>>, vector<1x32x32xbf16>
    %158 = vector.shape_cast %157 : vector<1x32x32xbf16> to vector<32x32xbf16>
    %cst_90 = arith.constant dense<0.000000e+00> : vector<20x32xf32>
    %159 = tpu.matmul %156, %158, %cst_90 {dimension_numbers = #tpu.dot_dimension_numbers<[1], [0], [0], [1], [0, 0, 1, 1], [], []>} : vector<20x32xbf16>, vector<32x32xbf16>, vector<20x32xf32> -> vector<20x32xf32>
    %160 = arith.addf %155, %159 : vector<20x32xf32>
    %161 = vector.extract_strided_slice %144 {offsets = [3, 0], sizes = [20, 32], strides = [1, 1]} : vector<24x32xbf16> to vector<20x32xbf16>
    %c3_91 = arith.constant 3 : index
    %c0_92 = arith.constant 0 : index
    %c0_93 = arith.constant 0 : index
    %162 = vector.load %arg10[%c3_91, %c0_92, %c0_93] : memref<5x32x32xbf16, #tpu.memory_space<vmem>>, vector<1x32x32xbf16>
    %163 = vector.shape_cast %162 : vector<1x32x32xbf16> to vector<32x32xbf16>
    %cst_94 = arith.constant dense<0.000000e+00> : vector<20x32xf32>
    %164 = tpu.matmul %161, %163, %cst_94 {dimension_numbers = #tpu.dot_dimension_numbers<[1], [0], [0], [1], [0, 0, 1, 1], [], []>} : vector<20x32xbf16>, vector<32x32xbf16>, vector<20x32xf32> -> vector<20x32xf32>
    %165 = arith.addf %160, %164 : vector<20x32xf32>
    %166 = vector.extract_strided_slice %144 {offsets = [4, 0], sizes = [20, 32], strides = [1, 1]} : vector<24x32xbf16> to vector<20x32xbf16>
    %c4_95 = arith.constant 4 : index
    %c0_96 = arith.constant 0 : index
    %c0_97 = arith.constant 0 : index
    %167 = vector.load %arg10[%c4_95, %c0_96, %c0_97] : memref<5x32x32xbf16, #tpu.memory_space<vmem>>, vector<1x32x32xbf16>
    %168 = vector.shape_cast %167 : vector<1x32x32xbf16> to vector<32x32xbf16>
    %cst_98 = arith.constant dense<0.000000e+00> : vector<20x32xf32>
    %169 = tpu.matmul %166, %168, %cst_98 {dimension_numbers = #tpu.dot_dimension_numbers<[1], [0], [0], [1], [0, 0, 1, 1], [], []>} : vector<20x32xbf16>, vector<32x32xbf16>, vector<20x32xf32> -> vector<20x32xf32>
    %170 = arith.addf %165, %169 : vector<20x32xf32>
    %c0_99 = arith.constant 0 : index
    %c0_100 = arith.constant 0 : index
    %171 = vector.load %arg11[%c0_99, %c0_100] : memref<1x32xf32, #tpu.memory_space<vmem>>, vector<1x32xf32>
    %172 = vector.broadcast %171 : vector<1x32xf32> to vector<20x32xf32>
    %173 = arith.addf %170, %172 : vector<20x32xf32>
    %174 = math.tanh %173 : vector<20x32xf32>
    %175 = tpu.iota {dimensions = array<i32: 0>} : vector<20x1xi32>
    %c2_i32 = arith.constant 2 : i32
    %176 = vector.broadcast %c2_i32 : i32 to vector<20x1xi32>
    %177 = arith.cmpi sge, %175, %176 : vector<20x1xi32>
    %c18_i32 = arith.constant 18 : i32
    %178 = vector.broadcast %c18_i32 : i32 to vector<20x1xi32>
    %179 = arith.cmpi slt, %175, %178 : vector<20x1xi32>
    %180 = arith.andi %177, %179 : vector<20x1xi1>
    %cst_101 = arith.constant 0.000000e+00 : f32
    %181 = vector.shape_cast %180 : vector<20x1xi1> to vector<20x1xi1>
    %182 = vector.broadcast %181 : vector<20x1xi1> to vector<20x32xi1>
    %183 = vector.broadcast %cst_101 : f32 to vector<20x32xf32>
    %184 = arith.select %182, %174, %183 : vector<20x32xi1>, vector<20x32xf32>
    %185 = arith.truncf %184 : vector<20x32xf32> to vector<20x32xbf16>
    %cst_102 = arith.constant 0.000000e+00 : f32
    %186 = vector.broadcast %cst_102 : f32 to vector<16x16xf32>
    %187 = vector.extract_strided_slice %185 {offsets = [0, 0], sizes = [16, 32], strides = [1, 1]} : vector<20x32xbf16> to vector<16x32xbf16>
    %c0_103 = arith.constant 0 : index
    %c0_104 = arith.constant 0 : index
    %c0_105 = arith.constant 0 : index
    %188 = vector.load %arg12[%c0_103, %c0_104, %c0_105] : memref<5x32x16xbf16, #tpu.memory_space<vmem>>, vector<1x32x16xbf16>
    %189 = vector.shape_cast %188 : vector<1x32x16xbf16> to vector<32x16xbf16>
    %cst_106 = arith.constant dense<0.000000e+00> : vector<16x16xf32>
    %190 = tpu.matmul %187, %189, %cst_106 {dimension_numbers = #tpu.dot_dimension_numbers<[1], [0], [0], [1], [0, 0, 1, 1], [], []>} : vector<16x32xbf16>, vector<32x16xbf16>, vector<16x16xf32> -> vector<16x16xf32>
    %191 = arith.addf %186, %190 : vector<16x16xf32>
    %192 = vector.extract_strided_slice %185 {offsets = [1, 0], sizes = [16, 32], strides = [1, 1]} : vector<20x32xbf16> to vector<16x32xbf16>
    %c1_107 = arith.constant 1 : index
    %c0_108 = arith.constant 0 : index
    %c0_109 = arith.constant 0 : index
    %193 = vector.load %arg12[%c1_107, %c0_108, %c0_109] : memref<5x32x16xbf16, #tpu.memory_space<vmem>>, vector<1x32x16xbf16>
    %194 = vector.shape_cast %193 : vector<1x32x16xbf16> to vector<32x16xbf16>
    %cst_110 = arith.constant dense<0.000000e+00> : vector<16x16xf32>
    %195 = tpu.matmul %192, %194, %cst_110 {dimension_numbers = #tpu.dot_dimension_numbers<[1], [0], [0], [1], [0, 0, 1, 1], [], []>} : vector<16x32xbf16>, vector<32x16xbf16>, vector<16x16xf32> -> vector<16x16xf32>
    %196 = arith.addf %191, %195 : vector<16x16xf32>
    %197 = vector.extract_strided_slice %185 {offsets = [2, 0], sizes = [16, 32], strides = [1, 1]} : vector<20x32xbf16> to vector<16x32xbf16>
    %c2_111 = arith.constant 2 : index
    %c0_112 = arith.constant 0 : index
    %c0_113 = arith.constant 0 : index
    %198 = vector.load %arg12[%c2_111, %c0_112, %c0_113] : memref<5x32x16xbf16, #tpu.memory_space<vmem>>, vector<1x32x16xbf16>
    %199 = vector.shape_cast %198 : vector<1x32x16xbf16> to vector<32x16xbf16>
    %cst_114 = arith.constant dense<0.000000e+00> : vector<16x16xf32>
    %200 = tpu.matmul %197, %199, %cst_114 {dimension_numbers = #tpu.dot_dimension_numbers<[1], [0], [0], [1], [0, 0, 1, 1], [], []>} : vector<16x32xbf16>, vector<32x16xbf16>, vector<16x16xf32> -> vector<16x16xf32>
    %201 = arith.addf %196, %200 : vector<16x16xf32>
    %202 = vector.extract_strided_slice %185 {offsets = [3, 0], sizes = [16, 32], strides = [1, 1]} : vector<20x32xbf16> to vector<16x32xbf16>
    %c3_115 = arith.constant 3 : index
    %c0_116 = arith.constant 0 : index
    %c0_117 = arith.constant 0 : index
    %203 = vector.load %arg12[%c3_115, %c0_116, %c0_117] : memref<5x32x16xbf16, #tpu.memory_space<vmem>>, vector<1x32x16xbf16>
    %204 = vector.shape_cast %203 : vector<1x32x16xbf16> to vector<32x16xbf16>
    %cst_118 = arith.constant dense<0.000000e+00> : vector<16x16xf32>
    %205 = tpu.matmul %202, %204, %cst_118 {dimension_numbers = #tpu.dot_dimension_numbers<[1], [0], [0], [1], [0, 0, 1, 1], [], []>} : vector<16x32xbf16>, vector<32x16xbf16>, vector<16x16xf32> -> vector<16x16xf32>
    %206 = arith.addf %201, %205 : vector<16x16xf32>
    %207 = vector.extract_strided_slice %185 {offsets = [4, 0], sizes = [16, 32], strides = [1, 1]} : vector<20x32xbf16> to vector<16x32xbf16>
    %c4_119 = arith.constant 4 : index
    %c0_120 = arith.constant 0 : index
    %c0_121 = arith.constant 0 : index
    %208 = vector.load %arg12[%c4_119, %c0_120, %c0_121] : memref<5x32x16xbf16, #tpu.memory_space<vmem>>, vector<1x32x16xbf16>
    %209 = vector.shape_cast %208 : vector<1x32x16xbf16> to vector<32x16xbf16>
    %cst_122 = arith.constant dense<0.000000e+00> : vector<16x16xf32>
    %210 = tpu.matmul %207, %209, %cst_122 {dimension_numbers = #tpu.dot_dimension_numbers<[1], [0], [0], [1], [0, 0, 1, 1], [], []>} : vector<16x32xbf16>, vector<32x16xbf16>, vector<16x16xf32> -> vector<16x16xf32>
    %211 = arith.addf %206, %210 : vector<16x16xf32>
    %c0_123 = arith.constant 0 : index
    %c0_124 = arith.constant 0 : index
    %212 = vector.load %arg13[%c0_123, %c0_124] : memref<1x16xf32, #tpu.memory_space<vmem>>, vector<1x16xf32>
    %213 = vector.broadcast %212 : vector<1x16xf32> to vector<16x16xf32>
    %214 = arith.addf %211, %213 : vector<16x16xf32>
    %215 = arith.addf %17, %214 : vector<16x16xf32>
    %c0_125 = arith.constant 0 : index
    %c0_126 = arith.constant 0 : index
    %c0_127 = arith.constant 0 : index
    %216 = vector.load %arg15[%c0_125, %c0_126, %c0_127] : memref<1x16x16xf32, #tpu.memory_space<vmem>>, vector<1x16x16xf32>
    %217 = vector.shape_cast %216 : vector<1x16x16xf32> to vector<16x16xf32>
    %218 = vector.shape_cast %215 : vector<16x16xf32> to vector<1x16x16xf32>
    tpu.vector_store %arg15[%c0_125, %c0_126, %c0_127], %218 {strides = array<i32>} : memref<1x16x16xf32, #tpu.memory_space<vmem>>, vector<1x16x16xf32>,
    return
  }
  func.func @transform_0(%arg0: i32) -> (i32, i32, i32) {
    %c0_i32 = arith.constant 0 : i32
    %c0_i32_0 = arith.constant 0 : i32
    %c0_i32_1 = arith.constant 0 : i32
    return %arg0, %c0_i32, %c0_i32_0 : i32, i32, i32
  }
  func.func @transform_1(%arg0: i32) -> (i32, i32) {
    %c0_i32 = arith.constant 0 : i32
    %c0_i32_0 = arith.constant 0 : i32
    %c0_i32_1 = arith.constant 0 : i32
    return %c0_i32, %c0_i32_0 : i32, i32
  }
  func.func @transform_2(%arg0: i32) -> (i32, i32) {
    %c0_i32 = arith.constant 0 : i32
    %c0_i32_0 = arith.constant 0 : i32
    %c0_i32_1 = arith.constant 0 : i32
    return %c0_i32, %c0_i32_0 : i32, i32
  }
  func.func @transform_3(%arg0: i32) -> (i32, i32, i32) {
    %c0_i32 = arith.constant 0 : i32
    %c0_i32_0 = arith.constant 0 : i32
    %c0_i32_1 = arith.constant 0 : i32
    %c0_i32_2 = arith.constant 0 : i32
    return %c0_i32, %c0_i32_0, %c0_i32_1 : i32, i32, i32
  }
  func.func @transform_4(%arg0: i32) -> (i32, i32) {
    %c0_i32 = arith.constant 0 : i32
    %c0_i32_0 = arith.constant 0 : i32
    %c0_i32_1 = arith.constant 0 : i32
    return %c0_i32, %c0_i32_0 : i32, i32
  }
  func.func @transform_5(%arg0: i32) -> (i32, i32, i32) {
    %c0_i32 = arith.constant 0 : i32
    %c0_i32_0 = arith.constant 0 : i32
    %c0_i32_1 = arith.constant 0 : i32
    %c0_i32_2 = arith.constant 0 : i32
    return %c0_i32, %c0_i32_0, %c0_i32_1 : i32, i32, i32
  }
  func.func @transform_6(%arg0: i32) -> (i32, i32) {
    %c0_i32 = arith.constant 0 : i32
    %c0_i32_0 = arith.constant 0 : i32
    %c0_i32_1 = arith.constant 0 : i32
    return %c0_i32, %c0_i32_0 : i32, i32
  }
  func.func @transform_7(%arg0: i32) -> (i32, i32, i32) {
    %c0_i32 = arith.constant 0 : i32
    %c0_i32_0 = arith.constant 0 : i32
    %c0_i32_1 = arith.constant 0 : i32
    %c0_i32_2 = arith.constant 0 : i32
    return %c0_i32, %c0_i32_0, %c0_i32_1 : i32, i32, i32
  }
  func.func @transform_8(%arg0: i32) -> (i32, i32) {
    %c0_i32 = arith.constant 0 : i32
    %c0_i32_0 = arith.constant 0 : i32
    %c0_i32_1 = arith.constant 0 : i32
    return %c0_i32, %c0_i32_0 : i32, i32
  }
  func.func @transform_9(%arg0: i32) -> (i32, i32, i32) {
    %c0_i32 = arith.constant 0 : i32
    %c0_i32_0 = arith.constant 0 : i32
    %c0_i32_1 = arith.constant 0 : i32
    %c0_i32_2 = arith.constant 0 : i32
    return %c0_i32, %c0_i32_0, %c0_i32_1 : i32, i32, i32
  }
  func.func @transform_10(%arg0: i32) -> (i32, i32) {
    %c0_i32 = arith.constant 0 : i32
    %c0_i32_0 = arith.constant 0 : i32
    %c0_i32_1 = arith.constant 0 : i32
    return %c0_i32, %c0_i32_0 : i32, i32
  }
  func.func @transform_11(%arg0: i32) -> (i32, i32, i32) {
    %c0_i32 = arith.constant 0 : i32
    %c0_i32_0 = arith.constant 0 : i32
    %c0_i32_1 = arith.constant 0 : i32
    %c0_i32_2 = arith.constant 0 : i32
    return %c0_i32, %c0_i32_0, %c0_i32_1 : i32, i32, i32
  }
  func.func @transform_12(%arg0: i32) -> (i32, i32) {
    %c0_i32 = arith.constant 0 : i32
    %c0_i32_0 = arith.constant 0 : i32
    %c0_i32_1 = arith.constant 0 : i32
    return %c0_i32, %c0_i32_0 : i32, i32
  }
  func.func @transform_13(%arg0: i32) -> (i32, i32, i32) {
    %c0_i32 = arith.constant 0 : i32
    %c0_i32_0 = arith.constant 0 : i32
    %c0_i32_1 = arith.constant 0 : i32
    return %arg0, %c0_i32, %c0_i32_0 : i32, i32, i32
  }
  func.func @transform_14(%arg0: i32) -> (i32, i32, i32) {
    %c0_i32 = arith.constant 0 : i32
    %c0_i32_0 = arith.constant 0 : i32
    %c0_i32_1 = arith.constant 0 : i32
    return %arg0, %c0_i32, %c0_i32_0 : i32, i32, i32
  }
}

</mosaic_0001>

<bundles_post_ra>
// kernel: ne.21
= control target key start
LH: loop header
LB: loop body
LE: loop exit
PB: predicated region body
PF: predicated region fallthrough
CT: control target
= control target key end

     0   :  { %3 = vsyncpa [#allocation1], 0  ;;  %s111_s0 = inlined_call_operand.hbm [shape: f32[2,16], index: 0, kind: input, shape index: {}, may-alias: {0,1}]   ;;  %s112_s1 = inlined_call_operand.hbm [shape: f32[2,16], index: 1, kind: input, shape index: {}, may-alias: {0,1}]   ;;  %s113_s2 = inlined_call_operand.vmem [shape: pred[2,16], index: 2, kind: output, shape index: {}]  }
   0x1   :  { %4 = vsyncpa [#allocation3], 0  ;;  %s84_s9 = smov [#allocation0]   ;;  %s85_s11 = smov [#allocation2]  }
   0x2   :  { %s9_s10 = sshll.u32 %s84_s9, 4  ;;  %s17_s12 = sshll.u32 %s85_s11, 4  ;;  %s10_s10 = int_to_ptr.vmem [resolvable:$true] %s9_s10  ;;  %s18_s12 = int_to_ptr.vmem [resolvable:$true] %s17_s12 }
   0x3   :  { %s48_s13 = scalar_lea.vmem %s10_s10, 32  ;;  %p53_p1 = scmp.lt.s32.totalorder %s10_s10, %s10_s10 }
   0x4   :  { %p49_p0 = scmp.ne.s32.totalorder %s10_s10, %s48_s13  ;;  %p54_p2 = scmp.lt.s32.totalorder %s48_s13, %s48_s13 }
   0x6   :  { %p55_p3 = por %p54_p2, %p53_p1 }
   0x8   :  { %p56_p4 = pnand %p55_p3, %p49_p0 }
   0xa   :  { %59 = shalt.err (!%p56_p4)
}
   0xb   :  { %12 = dma.hbm_to_vmem [thread:$0]  %s111_s0, 32, %s10_s10, [#allocation1]  }
   0xc   :  { %s68_s0 = scalar_lea.vmem %s18_s12, 32  ;;  %p73_p6 = scmp.lt.s32.totalorder %s18_s12, %s18_s12 }
   0xd   :  { %p69_p5 = scmp.ne.s32.totalorder %s18_s12, %s68_s0  ;;  %p74_p7 = scmp.lt.s32.totalorder %s68_s0, %s68_s0 }
   0xf   :  { %p75_p8 = por %p74_p7, %p73_p6 }
  0x11   :  { %p76_p9 = pnand %p75_p8, %p69_p5 }
  0x13   :  { %79 = shalt.err (!%p76_p9)
}
  0x14   :  { %20 = dma.hbm_to_vmem [thread:$0]  %s112_s1, 32, %s18_s12, [#allocation3]  }
  0x15   :  { %80 = dma.done.wait [#allocation1], 32  }
  0x16   :  { %81 = vsyncadd [#allocation1], 4294967264 }
  0x17   :  { %82 = dma.done.wait [#allocation3], 32  }
  0x18   :  { %83 = vsyncadd [#allocation3], 4294967264  ;;  %v23_v0 = vld [vmem:[#allocation0] sm:$0x3]  ;;  %v24_v1 = vld [vmem:[#allocation2] sm:$0x3] }
  0x19   :  { %vm27_vm0 = vcmp.ne.f32.partialorder %v23_v0, %v24_v1  ;;  %v86_v2 = vmov 0  }
  0x1a   :  { %v28_v3 = vsel %vm27_vm0, 1, %v86_v2 }
  0x1b   :  { %v30_v4 = vpack.c.b16 %v86_v2, %v28_v3 }
  0x1d   :  { %v31_v5 = vpack.c.b8 %v86_v2, %v30_v4 }
  0x1f   :  { %34 = vst [vmem:[%s113_s2] sm:$0x1] %v31_v5 }
  0x20   :  { %35 = vsyncpa [#allocation1], 1 }
  0x21   :  { %36 = vsyncpa [#allocation3], 1 }

// kernel: custom-call.9
= control target key start
LH: loop header
LB: loop body
LE: loop exit
PB: predicated region body
PF: predicated region fallthrough
CT: control target
= control target key end

     0   :  { %s6_s0 = inlined_call_operand.vmem [shape: u32[2,16], index: 0, kind: output, shape index: {}]  }

// kernel: squeeze.18
= control target key start
LH: loop header
LB: loop body
LE: loop exit
PB: predicated region body
PF: predicated region fallthrough
CT: control target
= control target key end

     0   :  { %vm8_vm0 = vcmask 130048   ;;  %s42_s0 = inlined_call_operand.vmem [shape: f32[32], index: 0, kind: input, shape index: {}]   ;;  %s43_s1 = inlined_call_operand.vmem [shape: f32[2,16], index: 1, kind: output, shape index: {}]  }
   0x1   :  { %v5_v0 = vld [vmem:[%s42_s0] sm:$0x1]  ;;  %s25_s0 = smov 112  }
   0x2   :  { %6 = vst [vmem:[#allocation1] sm:$0x1] %v5_v0 }
   0x9   :  { %v10_v1 = vld [vmem:[#allocation1] sm:$0x1]  }
   0xa   :  { %v7_v2 = vld [vmem:[#allocation1] sm:$0x1]   ;;  %11 = vrot.lane.b32.xlu0 %v10_v1, %s25_s0 }
   0xb   :  { %9 = vst.msk [vmem:[#allocation0] sm:$0x1] %vm8_vm0, %v7_v2  }
  0x7c   :  { %v12_v3 = vpop.permute.xlu0 %11  }
  0x7d   :  { %15 = vst.msk [vmem:[#allocation0 + $0x1] sm:$0x1] %vm8_vm0, %v12_v3  }
  0x84   :  { %v20_v4 = vld [vmem:[#allocation0] sm:$0x3] }
  0x85   :  { %23 = vst [vmem:[%s43_s1] sm:$0x3] %v20_v4 }

// kernel: _lambda_.23
= control target key start
LH: loop header
LB: loop body
LE: loop exit
PB: predicated region body
PF: predicated region fallthrough
CT: control target
= control target key end

     0   :  { %vm19_vm0 = vcmask 785408   ;;  %v151_v0 = vmov 0.0   ;;  %vm152_vm1 = vmmov 0   ;;  %vm47_vm2 = vcmask 261120   ;;  %s195_s1 = inlined_call_operand.vmem [shape: bf16[32,96], index: 1, kind: input, shape index: {}]   ;;  %s196_s0 = inlined_call_operand.vmem [shape: bf16[16,32], index: 0, kind: input, shape index: {}]   ;;  %s197_s2 = inlined_call_operand.vmem [shape: f32[1,96], index: 2, kind: input, shape index: {}]   ;;  %s198_s3 = inlined_call_operand.vmem [shape: bf16[16,96], index: 3, kind: output, shape index: {}]  }
   0x1   :  { %138 = vmatprep.subr.bf16.mxu0 %v151_v0  ;;  %v148_v1 = vld [vmem:[%s195_s1 + $0x8] sm:$0xff]   ;;  %142 = vmatprep.mubr.msk.bf16.mxu0 %vm152_vm1, %v151_v0  ;;  %20 = vst.msk [vmem:[#allocation2] sm:$0xff] %vm19_vm0, %v151_v0  ;;  %21 = vst.msk [vmem:[#allocation2 + $0x8] sm:$0xff] %vm19_vm0, %v151_v0  ;;  %v149_v2 = vld [vmem:[%s195_s1] sm:$0xff]   ;;  %vm119_vm3 = vcmask 781312  }
   0x2   :  { %139 = vmatpush3.bf16.msra.mxu0 %v148_v1  ;;  %v150_v3 = vld [vmem:[%s196_s0] sm:$0xff]  }
   0x3   :  { %140 = vmatprep.subr.bf16.mxu0 %v151_v0  ;;  %v130_v12 = vld [vmem:[%s197_s2] ss:$0 sm:$0xff] }
   0x6   :  { %141 = vmatpush3.bf16.msra.mxu0 %v149_v2 }
   0x8   :  { %v22_v4 = vld [vmem:[#allocation2] sm:$0xff]  ;;  %v23_v8 = vld [vmem:[#allocation2 + $0x8] sm:$0xff] }
   0x9   :  { %143 = vmatmul.mubr.msk.bf16.vlgmr.msra.gmra.mxu0 %vm47_vm2, %v150_v3 }
  0xc9   :  { %v85_v5 = vpop.f32.mrf.mxu0 }
  0xca   :  { %v92_v6 = vadd.f32 %v85_v5, %v22_v4 }
  0xcb   :  { %v144_v7 = vpop.f32.mrf.mxu0 }
  0xcc   :  { %95 = vst.msk [vmem:[#allocation2] sm:$0xff] %vm19_vm0, %v92_v6 }
  0xcd   :  { %v88_v9 = vpop.f32.mrf.mxu0 }
  0xce   :  { %v93_v10 = vadd.f32 %v88_v9, %v23_v8 }
  0xcf   :  { %v145_v11 = vpop.f32.mrf.mxu0 }
  0xd0   :  { %96 = vst.msk [vmem:[#allocation2 + $0x8] sm:$0xff] %vm19_vm0, %v93_v10 }
  0xd3   :  { %v100_v13 = vld [vmem:[#allocation2] sm:$0xff] }
  0xd4   :  { %v109_v14 = vadd.f32 %v130_v12, %v100_v13 }
  0xd6   :  { %v133_v15 = vpack.c.bf16 %v109_v14, %v109_v14 }
  0xd7   :  { %v101_v16 = vld [vmem:[#allocation2 + $0x8] sm:$0xff] }
  0xd8   :  { %120 = vst.msk [vmem:[%s198_s3] sm:$0xf] %vm119_vm3, %v133_v15  ;;  %v110_v17 = vadd.f32 %v130_v12, %v101_v16 }
  0xda   :  { %v134_v18 = vpack.c.bf16 %v110_v17, %v110_v17 }
  0xdc   :  { %121 = vst.msk [vmem:[%s198_s3 + $0x4] sm:$0xf] %vm119_vm3, %v134_v18 }

// kernel: _lambda_.24
= control target key start
LH: loop header
LB: loop body
LE: loop exit
PB: predicated region body
PF: predicated region fallthrough
CT: control target
= control target key end

     0   :  { %s852_s15 = smov 0   ;;  %s854_s16 = smov 0   ;;  %s929_s0 = inlined_call_operand.vmem [shape: bf16[2,2,8,16], index: 0, kind: input, shape index: {}]   ;;  %s930_s1 = inlined_call_operand.vmem [shape: bf16[2,2,8,16], index: 1, kind: input, shape index: {}]   ;;  %s931_s2 = inlined_call_operand.vmem [shape: bf16[2,2,8,16], index: 2, kind: input, shape index: {}]   ;;  %s932_s3 = inlined_call_operand.vmem [shape: f32[2,1,1,8], index: 3, kind: input, shape index: {}]   ;;  %s933_s4 = inlined_call_operand.vmem [shape: bf16[2,2,8,16], index: 4, kind: output, shape index: {}]  }
   0x1   :  { %s856_s17 = smov 0   ;;  %s858_s18 = smov 0  }
   0x2   :  { %s860_s19 = smov 0  }
   0x3 LB: > { %s36_s20 = sadd.s32 1, %s813_s17  ;;  %s40_s21 = sadd.s32 1, %s817_s18  ;;  %s821_s19 = sphi %s860_s19, %s14_s19   ;;  %s817_s18 = sphi %s858_s18, %s937_s18   ;;  %s813_s17 = sphi %s856_s17, %s936_s17   ;;  %s809_s16 = sphi %s854_s16, %s935_s16   ;;  %s805_s15 = sphi %s852_s15, %s934_s15  }
   0x4   : > { %p38_p0 = scmp.ge.s32.totalorder %s36_s20, 2  ;;  %p702_p1 = scmp.ge.s32.totalorder %s821_s19, 1 }
   0x5   : > { %p255_p2 = scmp.lt.s32.totalorder %s821_s19, 5 }
   0x6   : > { %s939_s20 = smov (%p38_p0, %s36_s20), 0  ;;  %s941_s21 = smov (!%p38_p0, %s40_s21), %s817_s18 }
   0x7   : > { %p256_p3 = pnand %p702_p1, %p255_p2  ;;  %p42_p4 = scmp.ge.s32.totalorder %s941_s21, 2 }
   0x8   : > { %p321_p5 = scmp.lt.s32.totalorder (!%p256_p3), %s809_s16, 1  ;;  %p323_p6 = scmp.lt.s32.totalorder (!%p256_p3), %s805_s15, 1 }
   0x9   : > { %s943_s21 = smov (%p42_p4, %s941_s21), 0  ;;  %259 = sbr.rel (%p256_p3) target bundleno = 799 (0x31f), region = 36 }
   0xe   : > { %vm379_vm0 = vcmask 130048   ;;  %v823_v0 = vmov 0.0   ;;  %vm824_vm1 = vmmov 0   ;;  %s945_s16 = smov (!%p321_p5, %s809_s16), 1  ;;  %s947_s15 = smov (!%p323_p6, %s805_s15), 1  ;;  %v825_v4 = vmov 0  }
   0xf   : > { %719 = vmatprep.subr.bf16.mxu0 %v823_v0  ;;  %380 = vst.msk [vmem:[#allocation4] sm:$0xff] %vm379_vm0, %v823_v0  ;;  %721 = vmatprep.mubr.msk.bf16.mxu0 %vm824_vm1, %v823_v0  ;;  %s703_s22 = sshll.u32 %s945_s16, 1  ;;  %vm376_vm2 = vcmask 7168   ;;  %v826_v5 = vmov -1e+30   ;;  %s359_s7 = scalar_lea.vmem %s932_s3, %s945_s16  ;;  %v435_v6 = vlaneseq  ;;  %vm442_vm5 = vcmask 64512  }
  0x10   : > { %725 = vmatprep.subr.bf16.mxu1 %v823_v0  ;;  %727 = vmatprep.mubr.msk.bf16.mxu1 %vm824_vm1, %v823_v0  ;;  %s329_s23 = sadd.s32 %s703_s22, %s947_s15  ;;  %377 = vst.msk [vmem:[#allocation2] sm:$0xff] %vm376_vm2, %v826_v5  ;;  %378 = vst.msk [vmem:[#allocation3] sm:$0xff] %vm376_vm2, %v823_v0  ;;  %v384_v7 = vld [vmem:[%s359_s7] sm:$0x1]  ;;  %vm477_vm6 = vcmask 1043456   ;;  %vm537_vm7 = vcmask 125952  }
  0x11   : > { %s883_s24 = sshll.u32 %s329_s23, 2  ;;  %775 = vset.pattern.permute.xlu0 %v825_v4  ;;  %776 = vset.pattern.permute.xlu1 %v825_v4  ;;  %v436_v8 = vshrl.u32 %v435_v6, 7  ;;  %vm433_vm3 = vcmp.gt.f32.partialorder %v384_v7, 0.5 }
  0x12   : > { %s342_s27 = scalar_lea.vmem %s930_s1, %s883_s24  ;;  %s331_s30 = scalar_lea.vmem %s929_s0, %s883_s24  ;;  %v434_v10 = vsel %vm433_vm3, 1, %v825_v4 }
  0x13   : > { %v382_v1 = vld [vmem:[%s342_s27] sm:$0xf]  ;;  %v437_v9 = vsub.s32 0, %v436_v8  ;;  %s353_s10 = scalar_lea.vmem %s931_s2, %s883_s24  ;;  %s370_s13 = scalar_lea.vmem %s933_s4, %s883_s24 }
  0x14   : > { %v390_v2 = vsel %vm379_vm0, %v382_v1, 0  ;;  %v381_v3 = vld [vmem:[%s331_s30] sm:$0xf] }
  0x15   : > { %720 = vmatpush3.bf16.xpose.msra.mxu0 %v390_v2  ;;  %v438_v11 = vrot.slane %v434_v10, %v437_v9  ;;  %v383_v23 = vld [vmem:[%s353_s10] sm:$0xf] }
  0x16   : > { %v479_v24 = vsel %vm477_vm6, %v383_v23, 0  ;;  %v466_v39 = vld [vmem:[#allocation4] sm:$0xff] }
  0x17   : > { %vm439_vm4 = vcmp.eq.s32.totalorder %v438_v11, 1  ;;  %v441_v19 = vld [vmem:[#allocation2] sm:$0xff]  ;;  %726 = vmatpush3.bf16.msra.mxu1 %v479_v24  ;;  %v458_v33 = vld [vmem:[#allocation3] sm:$0xff] }
  0x1c   : > { %722 = vmatmul.mubr.msk.bf16.vlgmr.msra.gmra.mxu0 %vm379_vm0, %v381_v3 }
  0xdc   : > { %v426_v12 = vpop.f32.mrf.mxu0 }
  0xdd   : > { %v432_v13 = vmul.f32 0.25, %v426_v12 }
  0xde   : > { %v723_v14 = vpop.f32.mrf.mxu0 }
  0xdf   : > { %v440_v15 = vsel %vm439_vm4, %v432_v13, -1e+09 }
  0xe0   : > { %v429_v16 = vpop.f32.mrf.mxu0  ;;  %v443_v17 = vsel %vm442_vm5, %v440_v15, -inf }
  0xe1   : > { %444 = vmax.xlane.f32.xlu0 %v443_v17 }
  0xe2   : > { %v724_v18 = vpop.f32.mrf.mxu0 }
 0x16a   : > { %v445_v20 = vpop.xlane.xlu0 %444 }
 0x16b   : > { %v446_v21 = vmax.f32 %v441_v19, %v445_v20 }
 0x16d   : > { %v447_v22 = vsub.f32 %v441_v19, %v446_v21  ;;  %523 = vst.msk [vmem:[#allocation2] sm:$0xff] %vm376_vm2, %v446_v21  ;;  %452 = vperm.xlu0 %775, %v446_v21  }
 0x16f   : > { %v448_v29 = vmul.f32 1.442695, %v447_v22 }
 0x1e8   : > { %v453_v25 = vpop.permute.xlu0 %452 }
 0x1e9   : > { %v455_v26 = vsub.f32 %v440_v15, %v453_v25 }
 0x1eb   : > { %v456_v27 = vmul.f32 1.442695, %v455_v26 }
 0x1ed   : > { %777 = vpow2.f32 %v456_v27 }
 0x1ee   : > { %779 = vpow2.f32 %v448_v29 }
 0x1fa   : > { %v778_v28 = vpop.eup %777 }
 0x1fb   : > { %v460_v30 = vsel %vm442_vm5, %v778_v28, 0.0  ;;  %v473_v31 = vpack.c.bf16 %v778_v28, %v778_v28  ;;  %v780_v32 = vpop.eup %779 }
 0x1fc   : > { %461 = vadd.xlane.f32.xlu1 %v460_v30  ;;  %v459_v34 = vmul.f32 %v780_v32, %v458_v33 }
 0x1fd   : > { %728 = vmatmul.mubr.msk.bf16.vlgmr.msra.gmra.mxu1 %vm442_vm5, %v473_v31 }
 0x20d   : > { %469 = vperm.xlu1 %776, %v780_v32  }
 0x285   : > { %v462_v35 = vpop.xlane.xlu1 %461 }
 0x286   : > { %v463_v36 = vadd.f32 %v462_v35, %v459_v34 }
 0x288   : > { %465 = vst.msk [vmem:[#allocation3] sm:$0xff] %vm376_vm2, %v463_v36 }
 0x289   : > { %v470_v40 = vpop.permute.xlu1 %469 }
 0x28a   : > { %v472_v41 = vmul.f32 %v470_v40, %v466_v39 }
 0x28f   : > { %v528_v37 = vld [vmem:[#allocation3] sm:$0xff] }
 0x290   : > { %781 = vrcp.f32 %v528_v37 }
 0x29d   : > { %v782_v38 = vpop.eup %781 }
 0x29e   : > { %532 = vperm.xlu1 %776, %v782_v38  }
 0x2bd   : > { %v515_v42 = vpop.f32.mrf.mxu1 }
 0x2be   : > { %v521_v43 = vadd.f32 %v515_v42, %v472_v41 }
 0x2bf   : > { %v729_v44 = vpop.f32.mrf.mxu1 }
 0x2c0   : > { %522 = vst.msk [vmem:[#allocation4] sm:$0xff] %vm379_vm0, %v521_v43 }
 0x2c1   : > { %v518_v45 = vpop.f32.mrf.mxu1 }
 0x2c3   : > { %v730_v46 = vpop.f32.mrf.mxu1 }
 0x2c7   : > { %v527_v47 = vld [vmem:[#allocation4] sm:$0xff] }
 0x319   : > { %v533_v48 = vpop.permute.xlu1 %532 }
 0x31a   : > { %v535_v49 = vmul.f32 %v533_v48, %v527_v47 }
 0x31c   : > { %v536_v50 = vpack.c.bf16 %v535_v49, %v535_v49 }
 0x31e   : > { %538 = vst.msk [vmem:[%s370_s13] sm:$0xf] %vm537_vm7, %v536_v50 }
 0x31f PF: > { %s14_s19 = sadd.s32 1, %s821_s19   ;;  %s934_s15 = smov %s813_s17 }
 0x320   : > { %p11_p7 = scmp.ge.s32.totalorder %s14_s19, 6   ;;  %s935_s16 = smov %s817_s18 }
 0x321   : > { %s936_s17 = smov %s939_s20  ;;  %s937_s18 = smov %s943_s21 }
 0x322   :  { %13 = sbr.rel (!%p11_p7) target bundleno = 3 (0x3), region = 83 }

// kernel: _lambda_.25
= control target key start
LH: loop header
LB: loop body
LE: loop exit
PB: predicated region body
PF: predicated region fallthrough
CT: control target
= control target key end

     0   :  { %s684_s21 = smov 0   ;;  %s686_s22 = smov 0   ;;  %s743_s0 = inlined_call_operand.vmem [shape: bf16[2,2,8,16], index: 0, kind: input, shape index: {}]   ;;  %s744_s1 = inlined_call_operand.vmem [shape: bf16[2,8,32], index: 1, kind: input, shape index: {}]   ;;  %s745_s2 = inlined_call_operand.vmem [shape: bf16[2,16,32], index: 2, kind: input, shape index: {}]   ;;  %s746_s3 = inlined_call_operand.vmem [shape: f32[1,32], index: 3, kind: input, shape index: {}, may-alias: {3,5}]   ;;  %s747_s4 = inlined_call_operand.vmem [shape: f32[1,32], index: 4, kind: input, shape index: {}]   ;;  %s748_s5 = inlined_call_operand.vmem [shape: f32[1,32], index: 5, kind: input, shape index: {}, may-alias: {3,5}]   ;;  %s749_s6 = inlined_call_operand.vmem [shape: bf16[2,8,32], index: 6, kind: output, shape index: {}]  }
   0x1   :  { %s688_s23 = smov 0  }
   0x2 LB: > { %s28_s24 = sadd.s32 1, %s641_s22  ;;  %p559_p0 = scmp.ge.s32.totalorder %s645_s23, 1  ;;  %s645_s23 = sphi %s688_s23, %s16_s23   ;;  %s641_s22 = sphi %s686_s22, %s751_s22   ;;  %s637_s21 = sphi %s684_s21, %s750_s21  }
   0x3   : > { %p30_p1 = scmp.ge.s32.totalorder %s28_s24, 2  ;;  %p245_p2 = scmp.lt.s32.totalorder %s645_s23, 3 }
   0x5   : > { %s753_s24 = smov (%p30_p1, %s28_s24), 0  ;;  %p246_p3 = pnand %p559_p0, %p245_p2 }
   0x6   : > { %p287_p4 = scmp.lt.s32.totalorder (!%p246_p3), %s637_s21, 1 }
   0x7   : > { %249 = sbr.rel (%p246_p3) target bundleno = 525 (0x20d), region = 44 }
   0xc   : > { %v619_v0 = vld [vmem:[%s745_s2] sm:$0xff]   ;;  %v647_v1 = vmov 0.0   ;;  %v620_v2 = vld [vmem:[%s745_s2 + $0x8] sm:$0xff]   ;;  %vm648_vm0 = vmmov 0   ;;  %s755_s21 = smov (!%p287_p4, %s637_s21), 1  ;;  %vm329_vm1 = vcmask 130048  }
   0xd   : > { %581 = vmatprep.subr.bf16.mxu0 %v647_v1  ;;  %587 = vmatprep.subr.bf16.mxu1 %v647_v1  ;;  %s576_s29 = sshll.u32 %s755_s21, 3  ;;  %s562_s9 = sshll.u32 %s755_s21, 2  ;;  %v564_v7 = vld [vmem:[%s746_s3] ss:$0 sm:$0xff]  ;;  %vm431_vm2 = vcmask 261120   ;;  %vm461_vm3 = vcmask 257024  }
   0xe   : > { %582 = vmatpush3.bf16.msra.mxu0 %v619_v0  ;;  %583 = vmatprep.mubr.msk.bf16.mxu0 %vm648_vm0, %v647_v1  ;;  %s294_s8 = scalar_lea.vmem %s743_s0, %s576_s29  ;;  %s301_s12 = scalar_lea.vmem %s744_s1, %s562_s9  ;;  %v572_v29 = vld [vmem:[%s747_s4] ss:$0 sm:$0xff] }
   0xf   : > { %588 = vmatpush3.bf16.msra.mxu1 %v620_v2  ;;  %589 = vmatprep.mubr.msk.bf16.mxu1 %vm648_vm0, %v647_v1  ;;  %v320_v3 = vld [vmem:[%s294_s8] sm:$0xf]  ;;  %v567_v4 = vld [vmem:[%s294_s8 + $0x4] sm:$0xf]  ;;  %s308_s25 = scalar_lea.vmem %s749_s6, %s562_s9 }
  0x10   : > { %v310_v5 = vld [vmem:[%s301_s12] sm:$0xf] }
  0x11   : > { %584 = vmatmul.mubr.msk.bf16.vlgmr.msra.gmra.mxu0 %vm329_vm1, %v320_v3  ;;  %v312_v6 = vunpack.c.l.bf16 %v310_v5  ;;  %v573_v31 = vld [vmem:[%s748_s5] ss:$0 sm:$0xff] }
  0x12   : > { %590 = vmatmul.mubr.msk.bf16.vlgmr.msra.gmra.mxu1 %vm329_vm1, %v567_v4 }
  0x13   : > { %v319_v8 = vadd.f32 %v564_v7, %v312_v6 }
  0xd1   : > { %v367_v9 = vpop.f32.mrf.mxu0 }
  0xd2   : > { %v422_v10 = vpop.f32.mrf.mxu1  ;;  %v373_v11 = vadd.f32 %v367_v9, %v319_v8 }
  0xd3   : > { %v585_v12 = vpop.f32.mrf.mxu0 }
  0xd4   : > { %v591_v13 = vpop.f32.mrf.mxu1  ;;  %v428_v14 = vadd.f32 %v422_v10, %v373_v11 }
  0xd5   : > { %v370_v15 = vpop.f32.mrf.mxu0 }
  0xd6   : > { %v425_v16 = vpop.f32.mrf.mxu1  ;;  %v432_v17 = vsel %vm431_vm2, %v428_v14, 0.0 }
  0xd7   : > { %433 = vadd.xlane.f32.xlu0 %v432_v17  ;;  %v586_v19 = vpop.f32.mrf.mxu0 }
  0xd8   : > { %v592_v18 = vpop.f32.mrf.mxu1 }
 0x160   : > { %v434_v20 = vpop.xlane.xlu0 %433 }
 0x161   : > { %v436_v21 = vmul.f32 0.03125, %v434_v20 }
 0x163   : > { %v437_v22 = vsub.f32 %v428_v14, %v436_v21 }
 0x165   : > { %v438_v23 = vmul.f32 %v437_v22, %v437_v22 }
 0x167   : > { %v439_v24 = vsel %vm431_vm2, %v438_v23, 0.0 }
 0x168   : > { %440 = vadd.xlane.f32.xlu0 %v439_v24 }
 0x1f1   : > { %v441_v25 = vpop.xlane.xlu0 %440 }
 0x1f2   : > { %v442_v26 = vmul.f32 0.03125, %v441_v25 }
 0x1f4   : > { %v443_v27 = vadd.f32 1e-05, %v442_v26 }
 0x1f6   : > { %621 = vrsqrt.f32 %v443_v27 }
 0x203   : > { %v622_v28 = vpop.eup %621 }
 0x204   : > { %v445_v30 = vmul.f32 %v622_v28, %v437_v22 }
 0x206   : > { %v452_v32 = vmul.f32 %v572_v29, %v445_v30 }
 0x208   : > { %v459_v33 = vadd.f32 %v573_v31, %v452_v32 }
 0x20a   : > { %v460_v34 = vpack.c.bf16 %v459_v33, %v459_v33 }
 0x20c   : > { %462 = vst.msk [vmem:[%s308_s25] sm:$0xf] %vm461_vm3, %v460_v34 }
 0x20d PF: > { %s16_s23 = sadd.s32 1, %s645_s23   ;;  %s750_s21 = smov %s641_s22 }
 0x20e   : > { %p13_p5 = scmp.ge.s32.totalorder %s16_s23, 4   ;;  %s751_s22 = smov %s753_s24 }
 0x210   :  { %15 = sbr.rel (!%p13_p5) target bundleno = 2 (0x2), region = 79 }

// kernel: _lambda_.29
= control target key start
LH: loop header
LB: loop body
LE: loop exit
PB: predicated region body
PF: predicated region fallthrough
CT: control target
= control target key end

     0   :  { %8 = vsyncpa [#allocation3], 0  ;;  %s813_s0 = inlined_call_operand.vmem [shape: bf16[2,2,8,16], index: 0, kind: input, shape index: {}]   ;;  %s814_s1 = inlined_call_operand.vmem [shape: bf16[2,2,8,16], index: 1, kind: input, shape index: {}]   ;;  %s815_s2 = inlined_call_operand.vmem [shape: f32[2,1,1,8], index: 2, kind: input, shape index: {}]   ;;  %s816_s3 = inlined_call_operand.hbm [shape: bf16[2,2,8,8], index: 3, kind: output, shape index: {}]  }
   0x1   :  { %10 = vsyncpa [#allocation3 + $0x1], 0  ;;  %s683_s12 = smov 0   ;;  %s685_s13 = smov 0  }
   0x2   :  { %s687_s14 = smov 0   ;;  %s689_s15 = smov 0  }
   0x3   :  { %s691_s16 = smov 0   ;;  %s693_s17 = smov 0  }
   0x4   :  { %s695_s18 = smov 0   ;;  %s697_s19 = smov 0  }
   0x5 LB: > { %s463_s20 = sadd.s32 4294967295, %s657_s19   ;;  %s464_s21 = sadd.s32 4294967294, %s657_s19   ;;  %s657_s19 = sphi %s697_s19, %s16_s19   ;;  %s653_s18 = sphi %s695_s18, %s825_s18   ;;  %s649_s17 = sphi %s693_s17, %s824_s17   ;;  %s645_s16 = sphi %s691_s16, %s823_s16   ;;  %s641_s15 = sphi %s689_s15, %s822_s15   ;;  %s637_s14 = sphi %s687_s14, %s821_s14   ;;  %s633_s13 = sphi %s685_s13, %s820_s13   ;;  %s629_s12 = sphi %s683_s12, %s819_s12  }
   0x6   : > { %s31_s22 = sadd.s32 1, %s649_s17  ;;  %s35_s23 = sadd.s32 1, %s653_s18 }
   0x7   : > { %p33_p0 = scmp.ge.s32.totalorder %s31_s22, 2  ;;  %p140_p1 = scmp.ne.s32.totalorder %s637_s14, %s633_s13 }
   0x8   : > { %p141_p2 = scmp.eq.s32.totalorder %s463_s20, 3  ;;  %p146_p5 = scmp.ne.s32.totalorder %s633_s13, %s629_s12 }
   0x9   : > { %s827_s22 = smov (%p33_p0, %s31_s22), 0  ;;  %s829_s23 = smov (!%p33_p0, %s35_s23), %s653_s18 }
   0xa   : > { %s124_s24 = ssub.s32 %s649_s17, %s827_s22  ;;  %p734_p3 = por %p141_p2, %p140_p1 }
   0xb   : > { %p37_p4 = scmp.ge.s32.totalorder %s829_s23, 2  ;;  %p147_p6 = scmp.eq.s32.totalorder %s464_s21, 3 }
   0xc   : > { %p467_p7 = scmp.ge.s32.totalorder %s657_s19, 1  ;;  %p196_p9 = scmp.lt.s32.totalorder %s657_s19, 5 }
   0xd   : > { %s831_s23 = smov (%p37_p4, %s829_s23), 0  ;;  %p743_p8 = por %p147_p6, %p146_p5 }
   0xe   : > { %s123_s27 = ssub.s32 %s653_s18, %s831_s23  ;;  %s130_s28 = sadd.s32 1, %s637_s14 }
   0xf   : > { %s125_s29 = sor.u32 %s124_s24, %s123_s27  ;;  %p197_p10 = pnand %p467_p7, %p196_p9 }
  0x10   : > { %p128_p11 = scmp.eq.s32.totalorder %s125_s29, 0  ;;  %p237_p12 = scmp.lt.s32.totalorder (!%p197_p10), %s645_s16, 1 }
  0x11   : > { %200 = sbr.rel (%p197_p10) target bundleno = 560 (0x230), region = 32  ;;  %p239_p13 = scmp.lt.s32.totalorder (!%p197_p10), %s641_s15, 1 }
  0x12   : > { %s752_s30 = scalar_select %p128_p11, %s637_s14, %s130_s28  }
  0x16   : > { %v659_v0 = vmov 0.0   ;;  %vm660_vm0 = vmmov 0   ;;  %s238_s4 = scalar_select %p237_p12, %s645_s16, 1  ;;  %vm263_vm1 = vcmask 130048   ;;  %v313_v4 = vlaneseq }
  0x17   : > { %481 = vmatprep.subr.bf16.mxu0 %v659_v0  ;;  %483 = vmatprep.mubr.msk.bf16.mxu0 %vm660_vm0, %v659_v0  ;;  %s240_s5 = scalar_select %p239_p13, %s641_s15, 1  ;;  %v661_v8 = vmov 0   ;;  %vm319_vm4 = vcmask 64512   ;;  %vm332_vm5 = vcmask 60416  }
  0x18   : > { %s469_s6 = sshll.u32 %s238_s4, 1  ;;  %s258_s29 = scalar_lea.vmem %s815_s2, %s238_s4  ;;  %v314_v6 = vshrl.u32 %v313_v4, 7 }
  0x19   : > { %s245_s7 = sadd.s32 %s469_s6, %s240_s5  ;;  %v262_v5 = vld [vmem:[%s258_s29] sm:$0x1]  ;;  %s234_s4 = sand.u32 1, %s633_s13  }
  0x1a   : > { %s470_s8 = sshll.u32 %s245_s7, 2  ;;  %vm311_vm2 = vcmp.gt.f32.partialorder %v262_v5, 0.5  ;;  %v315_v7 = vsub.s32 0, %v314_v6  ;;  %s468_s5 = sshll.u32 %s234_s4, 2 }
  0x1b   : > { %s255_s11 = scalar_lea.vmem %s814_s1, %s470_s8  ;;  %s247_s24 = scalar_lea.vmem %s813_s0, %s470_s8  ;;  %v312_v9 = vsel %vm311_vm2, 1, %v661_v8 }
  0x1c   : > { %v261_v1 = vld [vmem:[%s255_s11] sm:$0xf]  ;;  %v316_v10 = vrot.slane %v312_v9, %v315_v7  ;;  %s475_s6 = sshll.u32 %s645_s16, 1  ;;  %s236_s9 = scalar_lea.vmem [#allocation2], %s468_s5 }
  0x1d   : > { %v268_v2 = vsel %vm263_vm1, %v261_v1, 0  ;;  %v260_v3 = vld [vmem:[%s247_s24] sm:$0xf]  ;;  %s347_s7 = sadd.s32 %s641_s15, %s475_s6  ;;  %s351_s10 = sshll.u32 %s236_s9, 4  ;;  %s352_s10 = int_to_ptr.vmem [resolvable:$true] %s351_s10 }
  0x1e   : > { %482 = vmatpush3.bf16.xpose.msra.mxu0 %v268_v2  ;;  %vm317_vm3 = vcmp.eq.s32.totalorder %v316_v10, 1  ;;  %s476_s8 = sshll.u32 %s347_s7, 6  ;;  %s335_s24 = scalar_lea.sflag [#allocation3], %s234_s4 }
  0x1f   : > { %s349_s21 = scalar_lea.hbm %s816_s3, %s476_s8  ;;  %s565_s27 = scalar_lea.vmem %s352_s10, 64 }
  0x20   : > { %p566_p0 = scmp.ne.s32.totalorder %s352_s10, %s565_s27  ;;  %s662_s15 = smov [#allocation2]  }
  0x21   : > { %s569_s16 = sshll.u32 %s662_s15, 4  ;;  %s570_s16 = int_to_ptr.vmem [resolvable:$false] %s569_s16 }
  0x22   : > { %p567_p1 = pnand %p566_p0, %p734_p3  ;;  %s571_s28 = scalar_lea.vmem %s570_s16, 128 }
  0x23   : > { %p572_p4 = scmp.lt.s32.totalorder %s352_s10, %s570_s16  ;;  %p573_p5 = scmp.lt.s32.totalorder %s571_s28, %s565_s27 }
  0x24   : > { %p568_p2 = pneg %p567_p1 }
  0x25   : > { %484 = vmatmul.mubr.msk.bf16.vlgmr.msra.gmra.mxu0 %vm263_vm1, %v260_v3  ;;  %p574_p6 = por %p573_p5, %p572_p4 }
  0x27   : > { %p575_p7 = pnand %p574_p6, %p568_p2 }
  0xe5   : > { %v304_v11 = vpop.f32.mrf.mxu0 }
  0xe6   : > { %v310_v12 = vmul.f32 0.25, %v304_v11 }
  0xe7   : > { %v485_v13 = vpop.f32.mrf.mxu0 }
  0xe8   : > { %v318_v14 = vsel %vm317_vm3, %v310_v12, -1e+09 }
  0xe9   : > { %v307_v15 = vpop.f32.mrf.mxu0  ;;  %v320_v16 = vsel %vm319_vm4, %v318_v14, -inf }
  0xea   : > { %321 = vmax.xlane.f32.xlu0 %v320_v16 }
  0xeb   : > { %v486_v17 = vpop.f32.mrf.mxu0 }
 0x173   : > { %v322_v18 = vpop.xlane.xlu0 %321 }
 0x174   : > { %v323_v19 = vsub.f32 %v318_v14, %v322_v18 }
 0x176   : > { %v324_v20 = vmul.f32 1.442695, %v323_v19 }
 0x178   : > { %561 = vpow2.f32 %v324_v20 }
 0x185   : > { %v562_v21 = vpop.eup %561 }
 0x186   : > { %v326_v22 = vsel %vm319_vm4, %v562_v21, 0.0 }
 0x187   : > { %327 = vadd.xlane.f32.xlu0 %v326_v22 }
 0x210   : > { %v328_v23 = vpop.xlane.xlu0 %327 }
 0x211   : > { %563 = vrcp.f32 %v328_v23 }
 0x21e   : > { %v564_v24 = vpop.eup %563 }
 0x21f   : > { %v330_v25 = vmul.f32 %v564_v24, %v562_v21 }
 0x221   : > { %v331_v26 = vpack.c.bf16 %v330_v25, %v330_v25 }
 0x223   : > { %333 = vst.msk [vmem:[%s236_s9] sm:$0xf] %vm332_vm5, %v331_v26 }
 0x224   : > { %578 = shalt.err (!%p575_p7)
}
 0x225   : > { %s579_s29 = scalar_lea.hbm %s349_s21, 64  ;;  %s583_s6 = scalar_lea.hbm %s816_s3, 256 }
 0x226   : > { %p580_p9 = scmp.ne.s32.totalorder %s349_s21, %s579_s29  ;;  %p584_p12 = scmp.lt.s32.totalorder %s349_s21, %s816_s3 }
 0x227   : > { %p585_p13 = scmp.lt.s32.totalorder %s583_s6, %s579_s29 }
 0x228   : > { %p581_p10 = pnand %p580_p9, %p734_p3 }
 0x229   : > { %p586_p0 = por %p585_p13, %p584_p12 }
 0x22a   : > { %p582_p11 = pneg %p581_p10 }
 0x22c   : > { %p587_p1 = pnand %p586_p0, %p582_p11 }
 0x22e   : > { %590 = shalt.err (!%p587_p1)
}
 0x22f   : > { %487 = dma.vmem_to_hbm [thread:$0]  (%p734_p3), %s352_s10, 64, %s349_s21, %s335_s24  }
 0x230 PF: > { %p493_p2 = scmp.ge.s32.totalorder %s657_s19, 2  ;;  %s363_s9 = sand.u32 1, %s629_s12  }
 0x231   : > { %s364_s11 = scalar_lea.sflag [#allocation3], %s363_s9 }
 0x232   : > { %p490_p4 = pnand %p493_p2, %p743_p8 }
 0x234   : > { %p491_p5 = pneg %p490_p4 }
 0x236   : > { %624 = dma.done.wait (%p491_p5), %s364_s11, 64  }
 0x237   : > { %626 = vsyncadd (%p491_p5), %s364_s11, 4294967232  ;;  %s16_s19 = sadd.s32 1, %s657_s19   ;;  %s819_s12 = smov %s633_s13 }
 0x238   : > { %p13_p6 = scmp.ge.s32.totalorder %s16_s19, 6   ;;  %s820_s13 = smov %s637_s14 }
 0x239   : > { %s821_s14 = smov %s752_s30  ;;  %s822_s15 = smov %s649_s17 }
 0x23a   : > { %s823_s16 = smov %s653_s18  ;;  %s824_s17 = smov %s827_s22 }
 0x23b   : > { %s825_s18 = smov %s831_s23  ;;  %15 = sbr.rel (!%p13_p6) target bundleno = 5 (0x5), region = 73 }
 0x240   :  { %369 = vsyncpa [#allocation3], 1 }
 0x241   :  { %371 = vsyncpa [#allocation3 + $0x1], 1 }

// kernel: mul.27
= control target key start
LH: loop header
LB: loop body
LE: loop exit
PB: predicated region body
PF: predicated region fallthrough
CT: control target
= control target key end

     0   :  { %3 = vsyncpa [#allocation1], 0  ;;  %s69_s0 = inlined_call_operand.vmem [shape: f32[2,8], index: 0, kind: input, shape index: {}]   ;;  %s70_s1 = inlined_call_operand.vmem [shape: f32[2,8], index: 1, kind: input, shape index: {}]   ;;  %s71_s2 = inlined_call_operand.hbm [shape: f32[2,8], index: 2, kind: output, shape index: {}]  }
   0x1   :  { %v4_v0 = vld [vmem:[%s69_s0] sm:$0x3] }
   0x2   :  { %v5_v1 = vld [vmem:[%s70_s1] sm:$0x3]  ;;  %s44_s1 = smov [#allocation0]  }
   0x3   :  { %v8_v2 = vmul.f32 %v5_v1, %v4_v0  ;;  %s15_s12 = sshll.u32 %s44_s1, 4  ;;  %s16_s12 = int_to_ptr.vmem [resolvable:$true] %s15_s12 }
   0x4   :  { %s22_s13 = scalar_lea.vmem %s16_s12, 32  ;;  %p27_p1 = scmp.lt.s32.totalorder %s16_s12, %s16_s12 }
   0x5   :  { %10 = vst [vmem:[#allocation0] sm:$0x3] %v8_v2  ;;  %p23_p0 = scmp.ne.s32.totalorder %s16_s12, %s22_s13  ;;  %p28_p2 = scmp.lt.s32.totalorder %s22_s13, %s22_s13 }
   0x7   :  { %p29_p3 = por %p28_p2, %p27_p1 }
   0x9   :  { %p30_p4 = pnand %p29_p3, %p23_p0 }
   0xb   :  { %33 = shalt.err (!%p30_p4)
}
   0xc   :  { %18 = dma.vmem_to_hbm [thread:$0]  %s16_s12, 32, %s71_s2, [#allocation1]  }
   0xd   :  { %42 = dma.done.wait [#allocation1], 32  }
   0xe   :  { %43 = vsyncadd [#allocation1], 4294967264 }
   0xf   :  { %20 = vsyncpa [#allocation1], 1 }

// kernel: _lambda_.26
= control target key start
LH: loop header
LB: loop body
LE: loop exit
PB: predicated region body
PF: predicated region fallthrough
CT: control target
= control target key end

     0   :  { %s1239_s24 = smov 0   ;;  %s1417_s0 = inlined_call_operand.vmem [shape: bf16[2,12,32], index: 0, kind: input, shape index: {}]   ;;  %s1418_s1 = inlined_call_operand.vmem [shape: bf16[3,32,128], index: 1, kind: input, shape index: {}]   ;;  %s1419_s2 = inlined_call_operand.vmem [shape: f32[1,128], index: 2, kind: input, shape index: {}]   ;;  %s1420_s3 = inlined_call_operand.vmem [shape: bf16[3,128,32], index: 3, kind: input, shape index: {}]   ;;  %s1421_s4 = inlined_call_operand.vmem [shape: f32[1,32], index: 4, kind: input, shape index: {}, may-alias: {4,6}]   ;;  %s1422_s5 = inlined_call_operand.vmem [shape: f32[1,32], index: 5, kind: input, shape index: {}]   ;;  %s1423_s6 = inlined_call_operand.vmem [shape: f32[1,32], index: 6, kind: input, shape index: {}, may-alias: {4,6}]   ;;  %s1424_s7 = inlined_call_operand.vmem [shape: bf16[2,8,32], index: 7, kind: output, shape index: {}]  }
   0x1 LB: > { %s934_s25 = sadd.s32 4294967295, %s1195_s24   ;;  %p938_p0 = scmp.ge.s32.totalorder %s1195_s24, 1  ;;  %s1195_s24 = sphi %s1239_s24, %s17_s24  }
   0x2   : > { %p237_p1 = scmp.lt.s32.totalorder %s1195_s24, 3 }
   0x4   : > { %p238_p2 = pnand %p938_p0, %p237_p1 }
   0x5   : > { %p268_p3 = scmp.lt.s32.totalorder (!%p238_p2), %s934_s25, 1 }
   0x6   : > { %241 = sbr.rel (%p238_p2) target bundleno = 793 (0x319), region = 48 }
   0xb   : > { %v1156_v0 = vld [vmem:[%s1418_s1 + $0x18] sm:$0xff]   ;;  %v1197_v1 = vmov 0.0   ;;  %v1157_v2 = vld [vmem:[%s1418_s1 + $0x10] sm:$0xff]   ;;  %vm1198_vm0 = vmmov 0   ;;  %s1426_s25 = smov (!%p268_p3, %s934_s25), 1  ;;  %vm313_vm1 = vcmask 261120   ;;  %v488_v38 = vlaneseq }
   0xc   : > { %1062 = vmatprep.subr.bf16.mxu0 %v1197_v1  ;;  %1086 = vmatprep.subr.bf16.mxu1 %v1197_v1  ;;  %s1025_s30 = sshll.u32 %s1426_s25, 3  ;;  %v1159_v9 = vld [vmem:[%s1418_s1 + $0x8] sm:$0xff]   ;;  %v1160_v11 = vld [vmem:[%s1418_s1] sm:$0xff]   ;;  %v1163_v15 = vld [vmem:[%s1420_s3 + $0x38] sm:$0xff]   ;;  %vm842_vm5 = vcmask 1045504   ;;  %s941_s12 = sshll.u32 %s1426_s25, 2 }
   0xd   : > { %1063 = vmatpush3.bf16.msra.mxu0 %v1156_v0  ;;  %1066 = vmatprep.mubr.msk.bf16.mxu0 %vm1198_vm0, %v1197_v1  ;;  %s272_s10 = scalar_lea.vmem %s1417_s0, %s1025_s30  ;;  %v1161_v12 = vld [vmem:[%s1418_s1 + $0x28] sm:$0xff]   ;;  %v1162_v13 = vld [vmem:[%s1418_s1 + $0x20] sm:$0xff]   ;;  %v1164_v16 = vld [vmem:[%s1420_s3 + $0x30] sm:$0xff]   ;;  %v489_v44 = vshrl.u32 %v488_v38, 7  ;;  %s276_s15 = scalar_lea.vmem %s1424_s7, %s941_s12  ;;  %vm879_vm6 = vcmask 257024  }
   0xe   : > { %1064 = vmatprep.subr.bf16.mxu0 %v1197_v1  ;;  %1102 = vmatprep.mubr.msk.bf16.mxu1 %vm1198_vm0, %v1197_v1  ;;  %v1267_v3 = vld [vmem:[%s272_s10] sm:$0xf]  ;;  %v1269_v4 = vld [vmem:[%s272_s10 + $0x4] sm:$0x3]  ;;  %v1165_v17 = vld [vmem:[%s1420_s3 + $0x78] sm:$0xff]  }
   0xf   : > { %v946_v5 = vcombine.low %v1267_v3, %v1269_v4  ;;  %1087 = vmatpush3.bf16.msra.mxu1 %v1165_v17  ;;  %v1166_v18 = vld [vmem:[%s1420_s3 + $0x28] sm:$0xff]   ;;  %v1167_v19 = vld [vmem:[%s1420_s3 + $0x70] sm:$0xff]   ;;  %v1168_v20 = vld [vmem:[%s1420_s3 + $0x20] sm:$0xff]   ;;  %v490_v48 = vadd.s32 8, %v489_v44  ;;  %vm491_vm3 = vcmp.ge.s32.totalorder %v489_v44, 1 }
  0x10   : > { %1088 = vmatprep.subr.bf16.mxu1 %v1197_v1  ;;  %v1169_v21 = vld [vmem:[%s1420_s3 + $0x68] sm:$0xff]   ;;  %v1170_v22 = vld [vmem:[%s1420_s3 + $0x18] sm:$0xff]   ;;  %v1171_v23 = vld [vmem:[%s1420_s3 + $0x60] sm:$0xff]  }
  0x11   : > { %1065 = vmatpush3.bf16.msra.mxu0 %v1157_v2  ;;  %v295_v6 = vshrl.u32 %v946_v5, 16  ;;  %v297_v7 = vshll.u32 %v946_v5, 16  ;;  %v418_v14 = vrot.slane %v946_v5, 1  ;;  %v1172_v24 = vld [vmem:[%s1420_s3 + $0x10] sm:$0xff]   ;;  %v1173_v25 = vld [vmem:[%s1420_s3 + $0x58] sm:$0xff]   ;;  %v1174_v26 = vld [vmem:[%s1420_s3 + $0x8] sm:$0xff]  }
  0x12   : > { %1070 = vmatprep.subr.bf16.mxu0 %v1197_v1  ;;  %v1175_v27 = vld [vmem:[%s1420_s3 + $0x50] sm:$0xff]   ;;  %v1176_v28 = vld [vmem:[%s1420_s3] sm:$0xff]   ;;  %v1177_v29 = vld [vmem:[%s1420_s3 + $0x48] sm:$0xff]   ;;  %vm494_vm2 = vcmp.lt.s32.totalorder %v490_v48, 9 }
  0x13   : > { %v299_v8 = vrot.slane %v297_v7, 1  ;;  %1089 = vmatpush3.bf16.msra.mxu1 %v1167_v19  ;;  %v1178_v30 = vld [vmem:[%s1420_s3 + $0x40] sm:$0xff]   ;;  %vm993_vm4 = vmpackc.low %vm494_vm2, %vm491_vm3  ;;  %v1179_v62 = vld [vmem:[%s1420_s3 + $0xb8] sm:$0xff]   ;;  %v838_v19 = vunpack.c.l.bf16 %v1267_v3 }
  0x14   : > { %1090 = vmatprep.subr.bf16.mxu1 %v1197_v1  ;;  %v960_v42 = vld [vmem:[%s1419_s2] ss:$0 sm:$0xff]  ;;  %v1180_v0 = vld [vmem:[%s1420_s3 + $0xb0] sm:$0xff]   ;;  %v1181_v2 = vld [vmem:[%s1420_s3 + $0xa8] sm:$0xff]  }
  0x15   : > { %v300_v10 = vor.u32 %v299_v8, %v295_v6  ;;  %v1183_v6 = vld [vmem:[%s1420_s3 + $0x98] sm:$0xff]   ;;  %v1184_v7 = vld [vmem:[%s1420_s3 + $0x90] sm:$0xff]   ;;  %v1185_v8 = vld [vmem:[%s1420_s3 + $0x88] sm:$0xff]  }
  0x17   : > { %1067 = vmatmul.mubr.msk.bf16.vlgmr.msra.gmra.mxu0 %vm313_vm1, %v300_v10  ;;  %1091 = vmatpush3.bf16.msra.mxu1 %v1169_v21  ;;  %v843_v21 = vrot.slane %v838_v19, 2 }
  0x18   : > { %1071 = vmatpush3.bf16.msra.mxu0 %v1159_v9  ;;  %1074 = vmatprep.mubr.msk.bf16.mxu0 %vm1198_vm0, %v1197_v1  ;;  %v1186_v9 = vld [vmem:[%s1420_s3 + $0x80] sm:$0xff]  }
  0x19   : > { %1072 = vmatprep.subr.bf16.mxu0 %v1197_v1  ;;  %1092 = vmatprep.subr.bf16.mxu1 %v1197_v1 }
  0x1b   : > { %1093 = vmatpush3.bf16.msra.mxu1 %v1171_v23 }
  0x1c   : > { %1073 = vmatpush3.bf16.msra.mxu0 %v1160_v11  ;;  %1094 = vmatprep.subr.bf16.mxu1 %v1197_v1 }
  0x1d   : > { %1078 = vmatprep.subr.bf16.mxu0 %v1197_v1 }
  0x1f   : > { %1075 = vmatmul.mubr.msk.bf16.vlgmr.msra.gmra.mxu0 %vm313_vm1, %v946_v5  ;;  %1095 = vmatpush3.bf16.msra.mxu1 %v1173_v25  ;;  %v1182_v5 = vld [vmem:[%s1420_s3 + $0xa0] sm:$0xff]  }
  0x20   : > { %1079 = vmatpush3.bf16.msra.mxu0 %v1161_v12  ;;  %1082 = vmatprep.mubr.msk.bf16.mxu0 %vm1198_vm0, %v1197_v1 }
  0x21   : > { %1080 = vmatprep.subr.bf16.mxu0 %v1197_v1  ;;  %1096 = vmatprep.subr.bf16.mxu1 %v1197_v1 }
  0x23   : > { %1097 = vmatpush3.bf16.msra.mxu1 %v1175_v27 }
  0x24   : > { %1081 = vmatpush3.bf16.msra.mxu0 %v1162_v13  ;;  %1098 = vmatprep.subr.bf16.mxu1 %v1197_v1 }
  0x25   : > { %1106 = vmatprep.subr.bf16.mxu0 %v1197_v1 }
  0x27   : > { %1083 = vmatmul.mubr.msk.bf16.vlgmr.msra.gmra.mxu0 %vm313_vm1, %v418_v14  ;;  %1099 = vmatpush3.bf16.msra.mxu1 %v1177_v29 }
  0x28   : > { %1107 = vmatpush3.bf16.msra.mxu0 %v1163_v15  ;;  %1122 = vmatprep.mubr.msk.bf16.mxu0 %vm1198_vm0, %v1197_v1 }
  0x29   : > { %1108 = vmatprep.subr.bf16.mxu0 %v1197_v1  ;;  %1100 = vmatprep.subr.bf16.mxu1 %v1197_v1 }
  0x2b   : > { %1101 = vmatpush3.bf16.msra.mxu1 %v1178_v30 }
  0x2c   : > { %1109 = vmatpush3.bf16.msra.mxu0 %v1164_v16  ;;  %1126 = vmatprep.subr.bf16.mxu1 %v1197_v1 }
  0x2d   : > { %1110 = vmatprep.subr.bf16.mxu0 %v1197_v1 }
  0x30   : > { %1111 = vmatpush3.bf16.msra.mxu0 %v1166_v18 }
  0x31   : > { %1112 = vmatprep.subr.bf16.mxu0 %v1197_v1 }
  0x34   : > { %1113 = vmatpush3.bf16.msra.mxu0 %v1168_v20  ;;  %v839_v20 = vunpack.c.l.bf16 %v1269_v4 }
  0x35   : > { %1114 = vmatprep.subr.bf16.mxu0 %v1197_v1 }
  0x38   : > { %1115 = vmatpush3.bf16.msra.mxu0 %v1170_v22  ;;  %v844_v22 = vrot.slane %v839_v20, 2 }
  0x39   : > { %1116 = vmatprep.subr.bf16.mxu0 %v1197_v1 }
  0x3a   : > { %v845_v27 = vsel %vm842_vm5, %v843_v21, %v844_v22 }
  0x3c   : > { %1117 = vmatpush3.bf16.msra.mxu0 %v1172_v24  ;;  %v1020_v24 = vld [vmem:[%s1421_s4] ss:$0 sm:$0xff] }
  0x3d   : > { %1118 = vmatprep.subr.bf16.mxu0 %v1197_v1 }
  0x40   : > { %1119 = vmatpush3.bf16.msra.mxu0 %v1174_v26 }
  0x41   : > { %1120 = vmatprep.subr.bf16.mxu0 %v1197_v1 }
  0x44   : > { %1121 = vmatpush3.bf16.msra.mxu0 %v1176_v28 }
  0xd7   : > { %v351_v31 = vpop.f32.mrf.mxu0 }
  0xd9   : > { %v1068_v32 = vpop.f32.mrf.mxu0 }
  0xdb   : > { %v354_v33 = vpop.f32.mrf.mxu0 }
  0xdd   : > { %v1069_v34 = vpop.f32.mrf.mxu0 }
  0xdf   : > { %v406_v35 = vpop.f32.mrf.mxu0 }
  0xe0   : > { %v407_v40 = vadd.f32 %v406_v35, %v351_v31 }
  0xe1   : > { %v1076_v36 = vpop.f32.mrf.mxu0 }
  0xe3   : > { %v409_v37 = vpop.f32.mrf.mxu0 }
  0xe4   : > { %v410_v46 = vadd.f32 %v409_v37, %v354_v33 }
  0xe5   : > { %v1077_v39 = vpop.f32.mrf.mxu0 }
  0xe7   : > { %v468_v41 = vpop.f32.mrf.mxu0 }
  0xe8   : > { %v475_v43 = vadd.f32 %v468_v41, %v407_v40  ;;  %v1021_v40 = vld [vmem:[%s1422_s5] ss:$0 sm:$0xff] }
  0xe9   : > { %v1084_v45 = vpop.f32.mrf.mxu0 }
  0xea   : > { %v484_v47 = vadd.f32 %v960_v42, %v475_v43 }
  0xeb   : > { %v471_v49 = vpop.f32.mrf.mxu0 }
  0xec   : > { %v476_v50 = vadd.f32 %v471_v49, %v410_v46  ;;  %v486_v52 = vmax.f32 %v484_v47, 0.0 }
  0xed   : > { %v1085_v51 = vpop.f32.mrf.mxu0 }
  0xee   : > { %v485_v53 = vadd.f32 %v960_v42, %v476_v50  ;;  %v501_v55 = vsel %vm491_vm3, %v486_v52, 0.0  ;;  %v1022_v42 = vld [vmem:[%s1423_s6] ss:$0 sm:$0xff] }
  0xf0   : > { %v487_v54 = vmax.f32 %v485_v53, 0.0 }
  0xf2   : > { %v502_v56 = vsel %vm494_vm2, %v487_v54, 0.0  ;;  %v994_v57 = vpack.c.bf16 %v487_v54, %v486_v52 }
  0xf3   : > { %v503_v58 = vpack.c.bf16 %v502_v56, %v501_v55 }
  0xf4   : > { %1123 = vmatmul.mubr.msk.bf16.vlgmr.msra.gmra.mxu0 %vm993_vm4, %v994_v57 }
  0xf5   : > { %v540_v59 = vshll.u32 %v503_v58, 16  ;;  %v538_v60 = vshrl.u32 %v503_v58, 16  ;;  %v739_v10 = vrot.slane %v503_v58, 1 }
  0xf7   : > { %v542_v61 = vrot.slane %v540_v59, 1 }
  0xf9   : > { %v543_v63 = vor.u32 %v542_v61, %v538_v60 }
  0xfb   : > { %1103 = vmatmul.mubr.bf16.vlgmr.msra.gmra.mxu1 %v543_v63 }
  0xfc   : > { %1127 = vmatpush3.bf16.msra.mxu1 %v1179_v62  ;;  %1142 = vmatprep.mubr.msk.bf16.mxu1 %vm1198_vm0, %v1197_v1 }
  0xfd   : > { %1128 = vmatprep.subr.bf16.mxu1 %v1197_v1 }
 0x100   : > { %1129 = vmatpush3.bf16.msra.mxu1 %v1180_v0 }
 0x101   : > { %1130 = vmatprep.subr.bf16.mxu1 %v1197_v1 }
 0x104   : > { %1131 = vmatpush3.bf16.msra.mxu1 %v1181_v2 }
 0x105   : > { %1132 = vmatprep.subr.bf16.mxu1 %v1197_v1 }
 0x108   : > { %1133 = vmatpush3.bf16.msra.mxu1 %v1182_v5 }
 0x109   : > { %1134 = vmatprep.subr.bf16.mxu1 %v1197_v1 }
 0x10c   : > { %1135 = vmatpush3.bf16.msra.mxu1 %v1183_v6 }
 0x10d   : > { %1136 = vmatprep.subr.bf16.mxu1 %v1197_v1 }
 0x110   : > { %1137 = vmatpush3.bf16.msra.mxu1 %v1184_v7 }
 0x111   : > { %1138 = vmatprep.subr.bf16.mxu1 %v1197_v1 }
 0x114   : > { %1139 = vmatpush3.bf16.msra.mxu1 %v1185_v8 }
 0x115   : > { %1140 = vmatprep.subr.bf16.mxu1 %v1197_v1 }
 0x118   : > { %1141 = vmatpush3.bf16.msra.mxu1 %v1186_v9 }
 0x11b   : > { %1143 = vmatmul.mubr.bf16.vlgmr.msra.gmra.mxu1 %v739_v10 }
 0x1b4   : > { %v715_v11 = vpop.f32.mrf.mxu0 }
 0x1b6   : > { %v1124_v12 = vpop.f32.mrf.mxu0 }
 0x1b8   : > { %v718_v13 = vpop.f32.mrf.mxu0 }
 0x1ba   : > { %v1125_v14 = vpop.f32.mrf.mxu0 }
 0x1bb   : > { %v627_v15 = vpop.f32.mrf.mxu1 }
 0x1bc   : > { %v716_v23 = vadd.f32 %v715_v11, %v627_v15 }
 0x1bd   : > { %v1104_v16 = vpop.f32.mrf.mxu1 }
 0x1bf   : > { %v630_v17 = vpop.f32.mrf.mxu1 }
 0x1c1   : > { %v1105_v18 = vpop.f32.mrf.mxu1 }
 0x1db   : > { %v823_v1 = vpop.f32.mrf.mxu1 }
 0x1dc   : > { %v829_v25 = vadd.f32 %v823_v1, %v716_v23 }
 0x1dd   : > { %v1144_v26 = vpop.f32.mrf.mxu1 }
 0x1de   : > { %v837_v28 = vadd.f32 %v1020_v24, %v829_v25 }
 0x1df   : > { %v826_v29 = vpop.f32.mrf.mxu1 }
 0x1e0   : > { %v847_v30 = vadd.f32 %v845_v27, %v837_v28 }
 0x1e1   : > { %v1145_v31 = vpop.f32.mrf.mxu1 }
 0x1e2   : > { %v850_v3 = vsel %vm313_vm1, %v847_v30, 0.0 }
 0x1e3   : > { %851 = vadd.xlane.f32.xlu0 %v850_v3 }
 0x26c   : > { %v852_v4 = vpop.xlane.xlu0 %851 }
 0x26d   : > { %v854_v32 = vmul.f32 0.03125, %v852_v4 }
 0x26f   : > { %v855_v33 = vsub.f32 %v847_v30, %v854_v32 }
 0x271   : > { %v856_v34 = vmul.f32 %v855_v33, %v855_v33 }
 0x273   : > { %v857_v35 = vsel %vm313_vm1, %v856_v34, 0.0 }
 0x274   : > { %858 = vadd.xlane.f32.xlu0 %v857_v35 }
 0x2fd   : > { %v859_v36 = vpop.xlane.xlu0 %858 }
 0x2fe   : > { %v860_v37 = vmul.f32 0.03125, %v859_v36 }
 0x300   : > { %v861_v38 = vadd.f32 1e-05, %v860_v37 }
 0x302   : > { %1187 = vrsqrt.f32 %v861_v38 }
 0x30f   : > { %v1188_v39 = vpop.eup %1187 }
 0x310   : > { %v863_v41 = vmul.f32 %v1188_v39, %v855_v33 }
 0x312   : > { %v870_v43 = vmul.f32 %v1021_v40, %v863_v41 }
 0x314   : > { %v877_v44 = vadd.f32 %v1022_v42, %v870_v43 }
 0x316   : > { %v878_v45 = vpack.c.bf16 %v877_v44, %v877_v44 }
 0x318   : > { %880 = vst.msk [vmem:[%s276_s15] sm:$0xf] %vm879_vm6, %v878_v45 }
 0x319 PF: > { %s17_s24 = sadd.s32 1, %s1195_s24  }
 0x31a   : > { %p14_p4 = scmp.ge.s32.totalorder %s17_s24, 4  }
 0x31c   :  { %16 = sbr.rel (!%p14_p4) target bundleno = 1 (0x1), region = 82 }

// kernel: _lambda_.35
= control target key start
LH: loop header
LB: loop body
LE: loop exit
PB: predicated region body
PF: predicated region fallthrough
CT: control target
= control target key end

     0   :  { %vm19_vm0 = vcmask 261120   ;;  %v172_v1 = vmov 0.0   ;;  %s234_s1 = inlined_call_operand.vmem [shape: bf16[32,32], index: 1, kind: input, shape index: {}]   ;;  %s235_s0 = inlined_call_operand.vmem [shape: bf16[32,32], index: 0, kind: input, shape index: {}]   ;;  %s236_s2 = inlined_call_operand.vmem [shape: f32[1,32], index: 2, kind: input, shape index: {}]   ;;  %s237_s3 = inlined_call_operand.vmem [shape: f32[32,32], index: 3, kind: output, shape index: {}]  }
   0x1   :  { %v168_v0 = vld [vmem:[%s234_s1 + $0x8] sm:$0xff]   ;;  %22 = vst.msk [vmem:[#allocation2 + $0x10] sm:$0xff] %vm19_vm0, %v172_v1  ;;  %20 = vst.msk [vmem:[#allocation2] sm:$0xff] %vm19_vm0, %v172_v1  ;;  %v169_v2 = vld [vmem:[%s234_s1] sm:$0xff]  }
   0x2   :  { %21 = vst.msk [vmem:[#allocation2 + $0x8] sm:$0xff] %vm19_vm0, %v172_v1  ;;  %23 = vst.msk [vmem:[#allocation2 + $0x18] sm:$0xff] %vm19_vm0, %v172_v1  ;;  %159 = vmatprep.subr.bf16.mxu0 %v168_v0  ;;  %v170_v3 = vld [vmem:[%s235_s0] sm:$0xff]   ;;  %v171_v4 = vld [vmem:[%s235_s0 + $0x8] sm:$0xff]  }
   0x3   :  { %160 = vmatpush3.bf16.msra.mxu0 %v168_v0  ;;  %163 = vmatprep.mubr.msk.bf16.mxu0 %vm19_vm0, %v170_v3  ;;  %v154_v17 = vld [vmem:[%s236_s2] ss:$0 sm:$0xff] }
   0x4   :  { %161 = vmatprep.subr.bf16.mxu0 %v169_v2 }
   0x7   :  { %162 = vmatpush3.bf16.msra.mxu0 %v169_v2 }
   0x8   :  { %v26_v5 = vld [vmem:[#allocation2 + $0x10] sm:$0xff]  ;;  %v24_v7 = vld [vmem:[#allocation2] sm:$0xff] }
   0x9   :  { %v27_v10 = vld [vmem:[#allocation2 + $0x18] sm:$0xff]  ;;  %v25_v13 = vld [vmem:[#allocation2 + $0x8] sm:$0xff] }
   0xa   :  { %164 = vmatmul.mubr.msk.bf16.vlgmr.msra.gmra.mxu0 %vm19_vm0, %v171_v4 }
  0xca   :  { %v165_v6 = vpop.f32.mrf.mxu0 }
  0xcb   :  { %v116_v8 = vadd.f32 %v165_v6, %v26_v5 }
  0xcc   :  { %v99_v9 = vpop.f32.mrf.mxu0 }
  0xcd   :  { %120 = vst.msk [vmem:[#allocation2 + $0x10] sm:$0xff] %vm19_vm0, %v116_v8  ;;  %v114_v11 = vadd.f32 %v99_v9, %v24_v7 }
  0xce   :  { %v166_v12 = vpop.f32.mrf.mxu0 }
  0xcf   :  { %118 = vst.msk [vmem:[#allocation2] sm:$0xff] %vm19_vm0, %v114_v11  ;;  %v117_v14 = vadd.f32 %v166_v12, %v27_v10 }
  0xd0   :  { %v102_v15 = vpop.f32.mrf.mxu0 }
  0xd1   :  { %121 = vst.msk [vmem:[#allocation2 + $0x18] sm:$0xff] %vm19_vm0, %v117_v14  ;;  %v115_v16 = vadd.f32 %v102_v15, %v25_v13 }
  0xd3   :  { %119 = vst.msk [vmem:[#allocation2 + $0x8] sm:$0xff] %vm19_vm0, %v115_v16 }
  0xd4   :  { %v127_v18 = vld [vmem:[#allocation2 + $0x10] sm:$0xff] }
  0xd5   :  { %v138_v19 = vadd.f32 %v154_v17, %v127_v18 }
  0xd6   :  { %v125_v20 = vld [vmem:[#allocation2] sm:$0xff] }
  0xd7   :  { %142 = vst.msk [vmem:[%s237_s3 + $0x10] sm:$0xff] %vm19_vm0, %v138_v19  ;;  %v136_v21 = vadd.f32 %v154_v17, %v125_v20 }
  0xd8   :  { %v128_v22 = vld [vmem:[#allocation2 + $0x18] sm:$0xff] }
  0xd9   :  { %140 = vst.msk [vmem:[%s237_s3] sm:$0xff] %vm19_vm0, %v136_v21  ;;  %v139_v23 = vadd.f32 %v154_v17, %v128_v22 }
  0xda   :  { %v126_v24 = vld [vmem:[#allocation2 + $0x8] sm:$0xff] }
  0xdb   :  { %143 = vst.msk [vmem:[%s237_s3 + $0x18] sm:$0xff] %vm19_vm0, %v139_v23  ;;  %v137_v25 = vadd.f32 %v154_v17, %v126_v24 }
  0xdd   :  { %141 = vst.msk [vmem:[%s237_s3 + $0x8] sm:$0xff] %vm19_vm0, %v137_v25 }

// kernel: _lambda_.36
= control target key start
LH: loop header
LB: loop body
LE: loop exit
PB: predicated region body
PF: predicated region fallthrough
CT: control target
= control target key end

     0   :  { %vm19_vm0 = vcmask 785408   ;;  %v198_v1 = vmov 0.0   ;;  %vm58_vm1 = vcmask 261120   ;;  %vm157_vm2 = vcmask 781312   ;;  %s254_s1 = inlined_call_operand.vmem [shape: bf16[32,96], index: 1, kind: input, shape index: {}]   ;;  %s255_s0 = inlined_call_operand.vmem [shape: bf16[32,32], index: 0, kind: input, shape index: {}]   ;;  %s256_s2 = inlined_call_operand.vmem [shape: f32[1,96], index: 2, kind: input, shape index: {}]   ;;  %s257_s3 = inlined_call_operand.vmem [shape: bf16[32,96], index: 3, kind: output, shape index: {}]  }
   0x1   :  { %v194_v0 = vld [vmem:[%s254_s1 + $0x8] sm:$0xff]   ;;  %22 = vst.msk [vmem:[#allocation2 + $0x10] sm:$0xff] %vm19_vm0, %v198_v1  ;;  %20 = vst.msk [vmem:[#allocation2] sm:$0xff] %vm19_vm0, %v198_v1  ;;  %v195_v2 = vld [vmem:[%s254_s1] sm:$0xff]  }
   0x2   :  { %21 = vst.msk [vmem:[#allocation2 + $0x8] sm:$0xff] %vm19_vm0, %v198_v1  ;;  %23 = vst.msk [vmem:[#allocation2 + $0x18] sm:$0xff] %vm19_vm0, %v198_v1  ;;  %185 = vmatprep.subr.bf16.mxu0 %v194_v0  ;;  %v196_v3 = vld [vmem:[%s255_s0] sm:$0xff]   ;;  %v197_v4 = vld [vmem:[%s255_s0 + $0x8] sm:$0xff]  }
   0x3   :  { %186 = vmatpush3.bf16.msra.mxu0 %v194_v0  ;;  %189 = vmatprep.mubr.msk.bf16.mxu0 %vm58_vm1, %v196_v3  ;;  %v172_v17 = vld [vmem:[%s256_s2] ss:$0 sm:$0xff] }
   0x4   :  { %187 = vmatprep.subr.bf16.mxu0 %v195_v2 }
   0x7   :  { %188 = vmatpush3.bf16.msra.mxu0 %v195_v2 }
   0x8   :  { %v26_v5 = vld [vmem:[#allocation2 + $0x10] sm:$0xff]  ;;  %v24_v7 = vld [vmem:[#allocation2] sm:$0xff] }
   0x9   :  { %v27_v10 = vld [vmem:[#allocation2 + $0x18] sm:$0xff]  ;;  %v25_v13 = vld [vmem:[#allocation2 + $0x8] sm:$0xff] }
   0xa   :  { %190 = vmatmul.mubr.msk.bf16.vlgmr.msra.gmra.mxu0 %vm58_vm1, %v197_v4 }
  0xca   :  { %v191_v6 = vpop.f32.mrf.mxu0 }
  0xcb   :  { %v116_v8 = vadd.f32 %v191_v6, %v26_v5 }
  0xcc   :  { %v99_v9 = vpop.f32.mrf.mxu0 }
  0xcd   :  { %121 = vst.msk [vmem:[#allocation2 + $0x10] sm:$0xff] %vm19_vm0, %v116_v8  ;;  %v114_v11 = vadd.f32 %v99_v9, %v24_v7 }
  0xce   :  { %v192_v12 = vpop.f32.mrf.mxu0 }
  0xcf   :  { %119 = vst.msk [vmem:[#allocation2] sm:$0xff] %vm19_vm0, %v114_v11  ;;  %v117_v14 = vadd.f32 %v192_v12, %v27_v10 }
  0xd0   :  { %v102_v15 = vpop.f32.mrf.mxu0 }
  0xd1   :  { %122 = vst.msk [vmem:[#allocation2 + $0x18] sm:$0xff] %vm19_vm0, %v117_v14  ;;  %v115_v16 = vadd.f32 %v102_v15, %v25_v13 }
  0xd3   :  { %120 = vst.msk [vmem:[#allocation2 + $0x8] sm:$0xff] %vm19_vm0, %v115_v16 }
  0xd4   :  { %v128_v18 = vld [vmem:[#allocation2 + $0x10] sm:$0xff] }
  0xd5   :  { %v139_v19 = vadd.f32 %v172_v17, %v128_v18 }
  0xd6   :  { %v126_v20 = vld [vmem:[#allocation2] sm:$0xff] }
  0xd7   :  { %v179_v21 = vpack.c.bf16 %v139_v19, %v139_v19  ;;  %v137_v22 = vadd.f32 %v172_v17, %v126_v20 }
  0xd8   :  { %v129_v23 = vld [vmem:[#allocation2 + $0x18] sm:$0xff] }
  0xd9   :  { %160 = vst.msk [vmem:[%s257_s3 + $0x8] sm:$0xf] %vm157_vm2, %v179_v21  ;;  %v177_v24 = vpack.c.bf16 %v137_v22, %v137_v22  ;;  %v140_v25 = vadd.f32 %v172_v17, %v129_v23 }
  0xda   :  { %v127_v26 = vld [vmem:[#allocation2 + $0x8] sm:$0xff] }
  0xdb   :  { %158 = vst.msk [vmem:[%s257_s3] sm:$0xf] %vm157_vm2, %v177_v24  ;;  %v180_v27 = vpack.c.bf16 %v140_v25, %v140_v25  ;;  %v138_v28 = vadd.f32 %v172_v17, %v127_v26 }
  0xdd   :  { %161 = vst.msk [vmem:[%s257_s3 + $0xc] sm:$0xf] %vm157_vm2, %v180_v27  ;;  %v178_v29 = vpack.c.bf16 %v138_v28, %v138_v28 }
  0xdf   :  { %159 = vst.msk [vmem:[%s257_s3 + $0x4] sm:$0xf] %vm157_vm2, %v178_v29 }

// kernel: _lambda_.32
= control target key start
LH: loop header
LB: loop body
LE: loop exit
PB: predicated region body
PF: predicated region fallthrough
CT: control target
= control target key end

     0   :  { %s1239_s17 = smov 0   ;;  %s1365_s0 = inlined_call_operand.vmem [shape: bf16[2,12,32], index: 0, kind: input, shape index: {}]   ;;  %s1366_s1 = inlined_call_operand.vmem [shape: bf16[3,32,32], index: 1, kind: input, shape index: {}]   ;;  %s1367_s2 = inlined_call_operand.vmem [shape: f32[1,32], index: 2, kind: input, shape index: {}, may-alias: {2,4,6,8}]   ;;  %s1368_s3 = inlined_call_operand.vmem [shape: f32[1,32], index: 3, kind: input, shape index: {}, may-alias: {3,7}]   ;;  %s1369_s4 = inlined_call_operand.vmem [shape: f32[1,32], index: 4, kind: input, shape index: {}, may-alias: {2,4,6,8}]   ;;  %s1370_s5 = inlined_call_operand.vmem [shape: bf16[3,32,32], index: 5, kind: input, shape index: {}]   ;;  %s1371_s6 = inlined_call_operand.vmem [shape: f32[1,32], index: 6, kind: input, shape index: {}, may-alias: {2,4,6,8}]   ;;  %s1372_s7 = inlined_call_operand.vmem [shape: f32[1,32], index: 7, kind: input, shape index: {}, may-alias: {3,7}]   ;;  %s1373_s8 = inlined_call_operand.vmem [shape: f32[1,32], index: 8, kind: input, shape index: {}, may-alias: {2,4,6,8}]   ;;  %s1374_s9 = inlined_call_operand.vmem [shape: bf16[32,128], index: 9, kind: input, shape index: {}]   ;;  %s1375_s10 = inlined_call_operand.vmem [shape: f32[1,128], index: 10, kind: input, shape index: {}]   ;;  %s1376_s11 = inlined_call_operand.vmem [shape: f32[2,8,128], index: 11, kind: output, shape index: {}]  }
   0x1 LB: > { %s1005_s18 = sadd.s32 4294967295, %s1175_s17   ;;  %p1009_p0 = scmp.ge.s32.totalorder %s1175_s17, 1  ;;  %s1175_s17 = sphi %s1239_s17, %s21_s17  }
   0x2   : > { %p337_p1 = scmp.lt.s32.totalorder %s1175_s17, 3 }
   0x4   : > { %p338_p2 = pnand %p1009_p0, %p337_p1 }
   0x5   : > { %p376_p3 = scmp.lt.s32.totalorder (!%p338_p2), %s1005_s18, 1 }
   0x6   : > { %341 = sbr.rel (%p338_p2) target bundleno = 1265 (0x4f1), region = 64 }
   0xb   : > { %v1148_v0 = vld [vmem:[%s1366_s1 + $0x18] sm:$0xff]   ;;  %v1177_v1 = vmov 0.0   ;;  %v1149_v2 = vld [vmem:[%s1366_s1 + $0x8] sm:$0xff]   ;;  %v1150_v3 = vld [vmem:[%s1366_s1 + $0x10] sm:$0xff]   ;;  %vm1178_vm0 = vmmov 0   ;;  %s1378_s18 = smov (!%p376_p3, %s1005_s18), 1  ;;  %v642_v56 = vlaneseq }
   0xc   : > { %1082 = vmatprep.subr.bf16.mxu0 %v1177_v1  ;;  %1090 = vmatprep.subr.bf16.mxu1 %v1177_v1  ;;  %v1151_v4 = vld [vmem:[%s1366_s1] sm:$0xff]   ;;  %s1060_s27 = sshll.u32 %s1378_s18, 3  ;;  %vm421_vm1 = vcmask 261120   ;;  %v1153_v9 = vld [vmem:[%s1366_s1 + $0x28] sm:$0xff]   ;;  %vm601_vm2 = vcmask 254976   ;;  %v1157_v47 = vld [vmem:[%s1370_s5 + $0x18] sm:$0xff]  }
   0xd   : > { %1083 = vmatpush3.bf16.msra.mxu0 %v1148_v0  ;;  %1086 = vmatprep.mubr.msk.bf16.mxu0 %vm1178_vm0, %v1177_v1  ;;  %s380_s30 = scalar_lea.vmem %s1365_s0, %s1060_s27  ;;  %v1154_v11 = vld [vmem:[%s1366_s1 + $0x20] sm:$0xff]   ;;  %v1155_v46 = vld [vmem:[%s1370_s5 + $0x8] sm:$0xff]   ;;  %v1158_v49 = vld [vmem:[%s1370_s5 + $0x10] sm:$0xff]   ;;  %v643_v60 = vshrl.u32 %v642_v56, 7  ;;  %s384_s16 = scalar_lea.vmem %s1376_s11, %s1060_s27 }
   0xe   : > { %1091 = vmatpush3.bf16.msra.mxu1 %v1149_v2  ;;  %1084 = vmatprep.subr.bf16.mxu0 %v1177_v1  ;;  %v1152_v5 = vld [vmem:[%s380_s30] sm:$0x3f]  }
   0xf   : > { %1092 = vmatprep.subr.bf16.mxu1 %v1177_v1  ;;  %1094 = vmatprep.mubr.msk.bf16.mxu1 %vm1178_vm0, %v1177_v1  ;;  %v403_v6 = vshrl.u32 %v1152_v5, 16  ;;  %v405_v7 = vshll.u32 %v1152_v5, 16  ;;  %v526_v12 = vrot.slane %v1152_v5, 1  ;;  %v1031_v23 = vld [vmem:[%s1367_s2] ss:$0 sm:$0xff]  ;;  %v644_v0 = vadd.s32 8, %v643_v60 }
  0x10   : > { %v1156_v48 = vld [vmem:[%s1370_s5] sm:$0xff]   ;;  %vm645_vm3 = vcmp.ge.s32.totalorder %v643_v60, 1 }
  0x11   : > { %1085 = vmatpush3.bf16.msra.mxu0 %v1150_v3  ;;  %v407_v8 = vrot.slane %v405_v7, 1  ;;  %v1032_v58 = vld [vmem:[%s1368_s3] ss:$0 sm:$0xff]  ;;  %vm648_vm4 = vcmp.lt.s32.totalorder %v644_v0, 9 }
  0x12   : > { %1093 = vmatpush3.bf16.msra.mxu1 %v1151_v4  ;;  %1098 = vmatprep.subr.bf16.mxu0 %v1177_v1  ;;  %v1033_v63 = vld [vmem:[%s1369_s4] ss:$0 sm:$0xff] }
  0x13   : > { %1106 = vmatprep.subr.bf16.mxu1 %v1177_v1  ;;  %v408_v10 = vor.u32 %v407_v8, %v403_v6 }
  0x15   : > { %1095 = vmatmul.mubr.msk.bf16.vlgmr.msra.gmra.mxu1 %vm421_vm1, %v1152_v5  ;;  %1087 = vmatmul.mubr.msk.bf16.vlgmr.msra.gmra.mxu0 %vm421_vm1, %v408_v10 }
  0x16   : > { %1110 = vmatprep.mubr.msk.bf16.mxu1 %vm1178_vm0, %v1177_v1  ;;  %1099 = vmatpush3.bf16.msra.mxu0 %v1153_v9 }
  0x17   : > { %1102 = vmatprep.mubr.msk.bf16.mxu0 %vm1178_vm0, %v1177_v1  ;;  %1100 = vmatprep.subr.bf16.mxu0 %v1177_v1 }
  0x18   : > { %1107 = vmatpush3.bf16.msra.mxu1 %v1157_v47  ;;  %v1053_v47 = vld [vmem:[%s1373_s8] ss:$0 sm:$0xff] }
  0x19   : > { %1108 = vmatprep.subr.bf16.mxu1 %v1177_v1 }
  0x1a   : > { %1101 = vmatpush3.bf16.msra.mxu0 %v1154_v11 }
  0x1b   : > { %1114 = vmatprep.subr.bf16.mxu0 %v1177_v1 }
  0x1c   : > { %1109 = vmatpush3.bf16.msra.mxu1 %v1158_v49 }
  0x1d   : > { %1103 = vmatmul.mubr.msk.bf16.vlgmr.msra.gmra.mxu0 %vm421_vm1, %v526_v12  ;;  %1122 = vmatprep.subr.bf16.mxu1 %v1177_v1  ;;  %v1159_v12 = vld [vmem:[%s1370_s5 + $0x28] sm:$0xff]  }
  0x1e   : > { %1118 = vmatprep.mubr.msk.bf16.mxu0 %vm1178_vm0, %v1177_v1  ;;  %1115 = vmatpush3.bf16.msra.mxu0 %v1155_v46 }
  0x1f   : > { %1116 = vmatprep.subr.bf16.mxu0 %v1177_v1 }
  0x22   : > { %1117 = vmatpush3.bf16.msra.mxu0 %v1156_v48 }
  0x23   : > { %1130 = vmatprep.subr.bf16.mxu0 %v1177_v1 }
  0xd5   : > { %v514_v13 = vpop.f32.mrf.mxu1  ;;  %v459_v16 = vpop.f32.mrf.mxu0 }
  0xd6   : > { %v515_v21 = vadd.f32 %v514_v13, %v459_v16 }
  0xd7   : > { %v1096_v14 = vpop.f32.mrf.mxu1  ;;  %v1088_v18 = vpop.f32.mrf.mxu0 }
  0xd8   : > { %v1160_v14 = vld [vmem:[%s1370_s5 + $0x20] sm:$0xff]  }
  0xd9   : > { %v517_v15 = vpop.f32.mrf.mxu1  ;;  %v462_v19 = vpop.f32.mrf.mxu0 }
  0xda   : > { %v518_v26 = vadd.f32 %v517_v15, %v462_v19 }
  0xdb   : > { %v1097_v17 = vpop.f32.mrf.mxu1  ;;  %v1089_v20 = vpop.f32.mrf.mxu0 }
  0xdd   : > { %v576_v22 = vpop.f32.mrf.mxu0 }
  0xde   : > { %v583_v24 = vadd.f32 %v576_v22, %v515_v21 }
  0xdf   : > { %v1104_v25 = vpop.f32.mrf.mxu0 }
  0xe0   : > { %v592_v27 = vadd.f32 %v1031_v23, %v583_v24 }
  0xe1   : > { %v579_v28 = vpop.f32.mrf.mxu0 }
  0xe2   : > { %v584_v29 = vadd.f32 %v579_v28, %v518_v26  ;;  %v594_v30 = vmax.f32 %v592_v27, 0.0  ;;  %v1051_v26 = vld [vmem:[%s1371_s6] ss:$0 sm:$0xff] }
  0xe3   : > { %v1105_v31 = vpop.f32.mrf.mxu0 }
  0xe4   : > { %v593_v32 = vadd.f32 %v1031_v23, %v584_v29  ;;  %v598_v33 = vsel %vm421_vm1, %v594_v30, 0.0 }
  0xe5   : > { %599 = vadd.xlane.f32.xlu0 %v598_v33 }
  0xe6   : > { %v595_v34 = vmax.f32 %v593_v32, 0.0 }
  0xe8   : > { %v602_v35 = vsel %vm601_vm2, %v595_v34, 0.0 }
  0xe9   : > { %603 = vadd.xlane.f32.xlu0 %v602_v35 }
 0x16e   : > { %v600_v36 = vpop.xlane.xlu0 %599 }
 0x16f   : > { %v606_v37 = vmul.f32 0.03125, %v600_v36 }
 0x171   : > { %v608_v38 = vsub.f32 %v594_v30, %v606_v37 }
 0x172   : > { %v604_v39 = vpop.xlane.xlu0 %603 }
 0x173   : > { %v607_v40 = vmul.f32 0.03125, %v604_v39  ;;  %v610_v41 = vmul.f32 %v608_v38, %v608_v38  ;;  %v1161_v39 = vld [vmem:[%s1374_s9 + $0x8] sm:$0xff]  }
 0x175   : > { %v609_v42 = vsub.f32 %v595_v34, %v607_v40  ;;  %v612_v43 = vsel %vm421_vm1, %v610_v41, 0.0  ;;  %v1162_v40 = vld [vmem:[%s1374_s9] sm:$0xff]  }
 0x176   : > { %613 = vadd.xlane.f32.xlu1 %v612_v43 }
 0x177   : > { %v611_v44 = vmul.f32 %v609_v42, %v609_v42 }
 0x179   : > { %v615_v45 = vsel %vm601_vm2, %v611_v44, 0.0 }
 0x17a   : > { %616 = vadd.xlane.f32.xlu1 %v615_v45  ;;  %v1052_v45 = vld [vmem:[%s1372_s7] ss:$0 sm:$0xff] }
 0x1ff   : > { %v614_v50 = vpop.xlane.xlu1 %613 }
 0x200   : > { %v618_v51 = vmul.f32 0.03125, %v614_v50 }
 0x202   : > { %v620_v52 = vadd.f32 1e-05, %v618_v51 }
 0x203   : > { %v617_v53 = vpop.xlane.xlu1 %616 }
 0x204   : > { %1163 = vrsqrt.f32 %v620_v52  ;;  %v619_v54 = vmul.f32 0.03125, %v617_v53 }
 0x206   : > { %v621_v55 = vadd.f32 1e-05, %v619_v54 }
 0x208   : > { %1165 = vrsqrt.f32 %v621_v55 }
 0x211   : > { %v1164_v57 = vpop.eup %1163 }
 0x212   : > { %v624_v59 = vmul.f32 %v1164_v57, %v608_v38 }
 0x214   : > { %v632_v61 = vmul.f32 %v1032_v58, %v624_v59 }
 0x215   : > { %v1166_v62 = vpop.eup %1165 }
 0x216   : > { %v625_v2 = vmul.f32 %v1166_v62, %v609_v42  ;;  %v640_v4 = vadd.f32 %v1033_v63, %v632_v61 }
 0x218   : > { %v633_v3 = vmul.f32 %v1032_v58, %v625_v2  ;;  %v655_v6 = vsel %vm645_vm3, %v640_v4, 0.0 }
 0x21a   : > { %v641_v5 = vadd.f32 %v1033_v63, %v633_v3 }
 0x21c   : > { %v656_v7 = vsel %vm648_vm4, %v641_v5, 0.0 }
 0x21d   : > { %v657_v8 = vpack.c.bf16 %v656_v7, %v655_v6 }
 0x21f   : > { %1119 = vmatmul.mubr.msk.bf16.vlgmr.msra.gmra.mxu0 %vm421_vm1, %v657_v8  ;;  %v670_v9 = vshll.u32 %v657_v8, 16  ;;  %v668_v10 = vshrl.u32 %v657_v8, 16  ;;  %v789_v15 = vrot.slane %v657_v8, 1 }
 0x220   : > { %1134 = vmatprep.mubr.msk.bf16.mxu0 %vm1178_vm0, %v1177_v1  ;;  %1131 = vmatpush3.bf16.msra.mxu0 %v1161_v39 }
 0x221   : > { %v672_v11 = vrot.slane %v670_v9, 1  ;;  %1132 = vmatprep.subr.bf16.mxu0 %v1177_v1 }
 0x223   : > { %v673_v13 = vor.u32 %v672_v11, %v668_v10 }
 0x224   : > { %1133 = vmatpush3.bf16.msra.mxu0 %v1162_v40 }
 0x225   : > { %1111 = vmatmul.mubr.msk.bf16.vlgmr.msra.gmra.mxu1 %vm421_vm1, %v673_v13 }
 0x226   : > { %1123 = vmatpush3.bf16.msra.mxu1 %v1159_v12  ;;  %1126 = vmatprep.mubr.msk.bf16.mxu1 %vm1178_vm0, %v1177_v1 }
 0x227   : > { %1124 = vmatprep.subr.bf16.mxu1 %v1177_v1  ;;  %v1054_v1 = vld [vmem:[%s1375_s10] ss:$0 sm:$0xff] }
 0x22a   : > { %1125 = vmatpush3.bf16.msra.mxu1 %v1160_v14 }
 0x22d   : > { %1127 = vmatmul.mubr.msk.bf16.vlgmr.msra.gmra.mxu1 %vm421_vm1, %v789_v15 }
 0x2df   : > { %v777_v16 = vpop.f32.mrf.mxu0 }
 0x2e1   : > { %v1120_v17 = vpop.f32.mrf.mxu0 }
 0x2e3   : > { %v780_v18 = vpop.f32.mrf.mxu0 }
 0x2e5   : > { %v723_v19 = vpop.f32.mrf.mxu1  ;;  %v1121_v20 = vpop.f32.mrf.mxu0 }
 0x2e6   : > { %v778_v24 = vadd.f32 %v777_v16, %v723_v19 }
 0x2e7   : > { %v1112_v21 = vpop.f32.mrf.mxu1 }
 0x2e9   : > { %v726_v22 = vpop.f32.mrf.mxu1 }
 0x2eb   : > { %v1113_v23 = vpop.f32.mrf.mxu1 }
 0x2ed   : > { %v839_v25 = vpop.f32.mrf.mxu1 }
 0x2ee   : > { %v845_v27 = vadd.f32 %v839_v25, %v778_v24 }
 0x2ef   : > { %v1128_v28 = vpop.f32.mrf.mxu1 }
 0x2f0   : > { %v853_v29 = vadd.f32 %v1051_v26, %v845_v27 }
 0x2f1   : > { %v842_v30 = vpop.f32.mrf.mxu1 }
 0x2f2   : > { %v854_v31 = vmax.f32 %v853_v29, 0.0 }
 0x2f3   : > { %v1129_v32 = vpop.f32.mrf.mxu1 }
 0x2f4   : > { %v857_v33 = vsel %vm421_vm1, %v854_v31, 0.0 }
 0x2f5   : > { %858 = vadd.xlane.f32.xlu0 %v857_v33 }
 0x37e   : > { %v859_v34 = vpop.xlane.xlu0 %858 }
 0x37f   : > { %v860_v35 = vmul.f32 0.03125, %v859_v34 }
 0x381   : > { %v861_v36 = vsub.f32 %v854_v31, %v860_v35 }
 0x383   : > { %v862_v37 = vmul.f32 %v861_v36, %v861_v36 }
 0x385   : > { %v863_v38 = vsel %vm421_vm1, %v862_v37, 0.0 }
 0x386   : > { %864 = vadd.xlane.f32.xlu1 %v863_v38 }
 0x40f   : > { %v865_v41 = vpop.xlane.xlu1 %864 }
 0x410   : > { %v866_v42 = vmul.f32 0.03125, %v865_v41 }
 0x412   : > { %v867_v43 = vadd.f32 1e-05, %v866_v42 }
 0x414   : > { %1167 = vrsqrt.f32 %v867_v43 }
 0x421   : > { %v1168_v44 = vpop.eup %1167 }
 0x422   : > { %v869_v46 = vmul.f32 %v1168_v44, %v861_v36 }
 0x424   : > { %v876_v48 = vmul.f32 %v1052_v45, %v869_v46 }
 0x426   : > { %v883_v49 = vadd.f32 %v1053_v47, %v876_v48 }
 0x428   : > { %v884_v50 = vpack.c.bf16 %v883_v49, %v883_v49 }
 0x42a   : > { %1135 = vmatmul.mubr.msk.bf16.vlgmr.msra.gmra.mxu0 %vm421_vm1, %v884_v50 }
 0x4ea   : > { %v945_v51 = vpop.f32.mrf.mxu0 }
 0x4eb   : > { %v946_v52 = vadd.f32 %v1054_v1, %v945_v51 }
 0x4ec   : > { %v1136_v53 = vpop.f32.mrf.mxu0 }
 0x4ed   : > { %951 = vst [vmem:[%s384_s16] sm:$0xff] %v946_v52 }
 0x4ee   : > { %v948_v54 = vpop.f32.mrf.mxu0 }
 0x4f0   : > { %v1137_v55 = vpop.f32.mrf.mxu0 }
 0x4f1 PF: > { %s21_s17 = sadd.s32 1, %s1175_s17  }
 0x4f2   : > { %p18_p4 = scmp.ge.s32.totalorder %s21_s17, 4  }
 0x4f4   :  { %20 = sbr.rel (!%p18_p4) target bundleno = 1 (0x1), region = 98 }

// kernel: _lambda_.34
= control target key start
LH: loop header
LB: loop body
LE: loop exit
PB: predicated region body
PF: predicated region fallthrough
CT: control target
= control target key end

     0   :  { %s1358_s17 = smov 0   ;;  %s1482_s0 = inlined_call_operand.vmem [shape: bf16[2,20,32], index: 0, kind: input, shape index: {}]   ;;  %s1483_s1 = inlined_call_operand.vmem [shape: bf16[3,32,32], index: 1, kind: input, shape index: {}]   ;;  %s1484_s2 = inlined_call_operand.vmem [shape: f32[1,32], index: 2, kind: input, shape index: {}, may-alias: {2,4,6,8}]   ;;  %s1485_s3 = inlined_call_operand.vmem [shape: f32[1,32], index: 3, kind: input, shape index: {}, may-alias: {3,7}]   ;;  %s1486_s4 = inlined_call_operand.vmem [shape: f32[1,32], index: 4, kind: input, shape index: {}, may-alias: {2,4,6,8}]   ;;  %s1487_s5 = inlined_call_operand.vmem [shape: bf16[3,32,32], index: 5, kind: input, shape index: {}]   ;;  %s1488_s6 = inlined_call_operand.vmem [shape: f32[1,32], index: 6, kind: input, shape index: {}, may-alias: {2,4,6,8}]   ;;  %s1489_s7 = inlined_call_operand.vmem [shape: f32[1,32], index: 7, kind: input, shape index: {}, may-alias: {3,7}]   ;;  %s1490_s8 = inlined_call_operand.vmem [shape: f32[1,32], index: 8, kind: input, shape index: {}, may-alias: {2,4,6,8}]   ;;  %s1491_s9 = inlined_call_operand.vmem [shape: bf16[32,128], index: 9, kind: input, shape index: {}]   ;;  %s1492_s10 = inlined_call_operand.vmem [shape: f32[1,128], index: 10, kind: input, shape index: {}]   ;;  %s1493_s11 = inlined_call_operand.vmem [shape: f32[2,16,128], index: 11, kind: output, shape index: {}]  }
   0x1 LB: > { %s1111_s18 = sadd.s32 4294967295, %s1294_s17   ;;  %p1115_p0 = scmp.ge.s32.totalorder %s1294_s17, 1  ;;  %s1294_s17 = sphi %s1358_s17, %s21_s17  }
   0x2   : > { %p337_p1 = scmp.lt.s32.totalorder %s1294_s17, 3 }
   0x4   : > { %p338_p2 = pnand %p1115_p0, %p337_p1 }
   0x5   : > { %p377_p3 = scmp.lt.s32.totalorder (!%p338_p2), %s1111_s18, 1 }
   0x6   : > { %341 = sbr.rel (%p338_p2) target bundleno = 1276 (0x4fc), region = 64 }
   0xb   : > { %v1262_v0 = vld [vmem:[%s1483_s1 + $0x18] sm:$0xff]   ;;  %v1263_v1 = vld [vmem:[%s1483_s1 + $0x8] sm:$0xff]   ;;  %v1264_v2 = vld [vmem:[%s1483_s1 + $0x10] sm:$0xff]   ;;  %s1495_s18 = smov (!%p377_p3, %s1111_s18), 1  ;;  %vm436_vm0 = vcmask 261120   ;;  %vm560_vm1 = vcmask 1046528  }
   0xc   : > { %1195 = vmatprep.subr.bf16.mxu0 %v1262_v0  ;;  %1203 = vmatprep.subr.bf16.mxu1 %v1263_v1  ;;  %v1265_v3 = vld [vmem:[%s1483_s1] sm:$0xff]   ;;  %s1251_s27 = smul.u32 12, %s1495_s18  ;;  %v1268_v4 = vld [vmem:[%s1483_s1 + $0x28] sm:$0xff]   ;;  %vm408_vm2 = vsmask.f32 7424  ;;  %vm654_vm3 = vcmask 254976  }
   0xd   : > { %1196 = vmatpush3.bf16.msra.mxu0 %v1262_v0  ;;  %1204 = vmatpush3.bf16.msra.mxu1 %v1263_v1  ;;  %v1269_v18 = vld [vmem:[%s1483_s1 + $0x20] sm:$0xff]   ;;  %v1270_v63 = vld [vmem:[%s1487_s5 + $0x8] sm:$0xff]   ;;  %v1296_v0 = vmov 0.0   ;;  %v1272_v1 = vld [vmem:[%s1487_s5 + $0x18] sm:$0xff]   ;;  %vm1297_vm4 = vmmov 0   ;;  %s1170_s29 = sshll.u32 %s1495_s18, 4 }
   0xe   : > { %1197 = vmatprep.subr.bf16.mxu0 %v1264_v2  ;;  %1205 = vmatprep.subr.bf16.mxu1 %v1265_v3  ;;  %s381_s13 = scalar_lea.vmem %s1482_s0, %s1251_s27  ;;  %v1141_v29 = vld [vmem:[%s1484_s2] ss:$0 sm:$0xff]  ;;  %s386_s15 = scalar_lea.vmem %s1493_s11, %s1170_s29 }
   0xf   : > { %v1266_v5 = vld [vmem:[%s381_s13] sm:$0xff]   ;;  %v1267_v6 = vld [vmem:[%s381_s13 + $0x8] ss:$0 sps:$4 sm:$0x33]  }
  0x10   : > { %v410_v7 = vshrl.u32 %v1266_v5, 16  ;;  %v412_v8 = vshll.u32 %v1266_v5, 16  ;;  %v417_v9 = vshll.u32 %v1267_v6, 16  ;;  %v421_v10 = vshrl.u32 %v1267_v6, 16  ;;  %1207 = vmatprep.mubr.msk.bf16.mxu1 %vm436_vm0, %v1266_v5 }
  0x11   : > { %1198 = vmatpush3.bf16.msra.mxu0 %v1264_v2  ;;  %1206 = vmatpush3.bf16.msra.mxu1 %v1265_v3  ;;  %v561_v11 = vrot.slane %v1266_v5, 1  ;;  %v562_v12 = vrot.slane %v1267_v6, 1  ;;  %v1271_v2 = vld [vmem:[%s1487_s5] sm:$0xff]   ;;  %v1273_v3 = vld [vmem:[%s1487_s5 + $0x10] sm:$0xff]  }
  0x12   : > { %1211 = vmatprep.subr.bf16.mxu0 %v1268_v4  ;;  %v414_v13 = vrot.slane %v412_v8, 1  ;;  %v419_v14 = vrot.slane %v417_v9, 1  ;;  %1219 = vmatprep.subr.bf16.mxu1 %v1296_v0 }
  0x13   : > { %v563_v19 = vsel %vm560_vm1, %v561_v11, %v562_v12 }
  0x14   : > { %1208 = vmatmul.mubr.msk.bf16.vlgmr.msra.gmra.mxu1 %vm436_vm0, %v1267_v6  ;;  %v415_v15 = vor.u32 %v414_v13, %v410_v7  ;;  %v423_v16 = vor.u32 %v421_v10, %v419_v14  ;;  %v707_v13 = vlaneseq }
  0x15   : > { %1220 = vmatpush3.bf16.msra.mxu1 %v1272_v1  ;;  %1223 = vmatprep.mubr.msk.bf16.mxu1 %vm1297_vm4, %v1296_v0 }
  0x16   : > { %v420_v17 = vsel %vm408_vm2, %v415_v15, %v419_v14  ;;  %1221 = vmatprep.subr.bf16.mxu1 %v1296_v0  ;;  %v1142_v15 = vld [vmem:[%s1485_s3] ss:$0 sm:$0xff] }
  0x17   : > { %1199 = vmatprep.mubr.msk.bf16.mxu0 %vm436_vm0, %v420_v17  ;;  %v708_v17 = vshrl.u32 %v707_v13, 7 }
  0x18   : > { %1200 = vmatmul.mubr.msk.bf16.vlgmr.msra.gmra.mxu0 %vm436_vm0, %v423_v16 }
  0x19   : > { %1212 = vmatpush3.bf16.msra.mxu0 %v1268_v4  ;;  %1215 = vmatprep.mubr.msk.bf16.mxu0 %vm436_vm0, %v563_v19  ;;  %vm711_vm5 = vcmp.ge.s32.totalorder %v708_v17, 1 }
  0x1a   : > { %1213 = vmatprep.subr.bf16.mxu0 %v1269_v18  ;;  %1222 = vmatpush3.bf16.msra.mxu1 %v1273_v3 }
  0x1b   : > { %1235 = vmatprep.subr.bf16.mxu1 %v1296_v0 }
  0x1d   : > { %1214 = vmatpush3.bf16.msra.mxu0 %v1269_v18 }
  0x1e   : > { %1227 = vmatprep.subr.bf16.mxu0 %v1296_v0 }
  0x20   : > { %1216 = vmatmul.mubr.msk.bf16.vlgmr.msra.gmra.mxu0 %vm436_vm0, %v562_v12 }
  0x21   : > { %1228 = vmatpush3.bf16.msra.mxu0 %v1270_v63  ;;  %1231 = vmatprep.mubr.msk.bf16.mxu0 %vm1297_vm4, %v1296_v0 }
  0x22   : > { %1229 = vmatprep.subr.bf16.mxu0 %v1296_v0 }
  0x25   : > { %1230 = vmatpush3.bf16.msra.mxu0 %v1271_v2 }
  0x26   : > { %1243 = vmatprep.subr.bf16.mxu0 %v1296_v0 }
  0xd4   : > { %v1209_v20 = vpop.f32.mrf.mxu1 }
  0xd6   : > { %v541_v21 = vpop.f32.mrf.mxu1 }
  0xd8   : > { %v1210_v22 = vpop.f32.mrf.mxu1  ;;  %v1201_v23 = vpop.f32.mrf.mxu0 }
  0xd9   : > { %v550_v27 = vadd.f32 %v1209_v20, %v1201_v23  ;;  %v1143_v20 = vld [vmem:[%s1486_s4] ss:$0 sm:$0xff] }
  0xda   : > { %v477_v24 = vpop.f32.mrf.mxu0  ;;  %v544_v32 = vpop.f32.mrf.mxu1 }
  0xdb   : > { %v542_v30 = vadd.f32 %v541_v21, %v477_v24  ;;  %v710_v21 = vadd.s32 16, %v708_v17  ;;  %v1277_v17 = vld [vmem:[%s1491_s9] sm:$0xff]  }
  0xdc   : > { %v1202_v25 = vpop.f32.mrf.mxu0 }
  0xdd   : > { %vm716_vm6 = vcmp.lt.s32.totalorder %v710_v21, 17 }
  0xde   : > { %v480_v26 = vpop.f32.mrf.mxu0 }
  0xdf   : > { %v545_v37 = vadd.f32 %v544_v32, %v480_v26 }
  0xe0   : > { %v1217_v28 = vpop.f32.mrf.mxu0 }
  0xe1   : > { %v632_v31 = vadd.f32 %v1217_v28, %v550_v27 }
  0xe2   : > { %v616_v33 = vpop.f32.mrf.mxu0 }
  0xe3   : > { %v630_v34 = vadd.f32 %v616_v33, %v542_v30  ;;  %v642_v35 = vadd.f32 %v1141_v29, %v632_v31 }
  0xe4   : > { %v1218_v36 = vpop.f32.mrf.mxu0 }
  0xe5   : > { %v645_v38 = vmax.f32 %v642_v35, 0.0  ;;  %v640_v39 = vadd.f32 %v1141_v29, %v630_v34 }
  0xe6   : > { %v619_v40 = vpop.f32.mrf.mxu0 }
  0xe7   : > { %v631_v41 = vadd.f32 %v619_v40, %v545_v37  ;;  %v655_v42 = vsel %vm654_vm3, %v645_v38, 0.0  ;;  %v643_v43 = vmax.f32 %v640_v39, 0.0  ;;  %v1274_v40 = vld [vmem:[%s1487_s5 + $0x28] sm:$0xff]  }
  0xe8   : > { %656 = vadd.xlane.f32.xlu1 %v655_v42  ;;  %v1275_v42 = vld [vmem:[%s1487_s5 + $0x20] sm:$0xff]  }
  0xe9   : > { %v641_v44 = vadd.f32 %v1141_v29, %v631_v41  ;;  %v648_v45 = vsel %vm436_vm0, %v643_v43, 0.0 }
  0xea   : > { %649 = vadd.xlane.f32.xlu0 %v648_v45 }
  0xeb   : > { %v644_v46 = vmax.f32 %v641_v44, 0.0 }
  0xed   : > { %v651_v47 = vsel %vm436_vm0, %v644_v46, 0.0 }
  0xee   : > { %652 = vadd.xlane.f32.xlu0 %v651_v47 }
 0x171   : > { %v657_v48 = vpop.xlane.xlu1 %656 }
 0x172   : > { %v661_v49 = vmul.f32 0.03125, %v657_v48 }
 0x173   : > { %v650_v50 = vpop.xlane.xlu0 %649 }
 0x174   : > { %v659_v51 = vmul.f32 0.03125, %v650_v50  ;;  %v664_v52 = vsub.f32 %v645_v38, %v661_v49 }
 0x176   : > { %v662_v53 = vsub.f32 %v643_v43, %v659_v51  ;;  %v667_v59 = vmul.f32 %v664_v52, %v664_v52 }
 0x177   : > { %v653_v54 = vpop.xlane.xlu0 %652 }
 0x178   : > { %v660_v55 = vmul.f32 0.03125, %v653_v54  ;;  %v665_v56 = vmul.f32 %v662_v53, %v662_v53  ;;  %v674_v61 = vsel %vm654_vm3, %v667_v59, 0.0 }
 0x17a   : > { %v663_v57 = vsub.f32 %v644_v46, %v660_v55  ;;  %v668_v58 = vsel %vm436_vm0, %v665_v56, 0.0  ;;  %v1161_v56 = vld [vmem:[%s1488_s6] ss:$0 sm:$0xff] }
 0x17b   : > { %669 = vadd.xlane.f32.xlu1 %v668_v58 }
 0x17c   : > { %v666_v60 = vmul.f32 %v663_v57, %v663_v57 }
 0x17e   : > { %v671_v62 = vsel %vm436_vm0, %v666_v60, 0.0 }
 0x17f   : > { %675 = vadd.xlane.f32.xlu1 %v674_v61  ;;  %672 = vadd.xlane.f32.xlu0 %v671_v62 }
 0x204   : > { %v670_v4 = vpop.xlane.xlu1 %669 }
 0x205   : > { %v677_v5 = vmul.f32 0.03125, %v670_v4 }
 0x207   : > { %v680_v6 = vadd.f32 1e-05, %v677_v5 }
 0x208   : > { %v676_v7 = vpop.xlane.xlu1 %675  ;;  %v673_v8 = vpop.xlane.xlu0 %672 }
 0x209   : > { %1278 = vrsqrt.f32 %v680_v6  ;;  %v679_v9 = vmul.f32 0.03125, %v676_v7  ;;  %v678_v10 = vmul.f32 0.03125, %v673_v8 }
 0x20b   : > { %v682_v11 = vadd.f32 1e-05, %v679_v9  ;;  %v681_v12 = vadd.f32 1e-05, %v678_v10 }
 0x20d   : > { %1280 = vrsqrt.f32 %v682_v11 }
 0x20e   : > { %1282 = vrsqrt.f32 %v681_v12 }
 0x216   : > { %v1279_v14 = vpop.eup %1278 }
 0x217   : > { %v686_v16 = vmul.f32 %v1279_v14, %v662_v53 }
 0x219   : > { %v695_v18 = vmul.f32 %v1142_v15, %v686_v16  ;;  %v1276_v16 = vld [vmem:[%s1491_s9 + $0x8] sm:$0xff]  }
 0x21a   : > { %v1281_v19 = vpop.eup %1280 }
 0x21b   : > { %v1283_v22 = vpop.eup %1282  ;;  %v688_v23 = vmul.f32 %v1281_v19, %v664_v52  ;;  %v704_v25 = vadd.f32 %v1143_v20, %v695_v18 }
 0x21c   : > { %v687_v24 = vmul.f32 %v1283_v22, %v663_v57 }
 0x21d   : > { %v697_v26 = vmul.f32 %v1142_v15, %v688_v23  ;;  %v726_v30 = vsel %vm711_vm5, %v704_v25, 0.0 }
 0x21e   : > { %v696_v27 = vmul.f32 %v1142_v15, %v687_v24 }
 0x21f   : > { %v706_v28 = vadd.f32 %v1143_v20, %v697_v26  ;;  %v1162_v26 = vld [vmem:[%s1489_s7] ss:$0 sm:$0xff] }
 0x220   : > { %v705_v29 = vadd.f32 %v1143_v20, %v696_v27 }
 0x221   : > { %v728_v31 = vsel %vm716_vm6, %v706_v28, 0.0 }
 0x222   : > { %v729_v32 = vpack.c.bf16 %v705_v29, %v726_v30  ;;  %v730_v33 = vpack.c.bf16 %v728_v31, %v728_v31 }
 0x224   : > { %1232 = vmatmul.mubr.msk.bf16.vlgmr.msra.gmra.mxu0 %vm436_vm0, %v729_v32  ;;  %v743_v34 = vshll.u32 %v729_v32, 16  ;;  %v748_v35 = vshll.u32 %v730_v33, 16  ;;  %v741_v36 = vshrl.u32 %v729_v32, 16  ;;  %v870_v43 = vrot.slane %v729_v32, 1 }
 0x225   : > { %1247 = vmatprep.mubr.msk.bf16.mxu0 %vm1297_vm4, %v1296_v0  ;;  %v871_v44 = vrot.slane %v730_v33, 1  ;;  %1244 = vmatpush3.bf16.msra.mxu0 %v1276_v16 }
 0x226   : > { %v745_v37 = vrot.slane %v743_v34, 1  ;;  %v750_v38 = vrot.slane %v748_v35, 1  ;;  %1245 = vmatprep.subr.bf16.mxu0 %v1296_v0  ;;  %v1164_v34 = vld [vmem:[%s1492_s10] ss:$0 sm:$0xff] }
 0x227   : > { %v872_v45 = vsel %vm560_vm1, %v870_v43, %v871_v44 }
 0x228   : > { %v746_v39 = vor.u32 %v745_v37, %v741_v36 }
 0x229   : > { %1246 = vmatpush3.bf16.msra.mxu0 %v1277_v17 }
 0x22a   : > { %v751_v41 = vsel %vm408_vm2, %v746_v39, %v750_v38 }
 0x22b   : > { %1224 = vmatmul.mubr.msk.bf16.vlgmr.msra.gmra.mxu1 %vm436_vm0, %v751_v41 }
 0x22c   : > { %1236 = vmatpush3.bf16.msra.mxu1 %v1274_v40  ;;  %1239 = vmatprep.mubr.msk.bf16.mxu1 %vm1297_vm4, %v1296_v0 }
 0x22d   : > { %1237 = vmatprep.subr.bf16.mxu1 %v1296_v0  ;;  %v1163_v0 = vld [vmem:[%s1490_s8] ss:$0 sm:$0xff] }
 0x230   : > { %1238 = vmatpush3.bf16.msra.mxu1 %v1275_v42 }
 0x233   : > { %1240 = vmatmul.mubr.msk.bf16.vlgmr.msra.gmra.mxu1 %vm436_vm0, %v872_v45 }
 0x2e4   : > { %v856_v46 = vpop.f32.mrf.mxu0 }
 0x2e6   : > { %v1233_v47 = vpop.f32.mrf.mxu0 }
 0x2e8   : > { %v859_v48 = vpop.f32.mrf.mxu0 }
 0x2ea   : > { %v1234_v49 = vpop.f32.mrf.mxu0 }
 0x2eb   : > { %v801_v50 = vpop.f32.mrf.mxu1 }
 0x2ec   : > { %v857_v54 = vadd.f32 %v856_v46, %v801_v50 }
 0x2ed   : > { %v1225_v51 = vpop.f32.mrf.mxu1 }
 0x2ef   : > { %v804_v52 = vpop.f32.mrf.mxu1 }
 0x2f0   : > { %v860_v59 = vadd.f32 %v859_v48, %v804_v52 }
 0x2f1   : > { %v1226_v53 = vpop.f32.mrf.mxu1 }
 0x2f3   : > { %v922_v55 = vpop.f32.mrf.mxu1 }
 0x2f4   : > { %v929_v57 = vadd.f32 %v922_v55, %v857_v54 }
 0x2f5   : > { %v1241_v58 = vpop.f32.mrf.mxu1 }
 0x2f6   : > { %v938_v60 = vadd.f32 %v1161_v56, %v929_v57 }
 0x2f7   : > { %v925_v61 = vpop.f32.mrf.mxu1 }
 0x2f8   : > { %v930_v62 = vadd.f32 %v925_v61, %v860_v59  ;;  %v940_v63 = vmax.f32 %v938_v60, 0.0 }
 0x2f9   : > { %v1242_v1 = vpop.f32.mrf.mxu1 }
 0x2fa   : > { %v939_v2 = vadd.f32 %v1161_v56, %v930_v62  ;;  %v944_v3 = vsel %vm436_vm0, %v940_v63, 0.0 }
 0x2fb   : > { %945 = vadd.xlane.f32.xlu0 %v944_v3 }
 0x2fc   : > { %v941_v4 = vmax.f32 %v939_v2, 0.0 }
 0x2fe   : > { %v947_v5 = vsel %vm436_vm0, %v941_v4, 0.0 }
 0x2ff   : > { %948 = vadd.xlane.f32.xlu1 %v947_v5 }
 0x384   : > { %v946_v6 = vpop.xlane.xlu0 %945 }
 0x385   : > { %v950_v7 = vmul.f32 0.03125, %v946_v6 }
 0x387   : > { %v952_v8 = vsub.f32 %v940_v63, %v950_v7 }
 0x388   : > { %v949_v9 = vpop.xlane.xlu1 %948 }
 0x389   : > { %v951_v10 = vmul.f32 0.03125, %v949_v9  ;;  %v954_v11 = vmul.f32 %v952_v8, %v952_v8 }
 0x38b   : > { %v953_v12 = vsub.f32 %v941_v4, %v951_v10  ;;  %v956_v13 = vsel %vm436_vm0, %v954_v11, 0.0 }
 0x38c   : > { %957 = vadd.xlane.f32.xlu0 %v956_v13 }
 0x38d   : > { %v955_v14 = vmul.f32 %v953_v12, %v953_v12 }
 0x38f   : > { %v959_v15 = vsel %vm436_vm0, %v955_v14, 0.0 }
 0x390   : > { %960 = vadd.xlane.f32.xlu1 %v959_v15 }
 0x415   : > { %v958_v18 = vpop.xlane.xlu0 %957 }
 0x416   : > { %v962_v19 = vmul.f32 0.03125, %v958_v18 }
 0x418   : > { %v964_v20 = vadd.f32 1e-05, %v962_v19 }
 0x419   : > { %v961_v21 = vpop.xlane.xlu1 %960 }
 0x41a   : > { %1284 = vrsqrt.f32 %v964_v20  ;;  %v963_v22 = vmul.f32 0.03125, %v961_v21 }
 0x41c   : > { %v965_v23 = vadd.f32 1e-05, %v963_v22 }
 0x41e   : > { %1286 = vrsqrt.f32 %v965_v23 }
 0x427   : > { %v1285_v24 = vpop.eup %1284 }
 0x428   : > { %v968_v25 = vmul.f32 %v1285_v24, %v952_v8 }
 0x42a   : > { %v976_v29 = vmul.f32 %v1162_v26, %v968_v25 }
 0x42b   : > { %v1287_v27 = vpop.eup %1286 }
 0x42c   : > { %v969_v28 = vmul.f32 %v1287_v27, %v953_v12  ;;  %v984_v31 = vadd.f32 %v1163_v0, %v976_v29 }
 0x42e   : > { %v977_v30 = vmul.f32 %v1162_v26, %v969_v28 }
 0x430   : > { %v985_v32 = vadd.f32 %v1163_v0, %v977_v30 }
 0x432   : > { %v986_v33 = vpack.c.bf16 %v985_v32, %v984_v31 }
 0x434   : > { %1248 = vmatmul.mubr.msk.bf16.vlgmr.msra.gmra.mxu0 %vm436_vm0, %v986_v33 }
 0x4f4   : > { %v1047_v35 = vpop.f32.mrf.mxu0 }
 0x4f5   : > { %v1048_v36 = vadd.f32 %v1164_v34, %v1047_v35 }
 0x4f6   : > { %v1249_v37 = vpop.f32.mrf.mxu0 }
 0x4f7   : > { %1054 = vst [vmem:[%s386_s15] sm:$0xff] %v1048_v36 }
 0x4f8   : > { %v1050_v38 = vpop.f32.mrf.mxu0 }
 0x4f9   : > { %v1051_v39 = vadd.f32 %v1164_v34, %v1050_v38 }
 0x4fa   : > { %v1250_v40 = vpop.f32.mrf.mxu0 }
 0x4fb   : > { %1055 = vst [vmem:[%s386_s15 + $0x8] sm:$0xff] %v1051_v39 }
 0x4fc PF: > { %s21_s17 = sadd.s32 1, %s1294_s17  }
 0x4fd   : > { %p18_p4 = scmp.ge.s32.totalorder %s21_s17, 4  }
 0x4ff   :  { %20 = sbr.rel (!%p18_p4) target bundleno = 1 (0x1), region = 98 }

// kernel: _lambda_.37
= control target key start
LH: loop header
LB: loop body
LE: loop exit
PB: predicated region body
PF: predicated region fallthrough
CT: control target
= control target key end

     0   :  { %s991_s15 = smov 0   ;;  %s993_s16 = smov 0   ;;  %s1076_s0 = inlined_call_operand.vmem [shape: bf16[2,2,16,16], index: 0, kind: input, shape index: {}]   ;;  %s1077_s1 = inlined_call_operand.vmem [shape: bf16[2,2,16,16], index: 1, kind: input, shape index: {}]   ;;  %s1078_s2 = inlined_call_operand.vmem [shape: bf16[2,2,16,16], index: 2, kind: input, shape index: {}]   ;;  %s1079_s3 = inlined_call_operand.vmem [shape: f32[2,1,1,16], index: 3, kind: input, shape index: {}]   ;;  %s1080_s4 = inlined_call_operand.vmem [shape: bf16[2,2,16,16], index: 4, kind: output, shape index: {}]  }
   0x1   :  { %s995_s17 = smov 0   ;;  %s997_s18 = smov 0  }
   0x2   :  { %s999_s19 = smov 0  }
   0x3 LB: > { %s36_s20 = sadd.s32 1, %s952_s17  ;;  %s40_s21 = sadd.s32 1, %s956_s18  ;;  %s960_s19 = sphi %s999_s19, %s14_s19   ;;  %s956_s18 = sphi %s997_s18, %s1084_s18   ;;  %s952_s17 = sphi %s995_s17, %s1083_s17   ;;  %s948_s16 = sphi %s993_s16, %s1082_s16   ;;  %s944_s15 = sphi %s991_s15, %s1081_s15  }
   0x4   : > { %p38_p0 = scmp.ge.s32.totalorder %s36_s20, 2  ;;  %p821_p1 = scmp.ge.s32.totalorder %s960_s19, 1 }
   0x5   : > { %p264_p2 = scmp.lt.s32.totalorder %s960_s19, 5 }
   0x6   : > { %s1086_s20 = smov (%p38_p0, %s36_s20), 0  ;;  %s1088_s21 = smov (!%p38_p0, %s40_s21), %s956_s18 }
   0x7   : > { %p265_p3 = pnand %p821_p1, %p264_p2  ;;  %p42_p4 = scmp.ge.s32.totalorder %s1088_s21, 2 }
   0x8   : > { %p339_p5 = scmp.lt.s32.totalorder (!%p265_p3), %s948_s16, 1  ;;  %p341_p6 = scmp.lt.s32.totalorder (!%p265_p3), %s944_s15, 1 }
   0x9   : > { %s1090_s21 = smov (%p42_p4, %s1088_s21), 0  ;;  %268 = sbr.rel (%p265_p3) target bundleno = 803 (0x323), region = 36 }
   0xe   : > { %vm410_vm0 = vcmask 130048   ;;  %v962_v0 = vmov 0.0   ;;  %vm963_vm1 = vmmov 0   ;;  %s1092_s16 = smov (!%p339_p5, %s948_s16), 1  ;;  %s1094_s15 = smov (!%p341_p6, %s944_s15), 1  ;;  %v964_v4 = vmov 0  }
   0xf   : > { %849 = vmatprep.subr.bf16.mxu0 %v962_v0  ;;  %411 = vst.msk [vmem:[#allocation4] sm:$0xff] %vm410_vm0, %v962_v0  ;;  %412 = vst.msk [vmem:[#allocation4 + $0x8] sm:$0xff] %vm410_vm0, %v962_v0  ;;  %851 = vmatprep.mubr.msk.bf16.mxu0 %vm963_vm1, %v962_v0  ;;  %s823_s22 = sshll.u32 %s1092_s16, 2  ;;  %s822_s23 = sshll.u32 %s1094_s15, 1  ;;  %vm405_vm2 = vcmask 7168   ;;  %v482_v6 = vlaneseq  ;;  %vm636_vm5 = vcmask 125952  }
  0x10   : > { %855 = vmatprep.subr.bf16.mxu1 %v962_v0  ;;  %857 = vmatprep.mubr.msk.bf16.mxu1 %vm963_vm1, %v962_v0  ;;  %s348_s24 = sadd.s32 %s823_s22, %s822_s23  ;;  %v965_v5 = vmov -1e+30   ;;  %408 = vst.msk [vmem:[#allocation3] sm:$0xff] %vm405_vm2, %v962_v0  ;;  %409 = vst.msk [vmem:[#allocation3 + $0x8] sm:$0xff] %vm405_vm2, %v962_v0  ;;  %s385_s8 = scalar_lea.vmem %s1079_s3, %s1092_s16 }
  0x11   : > { %s1023_s25 = sshll.u32 %s348_s24, 2  ;;  %905 = vset.pattern.permute.xlu1 %v964_v4  ;;  %906 = vset.pattern.permute.xlu0 %v964_v4  ;;  %406 = vst.msk [vmem:[#allocation2] sm:$0xff] %vm405_vm2, %v965_v5  ;;  %407 = vst.msk [vmem:[#allocation2 + $0x8] sm:$0xff] %vm405_vm2, %v965_v5  ;;  %v419_v7 = vld [vmem:[%s385_s8] sm:$0x1]  ;;  %v483_v8 = vshrl.u32 %v482_v6, 7 }
  0x12   : > { %s364_s28 = scalar_lea.vmem %s1077_s1, %s1023_s25  ;;  %s350_s5 = scalar_lea.vmem %s1076_s0, %s1023_s25  ;;  %vm480_vm3 = vcmp.gt.f32.partialorder %v419_v7, 0.5 }
  0x13   : > { %v907_v1 = vld [vmem:[%s364_s28] sm:$0xff]   ;;  %v484_v9 = vsub.s32 0, %v483_v8  ;;  %v481_v10 = vsel %vm480_vm3, 1, %v964_v4  ;;  %s378_s11 = scalar_lea.vmem %s1078_s2, %s1023_s25  ;;  %s398_s14 = scalar_lea.vmem %s1080_s4, %s1023_s25 }
  0x14   : > { %v435_v2 = vsel %vm410_vm0, %v907_v1, 0  ;;  %v908_v3 = vld [vmem:[%s350_s5] sm:$0xff]  }
  0x15   : > { %850 = vmatpush3.bf16.xpose.msra.mxu0 %v435_v2  ;;  %v485_v11 = vrot.slane %v481_v10, %v484_v9  ;;  %v909_v30 = vld [vmem:[%s378_s11] sm:$0xff]  }
  0x16   : > { %856 = vmatpush3.bf16.msra.mxu1 %v909_v30  ;;  %v536_v58 = vld [vmem:[#allocation4] sm:$0xff]  ;;  %v537_v61 = vld [vmem:[#allocation4 + $0x8] sm:$0xff] }
  0x17   : > { %vm486_vm4 = vcmp.eq.s32.totalorder %v485_v11, 1  ;;  %v521_v46 = vld [vmem:[#allocation3] sm:$0xff]  ;;  %v522_v49 = vld [vmem:[#allocation3 + $0x8] sm:$0xff] }
  0x18   : > { %v489_v22 = vld [vmem:[#allocation2] sm:$0xff]  ;;  %v490_v25 = vld [vmem:[#allocation2 + $0x8] sm:$0xff] }
  0x1c   : > { %852 = vmatmul.mubr.msk.bf16.vlgmr.msra.gmra.mxu0 %vm410_vm0, %v908_v3 }
  0xdc   : > { %v471_v12 = vpop.f32.mrf.mxu0 }
  0xdd   : > { %v478_v13 = vmul.f32 0.25, %v471_v12 }
  0xde   : > { %v853_v14 = vpop.f32.mrf.mxu0 }
  0xdf   : > { %v487_v15 = vsel %vm486_vm4, %v478_v13, -1e+09 }
  0xe0   : > { %v474_v16 = vpop.f32.mrf.mxu0  ;;  %v491_v17 = vsel %vm410_vm0, %v487_v15, -inf }
  0xe1   : > { %v479_v18 = vmul.f32 0.25, %v474_v16  ;;  %492 = vmax.xlane.f32.xlu0 %v491_v17 }
  0xe2   : > { %v854_v19 = vpop.f32.mrf.mxu0 }
  0xe3   : > { %v488_v20 = vsel %vm486_vm4, %v479_v18, -1e+09 }
  0xe4   : > { %v494_v21 = vsel %vm410_vm0, %v488_v20, -inf }
  0xe5   : > { %495 = vmax.xlane.f32.xlu0 %v494_v21 }
 0x16a   : > { %v493_v23 = vpop.xlane.xlu0 %492 }
 0x16b   : > { %v497_v24 = vmax.f32 %v489_v22, %v493_v23 }
 0x16d   : > { %v499_v26 = vsub.f32 %v489_v22, %v497_v24  ;;  %605 = vst.msk [vmem:[#allocation2] sm:$0xff] %vm405_vm2, %v497_v24  ;;  %507 = vperm.xlu1 %905, %v497_v24  }
 0x16e   : > { %v496_v27 = vpop.xlane.xlu0 %495 }
 0x16f   : > { %v498_v28 = vmax.f32 %v490_v25, %v496_v27  ;;  %v501_v43 = vmul.f32 1.442695, %v499_v26 }
 0x171   : > { %v500_v29 = vsub.f32 %v490_v25, %v498_v28  ;;  %606 = vst.msk [vmem:[#allocation2 + $0x8] sm:$0xff] %vm405_vm2, %v498_v28  ;;  %512 = vperm.xlu1 %905, %v498_v28  }
 0x173   : > { %v503_v40 = vmul.f32 1.442695, %v500_v29 }
 0x1e8   : > { %v508_v31 = vpop.permute.xlu1 %507 }
 0x1e9   : > { %v515_v32 = vsub.f32 %v487_v15, %v508_v31 }
 0x1eb   : > { %v517_v33 = vmul.f32 1.442695, %v515_v32 }
 0x1ec   : > { %v513_v34 = vpop.permute.xlu1 %512 }
 0x1ed   : > { %910 = vpow2.f32 %v517_v33  ;;  %v516_v35 = vsub.f32 %v488_v20, %v513_v34 }
 0x1ef   : > { %v519_v36 = vmul.f32 1.442695, %v516_v35 }
 0x1f1   : > { %912 = vpow2.f32 %v519_v36 }
 0x1f2   : > { %914 = vpow2.f32 %v503_v40 }
 0x1f3   : > { %916 = vpow2.f32 %v501_v43 }
 0x1fa   : > { %v911_v37 = vpop.eup %910 }
 0x1fb   : > { %v525_v38 = vsel %vm410_vm0, %v911_v37, 0.0 }
 0x1fc   : > { %526 = vadd.xlane.f32.xlu0 %v525_v38 }
 0x1fe   : > { %v913_v39 = vpop.eup %912 }
 0x1ff   : > { %v528_v41 = vsel %vm410_vm0, %v913_v39, 0.0  ;;  %v550_v42 = vpack.c.bf16 %v913_v39, %v911_v37  ;;  %v915_v44 = vpop.eup %914 }
 0x200   : > { %529 = vadd.xlane.f32.xlu1 %v528_v41  ;;  %v917_v45 = vpop.eup %916  ;;  %v524_v51 = vmul.f32 %v915_v44, %v522_v49 }
 0x201   : > { %858 = vmatmul.mubr.msk.bf16.vlgmr.msra.gmra.mxu1 %vm410_vm0, %v550_v42  ;;  %v523_v47 = vmul.f32 %v917_v45, %v521_v46 }
 0x211   : > { %545 = vperm.xlu1 %905, %v915_v44  }
 0x212   : > { %540 = vperm.xlu0 %906, %v917_v45  }
 0x285   : > { %v527_v48 = vpop.xlane.xlu0 %526 }
 0x286   : > { %v531_v50 = vadd.f32 %v527_v48, %v523_v47 }
 0x288   : > { %534 = vst.msk [vmem:[#allocation3] sm:$0xff] %vm405_vm2, %v531_v50 }
 0x289   : > { %v530_v52 = vpop.xlane.xlu1 %529 }
 0x28a   : > { %v532_v53 = vadd.f32 %v530_v52, %v524_v51 }
 0x28c   : > { %535 = vst.msk [vmem:[#allocation3 + $0x8] sm:$0xff] %vm405_vm2, %v532_v53 }
 0x28d   : > { %v541_v59 = vpop.permute.xlu0 %540  ;;  %v546_v62 = vpop.permute.xlu1 %545 }
 0x28e   : > { %v548_v60 = vmul.f32 %v541_v59, %v536_v58  ;;  %v549_v2 = vmul.f32 %v546_v62, %v537_v61 }
 0x28f   : > { %v612_v54 = vld [vmem:[#allocation3] sm:$0xff] }
 0x290   : > { %918 = vrcp.f32 %v612_v54 }
 0x293   : > { %v613_v55 = vld [vmem:[#allocation3 + $0x8] sm:$0xff] }
 0x294   : > { %920 = vrcp.f32 %v613_v55 }
 0x29d   : > { %v919_v56 = vpop.eup %918 }
 0x29e   : > { %618 = vperm.xlu0 %906, %v919_v56  }
 0x2a1   : > { %v921_v57 = vpop.eup %920 }
 0x2a2   : > { %623 = vperm.xlu0 %906, %v921_v57  }
 0x2c1   : > { %v594_v63 = vpop.f32.mrf.mxu1 }
 0x2c2   : > { %v601_v0 = vadd.f32 %v594_v63, %v548_v60 }
 0x2c3   : > { %v859_v1 = vpop.f32.mrf.mxu1 }
 0x2c4   : > { %603 = vst.msk [vmem:[#allocation4] sm:$0xff] %vm410_vm0, %v601_v0 }
 0x2c5   : > { %v597_v3 = vpop.f32.mrf.mxu1 }
 0x2c6   : > { %v602_v4 = vadd.f32 %v597_v3, %v549_v2 }
 0x2c7   : > { %v860_v5 = vpop.f32.mrf.mxu1 }
 0x2c8   : > { %604 = vst.msk [vmem:[#allocation4 + $0x8] sm:$0xff] %vm410_vm0, %v602_v4 }
 0x2cb   : > { %v610_v6 = vld [vmem:[#allocation4] sm:$0xff] }
 0x2cf   : > { %v611_v10 = vld [vmem:[#allocation4 + $0x8] sm:$0xff] }
 0x319   : > { %v619_v7 = vpop.permute.xlu0 %618 }
 0x31a   : > { %v626_v8 = vmul.f32 %v619_v7, %v610_v6 }
 0x31c   : > { %v843_v9 = vpack.c.bf16 %v626_v8, %v626_v8 }
 0x31d   : > { %v624_v11 = vpop.permute.xlu0 %623 }
 0x31e   : > { %637 = vst.msk [vmem:[%s398_s14] sm:$0xf] %vm636_vm5, %v843_v9  ;;  %v627_v12 = vmul.f32 %v624_v11, %v611_v10 }
 0x320   : > { %v844_v13 = vpack.c.bf16 %v627_v12, %v627_v12 }
 0x322   : > { %638 = vst.msk [vmem:[%s398_s14 + $0x4] sm:$0xf] %vm636_vm5, %v844_v13 }
 0x323 PF: > { %s14_s19 = sadd.s32 1, %s960_s19   ;;  %s1081_s15 = smov %s952_s17 }
 0x324   : > { %p11_p7 = scmp.ge.s32.totalorder %s14_s19, 6   ;;  %s1082_s16 = smov %s956_s18 }
 0x325   : > { %s1083_s17 = smov %s1086_s20  ;;  %s1084_s18 = smov %s1090_s21 }
 0x326   :  { %13 = sbr.rel (!%p11_p7) target bundleno = 3 (0x3), region = 83 }

// kernel: _lambda_.38
= control target key start
LH: loop header
LB: loop body
LE: loop exit
PB: predicated region body
PF: predicated region fallthrough
CT: control target
= control target key end

     0   :  { %s776_s21 = smov 0   ;;  %s778_s22 = smov 0   ;;  %s839_s0 = inlined_call_operand.vmem [shape: bf16[2,2,16,16], index: 0, kind: input, shape index: {}]   ;;  %s840_s1 = inlined_call_operand.vmem [shape: bf16[2,16,32], index: 1, kind: input, shape index: {}]   ;;  %s841_s2 = inlined_call_operand.vmem [shape: bf16[2,16,32], index: 2, kind: input, shape index: {}]   ;;  %s842_s3 = inlined_call_operand.vmem [shape: f32[1,32], index: 3, kind: input, shape index: {}, may-alias: {3,5}]   ;;  %s843_s4 = inlined_call_operand.vmem [shape: f32[1,32], index: 4, kind: input, shape index: {}]   ;;  %s844_s5 = inlined_call_operand.vmem [shape: f32[1,32], index: 5, kind: input, shape index: {}, may-alias: {3,5}]   ;;  %s845_s6 = inlined_call_operand.vmem [shape: bf16[2,16,32], index: 6, kind: output, shape index: {}]  }
   0x1   :  { %s780_s23 = smov 0  }
   0x2 LB: > { %s28_s24 = sadd.s32 1, %s733_s22  ;;  %p632_p0 = scmp.ge.s32.totalorder %s737_s23, 1  ;;  %s737_s23 = sphi %s780_s23, %s16_s23   ;;  %s733_s22 = sphi %s778_s22, %s847_s22   ;;  %s729_s21 = sphi %s776_s21, %s846_s21  }
   0x3   : > { %p30_p1 = scmp.ge.s32.totalorder %s28_s24, 2  ;;  %p250_p2 = scmp.lt.s32.totalorder %s737_s23, 3 }
   0x5   : > { %s849_s24 = smov (%p30_p1, %s28_s24), 0  ;;  %p251_p3 = pnand %p632_p0, %p250_p2 }
   0x6   : > { %p298_p4 = scmp.lt.s32.totalorder (!%p251_p3), %s729_s21, 1 }
   0x7   : > { %254 = sbr.rel (%p251_p3) target bundleno = 529 (0x211), region = 44 }
   0xc   : > { %v707_v0 = vld [vmem:[%s841_s2] sm:$0xff]   ;;  %v739_v1 = vmov 0.0   ;;  %v708_v2 = vld [vmem:[%s841_s2 + $0x8] sm:$0xff]   ;;  %vm740_vm0 = vmmov 0   ;;  %s851_s21 = smov (!%p298_p4, %s729_s21), 1  ;;  %vm356_vm1 = vcmask 130048  }
   0xd   : > { %669 = vmatprep.subr.bf16.mxu0 %v739_v1  ;;  %675 = vmatprep.subr.bf16.mxu1 %v739_v1  ;;  %s656_s29 = sshll.u32 %s851_s21, 4  ;;  %s657_s9 = sshll.u32 %s851_s21, 3  ;;  %v639_v7 = vld [vmem:[%s842_s3] ss:$0 sm:$0xff]  ;;  %vm468_vm2 = vcmask 261120   ;;  %vm520_vm3 = vcmask 257024  }
   0xe   : > { %670 = vmatpush3.bf16.msra.mxu0 %v707_v0  ;;  %671 = vmatprep.mubr.msk.bf16.mxu0 %vm740_vm0, %v739_v1  ;;  %s305_s8 = scalar_lea.vmem %s839_s0, %s656_s29  ;;  %s315_s12 = scalar_lea.vmem %s840_s1, %s657_s9  ;;  %v650_v42 = vld [vmem:[%s843_s4] ss:$0 sm:$0xff] }
   0xf   : > { %676 = vmatpush3.bf16.msra.mxu1 %v708_v2  ;;  %677 = vmatprep.mubr.msk.bf16.mxu1 %vm740_vm0, %v739_v1  ;;  %v709_v3 = vld [vmem:[%s305_s8] sm:$0xff]   ;;  %v710_v4 = vld [vmem:[%s305_s8 + $0x8] sm:$0xff]   ;;  %s325_s25 = scalar_lea.vmem %s845_s6, %s657_s9 }
  0x10   : > { %v662_v5 = vld [vmem:[%s315_s12] sm:$0xff]  }
  0x11   : > { %672 = vmatmul.mubr.msk.bf16.vlgmr.msra.gmra.mxu0 %vm356_vm1, %v709_v3  ;;  %v663_v6 = vunpack.c.l.bf16 %v662_v5  ;;  %v664_v9 = vunpack.c.h.bf16 %v662_v5  ;;  %v651_v44 = vld [vmem:[%s844_s5] ss:$0 sm:$0xff] }
  0x12   : > { %678 = vmatmul.mubr.msk.bf16.vlgmr.msra.gmra.mxu1 %vm356_vm1, %v710_v4 }
  0x13   : > { %v339_v8 = vadd.f32 %v663_v6, %v639_v7  ;;  %v340_v13 = vadd.f32 %v664_v9, %v639_v7 }
  0xd1   : > { %v394_v10 = vpop.f32.mrf.mxu0 }
  0xd2   : > { %v401_v11 = vadd.f32 %v394_v10, %v339_v8  ;;  %v457_v12 = vpop.f32.mrf.mxu1 }
  0xd3   : > { %v673_v14 = vpop.f32.mrf.mxu0 }
  0xd4   : > { %v464_v15 = vadd.f32 %v457_v12, %v401_v11  ;;  %v679_v16 = vpop.f32.mrf.mxu1 }
  0xd5   : > { %v397_v17 = vpop.f32.mrf.mxu0 }
  0xd6   : > { %v402_v18 = vadd.f32 %v397_v17, %v340_v13  ;;  %v460_v19 = vpop.f32.mrf.mxu1  ;;  %v469_v20 = vsel %vm468_vm2, %v464_v15, 0.0 }
  0xd7   : > { %470 = vadd.xlane.f32.xlu0 %v469_v20  ;;  %v674_v21 = vpop.f32.mrf.mxu0 }
  0xd8   : > { %v465_v22 = vadd.f32 %v460_v19, %v402_v18  ;;  %v680_v23 = vpop.f32.mrf.mxu1 }
  0xda   : > { %v472_v24 = vsel %vm468_vm2, %v465_v22, 0.0 }
  0xdb   : > { %473 = vadd.xlane.f32.xlu0 %v472_v24 }
 0x160   : > { %v471_v25 = vpop.xlane.xlu0 %470 }
 0x161   : > { %v476_v26 = vmul.f32 0.03125, %v471_v25 }
 0x163   : > { %v478_v27 = vsub.f32 %v464_v15, %v476_v26 }
 0x164   : > { %v474_v28 = vpop.xlane.xlu0 %473 }
 0x165   : > { %v477_v29 = vmul.f32 0.03125, %v474_v28  ;;  %v480_v30 = vmul.f32 %v478_v27, %v478_v27 }
 0x167   : > { %v479_v31 = vsub.f32 %v465_v22, %v477_v29  ;;  %v482_v32 = vsel %vm468_vm2, %v480_v30, 0.0 }
 0x168   : > { %483 = vadd.xlane.f32.xlu1 %v482_v32 }
 0x169   : > { %v481_v33 = vmul.f32 %v479_v31, %v479_v31 }
 0x16b   : > { %v485_v34 = vsel %vm468_vm2, %v481_v33, 0.0 }
 0x16c   : > { %486 = vadd.xlane.f32.xlu1 %v485_v34 }
 0x1f1   : > { %v484_v35 = vpop.xlane.xlu1 %483 }
 0x1f2   : > { %v488_v36 = vmul.f32 0.03125, %v484_v35 }
 0x1f4   : > { %v490_v37 = vadd.f32 1e-05, %v488_v36 }
 0x1f5   : > { %v487_v38 = vpop.xlane.xlu1 %486 }
 0x1f6   : > { %711 = vrsqrt.f32 %v490_v37  ;;  %v489_v39 = vmul.f32 0.03125, %v487_v38 }
 0x1f8   : > { %v491_v40 = vadd.f32 1e-05, %v489_v39 }
 0x1fa   : > { %713 = vrsqrt.f32 %v491_v40 }
 0x203   : > { %v712_v41 = vpop.eup %711 }
 0x204   : > { %v494_v43 = vmul.f32 %v712_v41, %v478_v27 }
 0x206   : > { %v502_v45 = vmul.f32 %v650_v42, %v494_v43 }
 0x207   : > { %v714_v46 = vpop.eup %713 }
 0x208   : > { %v510_v47 = vadd.f32 %v651_v44, %v502_v45  ;;  %v495_v48 = vmul.f32 %v714_v46, %v479_v31 }
 0x20a   : > { %v659_v49 = vpack.c.bf16 %v510_v47, %v510_v47  ;;  %v503_v50 = vmul.f32 %v650_v42, %v495_v48 }
 0x20c   : > { %521 = vst.msk [vmem:[%s325_s25] sm:$0xf] %vm520_vm3, %v659_v49  ;;  %v511_v51 = vadd.f32 %v651_v44, %v503_v50 }
 0x20e   : > { %v660_v52 = vpack.c.bf16 %v511_v51, %v511_v51 }
 0x210   : > { %522 = vst.msk [vmem:[%s325_s25 + $0x4] sm:$0xf] %vm520_vm3, %v660_v52 }
 0x211 PF: > { %s16_s23 = sadd.s32 1, %s737_s23   ;;  %s846_s21 = smov %s733_s22 }
 0x212   : > { %p13_p5 = scmp.ge.s32.totalorder %s16_s23, 4   ;;  %s847_s22 = smov %s849_s24 }
 0x214   :  { %15 = sbr.rel (!%p13_p5) target bundleno = 2 (0x2), region = 79 }

// kernel: _lambda_.42
= control target key start
LH: loop header
LB: loop body
LE: loop exit
PB: predicated region body
PF: predicated region fallthrough
CT: control target
= control target key end

     0   :  { %8 = vsyncpa [#allocation3], 0  ;;  %s910_s0 = inlined_call_operand.vmem [shape: bf16[2,2,16,16], index: 0, kind: input, shape index: {}]   ;;  %s911_s1 = inlined_call_operand.vmem [shape: bf16[2,2,16,16], index: 1, kind: input, shape index: {}]   ;;  %s912_s2 = inlined_call_operand.vmem [shape: f32[2,1,1,16], index: 2, kind: input, shape index: {}]   ;;  %s913_s3 = inlined_call_operand.hbm [shape: bf16[2,2,16,16], index: 3, kind: output, shape index: {}]  }
   0x1   :  { %10 = vsyncpa [#allocation3 + $0x1], 0  ;;  %s759_s12 = smov 0   ;;  %s761_s13 = smov 0  }
   0x2   :  { %s763_s14 = smov 0   ;;  %s765_s15 = smov 0  }
   0x3   :  { %s767_s16 = smov 0   ;;  %s769_s17 = smov 0  }
   0x4   :  { %s771_s18 = smov 0   ;;  %s773_s19 = smov 0  }
   0x5 LB: > { %s520_s20 = sadd.s32 4294967295, %s731_s19   ;;  %s521_s21 = sadd.s32 4294967294, %s731_s19   ;;  %s731_s19 = sphi %s773_s19, %s16_s19   ;;  %s727_s18 = sphi %s771_s18, %s922_s18   ;;  %s723_s17 = sphi %s769_s17, %s921_s17   ;;  %s719_s16 = sphi %s767_s16, %s920_s16   ;;  %s715_s15 = sphi %s765_s15, %s919_s15   ;;  %s711_s14 = sphi %s763_s14, %s918_s14   ;;  %s707_s13 = sphi %s761_s13, %s917_s13   ;;  %s703_s12 = sphi %s759_s12, %s916_s12  }
   0x6   : > { %s31_s22 = sadd.s32 1, %s723_s17  ;;  %s35_s23 = sadd.s32 1, %s727_s18 }
   0x7   : > { %p33_p0 = scmp.ge.s32.totalorder %s31_s22, 2  ;;  %p140_p1 = scmp.ne.s32.totalorder %s711_s14, %s707_s13 }
   0x8   : > { %p141_p2 = scmp.eq.s32.totalorder %s520_s20, 3  ;;  %p146_p5 = scmp.ne.s32.totalorder %s707_s13, %s703_s12 }
   0x9   : > { %s924_s22 = smov (%p33_p0, %s31_s22), 0  ;;  %s926_s23 = smov (!%p33_p0, %s35_s23), %s727_s18 }
   0xa   : > { %s124_s24 = ssub.s32 %s723_s17, %s924_s22  ;;  %p810_p3 = por %p141_p2, %p140_p1 }
   0xb   : > { %p37_p4 = scmp.ge.s32.totalorder %s926_s23, 2  ;;  %p147_p6 = scmp.eq.s32.totalorder %s521_s21, 3 }
   0xc   : > { %p524_p7 = scmp.ge.s32.totalorder %s731_s19, 1  ;;  %p200_p9 = scmp.lt.s32.totalorder %s731_s19, 5 }
   0xd   : > { %s928_s23 = smov (%p37_p4, %s926_s23), 0  ;;  %p819_p8 = por %p147_p6, %p146_p5 }
   0xe   : > { %s123_s27 = ssub.s32 %s727_s18, %s928_s23  ;;  %s130_s28 = sadd.s32 1, %s711_s14 }
   0xf   : > { %s125_s29 = sor.u32 %s124_s24, %s123_s27  ;;  %p201_p10 = pnand %p524_p7, %p200_p9 }
  0x10   : > { %p128_p11 = scmp.eq.s32.totalorder %s125_s29, 0  ;;  %p245_p12 = scmp.lt.s32.totalorder (!%p201_p10), %s719_s16, 1 }
  0x11   : > { %204 = sbr.rel (%p201_p10) target bundleno = 566 (0x236), region = 32  ;;  %p247_p13 = scmp.lt.s32.totalorder (!%p201_p10), %s715_s15, 1 }
  0x12   : > { %s828_s30 = scalar_select %p128_p11, %s711_s14, %s130_s28  }
  0x13   : > { %s736_s28 = smov (!%p201_p10), [#allocation2]  }
  0x14   : > { %s643_s29 = sshll.u32 (!%p201_p10), %s736_s28, 4  ;;  %s644_s29 = int_to_ptr.vmem [resolvable:$false] %s643_s29 }
  0x16   : > { %v733_v0 = vmov 0.0   ;;  %vm734_vm0 = vmmov 0   ;;  %s246_s4 = scalar_select %p245_p12, %s719_s16, 1  ;;  %vm287_vm1 = vcmask 130048   ;;  %v339_v4 = vlaneseq }
  0x17   : > { %547 = vmatprep.subr.bf16.mxu0 %v733_v0  ;;  %549 = vmatprep.mubr.msk.bf16.mxu0 %vm734_vm0, %v733_v0  ;;  %s248_s5 = scalar_select %p247_p13, %s715_s15, 1  ;;  %v735_v8 = vmov 0   ;;  %vm376_vm4 = vcmask 125952  }
  0x18   : > { %s527_s6 = sshll.u32 %s246_s4, 2  ;;  %v340_v6 = vshrl.u32 %v339_v4, 7 }
  0x19   : > { %s526_s7 = sshll.u32 %s248_s5, 1  ;;  %s269_s5 = scalar_lea.vmem %s912_s2, %s246_s4 }
  0x1a   : > { %s254_s8 = sadd.s32 %s527_s6, %s526_s7  ;;  %v276_v5 = vld [vmem:[%s269_s5] sm:$0x1]  ;;  %v341_v7 = vsub.s32 0, %v340_v6  ;;  %s241_s4 = sand.u32 1, %s707_s13  }
  0x1b   : > { %s528_s9 = sshll.u32 %s254_s8, 2  ;;  %vm337_vm2 = vcmp.gt.f32.partialorder %v276_v5, 0.5  ;;  %s538_s6 = sshll.u32 %s715_s15, 1 }
  0x1c   : > { %s256_s20 = scalar_lea.vmem %s910_s0, %s528_s9  ;;  %s266_s27 = scalar_lea.vmem %s911_s1, %s528_s9  ;;  %v338_v9 = vsel %vm337_vm2, 1, %v735_v8 }
  0x1d   : > { %v629_v1 = vld [vmem:[%s266_s27] sm:$0xff]   ;;  %v342_v10 = vrot.slane %v338_v9, %v341_v7  ;;  %s539_s7 = sshll.u32 %s719_s16, 2  ;;  %s525_s8 = sshll.u32 %s241_s4, 3 }
  0x1e   : > { %v292_v2 = vsel %vm287_vm1, %v629_v1, 0  ;;  %v630_v3 = vld [vmem:[%s256_s20] sm:$0xff]   ;;  %s394_s9 = sadd.s32 %s539_s7, %s538_s6  ;;  %s243_s11 = scalar_lea.vmem [#allocation2], %s525_s8 }
  0x1f   : > { %548 = vmatpush3.bf16.xpose.msra.mxu0 %v292_v2  ;;  %vm343_vm3 = vcmp.eq.s32.totalorder %v342_v10, 1  ;;  %s540_s10 = sshll.u32 %s394_s9, 6  ;;  %s397_s20 = sshll.u32 %s243_s11, 4  ;;  %s857_s20 = int_to_ptr.vmem [resolvable:$true] %s397_s20 }
  0x20   : > { %s855_s27 = scalar_lea.hbm %s913_s3, %s540_s10  ;;  %s859_s15 = scalar_lea.sflag [#allocation3], %s241_s4 }
  0x21   : > { %s639_s16 = scalar_lea.vmem %s857_s20, 128  ;;  %s645_s5 = scalar_lea.vmem %s644_s29, 256 }
  0x22   : > { %p640_p0 = scmp.ne.s32.totalorder %s857_s20, %s639_s16  ;;  %p646_p4 = scmp.lt.s32.totalorder %s857_s20, %s644_s29 }
  0x23   : > { %p647_p5 = scmp.lt.s32.totalorder %s645_s5, %s639_s16 }
  0x24   : > { %p641_p1 = pnand %p640_p0, %p810_p3 }
  0x25   : > { %p648_p6 = por %p647_p5, %p646_p4 }
  0x26   : > { %550 = vmatmul.mubr.msk.bf16.vlgmr.msra.gmra.mxu0 %vm287_vm1, %v630_v3  ;;  %p642_p2 = pneg %p641_p1 }
  0x28   : > { %p649_p7 = pnand %p648_p6, %p642_p2 }
  0xe6   : > { %v328_v11 = vpop.f32.mrf.mxu0 }
  0xe7   : > { %v335_v12 = vmul.f32 0.25, %v328_v11 }
  0xe8   : > { %v551_v13 = vpop.f32.mrf.mxu0 }
  0xe9   : > { %v344_v14 = vsel %vm343_vm3, %v335_v12, -1e+09 }
  0xea   : > { %v331_v15 = vpop.f32.mrf.mxu0  ;;  %v346_v16 = vsel %vm287_vm1, %v344_v14, -inf }
  0xeb   : > { %v336_v17 = vmul.f32 0.25, %v331_v15  ;;  %347 = vmax.xlane.f32.xlu0 %v346_v16 }
  0xec   : > { %v552_v18 = vpop.f32.mrf.mxu0 }
  0xed   : > { %v345_v19 = vsel %vm343_vm3, %v336_v17, -1e+09 }
  0xee   : > { %v349_v20 = vsel %vm287_vm1, %v345_v19, -inf }
  0xef   : > { %350 = vmax.xlane.f32.xlu0 %v349_v20 }
 0x174   : > { %v348_v21 = vpop.xlane.xlu0 %347 }
 0x175   : > { %v352_v22 = vsub.f32 %v344_v14, %v348_v21 }
 0x177   : > { %v354_v23 = vmul.f32 1.442695, %v352_v22 }
 0x178   : > { %v351_v24 = vpop.xlane.xlu0 %350 }
 0x179   : > { %631 = vpow2.f32 %v354_v23  ;;  %v353_v25 = vsub.f32 %v345_v19, %v351_v24 }
 0x17b   : > { %v356_v26 = vmul.f32 1.442695, %v353_v25 }
 0x17d   : > { %633 = vpow2.f32 %v356_v26 }
 0x186   : > { %v632_v27 = vpop.eup %631 }
 0x187   : > { %v358_v28 = vsel %vm287_vm1, %v632_v27, 0.0 }
 0x188   : > { %359 = vadd.xlane.f32.xlu1 %v358_v28 }
 0x18a   : > { %v634_v29 = vpop.eup %633 }
 0x18b   : > { %v361_v30 = vsel %vm287_vm1, %v634_v29, 0.0 }
 0x18c   : > { %362 = vadd.xlane.f32.xlu1 %v361_v30 }
 0x211   : > { %v360_v31 = vpop.xlane.xlu1 %359 }
 0x212   : > { %635 = vrcp.f32 %v360_v31 }
 0x215   : > { %v363_v32 = vpop.xlane.xlu1 %362 }
 0x216   : > { %637 = vrcp.f32 %v363_v32 }
 0x21f   : > { %v636_v33 = vpop.eup %635 }
 0x220   : > { %v365_v34 = vmul.f32 %v636_v33, %v632_v27 }
 0x222   : > { %v543_v35 = vpack.c.bf16 %v365_v34, %v365_v34 }
 0x223   : > { %v638_v36 = vpop.eup %637 }
 0x224   : > { %v367_v37 = vmul.f32 %v638_v36, %v634_v29  ;;  %377 = vst.msk [vmem:[%s243_s11] sm:$0xf] %vm376_vm4, %v543_v35 }
 0x226   : > { %v544_v38 = vpack.c.bf16 %v367_v37, %v367_v37 }
 0x228   : > { %378 = vst.msk [vmem:[%s243_s11 + $0x4] sm:$0xf] %vm376_vm4, %v544_v38 }
 0x229   : > { %652 = shalt.err (!%p649_p7)
}
 0x22a   : > { %s653_s4 = scalar_lea.hbm %s855_s27, 128  ;;  %s657_s8 = scalar_lea.hbm %s913_s3, 512 }
 0x22b   : > { %p654_p9 = scmp.ne.s32.totalorder %s855_s27, %s653_s4  ;;  %p658_p12 = scmp.lt.s32.totalorder %s855_s27, %s913_s3 }
 0x22c   : > { %p659_p13 = scmp.lt.s32.totalorder %s657_s8, %s653_s4 }
 0x22d   : > { %p655_p10 = pnand %p654_p9, %p810_p3 }
 0x22e   : > { %p660_p0 = por %p659_p13, %p658_p12 }
 0x22f   : > { %p656_p11 = pneg %p655_p10 }
 0x231   : > { %p661_p1 = pnand %p660_p0, %p656_p11 }
 0x233   : > { %664 = shalt.err (!%p661_p1)
}
 0x234   : > { %s737_s11 = smov 64   ;;  %s738_s21 = smov 4  }
 0x235   : > { %553 = dma.vmem_to_hbm [thread:$0]  (%p810_p3), %s857_s20, 128, %s855_s27, %s859_s15, %s737_s11, %s737_s11, %s738_s21  }
 0x236 PF: > { %p559_p2 = scmp.ge.s32.totalorder %s731_s19, 2  ;;  %s412_s24 = sand.u32 1, %s703_s12  }
 0x237   : > { %s413_s16 = scalar_lea.sflag [#allocation3], %s412_s24 }
 0x238   : > { %p556_p4 = pnand %p559_p2, %p819_p8 }
 0x23a   : > { %p557_p5 = pneg %p556_p4 }
 0x23c   : > { %698 = dma.done.wait (%p557_p5), %s413_s16, 128  }
 0x23d   : > { %700 = vsyncadd (%p557_p5), %s413_s16, 4294967168  ;;  %s16_s19 = sadd.s32 1, %s731_s19   ;;  %s916_s12 = smov %s707_s13 }
 0x23e   : > { %p13_p6 = scmp.ge.s32.totalorder %s16_s19, 6   ;;  %s917_s13 = smov %s711_s14 }
 0x23f   : > { %s918_s14 = smov %s828_s30  ;;  %s919_s15 = smov %s723_s17 }
 0x240   : > { %s920_s16 = smov %s727_s18  ;;  %s921_s17 = smov %s924_s22 }
 0x241   : > { %s922_s18 = smov %s928_s23  ;;  %15 = sbr.rel (!%p13_p6) target bundleno = 5 (0x5), region = 73 }
 0x246   :  { %418 = vsyncpa [#allocation3], 1 }
 0x247   :  { %420 = vsyncpa [#allocation3 + $0x1], 1 }

// kernel: _lambda_.39
= control target key start
LH: loop header
LB: loop body
LE: loop exit
PB: predicated region body
PF: predicated region fallthrough
CT: control target
= control target key end

     0   :  { %s1359_s24 = smov 0   ;;  %s1539_s0 = inlined_call_operand.vmem [shape: bf16[2,20,32], index: 0, kind: input, shape index: {}]   ;;  %s1540_s1 = inlined_call_operand.vmem [shape: bf16[3,32,128], index: 1, kind: input, shape index: {}]   ;;  %s1541_s2 = inlined_call_operand.vmem [shape: f32[1,128], index: 2, kind: input, shape index: {}]   ;;  %s1542_s3 = inlined_call_operand.vmem [shape: bf16[3,128,32], index: 3, kind: input, shape index: {}]   ;;  %s1543_s4 = inlined_call_operand.vmem [shape: f32[1,32], index: 4, kind: input, shape index: {}, may-alias: {4,6}]   ;;  %s1544_s5 = inlined_call_operand.vmem [shape: f32[1,32], index: 5, kind: input, shape index: {}]   ;;  %s1545_s6 = inlined_call_operand.vmem [shape: f32[1,32], index: 6, kind: input, shape index: {}, may-alias: {4,6}]   ;;  %s1546_s7 = inlined_call_operand.vmem [shape: bf16[2,16,32], index: 7, kind: output, shape index: {}]  }
   0x1 LB: > { %s1036_s25 = sadd.s32 4294967295, %s1314_s24   ;;  %p1040_p0 = scmp.ge.s32.totalorder %s1314_s24, 1  ;;  %s1314_s24 = sphi %s1359_s24, %s17_s24  }
   0x2   : > { %p237_p1 = scmp.lt.s32.totalorder %s1314_s24, 3 }
   0x4   : > { %p238_p2 = pnand %p1040_p0, %p237_p1 }
   0x5   : > { %p269_p3 = scmp.lt.s32.totalorder (!%p238_p2), %s1036_s25, 1 }
   0x6   : > { %241 = sbr.rel (%p238_p2) target bundleno = 800 (0x320), region = 48 }
   0xb   : > { %v1271_v0 = vld [vmem:[%s1540_s1 + $0x18] sm:$0xff]   ;;  %v1272_v1 = vld [vmem:[%s1540_s1 + $0x10] sm:$0xff]   ;;  %s1548_s25 = smov (!%p269_p3, %s1036_s25), 1  ;;  %v1275_v2 = vld [vmem:[%s1540_s1 + $0x8] sm:$0xff]   ;;  %vm300_vm0 = vsmask.f32 7424  ;;  %v538_v43 = vlaneseq }
   0xc   : > { %1175 = vmatprep.subr.bf16.mxu0 %v1271_v0  ;;  %s1259_s30 = smul.u32 12, %s1548_s25  ;;  %vm328_vm1 = vcmask 261120   ;;  %v1316_v5 = vmov 0.0   ;;  %vm452_vm2 = vcmask 1046528   ;;  %v1276_v17 = vld [vmem:[%s1540_s1] sm:$0xff]   ;;  %v1277_v19 = vld [vmem:[%s1540_s1 + $0x28] sm:$0xff]  }
   0xd   : > { %1176 = vmatpush3.bf16.msra.mxu0 %v1271_v0  ;;  %1199 = vmatprep.subr.bf16.mxu1 %v1316_v5  ;;  %v1278_v20 = vld [vmem:[%s1540_s1 + $0x20] sm:$0xff]   ;;  %v1279_v22 = vld [vmem:[%s1542_s3 + $0x38] sm:$0xff]   ;;  %v1280_v23 = vld [vmem:[%s1542_s3 + $0x30] sm:$0xff]   ;;  %vm1317_vm3 = vmmov 0   ;;  %v539_v46 = vshrl.u32 %v538_v43, 7  ;;  %vm1318_vm6 = vmmov 1  }
   0xe   : > { %1177 = vmatprep.subr.bf16.mxu0 %v1272_v1  ;;  %s273_s12 = scalar_lea.vmem %s1539_s0, %s1259_s30  ;;  %v1281_v24 = vld [vmem:[%s1542_s3 + $0x78] sm:$0xff]   ;;  %v1282_v25 = vld [vmem:[%s1542_s3 + $0x28] sm:$0xff]   ;;  %v1283_v26 = vld [vmem:[%s1542_s3 + $0x70] sm:$0xff]   ;;  %1215 = vmatprep.mubr.msk.bf16.mxu1 %vm1317_vm3, %v1316_v5  ;;  %vm915_vm8 = vcmask 1045504   ;;  %vm978_vm9 = vcmask 257024  }
   0xf   : > { %v1382_v3 = vld [vmem:[%s273_s12] sm:$0xff]   ;;  %v1384_v4 = vld [vmem:[%s273_s12 + $0x8] sm:$0x3]  ;;  %1200 = vmatpush3.bf16.msra.mxu1 %v1281_v24  ;;  %v1286_v29 = vld [vmem:[%s1542_s3 + $0x18] sm:$0xff]   ;;  %v541_v53 = vadd.s32 16, %v539_v46  ;;  %vm542_vm5 = vcmp.ge.s32.totalorder %v539_v46, 1 }
  0x10   : > { %v1049_v6 = vcombine.low %v1384_v4, %v1384_v4  ;;  %v302_v7 = vshrl.u32 %v1382_v3, 16  ;;  %v304_v8 = vshll.u32 %v1382_v3, 16  ;;  %v453_v11 = vrot.slane %v1382_v3, 1  ;;  %1201 = vmatprep.subr.bf16.mxu1 %v1316_v5  ;;  %v1284_v27 = vld [vmem:[%s1542_s3 + $0x20] sm:$0xff]   ;;  %v1285_v28 = vld [vmem:[%s1542_s3 + $0x68] sm:$0xff]   ;;  %v1288_v31 = vld [vmem:[%s1542_s3 + $0x10] sm:$0xff]  }
  0x11   : > { %1178 = vmatpush3.bf16.msra.mxu0 %v1272_v1  ;;  %v1287_v30 = vld [vmem:[%s1542_s3 + $0x60] sm:$0xff]   ;;  %v1289_v32 = vld [vmem:[%s1542_s3 + $0x58] sm:$0xff]   ;;  %v1290_v33 = vld [vmem:[%s1542_s3 + $0x8] sm:$0xff]   ;;  %vm547_vm4 = vcmp.lt.s32.totalorder %v541_v53, 17  ;;  %s1133_s12 = sshll.u32 %s1548_s25, 3 }
  0x12   : > { %1183 = vmatprep.subr.bf16.mxu0 %v1275_v2  ;;  %v309_v9 = vshll.u32 %v1049_v6, 16  ;;  %v313_v10 = vshrl.u32 %v1049_v6, 16  ;;  %v454_v12 = vrot.slane %v1049_v6, 1  ;;  %v306_v13 = vrot.slane %v304_v8, 1  ;;  %v1291_v34 = vld [vmem:[%s1542_s3 + $0x50] sm:$0xff]   ;;  %v1292_v35 = vld [vmem:[%s1542_s3] sm:$0xff]   ;;  %vm1099_vm7 = vmpackc.low %vm1318_vm6, %vm542_vm5  ;;  %s278_s15 = scalar_lea.vmem %s1546_s7, %s1133_s12 }
  0x13   : > { %1202 = vmatpush3.bf16.msra.mxu1 %v1283_v26  ;;  %v1293_v36 = vld [vmem:[%s1542_s3 + $0x48] sm:$0xff]   ;;  %v1294_v37 = vld [vmem:[%s1542_s3 + $0x40] sm:$0xff]  }
  0x14   : > { %v311_v14 = vrot.slane %v309_v9, 1  ;;  %v307_v15 = vor.u32 %v306_v13, %v302_v7  ;;  %v455_v21 = vsel %vm452_vm2, %v453_v11, %v454_v12  ;;  %1203 = vmatprep.subr.bf16.mxu1 %v1316_v5  ;;  %v1066_v50 = vld [vmem:[%s1541_s2] ss:$0 sm:$0xff] }
  0x15   : > { %v1302_v24 = vld [vmem:[%s1542_s3 + $0x80] sm:$0xff]  }
  0x16   : > { %v315_v16 = vor.u32 %v313_v10, %v311_v14  ;;  %v312_v18 = vsel %vm300_vm0, %v307_v15, %v311_v14 }
  0x17   : > { %1179 = vmatprep.mubr.msk.bf16.mxu0 %vm328_vm1, %v312_v18  ;;  %1204 = vmatpush3.bf16.msra.mxu1 %v1285_v28  ;;  %v1296_v18 = vld [vmem:[%s1542_s3 + $0xb0] sm:$0xff]  }
  0x18   : > { %1180 = vmatmul.mubr.msk.bf16.vlgmr.msra.gmra.mxu0 %vm328_vm1, %v315_v16  ;;  %1205 = vmatprep.subr.bf16.mxu1 %v1316_v5  ;;  %v1295_v16 = vld [vmem:[%s1542_s3 + $0xb8] sm:$0xff]  }
  0x19   : > { %1184 = vmatpush3.bf16.msra.mxu0 %v1275_v2  ;;  %1187 = vmatprep.mubr.msk.bf16.mxu0 %vm328_vm1, %v1382_v3 }
  0x1a   : > { %1185 = vmatprep.subr.bf16.mxu0 %v1276_v17 }
  0x1b   : > { %1206 = vmatpush3.bf16.msra.mxu1 %v1287_v30 }
  0x1c   : > { %1207 = vmatprep.subr.bf16.mxu1 %v1316_v5 }
  0x1d   : > { %1186 = vmatpush3.bf16.msra.mxu0 %v1276_v17 }
  0x1e   : > { %1191 = vmatprep.subr.bf16.mxu0 %v1277_v19 }
  0x1f   : > { %1208 = vmatpush3.bf16.msra.mxu1 %v1289_v32 }
  0x20   : > { %1188 = vmatmul.mubr.msk.bf16.vlgmr.msra.gmra.mxu0 %vm328_vm1, %v1049_v6  ;;  %1209 = vmatprep.subr.bf16.mxu1 %v1316_v5 }
  0x21   : > { %1192 = vmatpush3.bf16.msra.mxu0 %v1277_v19  ;;  %1195 = vmatprep.mubr.msk.bf16.mxu0 %vm328_vm1, %v455_v21  ;;  %v1297_v19 = vld [vmem:[%s1542_s3 + $0xa8] sm:$0xff]   ;;  %v1299_v21 = vld [vmem:[%s1542_s3 + $0x98] sm:$0xff]  }
  0x22   : > { %1193 = vmatprep.subr.bf16.mxu0 %v1278_v20 }
  0x23   : > { %1210 = vmatpush3.bf16.msra.mxu1 %v1291_v34 }
  0x24   : > { %1211 = vmatprep.subr.bf16.mxu1 %v1316_v5 }
  0x25   : > { %1194 = vmatpush3.bf16.msra.mxu0 %v1278_v20  ;;  %v1298_v20 = vld [vmem:[%s1542_s3 + $0xa0] sm:$0xff]  }
  0x26   : > { %1219 = vmatprep.subr.bf16.mxu0 %v1316_v5 }
  0x27   : > { %1212 = vmatpush3.bf16.msra.mxu1 %v1293_v36  ;;  %v909_v36 = vunpack.c.l.bf16 %v1382_v3 }
  0x28   : > { %1196 = vmatmul.mubr.msk.bf16.vlgmr.msra.gmra.mxu0 %vm328_vm1, %v454_v12  ;;  %1213 = vmatprep.subr.bf16.mxu1 %v1316_v5 }
  0x29   : > { %1220 = vmatpush3.bf16.msra.mxu0 %v1279_v22  ;;  %1235 = vmatprep.mubr.msk.bf16.mxu0 %vm1317_vm3, %v1316_v5  ;;  %v1300_v22 = vld [vmem:[%s1542_s3 + $0x90] sm:$0xff]  }
  0x2a   : > { %1221 = vmatprep.subr.bf16.mxu0 %v1316_v5 }
  0x2b   : > { %1214 = vmatpush3.bf16.msra.mxu1 %v1294_v37  ;;  %v910_v37 = vunpack.c.h.bf16 %v1382_v3 }
  0x2c   : > { %1239 = vmatprep.subr.bf16.mxu1 %v1316_v5 }
  0x2d   : > { %1222 = vmatpush3.bf16.msra.mxu0 %v1280_v23  ;;  %v1301_v23 = vld [vmem:[%s1542_s3 + $0x88] sm:$0xff]  }
  0x2e   : > { %1223 = vmatprep.subr.bf16.mxu0 %v1316_v5 }
  0x31   : > { %1224 = vmatpush3.bf16.msra.mxu0 %v1282_v25 }
  0x32   : > { %1225 = vmatprep.subr.bf16.mxu0 %v1316_v5 }
  0x35   : > { %1226 = vmatpush3.bf16.msra.mxu0 %v1284_v27 }
  0x36   : > { %1227 = vmatprep.subr.bf16.mxu0 %v1316_v5 }
  0x39   : > { %1228 = vmatpush3.bf16.msra.mxu0 %v1286_v29 }
  0x3a   : > { %1229 = vmatprep.subr.bf16.mxu0 %v1316_v5 }
  0x3d   : > { %1230 = vmatpush3.bf16.msra.mxu0 %v1288_v31 }
  0x3e   : > { %1231 = vmatprep.subr.bf16.mxu0 %v1316_v5 }
  0x41   : > { %1232 = vmatpush3.bf16.msra.mxu0 %v1290_v33 }
  0x42   : > { %1233 = vmatprep.subr.bf16.mxu0 %v1316_v5 }
  0x45   : > { %1234 = vmatpush3.bf16.msra.mxu0 %v1292_v35 }
  0xd8   : > { %v1181_v38 = vpop.f32.mrf.mxu0 }
  0xda   : > { %v369_v39 = vpop.f32.mrf.mxu0 }
  0xdc   : > { %v1182_v40 = vpop.f32.mrf.mxu0 }
  0xde   : > { %v372_v41 = vpop.f32.mrf.mxu0 }
  0xe0   : > { %v1189_v42 = vpop.f32.mrf.mxu0 }
  0xe1   : > { %v442_v48 = vadd.f32 %v1189_v42, %v1181_v38  ;;  %v916_v38 = vrot.slane %v909_v36, 2  ;;  %v1126_v42 = vld [vmem:[%s1543_s4] ss:$0 sm:$0xff] }
  0xe2   : > { %v433_v44 = vpop.f32.mrf.mxu0 }
  0xe3   : > { %v434_v51 = vadd.f32 %v433_v44, %v369_v39  ;;  %v911_v39 = vunpack.c.l.bf16 %v1384_v4 }
  0xe4   : > { %v1190_v45 = vpop.f32.mrf.mxu0 }
  0xe5   : > { %v919_v46 = vrot.slane %v911_v39, 2 }
  0xe6   : > { %v436_v47 = vpop.f32.mrf.mxu0 }
  0xe7   : > { %v437_v58 = vadd.f32 %v436_v47, %v372_v41 }
  0xe8   : > { %v1197_v49 = vpop.f32.mrf.mxu0 }
  0xe9   : > { %v524_v52 = vadd.f32 %v1197_v49, %v442_v48 }
  0xea   : > { %v508_v54 = vpop.f32.mrf.mxu0 }
  0xeb   : > { %v534_v55 = vadd.f32 %v1066_v50, %v524_v52  ;;  %v522_v56 = vadd.f32 %v508_v54, %v434_v51 }
  0xec   : > { %v1198_v57 = vpop.f32.mrf.mxu0 }
  0xed   : > { %v537_v59 = vmax.f32 %v534_v55, 0.0  ;;  %v532_v60 = vadd.f32 %v1066_v50, %v522_v56 }
  0xee   : > { %v511_v61 = vpop.f32.mrf.mxu0 }
  0xef   : > { %v523_v62 = vadd.f32 %v511_v61, %v437_v58  ;;  %v559_v63 = vsel %vm547_vm4, %v537_v59, 0.0  ;;  %v535_v0 = vmax.f32 %v532_v60, 0.0 }
  0xf0   : > { %v561_v2 = vpack.c.bf16 %v559_v63, %v559_v63 }
  0xf1   : > { %v533_v1 = vadd.f32 %v1066_v50, %v523_v62  ;;  %v557_v7 = vsel %vm542_vm5, %v535_v0, 0.0 }
  0xf2   : > { %v603_v11 = vshll.u32 %v561_v2, 16  ;;  %v806_v26 = vrot.slane %v561_v2, 1 }
  0xf3   : > { %v536_v6 = vmax.f32 %v533_v1, 0.0 }
  0xf4   : > { %v605_v15 = vrot.slane %v603_v11, 1 }
  0xf5   : > { %v560_v8 = vpack.c.bf16 %v536_v6, %v557_v7  ;;  %v1100_v9 = vpack.c.bf16 %v536_v6, %v535_v0 }
  0xf7   : > { %1236 = vmatmul.mubr.msk.bf16.vlgmr.msra.gmra.mxu0 %vm1099_vm7, %v1100_v9  ;;  %v598_v10 = vshll.u32 %v560_v8, 16  ;;  %v596_v12 = vshrl.u32 %v560_v8, 16  ;;  %v805_v25 = vrot.slane %v560_v8, 1 }
  0xf9   : > { %v600_v13 = vrot.slane %v598_v10, 1  ;;  %v807_v27 = vsel %vm452_vm2, %v805_v25, %v806_v26 }
  0xfb   : > { %v601_v14 = vor.u32 %v600_v13, %v596_v12  ;;  %v1127_v12 = vld [vmem:[%s1544_s5] ss:$0 sm:$0xff] }
  0xfd   : > { %v606_v17 = vsel %vm300_vm0, %v601_v14, %v605_v15  ;;  %v1128_v14 = vld [vmem:[%s1545_s6] ss:$0 sm:$0xff] }
  0xfe   : > { %1216 = vmatmul.mubr.bf16.vlgmr.msra.gmra.mxu1 %v606_v17 }
  0xff   : > { %1240 = vmatpush3.bf16.msra.mxu1 %v1295_v16  ;;  %1255 = vmatprep.mubr.msk.bf16.mxu1 %vm1317_vm3, %v1316_v5 }
 0x100   : > { %1241 = vmatprep.subr.bf16.mxu1 %v1316_v5 }
 0x103   : > { %1242 = vmatpush3.bf16.msra.mxu1 %v1296_v18 }
 0x104   : > { %1243 = vmatprep.subr.bf16.mxu1 %v1316_v5 }
 0x107   : > { %1244 = vmatpush3.bf16.msra.mxu1 %v1297_v19 }
 0x108   : > { %1245 = vmatprep.subr.bf16.mxu1 %v1316_v5 }
 0x10b   : > { %1246 = vmatpush3.bf16.msra.mxu1 %v1298_v20 }
 0x10c   : > { %1247 = vmatprep.subr.bf16.mxu1 %v1316_v5 }
 0x10f   : > { %1248 = vmatpush3.bf16.msra.mxu1 %v1299_v21 }
 0x110   : > { %1249 = vmatprep.subr.bf16.mxu1 %v1316_v5 }
 0x113   : > { %1250 = vmatpush3.bf16.msra.mxu1 %v1300_v22 }
 0x114   : > { %1251 = vmatprep.subr.bf16.mxu1 %v1316_v5 }
 0x117   : > { %1252 = vmatpush3.bf16.msra.mxu1 %v1301_v23 }
 0x118   : > { %1253 = vmatprep.subr.bf16.mxu1 %v1316_v5  ;;  %v917_v5 = vrot.slane %v910_v37, 2 }
 0x11a   : > { %v918_v45 = vsel %vm915_vm8, %v916_v38, %v917_v5  ;;  %v920_v52 = vsel %vm915_vm8, %v917_v5, %v919_v46 }
 0x11b   : > { %1254 = vmatpush3.bf16.msra.mxu1 %v1302_v24 }
 0x11e   : > { %1256 = vmatmul.mubr.bf16.vlgmr.msra.gmra.mxu1 %v807_v27 }
 0x1b7   : > { %v779_v28 = vpop.f32.mrf.mxu0 }
 0x1b9   : > { %v1237_v29 = vpop.f32.mrf.mxu0 }
 0x1bb   : > { %v782_v30 = vpop.f32.mrf.mxu0 }
 0x1bd   : > { %v1238_v31 = vpop.f32.mrf.mxu0 }
 0x1be   : > { %v690_v32 = vpop.f32.mrf.mxu1 }
 0x1bf   : > { %v780_v40 = vadd.f32 %v779_v28, %v690_v32 }
 0x1c0   : > { %v1217_v33 = vpop.f32.mrf.mxu1 }
 0x1c2   : > { %v693_v34 = vpop.f32.mrf.mxu1 }
 0x1c3   : > { %v783_v47 = vadd.f32 %v782_v30, %v693_v34 }
 0x1c4   : > { %v1218_v35 = vpop.f32.mrf.mxu1 }
 0x1de   : > { %v891_v41 = vpop.f32.mrf.mxu1 }
 0x1df   : > { %v898_v43 = vadd.f32 %v891_v41, %v780_v40 }
 0x1e0   : > { %v1257_v44 = vpop.f32.mrf.mxu1 }
 0x1e1   : > { %v907_v48 = vadd.f32 %v1126_v42, %v898_v43 }
 0x1e2   : > { %v894_v49 = vpop.f32.mrf.mxu1 }
 0x1e3   : > { %v899_v50 = vadd.f32 %v894_v49, %v783_v47  ;;  %v923_v3 = vadd.f32 %v918_v45, %v907_v48 }
 0x1e4   : > { %v1258_v51 = vpop.f32.mrf.mxu1 }
 0x1e5   : > { %v908_v53 = vadd.f32 %v1126_v42, %v899_v50  ;;  %v927_v4 = vsel %vm328_vm1, %v923_v3, 0.0 }
 0x1e6   : > { %928 = vadd.xlane.f32.xlu0 %v927_v4 }
 0x1e7   : > { %v924_v54 = vadd.f32 %v920_v52, %v908_v53 }
 0x1e9   : > { %v930_v55 = vsel %vm328_vm1, %v924_v54, 0.0 }
 0x1ea   : > { %931 = vadd.xlane.f32.xlu0 %v930_v55 }
 0x26f   : > { %v929_v56 = vpop.xlane.xlu0 %928 }
 0x270   : > { %v934_v57 = vmul.f32 0.03125, %v929_v56 }
 0x272   : > { %v936_v58 = vsub.f32 %v923_v3, %v934_v57 }
 0x273   : > { %v932_v59 = vpop.xlane.xlu0 %931 }
 0x274   : > { %v935_v60 = vmul.f32 0.03125, %v932_v59  ;;  %v938_v61 = vmul.f32 %v936_v58, %v936_v58 }
 0x276   : > { %v937_v62 = vsub.f32 %v924_v54, %v935_v60  ;;  %v940_v63 = vsel %vm328_vm1, %v938_v61, 0.0 }
 0x277   : > { %941 = vadd.xlane.f32.xlu1 %v940_v63 }
 0x278   : > { %v939_v0 = vmul.f32 %v937_v62, %v937_v62 }
 0x27a   : > { %v943_v1 = vsel %vm328_vm1, %v939_v0, 0.0 }
 0x27b   : > { %944 = vadd.xlane.f32.xlu1 %v943_v1 }
 0x300   : > { %v942_v2 = vpop.xlane.xlu1 %941 }
 0x301   : > { %v946_v6 = vmul.f32 0.03125, %v942_v2 }
 0x303   : > { %v948_v7 = vadd.f32 1e-05, %v946_v6 }
 0x304   : > { %v945_v8 = vpop.xlane.xlu1 %944 }
 0x305   : > { %1304 = vrsqrt.f32 %v948_v7  ;;  %v947_v9 = vmul.f32 0.03125, %v945_v8 }
 0x307   : > { %v949_v10 = vadd.f32 1e-05, %v947_v9 }
 0x309   : > { %1306 = vrsqrt.f32 %v949_v10 }
 0x312   : > { %v1305_v11 = vpop.eup %1304 }
 0x313   : > { %v952_v13 = vmul.f32 %v1305_v11, %v936_v58 }
 0x315   : > { %v960_v15 = vmul.f32 %v1127_v12, %v952_v13 }
 0x316   : > { %v1307_v16 = vpop.eup %1306 }
 0x317   : > { %v968_v17 = vadd.f32 %v1128_v14, %v960_v15  ;;  %v953_v18 = vmul.f32 %v1307_v16, %v937_v62 }
 0x319   : > { %v1134_v19 = vpack.c.bf16 %v968_v17, %v968_v17  ;;  %v961_v20 = vmul.f32 %v1127_v12, %v953_v18 }
 0x31b   : > { %979 = vst.msk [vmem:[%s278_s15] sm:$0xf] %vm978_vm9, %v1134_v19  ;;  %v969_v21 = vadd.f32 %v1128_v14, %v961_v20 }
 0x31d   : > { %v1135_v22 = vpack.c.bf16 %v969_v21, %v969_v21 }
 0x31f   : > { %980 = vst.msk [vmem:[%s278_s15 + $0x4] sm:$0xf] %vm978_vm9, %v1135_v22 }
 0x320 PF: > { %s17_s24 = sadd.s32 1, %s1314_s24  }
 0x321   : > { %p14_p4 = scmp.ge.s32.totalorder %s17_s24, 4  }
 0x323   :  { %16 = sbr.rel (!%p14_p4) target bundleno = 1 (0x1), region = 82 }

// kernel: _lambda_.45
= control target key start
LH: loop header
LB: loop body
LE: loop exit
PB: predicated region body
PF: predicated region fallthrough
CT: control target
= control target key end

     0   :  { %s4091_s0 = inlined_call_operand.vmem [shape: bf16[2,36,32], index: 0, kind: input, shape index: {}]   ;;  %s4092_s1 = inlined_call_operand.vmem [shape: bf16[32,16], index: 1, kind: input, shape index: {}]   ;;  %s4093_s2 = inlined_call_operand.vmem [shape: f32[1,16], index: 2, kind: input, shape index: {}, may-alias: {2,12}]   ;;  %s4094_s3 = inlined_call_operand.vmem [shape: bf16[5,16,32], index: 3, kind: input, shape index: {}]   ;;  %s4095_s4 = inlined_call_operand.vmem [shape: f32[1,32], index: 4, kind: input, shape index: {}, may-alias: {4,6,8,10}]   ;;  %s4096_s5 = inlined_call_operand.vmem [shape: bf16[5,32,32], index: 5, kind: input, shape index: {}]   ;;  %s4097_s6 = inlined_call_operand.vmem [shape: f32[1,32], index: 6, kind: input, shape index: {}, may-alias: {4,6,8,10}]   ;;  %s4098_s7 = inlined_call_operand.vmem [shape: bf16[5,32,32], index: 7, kind: input, shape index: {}]   ;;  %s4099_s8 = inlined_call_operand.vmem [shape: f32[1,32], index: 8, kind: input, shape index: {}, may-alias: {4,6,8,10}]   ;;  %s4100_s9 = inlined_call_operand.vmem [shape: bf16[5,32,32], index: 9, kind: input, shape index: {}]   ;;  %s4101_s10 = inlined_call_operand.vmem [shape: f32[1,32], index: 10, kind: input, shape index: {}, may-alias: {4,6,8,10}]   ;;  %s4102_s11 = inlined_call_operand.vmem [shape: bf16[5,32,16], index: 11, kind: input, shape index: {}]   ;;  %s4103_s12 = inlined_call_operand.vmem [shape: f32[1,16], index: 12, kind: input, shape index: {}, may-alias: {2,12}]   ;;  %s4104_s13 = inlined_call_operand.hbm [shape: f32[2,16,16], index: 13, kind: output, shape index: {0}]   ;;  %s4105_s14 = inlined_call_operand.hbm [shape: f32[2,16,16], index: 14, kind: output, shape index: {1}]  }
   0x1   :  { %4110 = sst [smem:[#allocation8_spill]] %s4091_s0 }
   0x2   :  { %4111 = sst [smem:[#allocation9_spill]] %s4092_s1 }
   0x3   :  { %4112 = sst [smem:[#allocation10_spill]] %s4093_s2 }
   0x4   :  { %4113 = sst [smem:[#allocation11_spill]] %s4094_s3 }
   0x5   :  { %4114 = sst [smem:[#allocation12_spill]] %s4095_s4 }
   0x6   :  { %20 = vsyncpa [#allocation3], 0 }
   0x7   :  { %22 = vsyncpa [#allocation3 + $0x1], 0 }
   0x8   :  { %23 = vsyncpa [#allocation5], 0 }
   0x9   :  { %25 = vsyncpa [#allocation5 + $0x1], 0  ;;  %s3621_s29 = smov 0   ;;  %s3623_s30 = smov 0  }
   0xa   :  { %s3625_s15 = smov 0   ;;  %s3627_s16 = smov 0  }
   0xb LB: > { %s3642_s17 = sadd.s32 4294967295, %s3536_s16   ;;  %s2829_s18 = sadd.s32 4294967294, %s3536_s16   ;;  %s3536_s16 = sphi %s3627_s16, %s4130_s16   ;;  %s3532_s15 = sphi %s3625_s15, %s4129_s15   ;;  %s3528_s30 = sphi %s3623_s30, %s4128_s30   ;;  %s3524_s29 = sphi %s3621_s29, %s4127_s29  }
   0xc   : > { %s3646_s19 = sadd.s32 1, %s3536_s16   ;;  %s316_s20 = sadd.s32 1, %s3532_s15 }
   0xd   : > { %s313_s21 = ssub.s32 %s3536_s16, %s3646_s19  ;;  %p326_p0 = scmp.ne.s32.totalorder %s3532_s15, %s3528_s30 }
   0xe   : > { %p314_p1 = scmp.eq.s32.totalorder %s313_s21, 0  ;;  %p327_p2 = scmp.eq.s32.totalorder %s3642_s17, 1 }
   0xf   : > { %p332_p3 = scmp.ne.s32.totalorder %s3528_s30, %s3524_s29  ;;  %p333_p4 = scmp.eq.s32.totalorder %s2829_s18, 1 }
  0x10   : > { %s3657_s22 = scalar_select %p314_p1, %s3532_s15, %s316_s20  }
  0x11   : > { %p3659_p5 = por %p327_p2, %p326_p0  ;;  %p3663_p6 = por %p333_p4, %p332_p3 }
  0x12   : > { %p2832_p7 = scmp.ge.s32.totalorder %s3536_s16, 1  ;;  %p421_p8 = scmp.lt.s32.totalorder %s3536_s16, 3 }
  0x14   : > { %p422_p9 = pnand %p2832_p7, %p421_p8 }
  0x15   : > { %s4117_s1 = sld [smem:[#allocation9_spill]] (!%p422_p9)  ;;  %p472_p10 = scmp.lt.s32.totalorder (!%p422_p9), %s3642_s17, 1 }
  0x16   : > { %425 = sbr.rel (%p422_p9) target bundleno = 1470 (0x5be), region = 72  ;;  %s4118_s0 = sld [smem:[#allocation8_spill]] (!%p422_p9) }
  0x17   : > { %s4119_s3 = sld [smem:[#allocation11_spill]] (!%p422_p9)  ;;  %s4107_s25 = sshll.u32 (!%p422_p9), %s3642_s17, 8 }
  0x18   : > { %s4120_s2 = sld [smem:[#allocation10_spill]] (!%p422_p9) }
  0x19   : > { %s4121_s4 = sld [smem:[#allocation12_spill]] (!%p422_p9) }
  0x1b   : > { %v3374_v0 = vld [vmem:[%s4117_s1 + $0x8] sm:$0xff]   ;;  %v3538_v1 = vmov 0.0   ;;  %v3375_v2 = vld [vmem:[%s4117_s1] sm:$0xff]   ;;  %vm3539_vm0 = vmmov 0   ;;  %s473_s18 = scalar_select %p472_p10, %s3642_s17, 1  ;;  %vm519_vm1 = vcmask 261120   ;;  %v585_v9 = vlaneseq }
  0x1c   : > { %3117 = vmatprep.subr.bf16.mxu0 %v3538_v1  ;;  %3121 = vmatprep.mubr.msk.bf16.mxu0 %vm3539_vm0, %v3538_v1  ;;  %vm621_vm3 = vcmask 130050   ;;  %vm623_vm4 = vcmask 130048   ;;  %vm625_vm6 = vcmask 123904   ;;  %v3540_v31 = vmov 0.0|0.0   ;;  %s4002_s1 = scalar_lea.hbm %s4104_s13, %s4107_s25 }
  0x1d   : > { %3118 = vmatpush3.bf16.msra.mxu0 %v3374_v0  ;;  %s3323_s20 = smul.u32 20, %s473_s18  ;;  %v3379_v6 = vld [vmem:[%s4119_s3 + $0x20] sm:$0xff]   ;;  %v3380_v7 = vld [vmem:[%s4119_s3 + $0x8] sm:$0xff]   ;;  %v3700_v10 = vshrl.u32 %v585_v9, 7  ;;  %v942_v32 = vrot.slane %v3540_v31, 2  ;;  %vm938_vm7 = vcmask 1045504  }
  0x1e   : > { %3119 = vmatprep.subr.bf16.mxu0 %v3538_v1  ;;  %3133 = vmatprep.subr.bf16.mxu1 %v3380_v7  ;;  %v3381_v8 = vld [vmem:[%s4119_s3] sm:$0xff]   ;;  %vm635_vm8 = vsmask.f32 7424  ;;  %v3541_v44 = vmov 0   ;;  %v3382_v46 = vld [vmem:[%s4119_s3 + $0x10] sm:$0xff]   ;;  %vm782_vm9 = vcmask 1046528  }
  0x1f   : > { %s476_s26 = scalar_lea.vmem %s4118_s0, %s3323_s20  ;;  %3134 = vmatpush3.bf16.msra.mxu1 %v3380_v7  ;;  %v587_v12 = vadd.s32 8, %v3700_v10  ;;  %v2836_v14 = vld [vmem:[%s4120_s2] ss:$0 sm:$0xff]  ;;  %v589_v21 = vadd.s32 24, %v3700_v10  ;;  %v654_v45 = vrot.slane %v3541_v44, 1  ;;  %v3383_v50 = vld [vmem:[%s4119_s3 + $0x18] sm:$0xff]  }
  0x20   : > { %v3376_v3 = vld [vmem:[%s476_s26] sm:$0xff]   ;;  %v3377_v4 = vld [vmem:[%s476_s26 + $0x8] sm:$0xff]   ;;  %v3378_v5 = vld [vmem:[%s476_s26 + $0x10] ss:$0 sps:$4 sm:$0x33]   ;;  %3139 = vmatprep.subr.bf16.mxu1 %v3381_v8  ;;  %s3703_s26 = sand.u32 1, %s3528_s30  }
  0x21   : > { %3120 = vmatpush3.bf16.msra.mxu0 %v3375_v2  ;;  %s4106_s27 = sshll.u32 %s3703_s26, 4  ;;  %vm592_vm2 = vcmp.ge.s32.totalorder %v587_v12, 10  ;;  %vm599_vm5 = vcmp.lt.s32.totalorder %v589_v21, 26  ;;  %v786_v56 = vrot.slane %v3540_v31, 1  ;;  %vm856_vm10 = vsmask.f32 6400 }
  0x22   : > { %3157 = vmatprep.subr.bf16.mxu0 %v3379_v6  ;;  %s3714_s20 = scalar_lea.vmem [#allocation2], %s4106_s27  ;;  %v867_v59 = vrot.slane %v3541_v44, 2  ;;  %v3386_v7 = vld [vmem:[%s4096_s5 + $0x18] sm:$0xff]   ;;  %v3388_v9 = vld [vmem:[%s4096_s5 + $0x10] sm:$0xff]   ;;  %vm1464_vm12 = vcmp.ge.s32.totalorder %v3700_v10, 6  ;;  %vm1894_vm14 = vcmp.ge.s32.totalorder %v3700_v10, 4 }
  0x23   : > { %s2719_s21 = sshll.u32 %s3714_s20, 4  ;;  %s3542_s18 = smov [#allocation2]   ;;  %s3994_s21 = int_to_ptr.vmem [resolvable:$true] %s2719_s21 }
  0x24   : > { %3122 = vmatmul.mubr.msk.bf16.vlgmr.msra.gmra.mxu0 %vm519_vm1, %v3376_v3  ;;  %v868_v62 = vor.u32 %v867_v59, %v654_v45  ;;  %s3446_s27 = scalar_lea.vmem %s3994_s21, 256 }
  0x25   : > { %3125 = vmatprep.mubr.msk.bf16.mxu0 %vm3539_vm0, %v3538_v1  ;;  %3158 = vmatpush3.bf16.msra.mxu0 %v3379_v6  ;;  %v3385_v6 = vld [vmem:[%s4096_s5] sm:$0xff]   ;;  %p3447_p11 = scmp.ne.s32.totalorder %s3994_s21, %s3446_s27 }
  0x27   : > { %p3448_p12 = pnand %p3447_p11, %p3659_p5 }
  0x29   : > { %p3449_p13 = pneg %p3448_p12 }
  0x2c   : > { %3126 = vmatmul.mubr.msk.bf16.gmra.mxu0 %vm519_vm1, %v3377_v4 }
  0x2d   : > { %3129 = vmatprep.mubr.msk.bf16.mxu0 %vm3539_vm0, %v3538_v1 }
  0x34   : > { %3130 = vmatmul.mubr.msk.bf16.gmra.mxu0 %vm519_vm1, %v3378_v5  ;;  %v3384_v5 = vld [vmem:[%s4096_s5 + $0x8] sm:$0xff]  }
  0x35   : > { %3171 = vmatprep.subr.bf16.mxu0 %v3384_v5 }
  0xe4   : > { %v563_v11 = vpop.f32.mrf.mxu0 }
  0xe5   : > { %v3776_v11 = vld [vmem:[%s4096_s5 + $0x28] sm:$0xff]  }
  0xe6   : > { %v3123_v13 = vpop.f32.mrf.mxu0 }
  0xe8   : > { %v566_v15 = vpop.f32.mrf.mxu0 }
  0xe9   : > { %v567_v16 = vadd.f32 %v2836_v14, %v566_v15 }
  0xea   : > { %v3124_v17 = vpop.f32.mrf.mxu0 }
  0xeb   : > { %v3710_v18 = vsel %vm592_vm2, %v567_v16, 0.0  ;;  %vm2318_vm2 = vcmp.ge.s32.totalorder %v3700_v10, 2 }
  0xec   : > { %622 = vst.msk [vmem:[%s3714_s20 - $0x2] sm:$0xfc] %vm621_vm3, %v3710_v18  ;;  %v627_v19 = vpack.c.bf16 %v3710_v18, %v3538_v1  ;;  %v571_v20 = vpop.f32.mrf.mxu0 }
  0xed   : > { %v3722_v22 = vadd.f32 %v2836_v14, %v571_v20 }
  0xee   : > { %v3127_v23 = vpop.f32.mrf.mxu0  ;;  %v639_v24 = vshll.u32 %v627_v19, 16  ;;  %v637_v33 = vshrl.u32 %v627_v19, 16  ;;  %v939_v34 = vrot.slane %v627_v19, 2  ;;  %v783_v49 = vrot.slane %v627_v19, 1 }
  0xef   : > { %624 = vst.msk [vmem:[%s3714_s20 + $0x6] sm:$0xff] %vm623_vm4, %v3722_v22 }
  0xf0   : > { %v574_v25 = vpop.f32.mrf.mxu0  ;;  %v641_v29 = vrot.slane %v639_v24, 1  ;;  %v857_v54 = vrot.slane %v637_v33, 1  ;;  %v858_v55 = vrot.slane %v639_v24, 2 }
  0xf1   : > { %v575_v26 = vadd.f32 %v2836_v14, %v574_v25 }
  0xf2   : > { %v3128_v27 = vpop.f32.mrf.mxu0  ;;  %v642_v37 = vor.u32 %v641_v29, %v637_v33  ;;  %v859_v58 = vor.u32 %v858_v55, %v857_v54 }
  0xf3   : > { %v3727_v28 = vsel %vm599_vm5, %v575_v26, 0.0 }
  0xf4   : > { %626 = vst.msk [vmem:[%s3714_s20 + $0xe] sm:$0x3] %vm625_vm6, %v3727_v28  ;;  %v628_v30 = vpack.c.bf16 %v3727_v28, %v3722_v22  ;;  %v579_v0 = vpop.f32.mrf.mxu0  ;;  %s3450_s20 = sshll.u32 %s3542_s18, 4  ;;  %s3451_s20 = int_to_ptr.vmem [resolvable:$false] %s3450_s20 }
  0xf5   : > { %s3452_s3 = scalar_lea.vmem %s3451_s20, 512  ;;  %p3453_p0 = scmp.lt.s32.totalorder %s3994_s21, %s3451_s20 }
  0xf6   : > { %v940_v35 = vrot.slane %v628_v30, 2  ;;  %v644_v36 = vshll.u32 %v628_v30, 16  ;;  %v648_v41 = vshrl.u32 %v628_v30, 16  ;;  %v784_v48 = vrot.slane %v628_v30, 1  ;;  %v3131_v2 = vpop.f32.mrf.mxu0  ;;  %p3454_p1 = scmp.lt.s32.totalorder %s3452_s3, %s3446_s27 }
  0xf8   : > { %v941_v38 = vsel %vm938_vm7, %v939_v34, %v940_v35  ;;  %v943_v39 = vsel %vm938_vm7, %v940_v35, %v942_v32  ;;  %v646_v40 = vrot.slane %v644_v36, 1  ;;  %v861_v51 = vrot.slane %v644_v36, 2  ;;  %v582_v3 = vpop.f32.mrf.mxu0  ;;  %v2868_v34 = vld [vmem:[%s4121_s4] ss:$0 sm:$0xff]  ;;  %p3455_p2 = por %p3454_p1, %p3453_p0 }
  0xf9   : > { %3159 = vmatprep.mubr.msk.bf16.mxu0 %vm623_vm4, %v941_v38  ;;  %v785_v52 = vsel %vm782_vm9, %v783_v49, %v784_v48  ;;  %v860_v53 = vrot.slane %v648_v41, 1  ;;  %v787_v60 = vsel %vm782_vm9, %v784_v48, %v786_v56 }
  0xfa   : > { %3160 = vmatmul.mubr.msk.bf16.vlgmr.msra.gmra.mxu0 %vm623_vm4, %v943_v39  ;;  %v647_v42 = vsel %vm635_vm8, %v642_v37, %v646_v40  ;;  %v650_v43 = vor.u32 %v648_v41, %v646_v40  ;;  %v3132_v4 = vpop.f32.mrf.mxu0  ;;  %p3456_p3 = pnand %p3455_p2, %p3449_p13 }
  0xfb   : > { %3135 = vmatprep.mubr.msk.bf16.mxu1 %vm623_vm4, %v647_v42  ;;  %v862_v57 = vor.u32 %v861_v51, %v860_v53  ;;  %3172 = vmatpush3.bf16.msra.mxu0 %v3384_v5 }
  0xfc   : > { %v655_v47 = vsel %vm635_vm8, %v650_v43, %v654_v45  ;;  %3173 = vmatprep.subr.bf16.mxu0 %v3385_v6 }
  0xfd   : > { %3136 = vmatmul.mubr.msk.bf16.vlgmr.msra.gmra.mxu1 %vm623_vm4, %v655_v47  ;;  %v863_v61 = vsel %vm856_vm10, %v859_v58, %v862_v57  ;;  %v869_v63 = vsel %vm856_vm10, %v862_v57, %v868_v62 }
  0xfe   : > { %3140 = vmatpush3.bf16.msra.mxu1 %v3381_v8  ;;  %3141 = vmatprep.mubr.msk.bf16.mxu1 %vm623_vm4, %v627_v19  ;;  %v3387_v8 = vld [vmem:[%s4096_s5 + $0x38] sm:$0xff]  }
  0xff   : > { %3145 = vmatprep.subr.bf16.mxu1 %v3382_v46  ;;  %3174 = vmatpush3.bf16.msra.mxu0 %v3385_v6  ;;  %v3391_v6 = vld [vmem:[%s4096_s5 + $0x20] sm:$0xff]  }
 0x100   : > { %3187 = vmatprep.subr.bf16.mxu0 %v3387_v8 }
 0x105   : > { %3142 = vmatmul.mubr.msk.bf16.vlgmr.msra.gmra.mxu1 %vm623_vm4, %v628_v30 }
 0x106   : > { %3146 = vmatpush3.bf16.msra.mxu1 %v3382_v46  ;;  %3147 = vmatprep.mubr.msk.bf16.mxu1 %vm623_vm4, %v785_v52  ;;  %v3389_v52 = vld [vmem:[%s4096_s5 + $0x30] sm:$0xff]  }
 0x107   : > { %3151 = vmatprep.subr.bf16.mxu1 %v3383_v50 }
 0x10d   : > { %3148 = vmatmul.mubr.msk.bf16.vlgmr.msra.gmra.mxu1 %vm623_vm4, %v787_v60 }
 0x10e   : > { %3152 = vmatpush3.bf16.msra.mxu1 %v3383_v50  ;;  %3153 = vmatprep.mubr.msk.bf16.mxu1 %vm623_vm4, %v863_v61 }
 0x10f   : > { %3163 = vmatprep.subr.bf16.mxu1 %v3386_v7 }
 0x115   : > { %3154 = vmatmul.mubr.msk.bf16.vlgmr.msra.gmra.mxu1 %vm623_vm4, %v869_v63 }
 0x116   : > { %3164 = vmatpush3.bf16.msra.mxu1 %v3386_v7 }
 0x117   : > { %3165 = vmatprep.subr.bf16.mxu1 %v3388_v9 }
 0x11a   : > { %3166 = vmatpush3.bf16.msra.mxu1 %v3388_v9 }
 0x11b   : > { %3179 = vmatprep.subr.bf16.mxu1 %v3776_v11 }
 0x1ba   : > { %v3161_v12 = vpop.f32.mrf.mxu0 }
 0x1bc   : > { %v990_v13 = vpop.f32.mrf.mxu0 }
 0x1bd   : > { %v3137_v14 = vpop.f32.mrf.mxu1  ;;  %v3393_v13 = vld [vmem:[%s4096_s5 + $0x40] sm:$0xff]  }
 0x1be   : > { %v3162_v15 = vpop.f32.mrf.mxu0 }
 0x1bf   : > { %v702_v16 = vpop.f32.mrf.mxu1  ;;  %v3395_v15 = vld [vmem:[%s4098_s7] sm:$0xff]  }
 0x1c0   : > { %v993_v43 = vpop.f32.mrf.mxu0  ;;  %v3396_v16 = vld [vmem:[%s4098_s7 + $0x18] sm:$0xff]  }
 0x1c1   : > { %v3138_v17 = vpop.f32.mrf.mxu1 }
 0x1c2   : > { %v3823_v17 = vld [vmem:[%s4098_s7 + $0x38] sm:$0xff]  }
 0x1c3   : > { %v705_v19 = vpop.f32.mrf.mxu1 }
 0x1c5   : > { %v3143_v20 = vpop.f32.mrf.mxu1 }
 0x1c6   : > { %v770_v29 = vadd.f32 %v3143_v20, %v3137_v14  ;;  %v3394_v14 = vld [vmem:[%s4098_s7 + $0x8] sm:$0xff]  }
 0x1c7   : > { %v761_v21 = vpop.f32.mrf.mxu1  ;;  %v3832_v20 = vld [vmem:[%s4098_s7 + $0x28] sm:$0xff]  }
 0x1c9   : > { %v3144_v23 = vpop.f32.mrf.mxu1 }
 0x1cb   : > { %v764_v24 = vpop.f32.mrf.mxu1 }
 0x1cc   : > { %v765_v36 = vadd.f32 %v764_v24, %v705_v19  ;;  %v3398_v19 = vld [vmem:[%s4098_s7 + $0x10] sm:$0xff]  }
 0x1cd   : > { %v3149_v25 = vpop.f32.mrf.mxu1 }
 0x1ce   : > { %v851_v31 = vadd.f32 %v3149_v25, %v770_v29 }
 0x1cf   : > { %v834_v26 = vpop.f32.mrf.mxu1 }
 0x1d1   : > { %v3150_v27 = vpop.f32.mrf.mxu1 }
 0x1d3   : > { %v837_v30 = vpop.f32.mrf.mxu1 }
 0x1d4   : > { %v850_v39 = vadd.f32 %v837_v30, %v765_v36 }
 0x1d5   : > { %v3155_v32 = vpop.f32.mrf.mxu1 }
 0x1d6   : > { %v933_v33 = vadd.f32 %v3155_v32, %v851_v31 }
 0x1d7   : > { %v916_v35 = vpop.f32.mrf.mxu1 }
 0x1d8   : > { %v1007_v37 = vadd.f32 %v3161_v12, %v933_v33 }
 0x1d9   : > { %v3156_v38 = vpop.f32.mrf.mxu1 }
 0x1da   : > { %v1018_v40 = vadd.f32 %v2868_v34, %v1007_v37 }
 0x1db   : > { %v919_v41 = vpop.f32.mrf.mxu1 }
 0x1dc   : > { %3424 = vtanh.f32 %v1018_v40  ;;  %v932_v42 = vadd.f32 %v919_v41, %v850_v39 }
 0x1de   : > { %v1006_v44 = vadd.f32 %v993_v43, %v932_v42 }
 0x1e0   : > { %v1017_v45 = vadd.f32 %v2868_v34, %v1006_v44 }
 0x1e2   : > { %3426 = vtanh.f32 %v1017_v45  ;;  %v2905_v45 = vld [vmem:[%s4097_s6] ss:$0 sm:$0xff] }
 0x1e9   : > { %v3425_v46 = vpop.eup %3424 }
 0x1ea   : > { %v1049_v47 = vpack.c.bf16 %v3538_v1, %v3425_v46 }
 0x1ec   : > { %v1067_v48 = vshll.u32 %v1049_v47, 16  ;;  %v1071_v49 = vshrl.u32 %v1049_v47, 16  ;;  %v1214_v5 = vrot.slane %v1049_v47, 1  ;;  %v1376_v12 = vrot.slane %v1049_v47, 2 }
 0x1ee   : > { %v1295_v55 = vrot.slane %v1071_v49, 1  ;;  %v1296_v56 = vrot.slane %v1067_v48, 2  ;;  %v1069_v58 = vrot.slane %v1067_v48, 1 }
 0x1ef   : > { %v3427_v50 = vpop.eup %3426 }
 0x1f0   : > { %v1048_v51 = vpack.c.bf16 %v3427_v50, %v3538_v1  ;;  %v1297_v63 = vor.u32 %v1296_v56, %v1295_v55  ;;  %v1073_v3 = vor.u32 %v1071_v49, %v1069_v58 }
 0x1f2   : > { %3175 = vmatprep.mubr.msk.bf16.mxu0 %vm519_vm1, %v1048_v51  ;;  %v1060_v53 = vshrl.u32 %v1048_v51, 16  ;;  %v1062_v54 = vshll.u32 %v1048_v51, 16  ;;  %v1213_v0 = vrot.slane %v1048_v51, 1  ;;  %v1375_v9 = vrot.slane %v1048_v51, 2 }
 0x1f3   : > { %3176 = vmatmul.mubr.msk.bf16.vlgmr.msra.gmra.mxu0 %vm519_vm1, %v1049_v47 }
 0x1f4   : > { %3188 = vmatpush3.bf16.msra.mxu0 %v3387_v8  ;;  %v1064_v57 = vrot.slane %v1062_v54, 1  ;;  %v1292_v59 = vrot.slane %v1060_v53, 1  ;;  %v1293_v60 = vrot.slane %v1062_v54, 2  ;;  %v1215_v7 = vsel %vm782_vm9, %v1213_v0, %v1214_v5  ;;  %v3392_v8 = vld [vmem:[%s4096_s5 + $0x48] sm:$0xff]  }
 0x1f5   : > { %3189 = vmatprep.subr.bf16.mxu0 %v3389_v52 }
 0x1f6   : > { %v1065_v61 = vor.u32 %v1064_v57, %v1060_v53  ;;  %v1294_v62 = vor.u32 %v1293_v60, %v1292_v59  ;;  %v3839_v59 = vadd.s32 16, %v3700_v10  ;;  %v3419_v10 = vld [vmem:[%s4102_s11 + $0x30] sm:$0xff]  }
 0x1f8   : > { %3190 = vmatpush3.bf16.msra.mxu0 %v3389_v52  ;;  %v1070_v2 = vsel %vm635_vm8, %v1065_v61, %v1069_v58  ;;  %v1298_v4 = vsel %vm856_vm10, %v1294_v62, %v1297_v63  ;;  %vm1470_vm11 = vcmp.lt.s32.totalorder %v3839_v59, 22  ;;  %vm1899_vm13 = vcmp.lt.s32.totalorder %v3839_v59, 20 }
 0x1f9   : > { %3167 = vmatprep.mubr.msk.bf16.mxu1 %vm519_vm1, %v1070_v2  ;;  %3191 = vmatprep.mubr.msk.bf16.mxu0 %vm519_vm1, %v1298_v4  ;;  %vm2323_vm15 = vcmp.lt.s32.totalorder %v3839_v59, 18 }
 0x1fa   : > { %3168 = vmatmul.mubr.msk.bf16.vlgmr.msra.gmra.mxu1 %vm519_vm1, %v1073_v3  ;;  %3203 = vmatprep.subr.bf16.mxu0 %v3396_v16 }
 0x1fb   : > { %3180 = vmatpush3.bf16.msra.mxu1 %v3776_v11  ;;  %3183 = vmatprep.mubr.msk.bf16.mxu1 %vm519_vm1, %v1215_v7  ;;  %v1377_v11 = vsel %vm938_vm7, %v1375_v9, %v1376_v12 }
 0x1fc   : > { %3192 = vmatmul.mubr.msk.bf16.vlgmr.msra.gmra.mxu0 %vm519_vm1, %v1297_v63  ;;  %3181 = vmatprep.subr.bf16.mxu1 %v3391_v6 }
 0x1fd   : > { %3204 = vmatpush3.bf16.msra.mxu0 %v3396_v16 }
 0x1fe   : > { %3205 = vmatprep.subr.bf16.mxu0 %v3398_v19 }
 0x1ff   : > { %3182 = vmatpush3.bf16.msra.mxu1 %v3391_v6  ;;  %v3399_v6 = vld [vmem:[%s4098_s7 + $0x30] sm:$0xff]  }
 0x200   : > { %3195 = vmatprep.subr.bf16.mxu1 %v3392_v8 }
 0x201   : > { %3206 = vmatpush3.bf16.msra.mxu0 %v3398_v19 }
 0x202   : > { %3184 = vmatmul.mubr.msk.bf16.vlgmr.msra.gmra.mxu1 %vm519_vm1, %v1214_v5  ;;  %3219 = vmatprep.subr.bf16.mxu0 %v3832_v20 }
 0x203   : > { %3196 = vmatpush3.bf16.msra.mxu1 %v3392_v8  ;;  %3199 = vmatprep.mubr.msk.bf16.mxu1 %vm519_vm1, %v1377_v11 }
 0x204   : > { %3197 = vmatprep.subr.bf16.mxu1 %v3393_v13 }
 0x207   : > { %3198 = vmatpush3.bf16.msra.mxu1 %v3393_v13 }
 0x208   : > { %3211 = vmatprep.subr.bf16.mxu1 %v3394_v14 }
 0x20a   : > { %3200 = vmatmul.mubr.msk.bf16.vlgmr.msra.gmra.mxu1 %vm519_vm1, %v1376_v12 }
 0x20b   : > { %3212 = vmatpush3.bf16.msra.mxu1 %v3394_v14 }
 0x20c   : > { %3213 = vmatprep.subr.bf16.mxu1 %v3395_v15 }
 0x20f   : > { %3214 = vmatpush3.bf16.msra.mxu1 %v3395_v15 }
 0x210   : > { %3227 = vmatprep.subr.bf16.mxu1 %v3823_v17 }
 0x2b3   : > { %v3177_v21 = vpop.f32.mrf.mxu0 }
 0x2b5   : > { %v1191_v23 = vpop.f32.mrf.mxu0 }
 0x2b7   : > { %v3178_v24 = vpop.f32.mrf.mxu0 }
 0x2b9   : > { %v1194_v25 = vpop.f32.mrf.mxu0 }
 0x2ba   : > { %v3169_v26 = vpop.f32.mrf.mxu1 }
 0x2bb   : > { %v1200_v35 = vadd.f32 %v3177_v21, %v3169_v26 }
 0x2bc   : > { %v3193_v27 = vpop.f32.mrf.mxu0  ;;  %v1126_v29 = vpop.f32.mrf.mxu1 }
 0x2bd   : > { %v1192_v37 = vadd.f32 %v1191_v23, %v1126_v29 }
 0x2be   : > { %v1351_v30 = vpop.f32.mrf.mxu0  ;;  %v3170_v31 = vpop.f32.mrf.mxu1 }
 0x2c0   : > { %v3194_v32 = vpop.f32.mrf.mxu0  ;;  %v1129_v33 = vpop.f32.mrf.mxu1 }
 0x2c1   : > { %v1195_v42 = vadd.f32 %v1194_v25, %v1129_v33  ;;  %v3403_v33 = vld [vmem:[%s4098_s7 + $0x40] sm:$0xff]  }
 0x2c2   : > { %v3185_v34 = vpop.f32.mrf.mxu1  ;;  %v1354_v52 = vpop.f32.mrf.mxu0 }
 0x2c3   : > { %v1285_v38 = vadd.f32 %v3185_v34, %v1200_v35  ;;  %v3404_v34 = vld [vmem:[%s4100_s9 + $0x8] sm:$0xff]   ;;  %v3405_v35 = vld [vmem:[%s4100_s9] sm:$0xff]  }
 0x2c4   : > { %v1268_v36 = vpop.f32.mrf.mxu1 }
 0x2c5   : > { %v1283_v40 = vadd.f32 %v1268_v36, %v1192_v37  ;;  %v1368_v43 = vadd.f32 %v3193_v27, %v1285_v38  ;;  %v3406_v36 = vld [vmem:[%s4100_s9 + $0x18] sm:$0xff]   ;;  %v3408_v38 = vld [vmem:[%s4100_s9 + $0x10] sm:$0xff]  }
 0x2c6   : > { %v3186_v39 = vpop.f32.mrf.mxu1  ;;  %v3884_v37 = vld [vmem:[%s4100_s9 + $0x38] sm:$0xff]  }
 0x2c7   : > { %v1366_v48 = vadd.f32 %v1351_v30, %v1283_v40  ;;  %v3402_v30 = vld [vmem:[%s4098_s7 + $0x48] sm:$0xff]  }
 0x2c8   : > { %v1271_v41 = vpop.f32.mrf.mxu1  ;;  %v3893_v39 = vld [vmem:[%s4100_s9 + $0x28] sm:$0xff]  }
 0x2c9   : > { %v1284_v46 = vadd.f32 %v1271_v41, %v1195_v42 }
 0x2ca   : > { %v3201_v44 = vpop.f32.mrf.mxu1 }
 0x2cb   : > { %v1447_v47 = vadd.f32 %v3201_v44, %v1368_v43  ;;  %v1367_v55 = vadd.f32 %v1354_v52, %v1284_v46 }
 0x2cc   : > { %v1430_v49 = vpop.f32.mrf.mxu1 }
 0x2cd   : > { %v1458_v50 = vadd.f32 %v2905_v45, %v1447_v47  ;;  %v1445_v51 = vadd.f32 %v1430_v49, %v1366_v48 }
 0x2ce   : > { %v3202_v53 = vpop.f32.mrf.mxu1 }
 0x2cf   : > { %3428 = vtanh.f32 %v1458_v50  ;;  %v1456_v54 = vadd.f32 %v2905_v45, %v1445_v51 }
 0x2d0   : > { %v1433_v56 = vpop.f32.mrf.mxu1 }
 0x2d1   : > { %v1446_v57 = vadd.f32 %v1433_v56, %v1367_v55  ;;  %3430 = vtanh.f32 %v1456_v54 }
 0x2d3   : > { %v1457_v58 = vadd.f32 %v2905_v45, %v1446_v57 }
 0x2d5   : > { %3432 = vtanh.f32 %v1457_v58 }
 0x2dc   : > { %v3429_v60 = vpop.eup %3428 }
 0x2dd   : > { %v1486_v61 = vsel %vm1470_vm11, %v3429_v60, 0.0 }
 0x2de   : > { %v1489_v62 = vpack.c.bf16 %v3538_v1, %v1486_v61  ;;  %v3431_v63 = vpop.eup %3430 }
 0x2df   : > { %v1484_v4 = vsel %vm1464_vm12, %v3431_v63, 0.0  ;;  %v2942_v63 = vld [vmem:[%s4099_s8] ss:$0 sm:$0xff] }
 0x2e0   : > { %v1507_v0 = vshll.u32 %v1489_v62, 16  ;;  %v1511_v2 = vshrl.u32 %v1489_v62, 16  ;;  %v1652_v27 = vrot.slane %v1489_v62, 1  ;;  %v1810_v32 = vrot.slane %v1489_v62, 2 }
 0x2e2   : > { %v3433_v3 = vpop.eup %3432  ;;  %v1731_v9 = vrot.slane %v1511_v2, 1  ;;  %v1732_v12 = vrot.slane %v1507_v0, 2  ;;  %v1509_v11 = vrot.slane %v1507_v0, 1 }
 0x2e3   : > { %v1488_v5 = vpack.c.bf16 %v3433_v3, %v1484_v4 }
 0x2e4   : > { %v1733_v21 = vor.u32 %v1732_v12, %v1731_v9  ;;  %v1513_v25 = vor.u32 %v1511_v2, %v1509_v11 }
 0x2e5   : > { %3215 = vmatprep.mubr.msk.bf16.mxu1 %vm519_vm1, %v1488_v5  ;;  %v1500_v7 = vshrl.u32 %v1488_v5, 16  ;;  %v1502_v8 = vshll.u32 %v1488_v5, 16  ;;  %v1651_v23 = vrot.slane %v1488_v5, 1  ;;  %v1809_v31 = vrot.slane %v1488_v5, 2 }
 0x2e6   : > { %3216 = vmatmul.mubr.msk.bf16.vlgmr.msra.gmra.mxu1 %vm519_vm1, %v1489_v62 }
 0x2e7   : > { %3228 = vmatpush3.bf16.msra.mxu1 %v3823_v17  ;;  %v1504_v13 = vrot.slane %v1502_v8, 1  ;;  %v1728_v14 = vrot.slane %v1500_v7, 1  ;;  %v1729_v15 = vrot.slane %v1502_v8, 2  ;;  %v3401_v17 = vld [vmem:[%s4098_s7 + $0x20] sm:$0xff]   ;;  %v1653_v29 = vsel %vm782_vm9, %v1651_v23, %v1652_v27 }
 0x2e8   : > { %3229 = vmatprep.subr.bf16.mxu1 %v3399_v6 }
 0x2e9   : > { %v1505_v16 = vor.u32 %v1504_v13, %v1500_v7  ;;  %v1730_v19 = vor.u32 %v1729_v15, %v1728_v14 }
 0x2eb   : > { %3230 = vmatpush3.bf16.msra.mxu1 %v3399_v6  ;;  %v1510_v24 = vsel %vm635_vm8, %v1505_v16, %v1509_v11  ;;  %v1734_v26 = vsel %vm856_vm10, %v1730_v19, %v1733_v21 }
 0x2ec   : > { %3207 = vmatprep.mubr.msk.bf16.mxu0 %vm519_vm1, %v1510_v24  ;;  %3231 = vmatprep.mubr.msk.bf16.mxu1 %vm519_vm1, %v1734_v26 }
 0x2ed   : > { %3208 = vmatmul.mubr.msk.bf16.vlgmr.msra.gmra.mxu0 %vm519_vm1, %v1513_v25  ;;  %3243 = vmatprep.subr.bf16.mxu1 %v3406_v36 }
 0x2ee   : > { %3220 = vmatpush3.bf16.msra.mxu0 %v3832_v20  ;;  %3223 = vmatprep.mubr.msk.bf16.mxu0 %vm519_vm1, %v1653_v29  ;;  %v1811_v20 = vsel %vm938_vm7, %v1809_v31, %v1810_v32 }
 0x2ef   : > { %3232 = vmatmul.mubr.msk.bf16.vlgmr.msra.gmra.mxu1 %vm519_vm1, %v1733_v21  ;;  %3221 = vmatprep.subr.bf16.mxu0 %v3401_v17 }
 0x2f0   : > { %3244 = vmatpush3.bf16.msra.mxu1 %v3406_v36 }
 0x2f1   : > { %3245 = vmatprep.subr.bf16.mxu1 %v3408_v38 }
 0x2f2   : > { %3222 = vmatpush3.bf16.msra.mxu0 %v3401_v17  ;;  %v3409_v17 = vld [vmem:[%s4100_s9 + $0x30] sm:$0xff]  }
 0x2f3   : > { %3235 = vmatprep.subr.bf16.mxu0 %v3402_v30 }
 0x2f4   : > { %3246 = vmatpush3.bf16.msra.mxu1 %v3408_v38 }
 0x2f5   : > { %3224 = vmatmul.mubr.msk.bf16.vlgmr.msra.gmra.mxu0 %vm519_vm1, %v1652_v27  ;;  %3259 = vmatprep.subr.bf16.mxu1 %v3893_v39 }
 0x2f6   : > { %3236 = vmatpush3.bf16.msra.mxu0 %v3402_v30  ;;  %3239 = vmatprep.mubr.msk.bf16.mxu0 %vm519_vm1, %v1811_v20 }
 0x2f7   : > { %3237 = vmatprep.subr.bf16.mxu0 %v3403_v33 }
 0x2fa   : > { %3238 = vmatpush3.bf16.msra.mxu0 %v3403_v33 }
 0x2fb   : > { %3251 = vmatprep.subr.bf16.mxu0 %v3404_v34 }
 0x2fd   : > { %3240 = vmatmul.mubr.msk.bf16.vlgmr.msra.gmra.mxu0 %vm519_vm1, %v1810_v32 }
 0x2fe   : > { %3252 = vmatpush3.bf16.msra.mxu0 %v3404_v34 }
 0x2ff   : > { %3253 = vmatprep.subr.bf16.mxu0 %v3405_v35 }
 0x302   : > { %3254 = vmatpush3.bf16.msra.mxu0 %v3405_v35 }
 0x303   : > { %3267 = vmatprep.subr.bf16.mxu0 %v3884_v37 }
 0x3a6   : > { %v3217_v40 = vpop.f32.mrf.mxu1 }
 0x3a8   : > { %v1630_v41 = vpop.f32.mrf.mxu1 }
 0x3aa   : > { %v3218_v42 = vpop.f32.mrf.mxu1 }
 0x3ac   : > { %v1633_v43 = vpop.f32.mrf.mxu1 }
 0x3ad   : > { %v3209_v44 = vpop.f32.mrf.mxu0 }
 0x3ae   : > { %v1639_v52 = vadd.f32 %v3217_v40, %v3209_v44 }
 0x3af   : > { %v3233_v45 = vpop.f32.mrf.mxu1  ;;  %v1566_v46 = vpop.f32.mrf.mxu0 }
 0x3b0   : > { %v1631_v54 = vadd.f32 %v1630_v41, %v1566_v46 }
 0x3b1   : > { %v1787_v47 = vpop.f32.mrf.mxu1  ;;  %v3210_v48 = vpop.f32.mrf.mxu0 }
 0x3b3   : > { %v3234_v49 = vpop.f32.mrf.mxu1  ;;  %v1569_v50 = vpop.f32.mrf.mxu0 }
 0x3b4   : > { %v1634_v60 = vadd.f32 %v1633_v43, %v1569_v50 }
 0x3b5   : > { %v3225_v51 = vpop.f32.mrf.mxu0  ;;  %v1790_v7 = vpop.f32.mrf.mxu1 }
 0x3b6   : > { %v1722_v55 = vadd.f32 %v3225_v51, %v1639_v52  ;;  %v3414_v51 = vld [vmem:[%s4102_s11 + $0x8] sm:$0xff]   ;;  %v3416_v52 = vld [vmem:[%s4102_s11 + $0x18] sm:$0xff]  }
 0x3b7   : > { %v1706_v53 = vpop.f32.mrf.mxu0 }
 0x3b8   : > { %v1720_v57 = vadd.f32 %v1706_v53, %v1631_v54  ;;  %v1803_v61 = vadd.f32 %v3233_v45, %v1722_v55  ;;  %v3415_v53 = vld [vmem:[%s4102_s11] sm:$0xff]   ;;  %v3418_v54 = vld [vmem:[%s4102_s11 + $0x10] sm:$0xff]  }
 0x3b9   : > { %v3226_v56 = vpop.f32.mrf.mxu0 }
 0x3ba   : > { %v1801_v3 = vadd.f32 %v1787_v47, %v1720_v57  ;;  %v3412_v47 = vld [vmem:[%s4100_s9 + $0x48] sm:$0xff]  }
 0x3bb   : > { %v1709_v58 = vpop.f32.mrf.mxu0 }
 0x3bc   : > { %v1721_v0 = vadd.f32 %v1709_v58, %v1634_v60 }
 0x3bd   : > { %v3241_v62 = vpop.f32.mrf.mxu0 }
 0x3be   : > { %v1880_v2 = vadd.f32 %v3241_v62, %v1803_v61  ;;  %v1802_v12 = vadd.f32 %v1790_v7, %v1721_v0 }
 0x3bf   : > { %v1864_v4 = vpop.f32.mrf.mxu0 }
 0x3c0   : > { %v1890_v5 = vadd.f32 %v2942_v63, %v1880_v2  ;;  %v1878_v6 = vadd.f32 %v1864_v4, %v1801_v3 }
 0x3c1   : > { %v3242_v8 = vpop.f32.mrf.mxu0 }
 0x3c2   : > { %3434 = vtanh.f32 %v1890_v5  ;;  %v1888_v9 = vadd.f32 %v2942_v63, %v1878_v6 }
 0x3c3   : > { %v1867_v13 = vpop.f32.mrf.mxu0 }
 0x3c4   : > { %v1879_v11 = vadd.f32 %v1867_v13, %v1802_v12  ;;  %3436 = vtanh.f32 %v1888_v9 }
 0x3c6   : > { %v1889_v14 = vadd.f32 %v2942_v63, %v1879_v11 }
 0x3c8   : > { %3438 = vtanh.f32 %v1889_v14 }
 0x3cf   : > { %v3435_v15 = vpop.eup %3434 }
 0x3d0   : > { %v1911_v16 = vsel %vm1899_vm13, %v3435_v15, 0.0 }
 0x3d1   : > { %v1913_v19 = vpack.c.bf16 %v1911_v16, %v1911_v16  ;;  %v3437_v21 = vpop.eup %3436  ;;  %v2979_v16 = vld [vmem:[%s4101_s10] ss:$0 sm:$0xff] }
 0x3d2   : > { %v1909_v26 = vsel %vm1894_vm14, %v3437_v21, 0.0 }
 0x3d3   : > { %v1931_v23 = vshll.u32 %v1913_v19, 16  ;;  %v1935_v24 = vshrl.u32 %v1913_v19, 16  ;;  %v2076_v45 = vrot.slane %v1913_v19, 1  ;;  %v2234_v49 = vrot.slane %v1913_v19, 2 }
 0x3d5   : > { %v3439_v25 = vpop.eup %3438  ;;  %v2155_v31 = vrot.slane %v1935_v24, 1  ;;  %v2156_v32 = vrot.slane %v1931_v23, 2  ;;  %v1933_v20 = vrot.slane %v1931_v23, 1 }
 0x3d6   : > { %v1912_v27 = vpack.c.bf16 %v3439_v25, %v1909_v26 }
 0x3d7   : > { %v2157_v40 = vor.u32 %v2156_v32, %v2155_v31  ;;  %v1937_v43 = vor.u32 %v1935_v24, %v1933_v20 }
 0x3d8   : > { %3255 = vmatprep.mubr.msk.bf16.mxu0 %vm519_vm1, %v1912_v27  ;;  %v1924_v29 = vshrl.u32 %v1912_v27, 16  ;;  %v1926_v30 = vshll.u32 %v1912_v27, 16  ;;  %v2075_v41 = vrot.slane %v1912_v27, 1  ;;  %v2233_v48 = vrot.slane %v1912_v27, 2 }
 0x3d9   : > { %3256 = vmatmul.mubr.msk.bf16.vlgmr.msra.gmra.mxu0 %vm519_vm1, %v1913_v19 }
 0x3da   : > { %3268 = vmatpush3.bf16.msra.mxu0 %v3884_v37  ;;  %v1928_v33 = vrot.slane %v1926_v30, 1  ;;  %v2152_v34 = vrot.slane %v1924_v29, 1  ;;  %v2153_v35 = vrot.slane %v1926_v30, 2  ;;  %v3411_v37 = vld [vmem:[%s4100_s9 + $0x20] sm:$0xff]   ;;  %v2077_v46 = vsel %vm782_vm9, %v2075_v41, %v2076_v45 }
 0x3db   : > { %3269 = vmatprep.subr.bf16.mxu0 %v3409_v17  ;;  %v2235_v50 = vsel %vm938_vm7, %v2233_v48, %v2234_v49 }
 0x3dc   : > { %v1929_v36 = vor.u32 %v1928_v33, %v1924_v29  ;;  %v2154_v38 = vor.u32 %v2153_v35, %v2152_v34 }
 0x3de   : > { %3270 = vmatpush3.bf16.msra.mxu0 %v3409_v17  ;;  %v1934_v42 = vsel %vm635_vm8, %v1929_v36, %v1933_v20  ;;  %v2158_v44 = vsel %vm856_vm10, %v2154_v38, %v2157_v40 }
 0x3df   : > { %3247 = vmatprep.mubr.msk.bf16.mxu1 %vm519_vm1, %v1934_v42  ;;  %3271 = vmatprep.mubr.msk.bf16.mxu0 %vm519_vm1, %v2158_v44 }
 0x3e0   : > { %3248 = vmatmul.mubr.msk.bf16.vlgmr.msra.gmra.mxu1 %vm519_vm1, %v1937_v43  ;;  %3283 = vmatprep.subr.bf16.mxu0 %v3538_v1  ;;  %v3417_v43 = vld [vmem:[%s4102_s11 + $0x38] sm:$0xff]  }
 0x3e1   : > { %3260 = vmatpush3.bf16.msra.mxu1 %v3893_v39  ;;  %3263 = vmatprep.mubr.msk.bf16.mxu1 %vm519_vm1, %v2077_v46  ;;  %v3413_v39 = vld [vmem:[%s4100_s9 + $0x40] sm:$0xff]  }
 0x3e2   : > { %3272 = vmatmul.mubr.msk.bf16.vlgmr.msra.gmra.mxu0 %vm519_vm1, %v2157_v40  ;;  %3261 = vmatprep.subr.bf16.mxu1 %v3411_v37 }
 0x3e3   : > { %3287 = vmatprep.mubr.msk.bf16.mxu0 %vm3539_vm0, %v3538_v1  ;;  %3284 = vmatpush3.bf16.msra.mxu0 %v3416_v52 }
 0x3e4   : > { %3285 = vmatprep.subr.bf16.mxu0 %v3538_v1 }
 0x3e5   : > { %3262 = vmatpush3.bf16.msra.mxu1 %v3411_v37 }
 0x3e6   : > { %3275 = vmatprep.subr.bf16.mxu1 %v3412_v47 }
 0x3e7   : > { %3286 = vmatpush3.bf16.msra.mxu0 %v3418_v54 }
 0x3e8   : > { %3264 = vmatmul.mubr.msk.bf16.vlgmr.msra.gmra.mxu1 %vm519_vm1, %v2076_v45  ;;  %3299 = vmatprep.subr.bf16.mxu0 %v3538_v1 }
 0x3e9   : > { %3276 = vmatpush3.bf16.msra.mxu1 %v3412_v47  ;;  %3279 = vmatprep.mubr.msk.bf16.mxu1 %vm519_vm1, %v2235_v50 }
 0x3ea   : > { %3277 = vmatprep.subr.bf16.mxu1 %v3413_v39 }
 0x3ed   : > { %3278 = vmatpush3.bf16.msra.mxu1 %v3413_v39 }
 0x3ee   : > { %3291 = vmatprep.subr.bf16.mxu1 %v3538_v1 }
 0x3f0   : > { %3280 = vmatmul.mubr.msk.bf16.vlgmr.msra.gmra.mxu1 %vm519_vm1, %v2234_v49 }
 0x3f1   : > { %3295 = vmatprep.mubr.msk.bf16.mxu1 %vm3539_vm0, %v3538_v1  ;;  %3292 = vmatpush3.bf16.msra.mxu1 %v3414_v51  ;;  %v3420_v51 = vld [vmem:[%s4102_s11 + $0x28] sm:$0xff]  }
 0x3f2   : > { %3293 = vmatprep.subr.bf16.mxu1 %v3538_v1 }
 0x3f5   : > { %3294 = vmatpush3.bf16.msra.mxu1 %v3415_v53 }
 0x3f6   : > { %3307 = vmatprep.subr.bf16.mxu1 %v3538_v1 }
 0x499   : > { %v3257_v55 = vpop.f32.mrf.mxu0 }
 0x49b   : > { %v2054_v56 = vpop.f32.mrf.mxu0 }
 0x49d   : > { %v3258_v57 = vpop.f32.mrf.mxu0 }
 0x49f   : > { %v2057_v58 = vpop.f32.mrf.mxu0 }
 0x4a0   : > { %v3249_v60 = vpop.f32.mrf.mxu1 }
 0x4a1   : > { %v2063_v5 = vadd.f32 %v3257_v55, %v3249_v60  ;;  %v3422_v60 = vld [vmem:[%s4102_s11 + $0x48] sm:$0xff]  }
 0x4a2   : > { %v3273_v61 = vpop.f32.mrf.mxu0  ;;  %v1990_v62 = vpop.f32.mrf.mxu1 }
 0x4a3   : > { %v2055_v7 = vadd.f32 %v2054_v56, %v1990_v62  ;;  %v3421_v56 = vld [vmem:[%s4102_s11 + $0x20] sm:$0xff]  }
 0x4a4   : > { %v2211_v63 = vpop.f32.mrf.mxu0  ;;  %v3250_v0 = vpop.f32.mrf.mxu1  ;;  %v3423_v62 = vld [vmem:[%s4102_s11 + $0x40] sm:$0xff]  }
 0x4a6   : > { %v3274_v2 = vpop.f32.mrf.mxu0  ;;  %v1993_v3 = vpop.f32.mrf.mxu1 }
 0x4a7   : > { %v2058_v11 = vadd.f32 %v2057_v58, %v1993_v3 }
 0x4a8   : > { %v3265_v4 = vpop.f32.mrf.mxu1  ;;  %v2214_v27 = vpop.f32.mrf.mxu0 }
 0x4a9   : > { %v2146_v8 = vadd.f32 %v3265_v4, %v2063_v5 }
 0x4aa   : > { %v2130_v6 = vpop.f32.mrf.mxu1 }
 0x4ab   : > { %v2144_v12 = vadd.f32 %v2130_v6, %v2055_v7  ;;  %v2227_v14 = vadd.f32 %v3273_v61, %v2146_v8 }
 0x4ac   : > { %v3266_v9 = vpop.f32.mrf.mxu1 }
 0x4ad   : > { %v2225_v23 = vadd.f32 %v2211_v63, %v2144_v12 }
 0x4ae   : > { %v2133_v13 = vpop.f32.mrf.mxu1 }
 0x4af   : > { %v2145_v19 = vadd.f32 %v2133_v13, %v2058_v11 }
 0x4b0   : > { %v3281_v15 = vpop.f32.mrf.mxu1 }
 0x4b1   : > { %v2304_v21 = vadd.f32 %v3281_v15, %v2227_v14  ;;  %v2226_v30 = vadd.f32 %v2214_v27, %v2145_v19 }
 0x4b2   : > { %v2288_v24 = vpop.f32.mrf.mxu1 }
 0x4b3   : > { %v2314_v25 = vadd.f32 %v2979_v16, %v2304_v21  ;;  %v2302_v26 = vadd.f32 %v2288_v24, %v2225_v23 }
 0x4b4   : > { %v3282_v17 = vpop.f32.mrf.mxu1 }
 0x4b5   : > { %3440 = vtanh.f32 %v2314_v25  ;;  %v2312_v29 = vadd.f32 %v2979_v16, %v2302_v26 }
 0x4b6   : > { %v2291_v31 = vpop.f32.mrf.mxu1 }
 0x4b7   : > { %v2303_v32 = vadd.f32 %v2291_v31, %v2226_v30  ;;  %3442 = vtanh.f32 %v2312_v29 }
 0x4b9   : > { %v2313_v33 = vadd.f32 %v2979_v16, %v2303_v32 }
 0x4bb   : > { %3444 = vtanh.f32 %v2313_v33 }
 0x4c2   : > { %v3441_v20 = vpop.eup %3440 }
 0x4c3   : > { %v2335_v34 = vsel %vm2323_vm15, %v3441_v20, 0.0 }
 0x4c4   : > { %v2337_v35 = vpack.c.bf16 %v2335_v34, %v2335_v34  ;;  %v3443_v36 = vpop.eup %3442 }
 0x4c5   : > { %v2333_v42 = vsel %vm2318_vm2, %v3443_v36, 0.0 }
 0x4c6   : > { %v2355_v38 = vshll.u32 %v2337_v35, 16  ;;  %v2546_v40 = vshrl.u32 %v2337_v35, 16  ;;  %v2478_v58 = vrot.slane %v2337_v35, 1  ;;  %v2616_v0 = vrot.slane %v2337_v35, 2 }
 0x4c8   : > { %v3445_v41 = vpop.eup %3444  ;;  %v2548_v59 = vrot.slane %v2546_v40, 1  ;;  %v2549_v46 = vrot.slane %v2355_v38, 2  ;;  %v2357_v50 = vrot.slane %v2355_v38, 1 }
 0x4c9   : > { %v2336_v44 = vpack.c.bf16 %v3445_v41, %v2333_v42 }
 0x4ca   : > { %v2550_v53 = vor.u32 %v2549_v46, %v2548_v59 }
 0x4cb   : > { %3296 = vmatmul.mubr.msk.bf16.vlgmr.msra.gmra.mxu1 %vm519_vm1, %v2336_v44  ;;  %v2348_v45 = vshrl.u32 %v2336_v44, 16  ;;  %v2350_v37 = vshll.u32 %v2336_v44, 16  ;;  %v2477_v57 = vrot.slane %v2336_v44, 1  ;;  %v2615_v63 = vrot.slane %v2336_v44, 2 }
 0x4cc   : > { %3308 = vmatpush3.bf16.msra.mxu1 %v3417_v43  ;;  %3311 = vmatprep.mubr.msk.bf16.mxu1 %vm3539_vm0, %v3538_v1 }
 0x4cd   : > { %3309 = vmatprep.subr.bf16.mxu1 %v3538_v1  ;;  %v2352_v47 = vrot.slane %v2350_v37, 1  ;;  %v2543_v48 = vrot.slane %v2348_v45, 1  ;;  %v2544_v49 = vrot.slane %v2350_v37, 2  ;;  %v2479_v61 = vsel %vm782_vm9, %v2477_v57, %v2478_v58 }
 0x4ce   : > { %v2617_v2 = vsel %vm938_vm7, %v2615_v63, %v2616_v0 }
 0x4cf   : > { %v2353_v39 = vor.u32 %v2352_v47, %v2348_v45  ;;  %v2545_v52 = vor.u32 %v2544_v49, %v2543_v48 }
 0x4d0   : > { %3310 = vmatpush3.bf16.msra.mxu1 %v3419_v10 }
 0x4d1   : > { %v2358_v54 = vsel %vm635_vm8, %v2353_v39, %v2357_v50  ;;  %v2551_v55 = vsel %vm856_vm10, %v2545_v52, %v2550_v53 }
 0x4d2   : > { %3288 = vmatmul.mubr.msk.bf16.vlgmr.msra.gmra.mxu0 %vm519_vm1, %v2358_v54 }
 0x4d3   : > { %3300 = vmatpush3.bf16.msra.mxu0 %v3420_v51  ;;  %3312 = vmatmul.mubr.msk.bf16.vlgmr.msra.gmra.mxu1 %vm519_vm1, %v2551_v55 }
 0x4d4   : > { %3301 = vmatprep.subr.bf16.mxu0 %v3538_v1  ;;  %3303 = vmatprep.mubr.msk.bf16.mxu0 %vm3539_vm0, %v3538_v1 }
 0x4d7   : > { %3302 = vmatpush3.bf16.msra.mxu0 %v3421_v56 }
 0x4d8   : > { %3315 = vmatprep.subr.bf16.mxu0 %v3538_v1 }
 0x4da   : > { %3304 = vmatmul.mubr.msk.bf16.vlgmr.msra.gmra.mxu0 %vm519_vm1, %v2479_v61 }
 0x4db   : > { %3316 = vmatpush3.bf16.msra.mxu0 %v3422_v60  ;;  %3319 = vmatprep.mubr.msk.bf16.mxu0 %vm3539_vm0, %v3538_v1 }
 0x4dc   : > { %3317 = vmatprep.subr.bf16.mxu0 %v3538_v1 }
 0x4df   : > { %3318 = vmatpush3.bf16.msra.mxu0 %v3423_v62 }
 0x4e2   : > { %3320 = vmatmul.mubr.msk.bf16.vlgmr.msra.gmra.mxu0 %vm519_vm1, %v2617_v2 }
 0x4e3   : > { %3459 = shalt.err (!%p3456_p3)
}
 0x4e4   : > { %s3460_s28 = scalar_lea.hbm %s4002_s1, 256  ;;  %s3464_s18 = scalar_lea.hbm %s4104_s13, 512 }
 0x4e5   : > { %p3461_p4 = scmp.ne.s32.totalorder %s4002_s1, %s3460_s28  ;;  %p3465_p9 = scmp.lt.s32.totalorder %s4002_s1, %s4104_s13 }
 0x4e6   : > { %p3466_p10 = scmp.lt.s32.totalorder %s3464_s18, %s3460_s28 }
 0x4e7   : > { %p3462_p7 = pnand %p3461_p4, %p3659_p5 }
 0x4e8   : > { %p3467_p11 = por %p3466_p10, %p3465_p9 }
 0x4e9   : > { %p3463_p8 = pneg %p3462_p7 }
 0x4eb   : > { %p3468_p12 = pnand %p3467_p11, %p3463_p8 }
 0x4ed   : > { %3471 = shalt.err (!%p3468_p12)
}
 0x4ee   : > { %s4108_s3 = smov 128   ;;  %s4109_s27 = smov 8   ;;  %v3011_v29 = vld [vmem:[%s4103_s12] ss:$0 sm:$0xff]  ;;  %vm2687_vm0 = vcmask 1041408  }
 0x4ef   : > { %s4122_s25 = scalar_lea.sflag [#allocation3], %s3703_s26  ;;  %s4124_s28 = sshll.u32 %s3642_s17, 8 }
 0x4f0   : > { %3324 = dma.vmem_to_hbm [thread:$0]  (%p3659_p5), %s3994_s21, 256, %s4002_s1, %s4122_s25, %s4108_s3, %s4108_s3, %s4109_s27  }
 0x4f1   : > { %s4123_s1 = sshll.u32 %s3703_s26, 4  ;;  %s4046_s25 = scalar_lea.hbm %s4105_s14, %s4124_s28 }
 0x4f2   : > { %s471_s2 = scalar_lea.vmem [#allocation4], %s4123_s1  ;;  %s2706_s4 = scalar_lea.sflag [#allocation5], %s3703_s26 }
 0x4f3   : > { %s2735_s20 = sshll.u32 %s471_s2, 4  ;;  %s3545_s1 = smov [#allocation4]   ;;  %s4038_s20 = int_to_ptr.vmem [resolvable:$true] %s2735_s20 }
 0x4f4   : > { %s3472_s21 = scalar_lea.vmem %s4038_s20, 256  ;;  %s3476_s3 = sshll.u32 %s3545_s1, 4  ;;  %s3477_s3 = int_to_ptr.vmem [resolvable:$false] %s3476_s3 }
 0x4f5   : > { %p3473_p13 = scmp.ne.s32.totalorder %s4038_s20, %s3472_s21  ;;  %s3478_s27 = scalar_lea.vmem %s3477_s3, 512 }
 0x4f6   : > { %p3479_p2 = scmp.lt.s32.totalorder %s4038_s20, %s3477_s3  ;;  %p3480_p3 = scmp.lt.s32.totalorder %s3478_s27, %s3472_s21 }
 0x4f7   : > { %p3474_p0 = pnand %p3473_p13, %p3659_p5 }
 0x4f8   : > { %p3481_p4 = por %p3480_p3, %p3479_p2 }
 0x4f9   : > { %p3475_p1 = pneg %p3474_p0 }
 0x4fb   : > { %p3482_p7 = pnand %p3481_p4, %p3475_p1 }
 0x58b   : > { %v2463_v1 = vpop.f32.mrf.mxu1 }
 0x58d   : > { %v3297_v3 = vpop.f32.mrf.mxu1 }
 0x58f   : > { %v2466_v4 = vpop.f32.mrf.mxu1 }
 0x591   : > { %v3298_v5 = vpop.f32.mrf.mxu1 }
 0x592   : > { %v2408_v6 = vpop.f32.mrf.mxu0 }
 0x593   : > { %v2601_v7 = vpop.f32.mrf.mxu1  ;;  %v2464_v16 = vadd.f32 %v2463_v1, %v2408_v6 }
 0x594   : > { %v3289_v8 = vpop.f32.mrf.mxu0 }
 0x595   : > { %v3313_v9 = vpop.f32.mrf.mxu1 }
 0x596   : > { %v2411_v12 = vpop.f32.mrf.mxu0 }
 0x597   : > { %v2604_v13 = vpop.f32.mrf.mxu1  ;;  %v2467_v24 = vadd.f32 %v2466_v4, %v2411_v12 }
 0x598   : > { %v3290_v11 = vpop.f32.mrf.mxu0 }
 0x599   : > { %v3314_v14 = vpop.f32.mrf.mxu1 }
 0x59a   : > { %v2529_v15 = vpop.f32.mrf.mxu0 }
 0x59b   : > { %v2536_v21 = vadd.f32 %v2529_v15, %v2464_v16 }
 0x59c   : > { %v3305_v19 = vpop.f32.mrf.mxu0 }
 0x59d   : > { %v2608_v27 = vadd.f32 %v2601_v7, %v2536_v21 }
 0x59e   : > { %v2532_v23 = vpop.f32.mrf.mxu0 }
 0x59f   : > { %v2537_v26 = vadd.f32 %v2532_v23, %v2467_v24 }
 0x5a0   : > { %v3306_v25 = vpop.f32.mrf.mxu0 }
 0x5a1   : > { %v2609_v33 = vadd.f32 %v2604_v13, %v2537_v26 }
 0x5a2   : > { %v2667_v17 = vpop.f32.mrf.mxu0 }
 0x5a3   : > { %v2674_v30 = vadd.f32 %v2667_v17, %v2608_v27 }
 0x5a4   : > { %v3321_v31 = vpop.f32.mrf.mxu0 }
 0x5a5   : > { %v2683_v32 = vadd.f32 %v3011_v29, %v2674_v30 }
 0x5a6   : > { %v2670_v20 = vpop.f32.mrf.mxu0 }
 0x5a7   : > { %v2688_v34 = vrot.slane %v2683_v32, 6  ;;  %v2675_v35 = vadd.f32 %v2670_v20, %v2609_v33 }
 0x5a8   : > { %v3322_v36 = vpop.f32.mrf.mxu0 }
 0x5a9   : > { %v2694_v38 = vadd.f32 %v2688_v34, %v3710_v18  ;;  %v2684_v40 = vadd.f32 %v3011_v29, %v2675_v35 }
 0x5ab   : > { %2697 = vst.msk [vmem:[%s471_s2 - $0x2] sm:$0xfc] %vm621_vm3, %v2694_v38  ;;  %v2689_v41 = vrot.slane %v2684_v40, 6 }
 0x5ad   : > { %v2690_v42 = vsel %vm2687_vm0, %v2688_v34, %v2689_v41  ;;  %v2696_v43 = vadd.f32 %v2689_v41, %v3727_v28 }
 0x5ae   : > { %v2695_v44 = vadd.f32 %v2690_v42, %v3722_v22 }
 0x5af   : > { %2699 = vst.msk [vmem:[%s471_s2 + $0xe] sm:$0x3] %vm625_vm6, %v2696_v43 }
 0x5b0   : > { %2698 = vst.msk [vmem:[%s471_s2 + $0x6] sm:$0xff] %vm623_vm4, %v2695_v44 }
 0x5b1   : > { %3485 = shalt.err (!%p3482_p7)
}
 0x5b2   : > { %s3486_s17 = scalar_lea.hbm %s4046_s25, 256  ;;  %s3490_s28 = scalar_lea.hbm %s4105_s14, 512 }
 0x5b3   : > { %p3487_p8 = scmp.ne.s32.totalorder %s4046_s25, %s3486_s17  ;;  %p3491_p11 = scmp.lt.s32.totalorder %s4046_s25, %s4105_s14 }
 0x5b4   : > { %p3492_p12 = scmp.lt.s32.totalorder %s3490_s28, %s3486_s17 }
 0x5b5   : > { %p3488_p9 = pnand %p3487_p8, %p3659_p5 }
 0x5b6   : > { %p3493_p13 = por %p3492_p12, %p3491_p11 }
 0x5b7   : > { %p3489_p10 = pneg %p3488_p9 }
 0x5b9   : > { %p3494_p0 = pnand %p3493_p13, %p3489_p10 }
 0x5bb   : > { %3497 = shalt.err (!%p3494_p0)
}
 0x5bc   : > { %s4125_s3 = smov 8   ;;  %s4126_s27 = smov 128  }
 0x5bd   : > { %3325 = dma.vmem_to_hbm [thread:$0]  (%p3659_p5), %s4038_s20, 256, %s4046_s25, %s2706_s4, %s4126_s27, %s4126_s27, %s4125_s3  }
 0x5be PF: > { %p3335_p1 = scmp.ge.s32.totalorder %s3536_s16, 2  ;;  %s2750_s21 = sand.u32 1, %s3524_s29  }
 0x5bf   : > { %s2751_s1 = scalar_lea.sflag [#allocation3], %s2750_s21 }
 0x5c0   : > { %p3329_p2 = pnand %p3335_p1, %p3663_p6 }
 0x5c2   : > { %p3330_p3 = pneg %p3329_p2 }
 0x5c4   : > { %3515 = dma.done.wait (%p3330_p3), %s2751_s1, 256  }
 0x5c5   : > { %3517 = vsyncadd (%p3330_p3), %s2751_s1, 4294967040  ;;  %s2760_s17 = scalar_lea.sflag [#allocation5], %s2750_s21 }
 0x5c6   : > { %3519 = dma.done.wait (%p3330_p3), %s2760_s17, 256  }
 0x5c7   : > { %3521 = vsyncadd (%p3330_p3), %s2760_s17, 4294967040  ;;  %p28_p5 = scmp.ge.s32.totalorder %s3646_s19, 4   ;;  %s4127_s29 = smov %s3528_s30 }
 0x5c8   : > { %s4128_s30 = smov %s3532_s15  ;;  %s4129_s15 = smov %s3657_s22 }
 0x5c9   : > { %s4130_s16 = smov %s3646_s19  ;;  %30 = sbr.rel (!%p28_p5) target bundleno = 11 (0xb), region = 144 }
 0x5ce   :  { %2765 = vsyncpa [#allocation3], 1 }
 0x5cf   :  { %2767 = vsyncpa [#allocation3 + $0x1], 1 }
 0x5d0   :  { %2768 = vsyncpa [#allocation5], 1 }
 0x5d1   :  { %2770 = vsyncpa [#allocation5 + $0x1], 1 }

</bundles_post_ra>
